<compile_context>
chip_gen: v7x
topology: tpu7x:2x2x1
jax: 0.10.0
libtpu: 0.0.40
codegen_flags: <defaults>
</compile_context>

<pallas_src>
import functools

import numpy as np
import jax
import jax.numpy as jnp
from jax.experimental import pallas as pl
from jax.experimental.pallas import tpu as pltpu

LANE = 128
# bf16 MXU operands; accumulation and all elementwise math stay f32.
MATMUL_DTYPE = jnp.bfloat16


def _round_up(x, m):
    return (x + m - 1) // m * m


# -----------------------------------------------------------------------------
# Pallas kernel: fused BasicBlock forward for one batch element
# -----------------------------------------------------------------------------
def _basic_block_kernel(*refs, H, W, Cpi, Cpo, head_pad, has_downsample):
    if has_downsample:
        (x_ref, w1_ref, s1_ref, b1_ref, w2_ref, s2_ref, b2_ref,
         dsw_ref, dss_ref, dsb_ref, out_ref, y_scr) = refs
    else:
        (x_ref, w1_ref, s1_ref, b1_ref, w2_ref, s2_ref, b2_ref,
         out_ref, y_scr) = refs

    Wp = W + 2                 # padded width == flat-row stride
    m1 = H * Wp - 2            # conv1 rows: exactly covers all valid positions
    m2 = H * Wp                # conv2 / residual / output rows (padded-width layout)

    # ---- conv1: 9 accumulating MXU dots over contiguous flat-row taps --------
    # Output row r maps to padded position n = (Wp+1) + r; tap (ky,kx) reads
    # x_pad_flat[r + ky*Wp + kx] -- a single contiguous slice per tap.
    acc1 = jnp.zeros((m1, Cpo), jnp.float32)
    for t in range(9):
        ky, kx = divmod(t, 3)
        off = ky * Wp + kx
        lhs = x_ref[0, off:off + m1, :].astype(MATMUL_DTYPE)
        acc1 = acc1 + jnp.dot(lhs, w1_ref[t], preferred_element_type=jnp.float32)

    # ---- bn1 + relu, then zero the junk rows (they land on conv2's halo) -----
    y1 = jnp.maximum(acc1 * s1_ref[...] + b1_ref[...], 0.0)
    col = (jax.lax.broadcasted_iota(jnp.int32, (m1, 1), 0) + 1) % Wp
    y1 = jnp.where(jnp.logical_and(col >= 1, col <= W), y1, 0.0)

    # ---- stage into the padded scratch ----------------------------------------
    # One aligned contiguous interior store + two thin contiguous zero stores.
    # Done every step (not only step 0) so it stays correct when the "parallel"
    # batch axis is sharded across cores.
    base = head_pad + Wp + 1                      # multiple of 8 by construction
    y_scr[0:base, :] = jnp.zeros((base, Cpo), jnp.float32)
    y_scr[base:base + m1, :] = y1
    tail = base + m1
    y_scr[tail:tail + Wp + 3, :] = jnp.zeros((Wp + 3, Cpo), jnp.float32)

    # ---- conv2: 9 accumulating MXU dots over contiguous flat-row taps --------
    acc2 = jnp.zeros((m2, Cpo), jnp.float32)
    for t in range(9):
        ky, kx = divmod(t, 3)
        off = head_pad + ky * Wp + kx
        lhs = y_scr[off:off + m2, :].astype(MATMUL_DTYPE)
        acc2 = acc2 + jnp.dot(lhs, w2_ref[t], preferred_element_type=jnp.float32)

    # ---- bn2 -------------------------------------------------------------------
    y2 = acc2 * s2_ref[...] + b2_ref[...]

    # ---- identity / 1x1 downsample (same contiguous flat-row slice of x) ------
    x_id = x_ref[0, Wp + 1:Wp + 1 + m2, :]
    if has_downsample:
        idn = jnp.dot(x_id.astype(MATMUL_DTYPE), dsw_ref[...],
                      preferred_element_type=jnp.float32)
        idn = idn * dss_ref[...] + dsb_ref[...]
    else:
        idn = x_id

    # ---- residual add + relu, one full-extent lane-dense unmasked store -------
    out = jnp.maximum(y2 + idn, 0.0)
    out_ref[...] = out.reshape(1, m2, Cpo).astype(out_ref.dtype)


# -----------------------------------------------------------------------------
# Wrapper: layout glue, BN folding, lane padding, pallas_call setup
# -----------------------------------------------------------------------------
def fold_bn(gamma, beta, mean, var, eps=1e-5):
    scale = gamma / jnp.sqrt(var + eps)
    bias = beta - mean * scale
    return scale, bias


def _pad_last(a, target):
    pad = target - a.shape[-1]
    if pad == 0:
        return a
    return jnp.pad(a, [(0, 0)] * (a.ndim - 1) + [(0, pad)])


def _pick_vmem_limit_bytes():
    """Generation-aware VMEM budget: larger on 128 MiB v5e/v6e, conservative on
    64 MiB-per-core v7x (leave headroom below physical capacity)."""
    cap = None
    try:
        cap = int(pltpu.get_tpu_info().vmem_capacity_bytes)
    except Exception:
        cap = None
    if not cap:
        cap = 64 * 1024 * 1024
    return max(32 * 1024 * 1024, min(cap * 3 // 4, 96 * 1024 * 1024))


def _grid_invariant_spec(block_shape, index_map, single_buffer):
    """BlockSpec for an operand whose index_map is constant across the grid:
    request single buffering (no point double-buffering data that never
    changes). Falls back gracefully if pipeline_mode is unavailable."""
    if single_buffer and hasattr(pl, "Buffered"):
        try:
            return pl.BlockSpec(block_shape, index_map,
                                pipeline_mode=pl.Buffered(1))
        except TypeError:
            pass
    return pl.BlockSpec(block_shape, index_map)


def basic_block_forward(x_nchw, params):
    """x_nchw: (N, Cin, H, W) float32 — PyTorch layout at the boundary."""
    N, Cin, H, W = x_nchw.shape
    Cout = params["w1"].shape[0]            # PyTorch weight layout (Cout, Cin, 3, 3)
    has_downsample = Cin != Cout
    # TODO(synk): stride-2 spatial-downsample BasicBlock variant is not part of
    # this module's spec and is not implemented.

    Cpi = _round_up(Cin, LANE)
    Cpo = _round_up(Cout, LANE)
    # TODO(synk): for Cin < 128 stages, conv1/downsample K is still padded to a
    # full 128 lanes per tap; a packed round_up(9*Cin, 128) small-Cin path would
    # remove that wasted MXU K work and weight DMA.

    Wp = W + 2
    s_in = (H + 2) * Wp
    m2 = H * Wp
    head_pad = (-(Wp + 1)) % 8   # aligns the conv1 interior store to a sublane tile

    # layout glue: NCHW -> NHWC, 1-px spatial halo, lane-dense channel pad, flatten
    x_nhwc = jnp.transpose(x_nchw, (0, 2, 3, 1)).astype(jnp.float32)
    x_pad = jnp.pad(x_nhwc, ((0, 0), (1, 1), (1, 1), (0, Cpi - Cin)))
    x_flat = x_pad.reshape(N, s_in, Cpi)

    # conv weights -> (9, Cin_p, Cout_p) bf16 (one MXU rhs per tap)
    def conv3x3_weights(w_oihw, cin_p, cout_p):
        w = jnp.transpose(w_oihw, (2, 3, 1, 0))          # (3, 3, Cin, Cout)
        w = jnp.pad(w, ((0, 0), (0, 0),
                        (0, cin_p - w.shape[2]), (0, cout_p - w.shape[3])))
        return w.reshape(9, cin_p, cout_p).astype(MATMUL_DTYPE)

    w1 = conv3x3_weights(params["w1"], Cpi, Cpo)
    w2 = conv3x3_weights(params["w2"], Cpo, Cpo)

    s1, b1 = fold_bn(params["bn1_g"], params["bn1_b"], params["bn1_m"], params["bn1_v"])
    s2, b2 = fold_bn(params["bn2_g"], params["bn2_b"], params["bn2_m"], params["bn2_v"])
    s1 = _pad_last(s1, Cpo).reshape(1, Cpo)
    b1 = _pad_last(b1, Cpo).reshape(1, Cpo)
    s2 = _pad_last(s2, Cpo).reshape(1, Cpo)
    b2 = _pad_last(b2, Cpo).reshape(1, Cpo)

    args = [x_flat, w1, s1, b1, w2, s2, b2]
    if has_downsample:
        dsw = jnp.transpose(params["ds_w"], (2, 3, 1, 0)).reshape(Cin, Cout)
        dsw = jnp.pad(dsw, ((0, Cpi - Cin), (0, Cpo - Cout))).astype(MATMUL_DTYPE)
        dss, dsb = fold_bn(params["ds_g"], params["ds_b"], params["ds_m"], params["ds_v"])
        dss = _pad_last(dss, Cpo).reshape(1, Cpo)
        dsb = _pad_last(dsb, Cpo).reshape(1, Cpo)
        args += [dsw, dss, dsb]

    kernel = functools.partial(
        _basic_block_kernel, H=H, W=W, Cpi=Cpi, Cpo=Cpo,
        head_pad=head_pad, has_downsample=has_downsample)

    flops = 2 * N * H * W * (9 * Cin * Cout + 9 * Cout * Cout
                             + (Cin * Cout if has_downsample else 0))
    bytes_accessed = int(sum(int(a.size) * a.dtype.itemsize for a in args)
                         + N * m2 * Cpo * 4)
    cost = pl.CostEstimate(flops=int(flops), transcendentals=0,
                           bytes_accessed=bytes_accessed)

    batch_in_map = lambda n: (n, 0, 0)
    out_map = lambda n: (n, 0, 0)
    rep2 = lambda n: (0, 0)
    rep3 = lambda n: (0, 0, 0)

    def run(single_buffer):
        gi = functools.partial(_grid_invariant_spec, single_buffer=single_buffer)
        in_specs = [
            pl.BlockSpec((1, s_in, Cpi), batch_in_map),
            gi((9, Cpi, Cpo), rep3),
            gi((1, Cpo), rep2),
            gi((1, Cpo), rep2),
            gi((9, Cpo, Cpo), rep3),
            gi((1, Cpo), rep2),
            gi((1, Cpo), rep2),
        ]
        if has_downsample:
            in_specs += [gi((Cpi, Cpo), rep2), gi((1, Cpo), rep2), gi((1, Cpo), rep2)]
        return pl.pallas_call(
            kernel,
            out_shape=jax.ShapeDtypeStruct((N, m2, Cpo), jnp.float32),
            grid_spec=pltpu.PrefetchScalarGridSpec(
                num_scalar_prefetch=0,
                grid=(N,),
                in_specs=in_specs,
                out_specs=pl.BlockSpec((1, m2, Cpo), out_map),
                scratch_shapes=[
                    pltpu.VMEM((head_pad + s_in + 2, Cpo), jnp.float32)],
            ),
            compiler_params=pltpu.CompilerParams(
                dimension_semantics=("parallel",),
                vmem_limit_bytes=_pick_vmem_limit_bytes(),
            ),
            cost_estimate=cost,
        )(*args)

    # TODO(synk): add a second "parallel" grid axis over H row-tiles (halo'd
    # blocks) so megacore parts shard spatially and VMEM stays bounded at
    # production (56x56, 128+ channel) shapes.
    try:
        out_flat = run(single_buffer=True)
    except Exception:        # older JAX: pipeline_mode=Buffered(1) unsupported
        out_flat = run(single_buffer=False)

    # drop padded-width junk columns + channel padding, back to PyTorch NCHW
    out = out_flat.reshape(N, H, Wp, Cpo)[:, :, :W, :Cout]
    return jnp.transpose(out, (0, 3, 1, 2))


# -----------------------------------------------------------------------------
# Pure-JAX reference (for correctness check)
# -----------------------------------------------------------------------------
def reference_forward(x_nchw, params):
    def conv(x, w_oihw, pad):
        w_hwio = jnp.transpose(w_oihw, (2, 3, 1, 0))
        return jax.lax.conv_general_dilated(
            x, w_hwio, window_strides=(1, 1),
            padding=((pad, pad), (pad, pad)),
            dimension_numbers=("NHWC", "HWIO", "NHWC"))

    x = jnp.transpose(x_nchw, (0, 2, 3, 1)).astype(jnp.float32)
    Cin = x.shape[-1]
    Cout = params["w1"].shape[0]

    s1, b1 = fold_bn(params["bn1_g"], params["bn1_b"], params["bn1_m"], params["bn1_v"])
    s2, b2 = fold_bn(params["bn2_g"], params["bn2_b"], params["bn2_m"], params["bn2_v"])

    out = jnp.maximum(conv(x, params["w1"], 1) * s1 + b1, 0.0)
    out = conv(out, params["w2"], 1) * s2 + b2

    if Cin != Cout:
        dss, dsb = fold_bn(params["ds_g"], params["ds_b"], params["ds_m"], params["ds_v"])
        identity = conv(x, params["ds_w"], 0) * dss + dsb
    else:
        identity = x

    out = jnp.maximum(out + identity, 0.0)
    return jnp.transpose(out, (0, 3, 1, 2))


# -----------------------------------------------------------------------------
# Main
# -----------------------------------------------------------------------------
def make_params(key, cin, cout):
    ks = jax.random.split(key, 16)
    p = {
        "w1": jax.random.normal(ks[0], (cout, cin, 3, 3), jnp.float32) * 0.2,
        "w2": jax.random.normal(ks[1], (cout, cout, 3, 3), jnp.float32) * 0.2,
        "bn1_g": 1.0 + 0.1 * jax.random.normal(ks[2], (cout,), jnp.float32),
        "bn1_b": 0.1 * jax.random.normal(ks[3], (cout,), jnp.float32),
        "bn1_m": 0.1 * jax.random.normal(ks[4], (cout,), jnp.float32),
        "bn1_v": 1.0 + 0.1 * jax.random.uniform(ks[5], (cout,), jnp.float32),
        "bn2_g": 1.0 + 0.1 * jax.random.normal(ks[6], (cout,), jnp.float32),
        "bn2_b": 0.1 * jax.random.normal(ks[7], (cout,), jnp.float32),
        "bn2_m": 0.1 * jax.random.normal(ks[8], (cout,), jnp.float32),
        "bn2_v": 1.0 + 0.1 * jax.random.uniform(ks[9], (cout,), jnp.float32),
    }
    if cin != cout:
        p.update({
            "ds_w": jax.random.normal(ks[10], (cout, cin, 1, 1), jnp.float32) * 0.2,
            "ds_g": 1.0 + 0.1 * jax.random.normal(ks[11], (cout,), jnp.float32),
            "ds_b": 0.1 * jax.random.normal(ks[12], (cout,), jnp.float32),
            "ds_m": 0.1 * jax.random.normal(ks[13], (cout,), jnp.float32),
            "ds_v": 1.0 + 0.1 * jax.random.uniform(ks[14], (cout,), jnp.float32),
        })
    return p


if __name__ == "__main__":
    key = jax.random.PRNGKey(0)
    k1, k2, k3, k4 = jax.random.split(key, 4)

    # bf16 MXU operands vs an f32 reference -> tolerance loosened slightly.
    RTOL, ATOL = 2e-2, 5e-2

    # 1) downsample path (in_ch != out_ch)
    N, Cin, Cout, H, W = 2, 4, 8, 16, 16
    params = make_params(k1, Cin, Cout)
    x = jax.random.normal(k2, (N, Cin, H, W), jnp.float32)
    out = jax.block_until_ready(basic_block_forward(x, params))
    ref = jax.block_until_ready(reference_forward(x, params))
    assert out.shape == (N, Cout, H, W), out.shape
    np.testing.assert_allclose(np.asarray(out), np.asarray(ref), rtol=RTOL, atol=ATOL)

    # 2) identity path (in_ch == out_ch)
    params_id = make_params(k3, Cout, Cout)
    x2 = jax.random.normal(k4, (N, Cout, H, W), jnp.float32)
    out2 = jax.block_until_ready(basic_block_forward(x2, params_id))
    ref2 = jax.block_until_ready(reference_forward(x2, params_id))
    np.testing.assert_allclose(np.asarray(out2), np.asarray(ref2), rtol=RTOL, atol=ATOL)

    print("KERNEL_OK")
</pallas_src>

<mosaic_0001>
module attributes {stable_mosaic.version = 11 : i64} {
  func.func @_basic_block_kernel(%arg0: i32, %arg1: memref<1x324x128xf32, #tpu.memory_space<vmem>>, %arg2: memref<9x128x128xbf16, #tpu.memory_space<vmem>>, %arg3: memref<1x128xf32, #tpu.memory_space<vmem>>, %arg4: memref<1x128xf32, #tpu.memory_space<vmem>>, %arg5: memref<9x128x128xbf16, #tpu.memory_space<vmem>>, %arg6: memref<1x128xf32, #tpu.memory_space<vmem>>, %arg7: memref<1x128xf32, #tpu.memory_space<vmem>>, %arg8: memref<128x128xbf16, #tpu.memory_space<vmem>>, %arg9: memref<1x128xf32, #tpu.memory_space<vmem>>, %arg10: memref<1x128xf32, #tpu.memory_space<vmem>>, %arg11: memref<1x288x128xf32, #tpu.memory_space<vmem>>, %arg12: memref<331x128xf32, #tpu.memory_space<vmem>>) attributes {dimension_semantics = [#tpu.dimension_semantics<parallel>], iteration_bounds = array<i64: 2>, scalar_prefetch = 0 : i64, scratch_operands = 1 : i64, tpu.core_type = #tpu.core_type<tc>, window_params = [{transform_indices = @transform_0, window_bounds = array<i64: 1, 324, 128>}, {pipeline_mode = #tpu.pipeline_mode<synchronous>, transform_indices = @transform_1, window_bounds = array<i64: 9, 128, 128>}, {pipeline_mode = #tpu.pipeline_mode<synchronous>, transform_indices = @transform_2, window_bounds = array<i64: 1, 128>}, {pipeline_mode = #tpu.pipeline_mode<synchronous>, transform_indices = @transform_3, window_bounds = array<i64: 1, 128>}, {pipeline_mode = #tpu.pipeline_mode<synchronous>, transform_indices = @transform_4, window_bounds = array<i64: 9, 128, 128>}, {pipeline_mode = #tpu.pipeline_mode<synchronous>, transform_indices = @transform_5, window_bounds = array<i64: 1, 128>}, {pipeline_mode = #tpu.pipeline_mode<synchronous>, transform_indices = @transform_6, window_bounds = array<i64: 1, 128>}, {pipeline_mode = #tpu.pipeline_mode<synchronous>, transform_indices = @transform_7, window_bounds = array<i64: 128, 128>}, {pipeline_mode = #tpu.pipeline_mode<synchronous>, transform_indices = @transform_8, window_bounds = array<i64: 1, 128>}, {pipeline_mode = #tpu.pipeline_mode<synchronous>, transform_indices = @transform_9, window_bounds = array<i64: 1, 128>}, {transform_indices = @transform_10, window_bounds = array<i64: 1, 288, 128>}]} {
    %cst = arith.constant 0.000000e+00 : f32
    %0 = vector.broadcast %cst : f32 to vector<286x128xf32>
    %c0 = arith.constant 0 : index
    %c0_0 = arith.constant 0 : index
    %c0_1 = arith.constant 0 : index
    %1 = vector.load %arg1[%c0, %c0_0, %c0_1] : memref<1x324x128xf32, #tpu.memory_space<vmem>>, vector<1x286x128xf32>
    %2 = vector.shape_cast %1 : vector<1x286x128xf32> to vector<286x128xf32>
    %3 = arith.truncf %2 : vector<286x128xf32> to vector<286x128xbf16>
    %c0_2 = arith.constant 0 : index
    %c0_3 = arith.constant 0 : index
    %c0_4 = arith.constant 0 : index
    %4 = vector.load %arg2[%c0_2, %c0_3, %c0_4] : memref<9x128x128xbf16, #tpu.memory_space<vmem>>, vector<1x128x128xbf16>
    %5 = vector.shape_cast %4 : vector<1x128x128xbf16> to vector<128x128xbf16>
    %cst_5 = arith.constant dense<0.000000e+00> : vector<286x128xf32>
    %6 = tpu.matmul %3, %5, %cst_5 {dimension_numbers = #tpu.dot_dimension_numbers<[1], [0], [0], [1], [0, 0, 1, 1], [], []>} : vector<286x128xbf16>, vector<128x128xbf16>, vector<286x128xf32> -> vector<286x128xf32>
    %7 = arith.addf %0, %6 : vector<286x128xf32>
    %c0_6 = arith.constant 0 : index
    %c1 = arith.constant 1 : index
    %c0_7 = arith.constant 0 : index
    %8 = vector.load %arg1[%c0_6, %c1, %c0_7] : memref<1x324x128xf32, #tpu.memory_space<vmem>>, vector<1x286x128xf32>
    %9 = vector.shape_cast %8 : vector<1x286x128xf32> to vector<286x128xf32>
    %10 = arith.truncf %9 : vector<286x128xf32> to vector<286x128xbf16>
    %c1_8 = arith.constant 1 : index
    %c0_9 = arith.constant 0 : index
    %c0_10 = arith.constant 0 : index
    %11 = vector.load %arg2[%c1_8, %c0_9, %c0_10] : memref<9x128x128xbf16, #tpu.memory_space<vmem>>, vector<1x128x128xbf16>
    %12 = vector.shape_cast %11 : vector<1x128x128xbf16> to vector<128x128xbf16>
    %cst_11 = arith.constant dense<0.000000e+00> : vector<286x128xf32>
    %13 = tpu.matmul %10, %12, %cst_11 {dimension_numbers = #tpu.dot_dimension_numbers<[1], [0], [0], [1], [0, 0, 1, 1], [], []>} : vector<286x128xbf16>, vector<128x128xbf16>, vector<286x128xf32> -> vector<286x128xf32>
    %14 = arith.addf %7, %13 : vector<286x128xf32>
    %c0_12 = arith.constant 0 : index
    %c2 = arith.constant 2 : index
    %c0_13 = arith.constant 0 : index
    %15 = vector.load %arg1[%c0_12, %c2, %c0_13] : memref<1x324x128xf32, #tpu.memory_space<vmem>>, vector<1x286x128xf32>
    %16 = vector.shape_cast %15 : vector<1x286x128xf32> to vector<286x128xf32>
    %17 = arith.truncf %16 : vector<286x128xf32> to vector<286x128xbf16>
    %c2_14 = arith.constant 2 : index
    %c0_15 = arith.constant 0 : index
    %c0_16 = arith.constant 0 : index
    %18 = vector.load %arg2[%c2_14, %c0_15, %c0_16] : memref<9x128x128xbf16, #tpu.memory_space<vmem>>, vector<1x128x128xbf16>
    %19 = vector.shape_cast %18 : vector<1x128x128xbf16> to vector<128x128xbf16>
    %cst_17 = arith.constant dense<0.000000e+00> : vector<286x128xf32>
    %20 = tpu.matmul %17, %19, %cst_17 {dimension_numbers = #tpu.dot_dimension_numbers<[1], [0], [0], [1], [0, 0, 1, 1], [], []>} : vector<286x128xbf16>, vector<128x128xbf16>, vector<286x128xf32> -> vector<286x128xf32>
    %21 = arith.addf %14, %20 : vector<286x128xf32>
    %c0_18 = arith.constant 0 : index
    %c18 = arith.constant 18 : index
    %c0_19 = arith.constant 0 : index
    %22 = vector.load %arg1[%c0_18, %c18, %c0_19] : memref<1x324x128xf32, #tpu.memory_space<vmem>>, vector<1x286x128xf32>
    %23 = vector.shape_cast %22 : vector<1x286x128xf32> to vector<286x128xf32>
    %24 = arith.truncf %23 : vector<286x128xf32> to vector<286x128xbf16>
    %c3 = arith.constant 3 : index
    %c0_20 = arith.constant 0 : index
    %c0_21 = arith.constant 0 : index
    %25 = vector.load %arg2[%c3, %c0_20, %c0_21] : memref<9x128x128xbf16, #tpu.memory_space<vmem>>, vector<1x128x128xbf16>
    %26 = vector.shape_cast %25 : vector<1x128x128xbf16> to vector<128x128xbf16>
    %cst_22 = arith.constant dense<0.000000e+00> : vector<286x128xf32>
    %27 = tpu.matmul %24, %26, %cst_22 {dimension_numbers = #tpu.dot_dimension_numbers<[1], [0], [0], [1], [0, 0, 1, 1], [], []>} : vector<286x128xbf16>, vector<128x128xbf16>, vector<286x128xf32> -> vector<286x128xf32>
    %28 = arith.addf %21, %27 : vector<286x128xf32>
    %c0_23 = arith.constant 0 : index
    %c19 = arith.constant 19 : index
    %c0_24 = arith.constant 0 : index
    %29 = vector.load %arg1[%c0_23, %c19, %c0_24] : memref<1x324x128xf32, #tpu.memory_space<vmem>>, vector<1x286x128xf32>
    %30 = vector.shape_cast %29 : vector<1x286x128xf32> to vector<286x128xf32>
    %31 = arith.truncf %30 : vector<286x128xf32> to vector<286x128xbf16>
    %c4 = arith.constant 4 : index
    %c0_25 = arith.constant 0 : index
    %c0_26 = arith.constant 0 : index
    %32 = vector.load %arg2[%c4, %c0_25, %c0_26] : memref<9x128x128xbf16, #tpu.memory_space<vmem>>, vector<1x128x128xbf16>
    %33 = vector.shape_cast %32 : vector<1x128x128xbf16> to vector<128x128xbf16>
    %cst_27 = arith.constant dense<0.000000e+00> : vector<286x128xf32>
    %34 = tpu.matmul %31, %33, %cst_27 {dimension_numbers = #tpu.dot_dimension_numbers<[1], [0], [0], [1], [0, 0, 1, 1], [], []>} : vector<286x128xbf16>, vector<128x128xbf16>, vector<286x128xf32> -> vector<286x128xf32>
    %35 = arith.addf %28, %34 : vector<286x128xf32>
    %c0_28 = arith.constant 0 : index
    %c20 = arith.constant 20 : index
    %c0_29 = arith.constant 0 : index
    %36 = vector.load %arg1[%c0_28, %c20, %c0_29] : memref<1x324x128xf32, #tpu.memory_space<vmem>>, vector<1x286x128xf32>
    %37 = vector.shape_cast %36 : vector<1x286x128xf32> to vector<286x128xf32>
    %38 = arith.truncf %37 : vector<286x128xf32> to vector<286x128xbf16>
    %c5 = arith.constant 5 : index
    %c0_30 = arith.constant 0 : index
    %c0_31 = arith.constant 0 : index
    %39 = vector.load %arg2[%c5, %c0_30, %c0_31] : memref<9x128x128xbf16, #tpu.memory_space<vmem>>, vector<1x128x128xbf16>
    %40 = vector.shape_cast %39 : vector<1x128x128xbf16> to vector<128x128xbf16>
    %cst_32 = arith.constant dense<0.000000e+00> : vector<286x128xf32>
    %41 = tpu.matmul %38, %40, %cst_32 {dimension_numbers = #tpu.dot_dimension_numbers<[1], [0], [0], [1], [0, 0, 1, 1], [], []>} : vector<286x128xbf16>, vector<128x128xbf16>, vector<286x128xf32> -> vector<286x128xf32>
    %42 = arith.addf %35, %41 : vector<286x128xf32>
    %c0_33 = arith.constant 0 : index
    %c36 = arith.constant 36 : index
    %c0_34 = arith.constant 0 : index
    %43 = vector.load %arg1[%c0_33, %c36, %c0_34] : memref<1x324x128xf32, #tpu.memory_space<vmem>>, vector<1x286x128xf32>
    %44 = vector.shape_cast %43 : vector<1x286x128xf32> to vector<286x128xf32>
    %45 = arith.truncf %44 : vector<286x128xf32> to vector<286x128xbf16>
    %c6 = arith.constant 6 : index
    %c0_35 = arith.constant 0 : index
    %c0_36 = arith.constant 0 : index
    %46 = vector.load %arg2[%c6, %c0_35, %c0_36] : memref<9x128x128xbf16, #tpu.memory_space<vmem>>, vector<1x128x128xbf16>
    %47 = vector.shape_cast %46 : vector<1x128x128xbf16> to vector<128x128xbf16>
    %cst_37 = arith.constant dense<0.000000e+00> : vector<286x128xf32>
    %48 = tpu.matmul %45, %47, %cst_37 {dimension_numbers = #tpu.dot_dimension_numbers<[1], [0], [0], [1], [0, 0, 1, 1], [], []>} : vector<286x128xbf16>, vector<128x128xbf16>, vector<286x128xf32> -> vector<286x128xf32>
    %49 = arith.addf %42, %48 : vector<286x128xf32>
    %c0_38 = arith.constant 0 : index
    %c37 = arith.constant 37 : index
    %c0_39 = arith.constant 0 : index
    %50 = vector.load %arg1[%c0_38, %c37, %c0_39] : memref<1x324x128xf32, #tpu.memory_space<vmem>>, vector<1x286x128xf32>
    %51 = vector.shape_cast %50 : vector<1x286x128xf32> to vector<286x128xf32>
    %52 = arith.truncf %51 : vector<286x128xf32> to vector<286x128xbf16>
    %c7 = arith.constant 7 : index
    %c0_40 = arith.constant 0 : index
    %c0_41 = arith.constant 0 : index
    %53 = vector.load %arg2[%c7, %c0_40, %c0_41] : memref<9x128x128xbf16, #tpu.memory_space<vmem>>, vector<1x128x128xbf16>
    %54 = vector.shape_cast %53 : vector<1x128x128xbf16> to vector<128x128xbf16>
    %cst_42 = arith.constant dense<0.000000e+00> : vector<286x128xf32>
    %55 = tpu.matmul %52, %54, %cst_42 {dimension_numbers = #tpu.dot_dimension_numbers<[1], [0], [0], [1], [0, 0, 1, 1], [], []>} : vector<286x128xbf16>, vector<128x128xbf16>, vector<286x128xf32> -> vector<286x128xf32>
    %56 = arith.addf %49, %55 : vector<286x128xf32>
    %c0_43 = arith.constant 0 : index
    %c38 = arith.constant 38 : index
    %c0_44 = arith.constant 0 : index
    %57 = vector.load %arg1[%c0_43, %c38, %c0_44] : memref<1x324x128xf32, #tpu.memory_space<vmem>>, vector<1x286x128xf32>
    %58 = vector.shape_cast %57 : vector<1x286x128xf32> to vector<286x128xf32>
    %59 = arith.truncf %58 : vector<286x128xf32> to vector<286x128xbf16>
    %c8 = arith.constant 8 : index
    %c0_45 = arith.constant 0 : index
    %c0_46 = arith.constant 0 : index
    %60 = vector.load %arg2[%c8, %c0_45, %c0_46] : memref<9x128x128xbf16, #tpu.memory_space<vmem>>, vector<1x128x128xbf16>
    %61 = vector.shape_cast %60 : vector<1x128x128xbf16> to vector<128x128xbf16>
    %cst_47 = arith.constant dense<0.000000e+00> : vector<286x128xf32>
    %62 = tpu.matmul %59, %61, %cst_47 {dimension_numbers = #tpu.dot_dimension_numbers<[1], [0], [0], [1], [0, 0, 1, 1], [], []>} : vector<286x128xbf16>, vector<128x128xbf16>, vector<286x128xf32> -> vector<286x128xf32>
    %63 = arith.addf %56, %62 : vector<286x128xf32>
    %c0_48 = arith.constant 0 : index
    %c0_49 = arith.constant 0 : index
    %64 = vector.load %arg3[%c0_48, %c0_49] : memref<1x128xf32, #tpu.memory_space<vmem>>, vector<1x128xf32>
    %65 = vector.broadcast %64 : vector<1x128xf32> to vector<286x128xf32>
    %66 = arith.mulf %63, %65 : vector<286x128xf32>
    %c0_50 = arith.constant 0 : index
    %c0_51 = arith.constant 0 : index
    %67 = vector.load %arg4[%c0_50, %c0_51] : memref<1x128xf32, #tpu.memory_space<vmem>>, vector<1x128xf32>
    %68 = vector.broadcast %67 : vector<1x128xf32> to vector<286x128xf32>
    %69 = arith.addf %66, %68 : vector<286x128xf32>
    %cst_52 = arith.constant 0.000000e+00 : f32
    %70 = vector.broadcast %cst_52 : f32 to vector<286x128xf32>
    %71 = arith.maximumf %69, %70 : vector<286x128xf32>
    %72 = tpu.iota {dimensions = array<i32: 0>} : vector<286x1xi32>
    %c1_i32 = arith.constant 1 : i32
    %73 = vector.broadcast %c1_i32 : i32 to vector<286x1xi32>
    %74 = arith.addi %72, %73 : vector<286x1xi32>
    %c18_i32 = arith.constant 18 : i32
    %c0_i32 = arith.constant 0 : i32
    %75 = arith.cmpi eq, %c18_i32, %c0_i32 : i32
    %c1_i32_53 = arith.constant 1 : i32
    %76 = arith.select %75, %c1_i32_53, %c18_i32 : i32
    %77 = vector.broadcast %76 : i32 to vector<286x1xi32>
    %78 = arith.remsi %74, %77 : vector<286x1xi32>
    %c0_i32_54 = arith.constant 0 : i32
    %79 = vector.broadcast %c0_i32_54 : i32 to vector<286x1xi32>
    %80 = arith.cmpi ne, %78, %79 : vector<286x1xi32>
    %c0_i32_55 = arith.constant 0 : i32
    %81 = vector.broadcast %c0_i32_55 : i32 to vector<286x1xi32>
    %82 = arith.cmpi slt, %78, %81 : vector<286x1xi32>
    %c0_i32_56 = arith.constant 0 : i32
    %83 = arith.cmpi slt, %76, %c0_i32_56 : i32
    %84 = vector.broadcast %83 : i1 to vector<286x1xi1>
    %85 = vector.broadcast %84 : vector<286x1xi1> to vector<286x1xi1>
    %86 = arith.xori %82, %85 : vector<286x1xi1>
    %87 = arith.andi %86, %80 : vector<286x1xi1>
    %88 = vector.broadcast %76 : i32 to vector<286x1xi32>
    %89 = arith.addi %78, %88 : vector<286x1xi32>
    %90 = arith.select %87, %89, %78 : vector<286x1xi1>, vector<286x1xi32>
    %c1_i32_57 = arith.constant 1 : i32
    %91 = vector.broadcast %c1_i32_57 : i32 to vector<286x1xi32>
    %92 = arith.cmpi sge, %90, %91 : vector<286x1xi32>
    %c16_i32 = arith.constant 16 : i32
    %93 = vector.broadcast %c16_i32 : i32 to vector<286x1xi32>
    %94 = arith.cmpi sle, %90, %93 : vector<286x1xi32>
    %95 = arith.andi %92, %94 : vector<286x1xi1>
    %cst_58 = arith.constant 0.000000e+00 : f32
    %96 = vector.shape_cast %95 : vector<286x1xi1> to vector<286x1xi1>
    %97 = vector.broadcast %96 : vector<286x1xi1> to vector<286x128xi1>
    %98 = vector.broadcast %cst_58 : f32 to vector<286x128xf32>
    %99 = arith.select %97, %71, %98 : vector<286x128xi1>, vector<286x128xf32>
    %cst_59 = arith.constant 0.000000e+00 : f32
    %100 = vector.broadcast %cst_59 : f32 to vector<24x128xf32>
    %c0_60 = arith.constant 0 : index
    %c0_61 = arith.constant 0 : index
    %101 = vector.load %arg12[%c0_60, %c0_61] : memref<331x128xf32, #tpu.memory_space<vmem>>, vector<24x128xf32>
    tpu.vector_store %arg12[%c0_60, %c0_61], %100 {strides = array<i32>} : memref<331x128xf32, #tpu.memory_space<vmem>>, vector<24x128xf32>,
    %c24 = arith.constant 24 : index
    %c0_62 = arith.constant 0 : index
    %102 = vector.load %arg12[%c24, %c0_62] : memref<331x128xf32, #tpu.memory_space<vmem>>, vector<286x128xf32>
    tpu.vector_store %arg12[%c24, %c0_62], %99 {strides = array<i32>} : memref<331x128xf32, #tpu.memory_space<vmem>>, vector<286x128xf32>,
    %cst_63 = arith.constant 0.000000e+00 : f32
    %103 = vector.broadcast %cst_63 : f32 to vector<21x128xf32>
    %c310 = arith.constant 310 : index
    %c0_64 = arith.constant 0 : index
    %104 = vector.load %arg12[%c310, %c0_64] : memref<331x128xf32, #tpu.memory_space<vmem>>, vector<21x128xf32>
    tpu.vector_store %arg12[%c310, %c0_64], %103 {strides = array<i32>} : memref<331x128xf32, #tpu.memory_space<vmem>>, vector<21x128xf32>,
    %cst_65 = arith.constant 0.000000e+00 : f32
    %105 = vector.broadcast %cst_65 : f32 to vector<288x128xf32>
    %c5_66 = arith.constant 5 : index
    %c0_67 = arith.constant 0 : index
    %106 = vector.load %arg12[%c5_66, %c0_67] : memref<331x128xf32, #tpu.memory_space<vmem>>, vector<288x128xf32>
    %107 = arith.truncf %106 : vector<288x128xf32> to vector<288x128xbf16>
    %c0_68 = arith.constant 0 : index
    %c0_69 = arith.constant 0 : index
    %c0_70 = arith.constant 0 : index
    %108 = vector.load %arg5[%c0_68, %c0_69, %c0_70] : memref<9x128x128xbf16, #tpu.memory_space<vmem>>, vector<1x128x128xbf16>
    %109 = vector.shape_cast %108 : vector<1x128x128xbf16> to vector<128x128xbf16>
    %cst_71 = arith.constant dense<0.000000e+00> : vector<288x128xf32>
    %110 = tpu.matmul %107, %109, %cst_71 {dimension_numbers = #tpu.dot_dimension_numbers<[1], [0], [0], [1], [0, 0, 1, 1], [], []>} : vector<288x128xbf16>, vector<128x128xbf16>, vector<288x128xf32> -> vector<288x128xf32>
    %111 = arith.addf %105, %110 : vector<288x128xf32>
    %c6_72 = arith.constant 6 : index
    %c0_73 = arith.constant 0 : index
    %112 = vector.load %arg12[%c6_72, %c0_73] : memref<331x128xf32, #tpu.memory_space<vmem>>, vector<288x128xf32>
    %113 = arith.truncf %112 : vector<288x128xf32> to vector<288x128xbf16>
    %c1_74 = arith.constant 1 : index
    %c0_75 = arith.constant 0 : index
    %c0_76 = arith.constant 0 : index
    %114 = vector.load %arg5[%c1_74, %c0_75, %c0_76] : memref<9x128x128xbf16, #tpu.memory_space<vmem>>, vector<1x128x128xbf16>
    %115 = vector.shape_cast %114 : vector<1x128x128xbf16> to vector<128x128xbf16>
    %cst_77 = arith.constant dense<0.000000e+00> : vector<288x128xf32>
    %116 = tpu.matmul %113, %115, %cst_77 {dimension_numbers = #tpu.dot_dimension_numbers<[1], [0], [0], [1], [0, 0, 1, 1], [], []>} : vector<288x128xbf16>, vector<128x128xbf16>, vector<288x128xf32> -> vector<288x128xf32>
    %117 = arith.addf %111, %116 : vector<288x128xf32>
    %c7_78 = arith.constant 7 : index
    %c0_79 = arith.constant 0 : index
    %118 = vector.load %arg12[%c7_78, %c0_79] : memref<331x128xf32, #tpu.memory_space<vmem>>, vector<288x128xf32>
    %119 = arith.truncf %118 : vector<288x128xf32> to vector<288x128xbf16>
    %c2_80 = arith.constant 2 : index
    %c0_81 = arith.constant 0 : index
    %c0_82 = arith.constant 0 : index
    %120 = vector.load %arg5[%c2_80, %c0_81, %c0_82] : memref<9x128x128xbf16, #tpu.memory_space<vmem>>, vector<1x128x128xbf16>
    %121 = vector.shape_cast %120 : vector<1x128x128xbf16> to vector<128x128xbf16>
    %cst_83 = arith.constant dense<0.000000e+00> : vector<288x128xf32>
    %122 = tpu.matmul %119, %121, %cst_83 {dimension_numbers = #tpu.dot_dimension_numbers<[1], [0], [0], [1], [0, 0, 1, 1], [], []>} : vector<288x128xbf16>, vector<128x128xbf16>, vector<288x128xf32> -> vector<288x128xf32>
    %123 = arith.addf %117, %122 : vector<288x128xf32>
    %c23 = arith.constant 23 : index
    %c0_84 = arith.constant 0 : index
    %124 = vector.load %arg12[%c23, %c0_84] : memref<331x128xf32, #tpu.memory_space<vmem>>, vector<288x128xf32>
    %125 = arith.truncf %124 : vector<288x128xf32> to vector<288x128xbf16>
    %c3_85 = arith.constant 3 : index
    %c0_86 = arith.constant 0 : index
    %c0_87 = arith.constant 0 : index
    %126 = vector.load %arg5[%c3_85, %c0_86, %c0_87] : memref<9x128x128xbf16, #tpu.memory_space<vmem>>, vector<1x128x128xbf16>
    %127 = vector.shape_cast %126 : vector<1x128x128xbf16> to vector<128x128xbf16>
    %cst_88 = arith.constant dense<0.000000e+00> : vector<288x128xf32>
    %128 = tpu.matmul %125, %127, %cst_88 {dimension_numbers = #tpu.dot_dimension_numbers<[1], [0], [0], [1], [0, 0, 1, 1], [], []>} : vector<288x128xbf16>, vector<128x128xbf16>, vector<288x128xf32> -> vector<288x128xf32>
    %129 = arith.addf %123, %128 : vector<288x128xf32>
    %c24_89 = arith.constant 24 : index
    %c0_90 = arith.constant 0 : index
    %130 = vector.load %arg12[%c24_89, %c0_90] : memref<331x128xf32, #tpu.memory_space<vmem>>, vector<288x128xf32>
    %131 = arith.truncf %130 : vector<288x128xf32> to vector<288x128xbf16>
    %c4_91 = arith.constant 4 : index
    %c0_92 = arith.constant 0 : index
    %c0_93 = arith.constant 0 : index
    %132 = vector.load %arg5[%c4_91, %c0_92, %c0_93] : memref<9x128x128xbf16, #tpu.memory_space<vmem>>, vector<1x128x128xbf16>
    %133 = vector.shape_cast %132 : vector<1x128x128xbf16> to vector<128x128xbf16>
    %cst_94 = arith.constant dense<0.000000e+00> : vector<288x128xf32>
    %134 = tpu.matmul %131, %133, %cst_94 {dimension_numbers = #tpu.dot_dimension_numbers<[1], [0], [0], [1], [0, 0, 1, 1], [], []>} : vector<288x128xbf16>, vector<128x128xbf16>, vector<288x128xf32> -> vector<288x128xf32>
    %135 = arith.addf %129, %134 : vector<288x128xf32>
    %c25 = arith.constant 25 : index
    %c0_95 = arith.constant 0 : index
    %136 = vector.load %arg12[%c25, %c0_95] : memref<331x128xf32, #tpu.memory_space<vmem>>, vector<288x128xf32>
    %137 = arith.truncf %136 : vector<288x128xf32> to vector<288x128xbf16>
    %c5_96 = arith.constant 5 : index
    %c0_97 = arith.constant 0 : index
    %c0_98 = arith.constant 0 : index
    %138 = vector.load %arg5[%c5_96, %c0_97, %c0_98] : memref<9x128x128xbf16, #tpu.memory_space<vmem>>, vector<1x128x128xbf16>
    %139 = vector.shape_cast %138 : vector<1x128x128xbf16> to vector<128x128xbf16>
    %cst_99 = arith.constant dense<0.000000e+00> : vector<288x128xf32>
    %140 = tpu.matmul %137, %139, %cst_99 {dimension_numbers = #tpu.dot_dimension_numbers<[1], [0], [0], [1], [0, 0, 1, 1], [], []>} : vector<288x128xbf16>, vector<128x128xbf16>, vector<288x128xf32> -> vector<288x128xf32>
    %141 = arith.addf %135, %140 : vector<288x128xf32>
    %c41 = arith.constant 41 : index
    %c0_100 = arith.constant 0 : index
    %142 = vector.load %arg12[%c41, %c0_100] : memref<331x128xf32, #tpu.memory_space<vmem>>, vector<288x128xf32>
    %143 = arith.truncf %142 : vector<288x128xf32> to vector<288x128xbf16>
    %c6_101 = arith.constant 6 : index
    %c0_102 = arith.constant 0 : index
    %c0_103 = arith.constant 0 : index
    %144 = vector.load %arg5[%c6_101, %c0_102, %c0_103] : memref<9x128x128xbf16, #tpu.memory_space<vmem>>, vector<1x128x128xbf16>
    %145 = vector.shape_cast %144 : vector<1x128x128xbf16> to vector<128x128xbf16>
    %cst_104 = arith.constant dense<0.000000e+00> : vector<288x128xf32>
    %146 = tpu.matmul %143, %145, %cst_104 {dimension_numbers = #tpu.dot_dimension_numbers<[1], [0], [0], [1], [0, 0, 1, 1], [], []>} : vector<288x128xbf16>, vector<128x128xbf16>, vector<288x128xf32> -> vector<288x128xf32>
    %147 = arith.addf %141, %146 : vector<288x128xf32>
    %c42 = arith.constant 42 : index
    %c0_105 = arith.constant 0 : index
    %148 = vector.load %arg12[%c42, %c0_105] : memref<331x128xf32, #tpu.memory_space<vmem>>, vector<288x128xf32>
    %149 = arith.truncf %148 : vector<288x128xf32> to vector<288x128xbf16>
    %c7_106 = arith.constant 7 : index
    %c0_107 = arith.constant 0 : index
    %c0_108 = arith.constant 0 : index
    %150 = vector.load %arg5[%c7_106, %c0_107, %c0_108] : memref<9x128x128xbf16, #tpu.memory_space<vmem>>, vector<1x128x128xbf16>
    %151 = vector.shape_cast %150 : vector<1x128x128xbf16> to vector<128x128xbf16>
    %cst_109 = arith.constant dense<0.000000e+00> : vector<288x128xf32>
    %152 = tpu.matmul %149, %151, %cst_109 {dimension_numbers = #tpu.dot_dimension_numbers<[1], [0], [0], [1], [0, 0, 1, 1], [], []>} : vector<288x128xbf16>, vector<128x128xbf16>, vector<288x128xf32> -> vector<288x128xf32>
    %153 = arith.addf %147, %152 : vector<288x128xf32>
    %c43 = arith.constant 43 : index
    %c0_110 = arith.constant 0 : index
    %154 = vector.load %arg12[%c43, %c0_110] : memref<331x128xf32, #tpu.memory_space<vmem>>, vector<288x128xf32>
    %155 = arith.truncf %154 : vector<288x128xf32> to vector<288x128xbf16>
    %c8_111 = arith.constant 8 : index
    %c0_112 = arith.constant 0 : index
    %c0_113 = arith.constant 0 : index
    %156 = vector.load %arg5[%c8_111, %c0_112, %c0_113] : memref<9x128x128xbf16, #tpu.memory_space<vmem>>, vector<1x128x128xbf16>
    %157 = vector.shape_cast %156 : vector<1x128x128xbf16> to vector<128x128xbf16>
    %cst_114 = arith.constant dense<0.000000e+00> : vector<288x128xf32>
    %158 = tpu.matmul %155, %157, %cst_114 {dimension_numbers = #tpu.dot_dimension_numbers<[1], [0], [0], [1], [0, 0, 1, 1], [], []>} : vector<288x128xbf16>, vector<128x128xbf16>, vector<288x128xf32> -> vector<288x128xf32>
    %159 = arith.addf %153, %158 : vector<288x128xf32>
    %c0_115 = arith.constant 0 : index
    %c0_116 = arith.constant 0 : index
    %160 = vector.load %arg6[%c0_115, %c0_116] : memref<1x128xf32, #tpu.memory_space<vmem>>, vector<1x128xf32>
    %161 = vector.broadcast %160 : vector<1x128xf32> to vector<288x128xf32>
    %162 = arith.mulf %159, %161 : vector<288x128xf32>
    %c0_117 = arith.constant 0 : index
    %c0_118 = arith.constant 0 : index
    %163 = vector.load %arg7[%c0_117, %c0_118] : memref<1x128xf32, #tpu.memory_space<vmem>>, vector<1x128xf32>
    %164 = vector.broadcast %163 : vector<1x128xf32> to vector<288x128xf32>
    %165 = arith.addf %162, %164 : vector<288x128xf32>
    %c0_119 = arith.constant 0 : index
    %c19_120 = arith.constant 19 : index
    %c0_121 = arith.constant 0 : index
    %166 = vector.load %arg1[%c0_119, %c19_120, %c0_121] : memref<1x324x128xf32, #tpu.memory_space<vmem>>, vector<1x288x128xf32>
    %167 = vector.shape_cast %166 : vector<1x288x128xf32> to vector<288x128xf32>
    %168 = arith.truncf %167 : vector<288x128xf32> to vector<288x128xbf16>
    %c0_122 = arith.constant 0 : index
    %c0_123 = arith.constant 0 : index
    %169 = vector.load %arg8[%c0_122, %c0_123] : memref<128x128xbf16, #tpu.memory_space<vmem>>, vector<128x128xbf16>
    %cst_124 = arith.constant dense<0.000000e+00> : vector<288x128xf32>
    %170 = tpu.matmul %168, %169, %cst_124 {dimension_numbers = #tpu.dot_dimension_numbers<[1], [0], [0], [1], [0, 0, 1, 1], [], []>} : vector<288x128xbf16>, vector<128x128xbf16>, vector<288x128xf32> -> vector<288x128xf32>
    %c0_125 = arith.constant 0 : index
    %c0_126 = arith.constant 0 : index
    %171 = vector.load %arg9[%c0_125, %c0_126] : memref<1x128xf32, #tpu.memory_space<vmem>>, vector<1x128xf32>
    %172 = vector.broadcast %171 : vector<1x128xf32> to vector<288x128xf32>
    %173 = arith.mulf %170, %172 : vector<288x128xf32>
    %c0_127 = arith.constant 0 : index
    %c0_128 = arith.constant 0 : index
    %174 = vector.load %arg10[%c0_127, %c0_128] : memref<1x128xf32, #tpu.memory_space<vmem>>, vector<1x128xf32>
    %175 = vector.broadcast %174 : vector<1x128xf32> to vector<288x128xf32>
    %176 = arith.addf %173, %175 : vector<288x128xf32>
    %177 = arith.addf %165, %176 : vector<288x128xf32>
    %cst_129 = arith.constant 0.000000e+00 : f32
    %178 = vector.broadcast %cst_129 : f32 to vector<288x128xf32>
    %179 = arith.maximumf %177, %178 : vector<288x128xf32>
    %180 = vector.shape_cast %179 : vector<288x128xf32> to vector<1x288x128xf32>
    %c0_130 = arith.constant 0 : index
    %c0_131 = arith.constant 0 : index
    %c0_132 = arith.constant 0 : index
    %181 = vector.load %arg11[%c0_130, %c0_131, %c0_132] : memref<1x288x128xf32, #tpu.memory_space<vmem>>, vector<1x288x128xf32>
    tpu.vector_store %arg11[%c0_130, %c0_131, %c0_132], %180 {strides = array<i32>} : memref<1x288x128xf32, #tpu.memory_space<vmem>>, vector<1x288x128xf32>,
    return
  }
  func.func @transform_0(%arg0: i32) -> (i32, i32, i32) {
    %c0_i32 = arith.constant 0 : i32
    %c0_i32_0 = arith.constant 0 : i32
    %c0_i32_1 = arith.constant 0 : i32
    return %arg0, %c0_i32, %c0_i32_0 : i32, i32, i32
  }
  func.func @transform_1(%arg0: i32) -> (i32, i32, i32) {
    %c0_i32 = arith.constant 0 : i32
    %c0_i32_0 = arith.constant 0 : i32
    %c0_i32_1 = arith.constant 0 : i32
    %c0_i32_2 = arith.constant 0 : i32
    return %c0_i32, %c0_i32_0, %c0_i32_1 : i32, i32, i32
  }
  func.func @transform_2(%arg0: i32) -> (i32, i32) {
    %c0_i32 = arith.constant 0 : i32
    %c0_i32_0 = arith.constant 0 : i32
    %c0_i32_1 = arith.constant 0 : i32
    return %c0_i32, %c0_i32_0 : i32, i32
  }
  func.func @transform_3(%arg0: i32) -> (i32, i32) {
    %c0_i32 = arith.constant 0 : i32
    %c0_i32_0 = arith.constant 0 : i32
    %c0_i32_1 = arith.constant 0 : i32
    return %c0_i32, %c0_i32_0 : i32, i32
  }
  func.func @transform_4(%arg0: i32) -> (i32, i32, i32) {
    %c0_i32 = arith.constant 0 : i32
    %c0_i32_0 = arith.constant 0 : i32
    %c0_i32_1 = arith.constant 0 : i32
    %c0_i32_2 = arith.constant 0 : i32
    return %c0_i32, %c0_i32_0, %c0_i32_1 : i32, i32, i32
  }
  func.func @transform_5(%arg0: i32) -> (i32, i32) {
    %c0_i32 = arith.constant 0 : i32
    %c0_i32_0 = arith.constant 0 : i32
    %c0_i32_1 = arith.constant 0 : i32
    return %c0_i32, %c0_i32_0 : i32, i32
  }
  func.func @transform_6(%arg0: i32) -> (i32, i32) {
    %c0_i32 = arith.constant 0 : i32
    %c0_i32_0 = arith.constant 0 : i32
    %c0_i32_1 = arith.constant 0 : i32
    return %c0_i32, %c0_i32_0 : i32, i32
  }
  func.func @transform_7(%arg0: i32) -> (i32, i32) {
    %c0_i32 = arith.constant 0 : i32
    %c0_i32_0 = arith.constant 0 : i32
    %c0_i32_1 = arith.constant 0 : i32
    return %c0_i32, %c0_i32_0 : i32, i32
  }
  func.func @transform_8(%arg0: i32) -> (i32, i32) {
    %c0_i32 = arith.constant 0 : i32
    %c0_i32_0 = arith.constant 0 : i32
    %c0_i32_1 = arith.constant 0 : i32
    return %c0_i32, %c0_i32_0 : i32, i32
  }
  func.func @transform_9(%arg0: i32) -> (i32, i32) {
    %c0_i32 = arith.constant 0 : i32
    %c0_i32_0 = arith.constant 0 : i32
    %c0_i32_1 = arith.constant 0 : i32
    return %c0_i32, %c0_i32_0 : i32, i32
  }
  func.func @transform_10(%arg0: i32) -> (i32, i32, i32) {
    %c0_i32 = arith.constant 0 : i32
    %c0_i32_0 = arith.constant 0 : i32
    %c0_i32_1 = arith.constant 0 : i32
    return %arg0, %c0_i32, %c0_i32_0 : i32, i32, i32
  }
}

module attributes {stable_mosaic.version = 11 : i64} {
  func.func @_basic_block_kernel(%arg0: i32, %arg1: memref<1x324x128xf32, #tpu.memory_space<vmem>>, %arg2: memref<9x128x128xbf16, #tpu.memory_space<vmem>>, %arg3: memref<1x128xf32, #tpu.memory_space<vmem>>, %arg4: memref<1x128xf32, #tpu.memory_space<vmem>>, %arg5: memref<9x128x128xbf16, #tpu.memory_space<vmem>>, %arg6: memref<1x128xf32, #tpu.memory_space<vmem>>, %arg7: memref<1x128xf32, #tpu.memory_space<vmem>>, %arg8: memref<128x128xbf16, #tpu.memory_space<vmem>>, %arg9: memref<1x128xf32, #tpu.memory_space<vmem>>, %arg10: memref<1x128xf32, #tpu.memory_space<vmem>>, %arg11: memref<1x288x128xf32, #tpu.memory_space<vmem>>, %arg12: memref<331x128xf32, #tpu.memory_space<vmem>>) attributes {dimension_semantics = [#tpu.dimension_semantics<parallel>], iteration_bounds = array<i64: 2>, scalar_prefetch = 0 : i64, scratch_operands = 1 : i64, tpu.core_type = #tpu.core_type<tc>, window_params = [{transform_indices = @transform_0, window_bounds = array<i64: 1, 324, 128>}, {pipeline_mode = #tpu.pipeline_mode<synchronous>, transform_indices = @transform_1, window_bounds = array<i64: 9, 128, 128>}, {pipeline_mode = #tpu.pipeline_mode<synchronous>, transform_indices = @transform_2, window_bounds = array<i64: 1, 128>}, {pipeline_mode = #tpu.pipeline_mode<synchronous>, transform_indices = @transform_3, window_bounds = array<i64: 1, 128>}, {pipeline_mode = #tpu.pipeline_mode<synchronous>, transform_indices = @transform_4, window_bounds = array<i64: 9, 128, 128>}, {pipeline_mode = #tpu.pipeline_mode<synchronous>, transform_indices = @transform_5, window_bounds = array<i64: 1, 128>}, {pipeline_mode = #tpu.pipeline_mode<synchronous>, transform_indices = @transform_6, window_bounds = array<i64: 1, 128>}, {pipeline_mode = #tpu.pipeline_mode<synchronous>, transform_indices = @transform_7, window_bounds = array<i64: 128, 128>}, {pipeline_mode = #tpu.pipeline_mode<synchronous>, transform_indices = @transform_8, window_bounds = array<i64: 1, 128>}, {pipeline_mode = #tpu.pipeline_mode<synchronous>, transform_indices = @transform_9, window_bounds = array<i64: 1, 128>}, {transform_indices = @transform_10, window_bounds = array<i64: 1, 288, 128>}]} {
    %cst = arith.constant 0.000000e+00 : f32
    %0 = vector.broadcast %cst : f32 to vector<286x128xf32>
    %c0 = arith.constant 0 : index
    %c0_0 = arith.constant 0 : index
    %c0_1 = arith.constant 0 : index
    %1 = vector.load %arg1[%c0, %c0_0, %c0_1] : memref<1x324x128xf32, #tpu.memory_space<vmem>>, vector<1x286x128xf32>
    %2 = vector.shape_cast %1 : vector<1x286x128xf32> to vector<286x128xf32>
    %3 = arith.truncf %2 : vector<286x128xf32> to vector<286x128xbf16>
    %c0_2 = arith.constant 0 : index
    %c0_3 = arith.constant 0 : index
    %c0_4 = arith.constant 0 : index
    %4 = vector.load %arg2[%c0_2, %c0_3, %c0_4] : memref<9x128x128xbf16, #tpu.memory_space<vmem>>, vector<1x128x128xbf16>
    %5 = vector.shape_cast %4 : vector<1x128x128xbf16> to vector<128x128xbf16>
    %cst_5 = arith.constant dense<0.000000e+00> : vector<286x128xf32>
    %6 = tpu.matmul %3, %5, %cst_5 {dimension_numbers = #tpu.dot_dimension_numbers<[1], [0], [0], [1], [0, 0, 1, 1], [], []>} : vector<286x128xbf16>, vector<128x128xbf16>, vector<286x128xf32> -> vector<286x128xf32>
    %7 = arith.addf %0, %6 : vector<286x128xf32>
    %c0_6 = arith.constant 0 : index
    %c1 = arith.constant 1 : index
    %c0_7 = arith.constant 0 : index
    %8 = vector.load %arg1[%c0_6, %c1, %c0_7] : memref<1x324x128xf32, #tpu.memory_space<vmem>>, vector<1x286x128xf32>
    %9 = vector.shape_cast %8 : vector<1x286x128xf32> to vector<286x128xf32>
    %10 = arith.truncf %9 : vector<286x128xf32> to vector<286x128xbf16>
    %c1_8 = arith.constant 1 : index
    %c0_9 = arith.constant 0 : index
    %c0_10 = arith.constant 0 : index
    %11 = vector.load %arg2[%c1_8, %c0_9, %c0_10] : memref<9x128x128xbf16, #tpu.memory_space<vmem>>, vector<1x128x128xbf16>
    %12 = vector.shape_cast %11 : vector<1x128x128xbf16> to vector<128x128xbf16>
    %cst_11 = arith.constant dense<0.000000e+00> : vector<286x128xf32>
    %13 = tpu.matmul %10, %12, %cst_11 {dimension_numbers = #tpu.dot_dimension_numbers<[1], [0], [0], [1], [0, 0, 1, 1], [], []>} : vector<286x128xbf16>, vector<128x128xbf16>, vector<286x128xf32> -> vector<286x128xf32>
    %14 = arith.addf %7, %13 : vector<286x128xf32>
    %c0_12 = arith.constant 0 : index
    %c2 = arith.constant 2 : index
    %c0_13 = arith.constant 0 : index
    %15 = vector.load %arg1[%c0_12, %c2, %c0_13] : memref<1x324x128xf32, #tpu.memory_space<vmem>>, vector<1x286x128xf32>
    %16 = vector.shape_cast %15 : vector<1x286x128xf32> to vector<286x128xf32>
    %17 = arith.truncf %16 : vector<286x128xf32> to vector<286x128xbf16>
    %c2_14 = arith.constant 2 : index
    %c0_15 = arith.constant 0 : index
    %c0_16 = arith.constant 0 : index
    %18 = vector.load %arg2[%c2_14, %c0_15, %c0_16] : memref<9x128x128xbf16, #tpu.memory_space<vmem>>, vector<1x128x128xbf16>
    %19 = vector.shape_cast %18 : vector<1x128x128xbf16> to vector<128x128xbf16>
    %cst_17 = arith.constant dense<0.000000e+00> : vector<286x128xf32>
    %20 = tpu.matmul %17, %19, %cst_17 {dimension_numbers = #tpu.dot_dimension_numbers<[1], [0], [0], [1], [0, 0, 1, 1], [], []>} : vector<286x128xbf16>, vector<128x128xbf16>, vector<286x128xf32> -> vector<286x128xf32>
    %21 = arith.addf %14, %20 : vector<286x128xf32>
    %c0_18 = arith.constant 0 : index
    %c18 = arith.constant 18 : index
    %c0_19 = arith.constant 0 : index
    %22 = vector.load %arg1[%c0_18, %c18, %c0_19] : memref<1x324x128xf32, #tpu.memory_space<vmem>>, vector<1x286x128xf32>
    %23 = vector.shape_cast %22 : vector<1x286x128xf32> to vector<286x128xf32>
    %24 = arith.truncf %23 : vector<286x128xf32> to vector<286x128xbf16>
    %c3 = arith.constant 3 : index
    %c0_20 = arith.constant 0 : index
    %c0_21 = arith.constant 0 : index
    %25 = vector.load %arg2[%c3, %c0_20, %c0_21] : memref<9x128x128xbf16, #tpu.memory_space<vmem>>, vector<1x128x128xbf16>
    %26 = vector.shape_cast %25 : vector<1x128x128xbf16> to vector<128x128xbf16>
    %cst_22 = arith.constant dense<0.000000e+00> : vector<286x128xf32>
    %27 = tpu.matmul %24, %26, %cst_22 {dimension_numbers = #tpu.dot_dimension_numbers<[1], [0], [0], [1], [0, 0, 1, 1], [], []>} : vector<286x128xbf16>, vector<128x128xbf16>, vector<286x128xf32> -> vector<286x128xf32>
    %28 = arith.addf %21, %27 : vector<286x128xf32>
    %c0_23 = arith.constant 0 : index
    %c19 = arith.constant 19 : index
    %c0_24 = arith.constant 0 : index
    %29 = vector.load %arg1[%c0_23, %c19, %c0_24] : memref<1x324x128xf32, #tpu.memory_space<vmem>>, vector<1x286x128xf32>
    %30 = vector.shape_cast %29 : vector<1x286x128xf32> to vector<286x128xf32>
    %31 = arith.truncf %30 : vector<286x128xf32> to vector<286x128xbf16>
    %c4 = arith.constant 4 : index
    %c0_25 = arith.constant 0 : index
    %c0_26 = arith.constant 0 : index
    %32 = vector.load %arg2[%c4, %c0_25, %c0_26] : memref<9x128x128xbf16, #tpu.memory_space<vmem>>, vector<1x128x128xbf16>
    %33 = vector.shape_cast %32 : vector<1x128x128xbf16> to vector<128x128xbf16>
    %cst_27 = arith.constant dense<0.000000e+00> : vector<286x128xf32>
    %34 = tpu.matmul %31, %33, %cst_27 {dimension_numbers = #tpu.dot_dimension_numbers<[1], [0], [0], [1], [0, 0, 1, 1], [], []>} : vector<286x128xbf16>, vector<128x128xbf16>, vector<286x128xf32> -> vector<286x128xf32>
    %35 = arith.addf %28, %34 : vector<286x128xf32>
    %c0_28 = arith.constant 0 : index
    %c20 = arith.constant 20 : index
    %c0_29 = arith.constant 0 : index
    %36 = vector.load %arg1[%c0_28, %c20, %c0_29] : memref<1x324x128xf32, #tpu.memory_space<vmem>>, vector<1x286x128xf32>
    %37 = vector.shape_cast %36 : vector<1x286x128xf32> to vector<286x128xf32>
    %38 = arith.truncf %37 : vector<286x128xf32> to vector<286x128xbf16>
    %c5 = arith.constant 5 : index
    %c0_30 = arith.constant 0 : index
    %c0_31 = arith.constant 0 : index
    %39 = vector.load %arg2[%c5, %c0_30, %c0_31] : memref<9x128x128xbf16, #tpu.memory_space<vmem>>, vector<1x128x128xbf16>
    %40 = vector.shape_cast %39 : vector<1x128x128xbf16> to vector<128x128xbf16>
    %cst_32 = arith.constant dense<0.000000e+00> : vector<286x128xf32>
    %41 = tpu.matmul %38, %40, %cst_32 {dimension_numbers = #tpu.dot_dimension_numbers<[1], [0], [0], [1], [0, 0, 1, 1], [], []>} : vector<286x128xbf16>, vector<128x128xbf16>, vector<286x128xf32> -> vector<286x128xf32>
    %42 = arith.addf %35, %41 : vector<286x128xf32>
    %c0_33 = arith.constant 0 : index
    %c36 = arith.constant 36 : index
    %c0_34 = arith.constant 0 : index
    %43 = vector.load %arg1[%c0_33, %c36, %c0_34] : memref<1x324x128xf32, #tpu.memory_space<vmem>>, vector<1x286x128xf32>
    %44 = vector.shape_cast %43 : vector<1x286x128xf32> to vector<286x128xf32>
    %45 = arith.truncf %44 : vector<286x128xf32> to vector<286x128xbf16>
    %c6 = arith.constant 6 : index
    %c0_35 = arith.constant 0 : index
    %c0_36 = arith.constant 0 : index
    %46 = vector.load %arg2[%c6, %c0_35, %c0_36] : memref<9x128x128xbf16, #tpu.memory_space<vmem>>, vector<1x128x128xbf16>
    %47 = vector.shape_cast %46 : vector<1x128x128xbf16> to vector<128x128xbf16>
    %cst_37 = arith.constant dense<0.000000e+00> : vector<286x128xf32>
    %48 = tpu.matmul %45, %47, %cst_37 {dimension_numbers = #tpu.dot_dimension_numbers<[1], [0], [0], [1], [0, 0, 1, 1], [], []>} : vector<286x128xbf16>, vector<128x128xbf16>, vector<286x128xf32> -> vector<286x128xf32>
    %49 = arith.addf %42, %48 : vector<286x128xf32>
    %c0_38 = arith.constant 0 : index
    %c37 = arith.constant 37 : index
    %c0_39 = arith.constant 0 : index
    %50 = vector.load %arg1[%c0_38, %c37, %c0_39] : memref<1x324x128xf32, #tpu.memory_space<vmem>>, vector<1x286x128xf32>
    %51 = vector.shape_cast %50 : vector<1x286x128xf32> to vector<286x128xf32>
    %52 = arith.truncf %51 : vector<286x128xf32> to vector<286x128xbf16>
    %c7 = arith.constant 7 : index
    %c0_40 = arith.constant 0 : index
    %c0_41 = arith.constant 0 : index
    %53 = vector.load %arg2[%c7, %c0_40, %c0_41] : memref<9x128x128xbf16, #tpu.memory_space<vmem>>, vector<1x128x128xbf16>
    %54 = vector.shape_cast %53 : vector<1x128x128xbf16> to vector<128x128xbf16>
    %cst_42 = arith.constant dense<0.000000e+00> : vector<286x128xf32>
    %55 = tpu.matmul %52, %54, %cst_42 {dimension_numbers = #tpu.dot_dimension_numbers<[1], [0], [0], [1], [0, 0, 1, 1], [], []>} : vector<286x128xbf16>, vector<128x128xbf16>, vector<286x128xf32> -> vector<286x128xf32>
    %56 = arith.addf %49, %55 : vector<286x128xf32>
    %c0_43 = arith.constant 0 : index
    %c38 = arith.constant 38 : index
    %c0_44 = arith.constant 0 : index
    %57 = vector.load %arg1[%c0_43, %c38, %c0_44] : memref<1x324x128xf32, #tpu.memory_space<vmem>>, vector<1x286x128xf32>
    %58 = vector.shape_cast %57 : vector<1x286x128xf32> to vector<286x128xf32>
    %59 = arith.truncf %58 : vector<286x128xf32> to vector<286x128xbf16>
    %c8 = arith.constant 8 : index
    %c0_45 = arith.constant 0 : index
    %c0_46 = arith.constant 0 : index
    %60 = vector.load %arg2[%c8, %c0_45, %c0_46] : memref<9x128x128xbf16, #tpu.memory_space<vmem>>, vector<1x128x128xbf16>
    %61 = vector.shape_cast %60 : vector<1x128x128xbf16> to vector<128x128xbf16>
    %cst_47 = arith.constant dense<0.000000e+00> : vector<286x128xf32>
    %62 = tpu.matmul %59, %61, %cst_47 {dimension_numbers = #tpu.dot_dimension_numbers<[1], [0], [0], [1], [0, 0, 1, 1], [], []>} : vector<286x128xbf16>, vector<128x128xbf16>, vector<286x128xf32> -> vector<286x128xf32>
    %63 = arith.addf %56, %62 : vector<286x128xf32>
    %c0_48 = arith.constant 0 : index
    %c0_49 = arith.constant 0 : index
    %64 = vector.load %arg3[%c0_48, %c0_49] : memref<1x128xf32, #tpu.memory_space<vmem>>, vector<1x128xf32>
    %65 = vector.broadcast %64 : vector<1x128xf32> to vector<286x128xf32>
    %66 = arith.mulf %63, %65 : vector<286x128xf32>
    %c0_50 = arith.constant 0 : index
    %c0_51 = arith.constant 0 : index
    %67 = vector.load %arg4[%c0_50, %c0_51] : memref<1x128xf32, #tpu.memory_space<vmem>>, vector<1x128xf32>
    %68 = vector.broadcast %67 : vector<1x128xf32> to vector<286x128xf32>
    %69 = arith.addf %66, %68 : vector<286x128xf32>
    %cst_52 = arith.constant 0.000000e+00 : f32
    %70 = vector.broadcast %cst_52 : f32 to vector<286x128xf32>
    %71 = arith.maximumf %69, %70 : vector<286x128xf32>
    %72 = tpu.iota {dimensions = array<i32: 0>} : vector<286x1xi32>
    %c1_i32 = arith.constant 1 : i32
    %73 = vector.broadcast %c1_i32 : i32 to vector<286x1xi32>
    %74 = arith.addi %72, %73 : vector<286x1xi32>
    %c18_i32 = arith.constant 18 : i32
    %c0_i32 = arith.constant 0 : i32
    %75 = arith.cmpi eq, %c18_i32, %c0_i32 : i32
    %c1_i32_53 = arith.constant 1 : i32
    %76 = arith.select %75, %c1_i32_53, %c18_i32 : i32
    %77 = vector.broadcast %76 : i32 to vector<286x1xi32>
    %78 = arith.remsi %74, %77 : vector<286x1xi32>
    %c0_i32_54 = arith.constant 0 : i32
    %79 = vector.broadcast %c0_i32_54 : i32 to vector<286x1xi32>
    %80 = arith.cmpi ne, %78, %79 : vector<286x1xi32>
    %c0_i32_55 = arith.constant 0 : i32
    %81 = vector.broadcast %c0_i32_55 : i32 to vector<286x1xi32>
    %82 = arith.cmpi slt, %78, %81 : vector<286x1xi32>
    %c0_i32_56 = arith.constant 0 : i32
    %83 = arith.cmpi slt, %76, %c0_i32_56 : i32
    %84 = vector.broadcast %83 : i1 to vector<286x1xi1>
    %85 = vector.broadcast %84 : vector<286x1xi1> to vector<286x1xi1>
    %86 = arith.xori %82, %85 : vector<286x1xi1>
    %87 = arith.andi %86, %80 : vector<286x1xi1>
    %88 = vector.broadcast %76 : i32 to vector<286x1xi32>
    %89 = arith.addi %78, %88 : vector<286x1xi32>
    %90 = arith.select %87, %89, %78 : vector<286x1xi1>, vector<286x1xi32>
    %c1_i32_57 = arith.constant 1 : i32
    %91 = vector.broadcast %c1_i32_57 : i32 to vector<286x1xi32>
    %92 = arith.cmpi sge, %90, %91 : vector<286x1xi32>
    %c16_i32 = arith.constant 16 : i32
    %93 = vector.broadcast %c16_i32 : i32 to vector<286x1xi32>
    %94 = arith.cmpi sle, %90, %93 : vector<286x1xi32>
    %95 = arith.andi %92, %94 : vector<286x1xi1>
    %cst_58 = arith.constant 0.000000e+00 : f32
    %96 = vector.shape_cast %95 : vector<286x1xi1> to vector<286x1xi1>
    %97 = vector.broadcast %96 : vector<286x1xi1> to vector<286x128xi1>
    %98 = vector.broadcast %cst_58 : f32 to vector<286x128xf32>
    %99 = arith.select %97, %71, %98 : vector<286x128xi1>, vector<286x128xf32>
    %cst_59 = arith.constant 0.000000e+00 : f32
    %100 = vector.broadcast %cst_59 : f32 to vector<24x128xf32>
    %c0_60 = arith.constant 0 : index
    %c0_61 = arith.constant 0 : index
    %101 = vector.load %arg12[%c0_60, %c0_61] : memref<331x128xf32, #tpu.memory_space<vmem>>, vector<24x128xf32>
    tpu.vector_store %arg12[%c0_60, %c0_61], %100 {strides = array<i32>} : memref<331x128xf32, #tpu.memory_space<vmem>>, vector<24x128xf32>,
    %c24 = arith.constant 24 : index
    %c0_62 = arith.constant 0 : index
    %102 = vector.load %arg12[%c24, %c0_62] : memref<331x128xf32, #tpu.memory_space<vmem>>, vector<286x128xf32>
    tpu.vector_store %arg12[%c24, %c0_62], %99 {strides = array<i32>} : memref<331x128xf32, #tpu.memory_space<vmem>>, vector<286x128xf32>,
    %cst_63 = arith.constant 0.000000e+00 : f32
    %103 = vector.broadcast %cst_63 : f32 to vector<21x128xf32>
    %c310 = arith.constant 310 : index
    %c0_64 = arith.constant 0 : index
    %104 = vector.load %arg12[%c310, %c0_64] : memref<331x128xf32, #tpu.memory_space<vmem>>, vector<21x128xf32>
    tpu.vector_store %arg12[%c310, %c0_64], %103 {strides = array<i32>} : memref<331x128xf32, #tpu.memory_space<vmem>>, vector<21x128xf32>,
    %cst_65 = arith.constant 0.000000e+00 : f32
    %105 = vector.broadcast %cst_65 : f32 to vector<288x128xf32>
    %c5_66 = arith.constant 5 : index
    %c0_67 = arith.constant 0 : index
    %106 = vector.load %arg12[%c5_66, %c0_67] : memref<331x128xf32, #tpu.memory_space<vmem>>, vector<288x128xf32>
    %107 = arith.truncf %106 : vector<288x128xf32> to vector<288x128xbf16>
    %c0_68 = arith.constant 0 : index
    %c0_69 = arith.constant 0 : index
    %c0_70 = arith.constant 0 : index
    %108 = vector.load %arg5[%c0_68, %c0_69, %c0_70] : memref<9x128x128xbf16, #tpu.memory_space<vmem>>, vector<1x128x128xbf16>
    %109 = vector.shape_cast %108 : vector<1x128x128xbf16> to vector<128x128xbf16>
    %cst_71 = arith.constant dense<0.000000e+00> : vector<288x128xf32>
    %110 = tpu.matmul %107, %109, %cst_71 {dimension_numbers = #tpu.dot_dimension_numbers<[1], [0], [0], [1], [0, 0, 1, 1], [], []>} : vector<288x128xbf16>, vector<128x128xbf16>, vector<288x128xf32> -> vector<288x128xf32>
    %111 = arith.addf %105, %110 : vector<288x128xf32>
    %c6_72 = arith.constant 6 : index
    %c0_73 = arith.constant 0 : index
    %112 = vector.load %arg12[%c6_72, %c0_73] : memref<331x128xf32, #tpu.memory_space<vmem>>, vector<288x128xf32>
    %113 = arith.truncf %112 : vector<288x128xf32> to vector<288x128xbf16>
    %c1_74 = arith.constant 1 : index
    %c0_75 = arith.constant 0 : index
    %c0_76 = arith.constant 0 : index
    %114 = vector.load %arg5[%c1_74, %c0_75, %c0_76] : memref<9x128x128xbf16, #tpu.memory_space<vmem>>, vector<1x128x128xbf16>
    %115 = vector.shape_cast %114 : vector<1x128x128xbf16> to vector<128x128xbf16>
    %cst_77 = arith.constant dense<0.000000e+00> : vector<288x128xf32>
    %116 = tpu.matmul %113, %115, %cst_77 {dimension_numbers = #tpu.dot_dimension_numbers<[1], [0], [0], [1], [0, 0, 1, 1], [], []>} : vector<288x128xbf16>, vector<128x128xbf16>, vector<288x128xf32> -> vector<288x128xf32>
    %117 = arith.addf %111, %116 : vector<288x128xf32>
    %c7_78 = arith.constant 7 : index
    %c0_79 = arith.constant 0 : index
    %118 = vector.load %arg12[%c7_78, %c0_79] : memref<331x128xf32, #tpu.memory_space<vmem>>, vector<288x128xf32>
    %119 = arith.truncf %118 : vector<288x128xf32> to vector<288x128xbf16>
    %c2_80 = arith.constant 2 : index
    %c0_81 = arith.constant 0 : index
    %c0_82 = arith.constant 0 : index
    %120 = vector.load %arg5[%c2_80, %c0_81, %c0_82] : memref<9x128x128xbf16, #tpu.memory_space<vmem>>, vector<1x128x128xbf16>
    %121 = vector.shape_cast %120 : vector<1x128x128xbf16> to vector<128x128xbf16>
    %cst_83 = arith.constant dense<0.000000e+00> : vector<288x128xf32>
    %122 = tpu.matmul %119, %121, %cst_83 {dimension_numbers = #tpu.dot_dimension_numbers<[1], [0], [0], [1], [0, 0, 1, 1], [], []>} : vector<288x128xbf16>, vector<128x128xbf16>, vector<288x128xf32> -> vector<288x128xf32>
    %123 = arith.addf %117, %122 : vector<288x128xf32>
    %c23 = arith.constant 23 : index
    %c0_84 = arith.constant 0 : index
    %124 = vector.load %arg12[%c23, %c0_84] : memref<331x128xf32, #tpu.memory_space<vmem>>, vector<288x128xf32>
    %125 = arith.truncf %124 : vector<288x128xf32> to vector<288x128xbf16>
    %c3_85 = arith.constant 3 : index
    %c0_86 = arith.constant 0 : index
    %c0_87 = arith.constant 0 : index
    %126 = vector.load %arg5[%c3_85, %c0_86, %c0_87] : memref<9x128x128xbf16, #tpu.memory_space<vmem>>, vector<1x128x128xbf16>
    %127 = vector.shape_cast %126 : vector<1x128x128xbf16> to vector<128x128xbf16>
    %cst_88 = arith.constant dense<0.000000e+00> : vector<288x128xf32>
    %128 = tpu.matmul %125, %127, %cst_88 {dimension_numbers = #tpu.dot_dimension_numbers<[1], [0], [0], [1], [0, 0, 1, 1], [], []>} : vector<288x128xbf16>, vector<128x128xbf16>, vector<288x128xf32> -> vector<288x128xf32>
    %129 = arith.addf %123, %128 : vector<288x128xf32>
    %c24_89 = arith.constant 24 : index
    %c0_90 = arith.constant 0 : index
    %130 = vector.load %arg12[%c24_89, %c0_90] : memref<331x128xf32, #tpu.memory_space<vmem>>, vector<288x128xf32>
    %131 = arith.truncf %130 : vector<288x128xf32> to vector<288x128xbf16>
    %c4_91 = arith.constant 4 : index
    %c0_92 = arith.constant 0 : index
    %c0_93 = arith.constant 0 : index
    %132 = vector.load %arg5[%c4_91, %c0_92, %c0_93] : memref<9x128x128xbf16, #tpu.memory_space<vmem>>, vector<1x128x128xbf16>
    %133 = vector.shape_cast %132 : vector<1x128x128xbf16> to vector<128x128xbf16>
    %cst_94 = arith.constant dense<0.000000e+00> : vector<288x128xf32>
    %134 = tpu.matmul %131, %133, %cst_94 {dimension_numbers = #tpu.dot_dimension_numbers<[1], [0], [0], [1], [0, 0, 1, 1], [], []>} : vector<288x128xbf16>, vector<128x128xbf16>, vector<288x128xf32> -> vector<288x128xf32>
    %135 = arith.addf %129, %134 : vector<288x128xf32>
    %c25 = arith.constant 25 : index
    %c0_95 = arith.constant 0 : index
    %136 = vector.load %arg12[%c25, %c0_95] : memref<331x128xf32, #tpu.memory_space<vmem>>, vector<288x128xf32>
    %137 = arith.truncf %136 : vector<288x128xf32> to vector<288x128xbf16>
    %c5_96 = arith.constant 5 : index
    %c0_97 = arith.constant 0 : index
    %c0_98 = arith.constant 0 : index
    %138 = vector.load %arg5[%c5_96, %c0_97, %c0_98] : memref<9x128x128xbf16, #tpu.memory_space<vmem>>, vector<1x128x128xbf16>
    %139 = vector.shape_cast %138 : vector<1x128x128xbf16> to vector<128x128xbf16>
    %cst_99 = arith.constant dense<0.000000e+00> : vector<288x128xf32>
    %140 = tpu.matmul %137, %139, %cst_99 {dimension_numbers = #tpu.dot_dimension_numbers<[1], [0], [0], [1], [0, 0, 1, 1], [], []>} : vector<288x128xbf16>, vector<128x128xbf16>, vector<288x128xf32> -> vector<288x128xf32>
    %141 = arith.addf %135, %140 : vector<288x128xf32>
    %c41 = arith.constant 41 : index
    %c0_100 = arith.constant 0 : index
    %142 = vector.load %arg12[%c41, %c0_100] : memref<331x128xf32, #tpu.memory_space<vmem>>, vector<288x128xf32>
    %143 = arith.truncf %142 : vector<288x128xf32> to vector<288x128xbf16>
    %c6_101 = arith.constant 6 : index
    %c0_102 = arith.constant 0 : index
    %c0_103 = arith.constant 0 : index
    %144 = vector.load %arg5[%c6_101, %c0_102, %c0_103] : memref<9x128x128xbf16, #tpu.memory_space<vmem>>, vector<1x128x128xbf16>
    %145 = vector.shape_cast %144 : vector<1x128x128xbf16> to vector<128x128xbf16>
    %cst_104 = arith.constant dense<0.000000e+00> : vector<288x128xf32>
    %146 = tpu.matmul %143, %145, %cst_104 {dimension_numbers = #tpu.dot_dimension_numbers<[1], [0], [0], [1], [0, 0, 1, 1], [], []>} : vector<288x128xbf16>, vector<128x128xbf16>, vector<288x128xf32> -> vector<288x128xf32>
    %147 = arith.addf %141, %146 : vector<288x128xf32>
    %c42 = arith.constant 42 : index
    %c0_105 = arith.constant 0 : index
    %148 = vector.load %arg12[%c42, %c0_105] : memref<331x128xf32, #tpu.memory_space<vmem>>, vector<288x128xf32>
    %149 = arith.truncf %148 : vector<288x128xf32> to vector<288x128xbf16>
    %c7_106 = arith.constant 7 : index
    %c0_107 = arith.constant 0 : index
    %c0_108 = arith.constant 0 : index
    %150 = vector.load %arg5[%c7_106, %c0_107, %c0_108] : memref<9x128x128xbf16, #tpu.memory_space<vmem>>, vector<1x128x128xbf16>
    %151 = vector.shape_cast %150 : vector<1x128x128xbf16> to vector<128x128xbf16>
    %cst_109 = arith.constant dense<0.000000e+00> : vector<288x128xf32>
    %152 = tpu.matmul %149, %151, %cst_109 {dimension_numbers = #tpu.dot_dimension_numbers<[1], [0], [0], [1], [0, 0, 1, 1], [], []>} : vector<288x128xbf16>, vector<128x128xbf16>, vector<288x128xf32> -> vector<288x128xf32>
    %153 = arith.addf %147, %152 : vector<288x128xf32>
    %c43 = arith.constant 43 : index
    %c0_110 = arith.constant 0 : index
    %154 = vector.load %arg12[%c43, %c0_110] : memref<331x128xf32, #tpu.memory_space<vmem>>, vector<288x128xf32>
    %155 = arith.truncf %154 : vector<288x128xf32> to vector<288x128xbf16>
    %c8_111 = arith.constant 8 : index
    %c0_112 = arith.constant 0 : index
    %c0_113 = arith.constant 0 : index
    %156 = vector.load %arg5[%c8_111, %c0_112, %c0_113] : memref<9x128x128xbf16, #tpu.memory_space<vmem>>, vector<1x128x128xbf16>
    %157 = vector.shape_cast %156 : vector<1x128x128xbf16> to vector<128x128xbf16>
    %cst_114 = arith.constant dense<0.000000e+00> : vector<288x128xf32>
    %158 = tpu.matmul %155, %157, %cst_114 {dimension_numbers = #tpu.dot_dimension_numbers<[1], [0], [0], [1], [0, 0, 1, 1], [], []>} : vector<288x128xbf16>, vector<128x128xbf16>, vector<288x128xf32> -> vector<288x128xf32>
    %159 = arith.addf %153, %158 : vector<288x128xf32>
    %c0_115 = arith.constant 0 : index
    %c0_116 = arith.constant 0 : index
    %160 = vector.load %arg6[%c0_115, %c0_116] : memref<1x128xf32, #tpu.memory_space<vmem>>, vector<1x128xf32>
    %161 = vector.broadcast %160 : vector<1x128xf32> to vector<288x128xf32>
    %162 = arith.mulf %159, %161 : vector<288x128xf32>
    %c0_117 = arith.constant 0 : index
    %c0_118 = arith.constant 0 : index
    %163 = vector.load %arg7[%c0_117, %c0_118] : memref<1x128xf32, #tpu.memory_space<vmem>>, vector<1x128xf32>
    %164 = vector.broadcast %163 : vector<1x128xf32> to vector<288x128xf32>
    %165 = arith.addf %162, %164 : vector<288x128xf32>
    %c0_119 = arith.constant 0 : index
    %c19_120 = arith.constant 19 : index
    %c0_121 = arith.constant 0 : index
    %166 = vector.load %arg1[%c0_119, %c19_120, %c0_121] : memref<1x324x128xf32, #tpu.memory_space<vmem>>, vector<1x288x128xf32>
    %167 = vector.shape_cast %166 : vector<1x288x128xf32> to vector<288x128xf32>
    %168 = arith.truncf %167 : vector<288x128xf32> to vector<288x128xbf16>
    %c0_122 = arith.constant 0 : index
    %c0_123 = arith.constant 0 : index
    %169 = vector.load %arg8[%c0_122, %c0_123] : memref<128x128xbf16, #tpu.memory_space<vmem>>, vector<128x128xbf16>
    %cst_124 = arith.constant dense<0.000000e+00> : vector<288x128xf32>
    %170 = tpu.matmul %168, %169, %cst_124 {dimension_numbers = #tpu.dot_dimension_numbers<[1], [0], [0], [1], [0, 0, 1, 1], [], []>} : vector<288x128xbf16>, vector<128x128xbf16>, vector<288x128xf32> -> vector<288x128xf32>
    %c0_125 = arith.constant 0 : index
    %c0_126 = arith.constant 0 : index
    %171 = vector.load %arg9[%c0_125, %c0_126] : memref<1x128xf32, #tpu.memory_space<vmem>>, vector<1x128xf32>
    %172 = vector.broadcast %171 : vector<1x128xf32> to vector<288x128xf32>
    %173 = arith.mulf %170, %172 : vector<288x128xf32>
    %c0_127 = arith.constant 0 : index
    %c0_128 = arith.constant 0 : index
    %174 = vector.load %arg10[%c0_127, %c0_128] : memref<1x128xf32, #tpu.memory_space<vmem>>, vector<1x128xf32>
    %175 = vector.broadcast %174 : vector<1x128xf32> to vector<288x128xf32>
    %176 = arith.addf %173, %175 : vector<288x128xf32>
    %177 = arith.addf %165, %176 : vector<288x128xf32>
    %cst_129 = arith.constant 0.000000e+00 : f32
    %178 = vector.broadcast %cst_129 : f32 to vector<288x128xf32>
    %179 = arith.maximumf %177, %178 : vector<288x128xf32>
    %180 = vector.shape_cast %179 : vector<288x128xf32> to vector<1x288x128xf32>
    %c0_130 = arith.constant 0 : index
    %c0_131 = arith.constant 0 : index
    %c0_132 = arith.constant 0 : index
    %181 = vector.load %arg11[%c0_130, %c0_131, %c0_132] : memref<1x288x128xf32, #tpu.memory_space<vmem>>, vector<1x288x128xf32>
    tpu.vector_store %arg11[%c0_130, %c0_131, %c0_132], %180 {strides = array<i32>} : memref<1x288x128xf32, #tpu.memory_space<vmem>>, vector<1x288x128xf32>,
    return
  }
  func.func @transform_0(%arg0: i32) -> (i32, i32, i32) {
    %c0_i32 = arith.constant 0 : i32
    %c0_i32_0 = arith.constant 0 : i32
    %c0_i32_1 = arith.constant 0 : i32
    return %arg0, %c0_i32, %c0_i32_0 : i32, i32, i32
  }
  func.func @transform_1(%arg0: i32) -> (i32, i32, i32) {
    %c0_i32 = arith.constant 0 : i32
    %c0_i32_0 = arith.constant 0 : i32
    %c0_i32_1 = arith.constant 0 : i32
    %c0_i32_2 = arith.constant 0 : i32
    return %c0_i32, %c0_i32_0, %c0_i32_1 : i32, i32, i32
  }
  func.func @transform_2(%arg0: i32) -> (i32, i32) {
    %c0_i32 = arith.constant 0 : i32
    %c0_i32_0 = arith.constant 0 : i32
    %c0_i32_1 = arith.constant 0 : i32
    return %c0_i32, %c0_i32_0 : i32, i32
  }
  func.func @transform_3(%arg0: i32) -> (i32, i32) {
    %c0_i32 = arith.constant 0 : i32
    %c0_i32_0 = arith.constant 0 : i32
    %c0_i32_1 = arith.constant 0 : i32
    return %c0_i32, %c0_i32_0 : i32, i32
  }
  func.func @transform_4(%arg0: i32) -> (i32, i32, i32) {
    %c0_i32 = arith.constant 0 : i32
    %c0_i32_0 = arith.constant 0 : i32
    %c0_i32_1 = arith.constant 0 : i32
    %c0_i32_2 = arith.constant 0 : i32
    return %c0_i32, %c0_i32_0, %c0_i32_1 : i32, i32, i32
  }
  func.func @transform_5(%arg0: i32) -> (i32, i32) {
    %c0_i32 = arith.constant 0 : i32
    %c0_i32_0 = arith.constant 0 : i32
    %c0_i32_1 = arith.constant 0 : i32
    return %c0_i32, %c0_i32_0 : i32, i32
  }
  func.func @transform_6(%arg0: i32) -> (i32, i32) {
    %c0_i32 = arith.constant 0 : i32
    %c0_i32_0 = arith.constant 0 : i32
    %c0_i32_1 = arith.constant 0 : i32
    return %c0_i32, %c0_i32_0 : i32, i32
  }
  func.func @transform_7(%arg0: i32) -> (i32, i32) {
    %c0_i32 = arith.constant 0 : i32
    %c0_i32_0 = arith.constant 0 : i32
    %c0_i32_1 = arith.constant 0 : i32
    return %c0_i32, %c0_i32_0 : i32, i32
  }
  func.func @transform_8(%arg0: i32) -> (i32, i32) {
    %c0_i32 = arith.constant 0 : i32
    %c0_i32_0 = arith.constant 0 : i32
    %c0_i32_1 = arith.constant 0 : i32
    return %c0_i32, %c0_i32_0 : i32, i32
  }
  func.func @transform_9(%arg0: i32) -> (i32, i32) {
    %c0_i32 = arith.constant 0 : i32
    %c0_i32_0 = arith.constant 0 : i32
    %c0_i32_1 = arith.constant 0 : i32
    return %c0_i32, %c0_i32_0 : i32, i32
  }
  func.func @transform_10(%arg0: i32) -> (i32, i32, i32) {
    %c0_i32 = arith.constant 0 : i32
    %c0_i32_0 = arith.constant 0 : i32
    %c0_i32_1 = arith.constant 0 : i32
    return %arg0, %c0_i32, %c0_i32_0 : i32, i32, i32
  }
}

</mosaic_0001>

<bundles_post_ra>
// kernel: tpu_custom_call.1
= control target key start
LH: loop header
LB: loop body
LE: loop exit
PB: predicated region body
PF: predicated region fallthrough
CT: control target
= control target key end

     0   :  { %15 = vsyncpa [#allocation4], 0  ;;  %s13531_s0 = inlined_call_operand.vmem [shape: f32[2,324,128], index: 0, kind: input, shape index: {}]   ;;  %s13532_s1 = inlined_call_operand.vmem [shape: bf16[9,128,128], index: 1, kind: input, shape index: {}]   ;;  %s13533_s2 = inlined_call_operand.vmem [shape: f32[1,128], index: 2, kind: input, shape index: {}]   ;;  %s13534_s3 = inlined_call_operand.vmem [shape: f32[1,128], index: 3, kind: input, shape index: {}]   ;;  %s13535_s4 = inlined_call_operand.vmem [shape: bf16[9,128,128], index: 4, kind: input, shape index: {}]   ;;  %s13536_s5 = inlined_call_operand.vmem [shape: f32[1,128], index: 5, kind: input, shape index: {}]   ;;  %s13537_s6 = inlined_call_operand.vmem [shape: f32[1,128], index: 6, kind: input, shape index: {}]   ;;  %s13538_s7 = inlined_call_operand.vmem [shape: bf16[128,128], index: 7, kind: input, shape index: {}]   ;;  %s13539_s8 = inlined_call_operand.vmem [shape: f32[1,128], index: 8, kind: input, shape index: {}]   ;;  %s13540_s9 = inlined_call_operand.vmem [shape: f32[1,128], index: 9, kind: input, shape index: {}]   ;;  %s13541_s10 = inlined_call_operand.hbm [shape: f32[2,288,128], index: 10, kind: output, shape index: {}]  }
   0x1   :  { %17 = vsyncpa [#allocation4 + $0x1], 0  ;;  %s10763_s13 = smov 0   ;;  %s10765_s14 = smov 0  }
   0x2   :  { %s10767_s15 = smov 0   ;;  %s10769_s16 = smov 0  }
   0x3 LB: > { %s10784_s17 = sadd.s32 4294967295, %s10701_s16   ;;  %s7869_s18 = sadd.s32 4294967294, %s10701_s16   ;;  %s10701_s16 = sphi %s10769_s16, %s13730_s16   ;;  %s10697_s15 = sphi %s10767_s15, %s13729_s15   ;;  %s10693_s14 = sphi %s10765_s14, %s13728_s14   ;;  %s10689_s13 = sphi %s10763_s13, %s13727_s13  }
   0x4   : > { %s10788_s19 = sadd.s32 1, %s10701_s16   ;;  %s245_s20 = sadd.s32 1, %s10697_s15 }
   0x5   : > { %s242_s21 = ssub.s32 %s10701_s16, %s10788_s19  ;;  %p255_p0 = scmp.ne.s32.totalorder %s10697_s15, %s10693_s14 }
   0x6   : > { %p243_p1 = scmp.eq.s32.totalorder %s242_s21, 0  ;;  %p256_p2 = scmp.eq.s32.totalorder %s10784_s17, 1 }
   0x7   : > { %p261_p3 = scmp.ne.s32.totalorder %s10693_s14, %s10689_s13  ;;  %p262_p4 = scmp.eq.s32.totalorder %s7869_s18, 1 }
   0x8   : > { %s10799_s22 = scalar_select %p243_p1, %s10697_s15, %s245_s20  }
   0x9   : > { %p10801_p5 = por %p256_p2, %p255_p0  ;;  %p10805_p6 = por %p262_p4, %p261_p3 }
   0xa   : > { %p7872_p7 = scmp.ge.s32.totalorder %s10701_s16, 1  ;;  %p315_p8 = scmp.lt.s32.totalorder %s10701_s16, 3 }
   0xc   : > { %p316_p9 = pnand %p7872_p7, %p315_p8 }
   0xe   : > { %319 = sbr.rel (%p316_p9) target bundleno = 1711 (0x6af), region = 60 }
  0x15   : > { %v10482_v0 = vld [vmem:[%s13532_s1 + $0x40] sm:$0xff]   ;;  %p353_p10 = scmp.lt.s32.totalorder %s10784_s17, 1  ;;  %v10483_v1 = vld [vmem:[%s13532_s1 + $0x48] sm:$0xff]   ;;  %v10484_v2 = vld [vmem:[%s13532_s1 + $0x50] sm:$0xff]   ;;  %s350_s25 = sand.u32 1, %s10693_s14  }
  0x16   : > { %8785 = vmatprep.subr.bf16.mxu0 %v10482_v0  ;;  %9773 = vmatprep.subr.bf16.mxu1 %v10482_v0  ;;  %v10485_v3 = vld [vmem:[%s13532_s1 + $0x58] sm:$0xff]   ;;  %v10486_v7 = vld [vmem:[%s13532_s1 + $0x60] sm:$0xff]   ;;  %v10487_v8 = vld [vmem:[%s13532_s1 + $0x68] sm:$0xff]   ;;  %s10365_s28 = smul.u32 288, %s350_s25  ;;  %s10705_s26 = smov [#allocation3]  }
  0x17   : > { %s354_s29 = scalar_select %p353_p10, %s10784_s17, 1  ;;  %8786 = vmatpush3.bf16.msra.mxu0 %v10482_v0  ;;  %9781 = vmatpush3.bf16.msra.mxu1 %v10482_v0  ;;  %v10488_v9 = vld [vmem:[%s13532_s1 + $0x70] sm:$0xff]   ;;  %v10489_v10 = vld [vmem:[%s13532_s1 + $0x78] sm:$0xff]   ;;  %v10490_v13 = vld [vmem:[%s13532_s1] sm:$0xff]  }
  0x18   : > { %8787 = vmatprep.subr.bf16.mxu0 %v10483_v1  ;;  %9774 = vmatprep.subr.bf16.mxu1 %v10483_v1  ;;  %v10491_v18 = vld [vmem:[%s13532_s1 + $0x8] sm:$0xff]   ;;  %v10492_v21 = vld [vmem:[%s13532_s1 + $0x10] sm:$0xff]   ;;  %v10493_v26 = vld [vmem:[%s13532_s1 + $0x18] sm:$0xff]   ;;  %s10439_s30 = smul.u32 4608, %s10784_s17  ;;  %s13490_s17 = scalar_lea.sflag [#allocation4], %s350_s25 }
  0x19   : > { %s10366_s12 = smul.u32 328, %s354_s29  ;;  %v10494_v29 = vld [vmem:[%s13532_s1 + $0x20] sm:$0xff]   ;;  %v10495_v34 = vld [vmem:[%s13532_s1 + $0x28] sm:$0xff]   ;;  %v10496_v37 = vld [vmem:[%s13532_s1 + $0x30] sm:$0xff]   ;;  %s13285_s29 = scalar_lea.vmem [#allocation3], %s10365_s28 }
  0x1a   : > { %v10497_v42 = vld [vmem:[%s13532_s1 + $0x38] sm:$0xff]   ;;  %v10498_v45 = vld [vmem:[%s13532_s1 + $0x80] sm:$0xff]   ;;  %v10499_v49 = vld [vmem:[%s13532_s1 + $0x88] sm:$0xff]   ;;  %s7807_s11 = sshll.u32 %s13285_s29, 4  ;;  %s13481_s18 = scalar_lea.hbm %s13541_s10, %s10439_s30  ;;  %s13484_s11 = int_to_ptr.vmem [resolvable:$true] %s7807_s11 }
  0x1b   : > { %s10825_s21 = scalar_lea.vmem %s13531_s0, %s10366_s12  ;;  %8788 = vmatpush3.bf16.msra.mxu0 %v10483_v1  ;;  %9782 = vmatpush3.bf16.msra.mxu1 %v10483_v1  ;;  %v10500_v55 = vld [vmem:[%s13532_s1 + $0x90] sm:$0xff]   ;;  %v10501_v57 = vld [vmem:[%s13532_s1 + $0x98] sm:$0xff]   ;;  %v10502_v63 = vld [vmem:[%s13532_s1 + $0xa0] sm:$0xff]   ;;  %s10639_s20 = scalar_lea.vmem %s13484_s11, 4608 }
  0x1c   : > { %8789 = vmatprep.subr.bf16.mxu0 %v10484_v2  ;;  %v429_v4 = vld [vmem:[%s10825_s21 + $0x1] sm:$0xff]  ;;  %v430_v5 = vld [vmem:[%s10825_s21 + $0x9] sm:$0xff]  ;;  %9775 = vmatprep.subr.bf16.mxu1 %v10484_v2  ;;  %v431_v11 = vld [vmem:[%s10825_s21 + $0x11] sm:$0xff]  ;;  %p10640_p11 = scmp.ne.s32.totalorder %s13484_s11, %s10639_s20  ;;  %s10643_s27 = sshll.u32 %s10705_s26, 4  ;;  %s10644_s27 = int_to_ptr.vmem [resolvable:$false] %s10643_s27 }
  0x1d   : > { %v465_v6 = vpack.c.bf16 %v430_v5, %v429_v4  ;;  %v432_v12 = vld [vmem:[%s10825_s21 + $0x19] sm:$0xff]  ;;  %v433_v14 = vld [vmem:[%s10825_s21 + $0x21] sm:$0xff]  ;;  %v434_v15 = vld [vmem:[%s10825_s21 + $0x29] sm:$0xff]  ;;  %s10645_s28 = scalar_lea.vmem %s10644_s27, 9216  ;;  %p10646_p0 = scmp.lt.s32.totalorder %s13484_s11, %s10644_s27 }
  0x1e   : > { %v466_v16 = vpack.c.bf16 %v432_v12, %v431_v11  ;;  %v467_v17 = vpack.c.bf16 %v434_v15, %v433_v14  ;;  %v435_v19 = vld [vmem:[%s10825_s21 + $0x31] sm:$0xff]  ;;  %v436_v20 = vld [vmem:[%s10825_s21 + $0x39] sm:$0xff]  ;;  %v437_v22 = vld [vmem:[%s10825_s21 + $0x41] sm:$0xff]  ;;  %p10641_p12 = pnand %p10640_p11, %p10801_p5  ;;  %p10647_p1 = scmp.lt.s32.totalorder %s10645_s28, %s10639_s20 }
  0x1f   : > { %8790 = vmatpush3.bf16.msra.mxu0 %v10484_v2  ;;  %8801 = vmatprep.mubr.bf16.mxu0 %v465_v6  ;;  %v438_v23 = vld [vmem:[%s10825_s21 + $0x49] sm:$0xff]  ;;  %v468_v24 = vpack.c.bf16 %v436_v20, %v435_v19  ;;  %v439_v27 = vld [vmem:[%s10825_s21 + $0x51] sm:$0xff]  ;;  %v440_v28 = vld [vmem:[%s10825_s21 + $0x59] sm:$0xff] }
  0x20   : > { %8791 = vmatprep.subr.bf16.mxu0 %v10485_v3  ;;  %9783 = vmatpush3.bf16.msra.mxu1 %v10484_v2  ;;  %v469_v25 = vpack.c.bf16 %v438_v23, %v437_v22  ;;  %v441_v30 = vld [vmem:[%s10825_s21 + $0x61] sm:$0xff]  ;;  %v442_v31 = vld [vmem:[%s10825_s21 + $0x69] sm:$0xff]  ;;  %v470_v32 = vpack.c.bf16 %v440_v28, %v439_v27  ;;  %v443_v35 = vld [vmem:[%s10825_s21 + $0x71] sm:$0xff]  ;;  %p10642_p13 = pneg %p10641_p12  ;;  %p10648_p2 = por %p10647_p1, %p10646_p0 }
  0x21   : > { %9776 = vmatprep.subr.bf16.mxu1 %v10485_v3  ;;  %v471_v33 = vpack.c.bf16 %v442_v31, %v441_v30  ;;  %v444_v36 = vld [vmem:[%s10825_s21 + $0x79] sm:$0xff]  ;;  %v360_v39 = vld [vmem:[%s10825_s21 + $0x8] sm:$0xff]  ;;  %v361_v43 = vld [vmem:[%s10825_s21 + $0x10] sm:$0xff] }
  0x22   : > { %v359_v38 = vld [vmem:[%s10825_s21] sm:$0xff]  ;;  %v472_v40 = vpack.c.bf16 %v444_v36, %v443_v35  ;;  %v362_v44 = vld [vmem:[%s10825_s21 + $0x18] sm:$0xff]  ;;  %v364_v47 = vld [vmem:[%s10825_s21 + $0x28] sm:$0xff]  ;;  %p10649_p3 = pnand %p10648_p2, %p10642_p13 }
  0x23   : > { %8792 = vmatpush3.bf16.msra.mxu0 %v10485_v3  ;;  %v395_v41 = vpack.c.bf16 %v360_v39, %v359_v38  ;;  %v363_v46 = vld [vmem:[%s10825_s21 + $0x20] sm:$0xff]  ;;  %v396_v48 = vpack.c.bf16 %v362_v44, %v361_v43  ;;  %v365_v51 = vld [vmem:[%s10825_s21 + $0x30] sm:$0xff]  ;;  %v366_v52 = vld [vmem:[%s10825_s21 + $0x38] sm:$0xff] }
  0x24   : > { %8793 = vmatprep.subr.bf16.mxu0 %v10486_v7  ;;  %9784 = vmatpush3.bf16.msra.mxu1 %v10485_v3  ;;  %v397_v50 = vpack.c.bf16 %v364_v47, %v363_v46  ;;  %v367_v53 = vld [vmem:[%s10825_s21 + $0x40] sm:$0xff]  ;;  %v368_v54 = vld [vmem:[%s10825_s21 + $0x48] sm:$0xff]  ;;  %v398_v56 = vpack.c.bf16 %v366_v52, %v365_v51  ;;  %v369_v59 = vld [vmem:[%s10825_s21 + $0x50] sm:$0xff] }
  0x25   : > { %9777 = vmatprep.subr.bf16.mxu1 %v10486_v7  ;;  %v399_v58 = vpack.c.bf16 %v368_v54, %v367_v53  ;;  %v370_v60 = vld [vmem:[%s10825_s21 + $0x58] sm:$0xff]  ;;  %v371_v61 = vld [vmem:[%s10825_s21 + $0x60] sm:$0xff]  ;;  %v372_v62 = vld [vmem:[%s10825_s21 + $0x68] sm:$0xff] }
  0x26   : > { %v400_v0 = vpack.c.bf16 %v370_v60, %v369_v59  ;;  %v10503_v1 = vld [vmem:[%s13532_s1 + $0xa8] sm:$0xff]   ;;  %v401_v2 = vpack.c.bf16 %v372_v62, %v371_v61  ;;  %v373_v3 = vld [vmem:[%s10825_s21 + $0x70] sm:$0xff]  ;;  %v374_v4 = vld [vmem:[%s10825_s21 + $0x78] sm:$0xff] }
  0x27   : > { %8794 = vmatpush3.bf16.msra.mxu0 %v10486_v7  ;;  %v375_v5 = vld [vmem:[%s10825_s21 + $0x80] sm:$0xff]  ;;  %v376_v6 = vld [vmem:[%s10825_s21 + $0x88] sm:$0xff]  ;;  %v377_v11 = vld [vmem:[%s10825_s21 + $0x90] sm:$0xff] }
  0x28   : > { %8795 = vmatprep.subr.bf16.mxu0 %v10487_v8  ;;  %9785 = vmatpush3.bf16.msra.mxu1 %v10486_v7  ;;  %v10504_v7 = vld [vmem:[%s13532_s1 + $0xb0] sm:$0xff]   ;;  %v378_v12 = vld [vmem:[%s10825_s21 + $0x98] sm:$0xff]  ;;  %v380_v14 = vld [vmem:[%s10825_s21 + $0xa8] sm:$0xff] }
  0x29   : > { %9778 = vmatprep.subr.bf16.mxu1 %v10487_v8  ;;  %v10506_v15 = vld [vmem:[%s13532_s1 + $0xc0] sm:$0xff]   ;;  %v382_v19 = vld [vmem:[%s10825_s21 + $0xb8] sm:$0xff]  ;;  %v388_v27 = vld [vmem:[%s10825_s21 + $0xe8] sm:$0xff] }
  0x2a   : > { %v383_v20 = vld [vmem:[%s10825_s21 + $0xc0] sm:$0xff]  ;;  %v389_v30 = vld [vmem:[%s10825_s21 + $0xf0] sm:$0xff]  ;;  %v390_v31 = vld [vmem:[%s10825_s21 + $0xf8] sm:$0xff] }
  0x2b   : > { %8796 = vmatpush3.bf16.msra.mxu0 %v10487_v8  ;;  %v393_v36 = vld [vmem:[%s10825_s21 + $0x110] sm:$0xff]  ;;  %v950_v38 = vld [vmem:[%s10825_s21 + $0x2] sm:$0xff]  ;;  %v953_v43 = vld [vmem:[%s10825_s21 + $0x1a] sm:$0xff] }
  0x2c   : > { %8797 = vmatprep.subr.bf16.mxu0 %v10488_v9  ;;  %9786 = vmatpush3.bf16.msra.mxu1 %v10487_v8  ;;  %v402_v8 = vpack.c.bf16 %v374_v4, %v373_v3  ;;  %v951_v39 = vld [vmem:[%s10825_s21 + $0xa] sm:$0xff]  ;;  %v954_v44 = vld [vmem:[%s10825_s21 + $0x22] sm:$0xff] }
  0x2d   : > { %9779 = vmatprep.subr.bf16.mxu1 %v10488_v9  ;;  %v10507_v47 = vld [vmem:[%s13532_s1 + $0xc8] sm:$0xff]   ;;  %v10508_v53 = vld [vmem:[%s13532_s1 + $0xd0] sm:$0xff]   ;;  %v10510_v61 = vld [vmem:[%s13532_s1 + $0xe0] sm:$0xff]  }
  0x2e   : > { %v958_v51 = vld [vmem:[%s10825_s21 + $0x42] sm:$0xff]  ;;  %v959_v52 = vld [vmem:[%s10825_s21 + $0x4a] sm:$0xff] }
  0x2f   : > { %8798 = vmatpush3.bf16.msra.mxu0 %v10488_v9  ;;  %v962_v59 = vld [vmem:[%s10825_s21 + $0x62] sm:$0xff]  ;;  %v963_v60 = vld [vmem:[%s10825_s21 + $0x6a] sm:$0xff] }
  0x30   : > { %8799 = vmatprep.subr.bf16.mxu0 %v10489_v10  ;;  %9787 = vmatpush3.bf16.msra.mxu1 %v10488_v9  ;;  %v10505_v9 = vld [vmem:[%s13532_s1 + $0xb8] sm:$0xff]   ;;  %v966_v3 = vld [vmem:[%s10825_s21 + $0x82] sm:$0xff]  ;;  %v967_v4 = vld [vmem:[%s10825_s21 + $0x8a] sm:$0xff] }
  0x31   : > { %9780 = vmatprep.subr.bf16.mxu1 %v10489_v10 }
  0x33   : > { %8800 = vmatpush3.bf16.msra.mxu0 %v10489_v10 }
  0x34   : > { %8837 = vmatprep.subr.bf16.mxu0 %v10490_v13  ;;  %9788 = vmatpush3.bf16.msra.mxu1 %v10489_v10  ;;  %v403_v10 = vpack.c.bf16 %v376_v6, %v375_v5  ;;  %v10512_v5 = vld [vmem:[%s13532_s1 + $0xf0] sm:$0xff]  }
  0x36   : > { %8802 = vmatmul.mubr.bf16.vlgmr.msra.gmra.mrb[0].mxu0 %v466_v16  ;;  %v404_v16 = vpack.c.bf16 %v378_v12, %v377_v11  ;;  %v970_v11 = vld [vmem:[%s10825_s21 + $0xa2] sm:$0xff]  ;;  %v971_v12 = vld [vmem:[%s10825_s21 + $0xaa] sm:$0xff] }
  0x37   : > { %8838 = vmatpush3.bf16.msra.mxu0 %v10490_v13  ;;  %8805 = vmatprep.mubr.bf16.mxu0 %v467_v17  ;;  %v379_v13 = vld [vmem:[%s10825_s21 + $0xa0] sm:$0xff] }
  0x38   : > { %8839 = vmatprep.subr.bf16.mxu0 %v10491_v18  ;;  %v405_v17 = vpack.c.bf16 %v380_v14, %v379_v13  ;;  %v10514_v13 = vld [vmem:[%s13532_s1 + $0x100] sm:$0xff]  }
  0x3b   : > { %8840 = vmatpush3.bf16.msra.mxu0 %v10491_v18  ;;  %v381_v18 = vld [vmem:[%s10825_s21 + $0xb0] sm:$0xff] }
  0x3c   : > { %8841 = vmatprep.subr.bf16.mxu0 %v10492_v21  ;;  %v406_v22 = vpack.c.bf16 %v382_v19, %v381_v18  ;;  %v974_v18 = vld [vmem:[%s10825_s21 + $0xc2] sm:$0xff]  ;;  %v975_v19 = vld [vmem:[%s10825_s21 + $0xca] sm:$0xff] }
  0x3e   : > { %8806 = vmatmul.mubr.bf16.gmra.mrb[4].mxu0 %v468_v24  ;;  %v385_v24 = vld [vmem:[%s10825_s21 + $0xd0] sm:$0xff] }
  0x3f   : > { %8842 = vmatpush3.bf16.msra.mxu0 %v10492_v21  ;;  %8809 = vmatprep.mubr.bf16.mxu0 %v469_v25  ;;  %v384_v21 = vld [vmem:[%s10825_s21 + $0xc8] sm:$0xff]  ;;  %v386_v25 = vld [vmem:[%s10825_s21 + $0xd8] sm:$0xff] }
  0x40   : > { %8843 = vmatprep.subr.bf16.mxu0 %v10493_v26  ;;  %v407_v23 = vpack.c.bf16 %v384_v21, %v383_v20  ;;  %v408_v28 = vpack.c.bf16 %v386_v25, %v385_v24  ;;  %v998_v21 = vpack.c.bf16 %v975_v19, %v974_v18  ;;  %v978_v24 = vld [vmem:[%s10825_s21 + $0xe2] sm:$0xff]  ;;  %v979_v25 = vld [vmem:[%s10825_s21 + $0xea] sm:$0xff]  ;;  %v10529_v19 = vld [vmem:[%s13532_s1 + $0x178] sm:$0xff]  }
  0x43   : > { %8844 = vmatpush3.bf16.msra.mxu0 %v10493_v26  ;;  %v387_v26 = vld [vmem:[%s10825_s21 + $0xe0] sm:$0xff] }
  0x44   : > { %8845 = vmatprep.subr.bf16.mxu0 %v10494_v29 }
  0x46   : > { %8810 = vmatmul.mubr.bf16.gmra.mrb[8].mxu0 %v470_v32  ;;  %v391_v32 = vld [vmem:[%s10825_s21 + $0x100] sm:$0xff] }
  0x47   : > { %8846 = vmatpush3.bf16.msra.mxu0 %v10494_v29  ;;  %8813 = vmatprep.mubr.bf16.mxu0 %v471_v33  ;;  %v409_v29 = vpack.c.bf16 %v388_v27, %v387_v26  ;;  %v392_v33 = vld [vmem:[%s10825_s21 + $0x108] sm:$0xff]  ;;  %v1000_v27 = vpack.c.bf16 %v979_v25, %v978_v24  ;;  %v10530_v24 = vld [vmem:[%s13532_s1 + $0x180] sm:$0xff]  }
  0x48   : > { %8847 = vmatprep.subr.bf16.mxu0 %v10495_v34  ;;  %v411_v35 = vpack.c.bf16 %v392_v33, %v391_v32 }
  0x4b   : > { %8848 = vmatpush3.bf16.msra.mxu0 %v10495_v34  ;;  %v410_v34 = vpack.c.bf16 %v390_v31, %v389_v30  ;;  %v982_v30 = vld [vmem:[%s10825_s21 + $0x102] sm:$0xff]  ;;  %v983_v31 = vld [vmem:[%s10825_s21 + $0x10a] sm:$0xff] }
  0x4c   : > { %8849 = vmatprep.subr.bf16.mxu0 %v10496_v37  ;;  %v1002_v33 = vpack.c.bf16 %v983_v31, %v982_v30  ;;  %v1639_v30 = vld [vmem:[%s10825_s21 + $0xdb] sm:$0xff] }
  0x4e   : > { %8814 = vmatmul.mubr.bf16.gmra.mrb[12].mxu0 %v472_v40 }
  0x4f   : > { %8850 = vmatpush3.bf16.msra.mxu0 %v10496_v37  ;;  %8853 = vmatprep.mubr.bf16.mxu0 %v395_v41  ;;  %v394_v37 = vld [vmem:[%s10825_s21 + $0x118] sm:$0x3f]  ;;  %v986_v41 = vpack.c.bf16 %v951_v39, %v950_v38  ;;  %v10516_v38 = vld [vmem:[%s13532_s1 + $0x110] sm:$0xff]  }
  0x50   : > { %8851 = vmatprep.subr.bf16.mxu0 %v10497_v42  ;;  %v412_v40 = vpack.c.bf16 %v394_v37, %v393_v36  ;;  %v10515_v37 = vld [vmem:[%s13532_s1 + $0x108] sm:$0xff]   ;;  %v10517_v39 = vld [vmem:[%s13532_s1 + $0x118] sm:$0xff]  }
  0x53   : > { %8852 = vmatpush3.bf16.msra.mxu0 %v10497_v42  ;;  %v952_v42 = vld [vmem:[%s10825_s21 + $0x12] sm:$0xff] }
  0x54   : > { %8889 = vmatprep.subr.bf16.mxu0 %v10498_v45  ;;  %v10951_v46 = vpack.c.bf16 %v953_v43, %v952_v42  ;;  %v10520_v42 = vld [vmem:[%s13532_s1 + $0x130] sm:$0xff]   ;;  %v10521_v43 = vld [vmem:[%s13532_s1 + $0x138] sm:$0xff]  }
  0x56   : > { %8854 = vmatmul.mubr.bf16.vlgmr.msra.gmra.mrb[0].mxu0 %v396_v48 }
  0x57   : > { %8890 = vmatpush3.bf16.msra.mxu0 %v10498_v45  ;;  %8857 = vmatprep.mubr.bf16.mxu0 %v397_v50  ;;  %v955_v45 = vld [vmem:[%s10825_s21 + $0x2a] sm:$0xff]  ;;  %v957_v50 = vld [vmem:[%s10825_s21 + $0x3a] sm:$0xff] }
  0x58   : > { %8891 = vmatprep.subr.bf16.mxu0 %v10499_v49  ;;  %v10956_v48 = vpack.c.bf16 %v955_v45, %v954_v44  ;;  %v10522_v44 = vld [vmem:[%s13532_s1 + $0x140] sm:$0xff]  }
  0x59   : > { %v1315_v45 = vld [vmem:[%s10825_s21 + $0x11a] sm:$0xff] }
  0x5b   : > { %8892 = vmatpush3.bf16.msra.mxu0 %v10499_v49  ;;  %v956_v49 = vld [vmem:[%s10825_s21 + $0x32] sm:$0xff] }
  0x5c   : > { %8893 = vmatprep.subr.bf16.mxu0 %v10500_v55  ;;  %v10967_v54 = vpack.c.bf16 %v957_v50, %v956_v49  ;;  %v1614_v49 = vld [vmem:[%s10825_s21 + $0x13] sm:$0xff]  ;;  %v1615_v50 = vld [vmem:[%s10825_s21 + $0x1b] sm:$0xff] }
  0x5e   : > { %8858 = vmatmul.mubr.bf16.gmra.mrb[4].mxu0 %v398_v56  ;;  %v10972_v56 = vpack.c.bf16 %v959_v52, %v958_v51  ;;  %v1650_v52 = vpack.c.bf16 %v1615_v50, %v1614_v49 }
  0x5f   : > { %8861 = vmatprep.mubr.bf16.mxu0 %v399_v58  ;;  %8894 = vmatpush3.bf16.msra.mxu0 %v10500_v55  ;;  %v10509_v55 = vld [vmem:[%s13532_s1 + $0xd8] sm:$0xff]  }
  0x60   : > { %8895 = vmatprep.subr.bf16.mxu0 %v10501_v57  ;;  %v961_v58 = vld [vmem:[%s10825_s21 + $0x5a] sm:$0xff] }
  0x63   : > { %8896 = vmatpush3.bf16.msra.mxu0 %v10501_v57  ;;  %v960_v57 = vld [vmem:[%s10825_s21 + $0x52] sm:$0xff] }
  0x64   : > { %8897 = vmatprep.subr.bf16.mxu0 %v10502_v63  ;;  %v10983_v62 = vpack.c.bf16 %v961_v58, %v960_v57 }
  0x66   : > { %8862 = vmatmul.mubr.bf16.gmra.mrb[8].mxu0 %v400_v0  ;;  %v10511_v0 = vld [vmem:[%s13532_s1 + $0xe8] sm:$0xff]  }
  0x67   : > { %8865 = vmatprep.mubr.bf16.mxu0 %v401_v2  ;;  %8898 = vmatpush3.bf16.msra.mxu0 %v10502_v63  ;;  %v10985_v63 = vpack.c.bf16 %v963_v60, %v962_v59  ;;  %v965_v2 = vld [vmem:[%s10825_s21 + $0x7a] sm:$0xff]  ;;  %v10523_v59 = vld [vmem:[%s13532_s1 + $0x148] sm:$0xff]  }
  0x68   : > { %8899 = vmatprep.subr.bf16.mxu0 %v10503_v1  ;;  %v1620_v60 = vld [vmem:[%s10825_s21 + $0x43] sm:$0xff] }
  0x6b   : > { %8900 = vmatpush3.bf16.msra.mxu0 %v10503_v1  ;;  %v964_v1 = vld [vmem:[%s10825_s21 + $0x72] sm:$0xff] }
  0x6c   : > { %8901 = vmatprep.subr.bf16.mxu0 %v10504_v7  ;;  %v10999_v6 = vpack.c.bf16 %v965_v2, %v964_v1 }
  0x6e   : > { %8866 = vmatmul.mubr.bf16.gmra.mrb[12].mxu0 %v402_v8  ;;  %v10513_v8 = vld [vmem:[%s13532_s1 + $0xf8] sm:$0xff]  }
  0x6f   : > { %8869 = vmatprep.mubr.bf16.mxu0 %v403_v10  ;;  %8902 = vmatpush3.bf16.msra.mxu0 %v10504_v7  ;;  %v11001_v7 = vpack.c.bf16 %v967_v4, %v966_v3  ;;  %v969_v10 = vld [vmem:[%s10825_s21 + $0x9a] sm:$0xff]  ;;  %v1624_v4 = vld [vmem:[%s10825_s21 + $0x63] sm:$0xff] }
  0x70   : > { %8903 = vmatprep.subr.bf16.mxu0 %v10505_v9  ;;  %v10525_v3 = vld [vmem:[%s13532_s1 + $0x158] sm:$0xff]  }
  0x73   : > { %8904 = vmatpush3.bf16.msra.mxu0 %v10505_v9  ;;  %v968_v9 = vld [vmem:[%s10825_s21 + $0x92] sm:$0xff] }
  0x74   : > { %8941 = vmatprep.subr.bf16.mxu0 %v10506_v15  ;;  %v995_v14 = vpack.c.bf16 %v969_v10, %v968_v9 }
  0x76   : > { %8870 = vmatmul.mubr.bf16.gmra.mrb[16].mxu0 %v404_v16  ;;  %v972_v16 = vld [vmem:[%s10825_s21 + $0xb2] sm:$0xff] }
  0x77   : > { %8873 = vmatprep.mubr.bf16.mxu0 %v405_v17  ;;  %v973_v17 = vld [vmem:[%s10825_s21 + $0xba] sm:$0xff] }
  0x78   : > { %v997_v20 = vpack.c.bf16 %v973_v17, %v972_v16  ;;  %v10528_v16 = vld [vmem:[%s13532_s1 + $0x170] sm:$0xff]  }
  0x7e   : > { %8874 = vmatmul.mubr.bf16.gmra.mrb[20].mxu0 %v406_v22  ;;  %v976_v22 = vld [vmem:[%s10825_s21 + $0xd2] sm:$0xff] }
  0x7f   : > { %8877 = vmatprep.mubr.bf16.mxu0 %v407_v23  ;;  %v977_v23 = vld [vmem:[%s10825_s21 + $0xda] sm:$0xff] }
  0x80   : > { %v999_v26 = vpack.c.bf16 %v977_v23, %v976_v22  ;;  %v1634_v22 = vld [vmem:[%s10825_s21 + $0xb3] sm:$0xff]  ;;  %v1635_v23 = vld [vmem:[%s10825_s21 + $0xbb] sm:$0xff] }
  0x86   : > { %8878 = vmatmul.mubr.bf16.gmra.mrb[24].mxu0 %v408_v28  ;;  %v980_v28 = vld [vmem:[%s10825_s21 + $0xf2] sm:$0xff] }
  0x87   : > { %8881 = vmatprep.mubr.bf16.mxu0 %v409_v29  ;;  %v981_v29 = vld [vmem:[%s10825_s21 + $0xfa] sm:$0xff] }
  0x88   : > { %v1001_v32 = vpack.c.bf16 %v981_v29, %v980_v28  ;;  %v1637_v28 = vld [vmem:[%s10825_s21 + $0xcb] sm:$0xff]  ;;  %v1638_v29 = vld [vmem:[%s10825_s21 + $0xd3] sm:$0xff] }
  0x8e   : > { %8882 = vmatmul.mubr.bf16.gmra.mrb[28].mxu0 %v410_v34  ;;  %v984_v34 = vld [vmem:[%s10825_s21 + $0x112] sm:$0xff] }
  0x8f   : > { %8885 = vmatprep.mubr.bf16.mxu0 %v411_v35  ;;  %v985_v35 = vld [vmem:[%s10825_s21 + $0x11a] sm:$0x3f] }
  0x90   : > { %v1003_v36 = vpack.c.bf16 %v985_v35, %v984_v34  ;;  %v1642_v35 = vld [vmem:[%s10825_s21 + $0xf3] sm:$0xff] }
  0x96   : > { %8886 = vmatmul.mubr.bf16.gmra.mrb[32].mxu0 %v412_v40  ;;  %v10518_v40 = vld [vmem:[%s13532_s1 + $0x120] sm:$0xff]  }
  0x97   : > { %8905 = vmatprep.mubr.bf16.mxu0 %v986_v41  ;;  %v10519_v41 = vld [vmem:[%s13532_s1 + $0x128] sm:$0xff]  }
  0x9e   : > { %8906 = vmatmul.mubr.bf16.vlgmr.msra.gmra.mrb[0].mxu0 %v10951_v46 }
  0x9f   : > { %8942 = vmatpush3.bf16.msra.mxu0 %v10506_v15  ;;  %8909 = vmatprep.mubr.bf16.mxu0 %v10956_v48  ;;  %v11015_v15 = vpack.c.bf16 %v971_v12, %v970_v11  ;;  %v10527_v11 = vld [vmem:[%s13532_s1 + $0x168] sm:$0xff]  }
  0xa0   : > { %8943 = vmatprep.subr.bf16.mxu0 %v10507_v47  ;;  %v1628_v12 = vld [vmem:[%s10825_s21 + $0x83] sm:$0xff] }
  0xa3   : > { %8944 = vmatpush3.bf16.msra.mxu0 %v10507_v47  ;;  %v1316_v47 = vld [vmem:[%s10825_s21 + $0x122] sm:$0xff] }
  0xa4   : > { %8945 = vmatprep.subr.bf16.mxu0 %v10508_v53 }
  0xa6   : > { %8910 = vmatmul.mubr.bf16.gmra.mrb[4].mxu0 %v10967_v54 }
  0xa7   : > { %8913 = vmatprep.mubr.bf16.mxu0 %v10972_v56  ;;  %8946 = vmatpush3.bf16.msra.mxu0 %v10508_v53  ;;  %v1616_v53 = vld [vmem:[%s10825_s21 + $0x23] sm:$0xff] }
  0xa8   : > { %8947 = vmatprep.subr.bf16.mxu0 %v10509_v55 }
  0xab   : > { %8948 = vmatpush3.bf16.msra.mxu0 %v10509_v55  ;;  %v1618_v55 = vld [vmem:[%s10825_s21 + $0x33] sm:$0xff] }
  0xac   : > { %8949 = vmatprep.subr.bf16.mxu0 %v10510_v61 }
  0xae   : > { %8914 = vmatmul.mubr.bf16.gmra.mrb[8].mxu0 %v10983_v62 }
  0xaf   : > { %8917 = vmatprep.mubr.bf16.mxu0 %v10985_v63  ;;  %8950 = vmatpush3.bf16.msra.mxu0 %v10510_v61  ;;  %v1621_v61 = vld [vmem:[%s10825_s21 + $0x4b] sm:$0xff] }
  0xb0   : > { %8951 = vmatprep.subr.bf16.mxu0 %v10511_v0  ;;  %v1653_v1 = vpack.c.bf16 %v1621_v61, %v1620_v60  ;;  %v1954_v60 = vld [vmem:[%s10825_s21 + $0x54] sm:$0xff]  ;;  %v1955_v61 = vld [vmem:[%s10825_s21 + $0x5c] sm:$0xff] }
  0xb3   : > { %8952 = vmatpush3.bf16.msra.mxu0 %v10511_v0  ;;  %v10524_v0 = vld [vmem:[%s13532_s1 + $0x150] sm:$0xff]  }
  0xb4   : > { %8953 = vmatprep.subr.bf16.mxu0 %v10512_v5 }
  0xb6   : > { %8918 = vmatmul.mubr.bf16.gmra.mrb[12].mxu0 %v10999_v6 }
  0xb7   : > { %8921 = vmatprep.mubr.bf16.mxu0 %v11001_v7  ;;  %8954 = vmatpush3.bf16.msra.mxu0 %v10512_v5  ;;  %v1625_v5 = vld [vmem:[%s10825_s21 + $0x6b] sm:$0xff] }
  0xb8   : > { %8955 = vmatprep.subr.bf16.mxu0 %v10513_v8  ;;  %v1655_v9 = vpack.c.bf16 %v1625_v5, %v1624_v4  ;;  %v1958_v4 = vld [vmem:[%s10825_s21 + $0x74] sm:$0xff]  ;;  %v1959_v5 = vld [vmem:[%s10825_s21 + $0x7c] sm:$0xff] }
  0xbb   : > { %8956 = vmatpush3.bf16.msra.mxu0 %v10513_v8  ;;  %v10526_v8 = vld [vmem:[%s13532_s1 + $0x160] sm:$0xff]  }
  0xbc   : > { %8993 = vmatprep.subr.bf16.mxu0 %v10514_v13 }
  0xbe   : > { %8922 = vmatmul.mubr.bf16.gmra.mrb[16].mxu0 %v995_v14 }
  0xbf   : > { %8925 = vmatprep.mubr.bf16.mxu0 %v11015_v15 }
  0xc6   : > { %8926 = vmatmul.mubr.bf16.gmra.mrb[20].mxu0 %v997_v20 }
  0xc7   : > { %8929 = vmatprep.mubr.bf16.mxu0 %v998_v21 }
  0xce   : > { %8930 = vmatmul.mubr.bf16.gmra.mrb[24].mxu0 %v999_v26 }
  0xcf   : > { %8933 = vmatprep.mubr.bf16.mxu0 %v1000_v27 }
  0xd6   : > { %8934 = vmatmul.mubr.bf16.gmra.mrb[28].mxu0 %v1001_v32 }
  0xd7   : > { %8937 = vmatprep.mubr.bf16.mxu0 %v1002_v33 }
  0xde   : > { %8938 = vmatmul.mubr.bf16.gmra.mrb[32].mxu0 %v1003_v36  ;;  %v1643_v36 = vld [vmem:[%s10825_s21 + $0xfb] sm:$0xff] }
  0xdf   : > { %8957 = vmatprep.mubr.bf16.mxu0 %v10951_v46  ;;  %v1334_v46 = vpack.c.bf16 %v1315_v45, %v984_v34  ;;  %v1641_v34 = vld [vmem:[%s10825_s21 + $0xeb] sm:$0xff]  ;;  %v1648_v45 = vld [vmem:[%s10825_s21 + $0x123] sm:$0xff] }
  0xe6   : > { %8958 = vmatmul.mubr.bf16.vlgmr.msra.gmra.mrb[0].mxu0 %v10956_v48  ;;  %v1317_v48 = vld [vmem:[%s10825_s21 + $0x12a] sm:$0x3f] }
  0xe7   : > { %8994 = vmatpush3.bf16.msra.mxu0 %v10514_v13  ;;  %8961 = vmatprep.mubr.bf16.mxu0 %v10967_v54  ;;  %v1335_v51 = vpack.c.bf16 %v1317_v48, %v1316_v47  ;;  %v1617_v54 = vld [vmem:[%s10825_s21 + $0x2b] sm:$0xff]  ;;  %v1946_v47 = vld [vmem:[%s10825_s21 + $0x14] sm:$0xff]  ;;  %v1947_v48 = vld [vmem:[%s10825_s21 + $0x1c] sm:$0xff] }
  0xe8   : > { %8995 = vmatprep.subr.bf16.mxu0 %v10515_v37  ;;  %v1651_v57 = vpack.c.bf16 %v1617_v54, %v1616_v53  ;;  %v1629_v13 = vld [vmem:[%s10825_s21 + $0x8b] sm:$0xff]  ;;  %v1982_v50 = vpack.c.bf16 %v1947_v48, %v1946_v47  ;;  %v1950_v53 = vld [vmem:[%s10825_s21 + $0x34] sm:$0xff]  ;;  %v1951_v54 = vld [vmem:[%s10825_s21 + $0x3c] sm:$0xff] }
  0xe9   : > { %v1657_v17 = vpack.c.bf16 %v1629_v13, %v1628_v12  ;;  %v1962_v12 = vld [vmem:[%s10825_s21 + $0x94] sm:$0xff]  ;;  %v1963_v13 = vld [vmem:[%s10825_s21 + $0x9c] sm:$0xff] }
  0xea   : > { %v10540_v47 = vld [vmem:[%s13532_s1 + $0x1d0] sm:$0xff]   ;;  %v10541_v48 = vld [vmem:[%s13532_s1 + $0x1d8] sm:$0xff]  }
  0xeb   : > { %8996 = vmatpush3.bf16.msra.mxu0 %v10515_v37 }
  0xec   : > { %8997 = vmatprep.subr.bf16.mxu0 %v10516_v38 }
  0xee   : > { %8962 = vmatmul.mubr.bf16.gmra.mrb[4].mxu0 %v10972_v56  ;;  %v1619_v56 = vld [vmem:[%s10825_s21 + $0x3b] sm:$0xff] }
  0xef   : > { %8965 = vmatprep.mubr.bf16.mxu0 %v10983_v62  ;;  %8998 = vmatpush3.bf16.msra.mxu0 %v10516_v38  ;;  %v1652_v58 = vpack.c.bf16 %v1619_v56, %v1618_v55  ;;  %v1622_v62 = vld [vmem:[%s10825_s21 + $0x53] sm:$0xff]  ;;  %v1664_v38 = vpack.c.bf16 %v1643_v36, %v1642_v35  ;;  %v11136_v56 = vpack.c.bf16 %v1951_v54, %v1950_v53  ;;  %v11253_v53 = vld [vmem:[%s13532_s1 + $0x200] sm:$0xff]  }
  0xf0   : > { %8999 = vmatprep.subr.bf16.mxu0 %v10517_v39  ;;  %v445_v54 = vld [vmem:[%s10825_s21 + $0x81] sm:$0xff] }
  0xf3   : > { %9000 = vmatpush3.bf16.msra.mxu0 %v10517_v39  ;;  %v1644_v39 = vld [vmem:[%s10825_s21 + $0x103] sm:$0xff] }
  0xf4   : > { %9001 = vmatprep.subr.bf16.mxu0 %v10518_v40 }
  0xf6   : > { %8966 = vmatmul.mubr.bf16.gmra.mrb[8].mxu0 %v10985_v63  ;;  %v1623_v63 = vld [vmem:[%s10825_s21 + $0x5b] sm:$0xff] }
  0xf7   : > { %8969 = vmatprep.mubr.bf16.mxu0 %v10999_v6  ;;  %9002 = vmatpush3.bf16.msra.mxu0 %v10518_v40  ;;  %v1654_v2 = vpack.c.bf16 %v1623_v63, %v1622_v62  ;;  %v1626_v6 = vld [vmem:[%s10825_s21 + $0x73] sm:$0xff]  ;;  %v1645_v40 = vld [vmem:[%s10825_s21 + $0x10b] sm:$0xff] }
  0xf8   : > { %9003 = vmatprep.subr.bf16.mxu0 %v10519_v41  ;;  %v10532_v62 = vld [vmem:[%s13532_s1 + $0x190] sm:$0xff]  }
  0xfb   : > { %9004 = vmatpush3.bf16.msra.mxu0 %v10519_v41  ;;  %v1646_v41 = vld [vmem:[%s10825_s21 + $0x113] sm:$0xff] }
  0xfc   : > { %9005 = vmatprep.subr.bf16.mxu0 %v10520_v42 }
  0xfe   : > { %8970 = vmatmul.mubr.bf16.gmra.mrb[12].mxu0 %v11001_v7  ;;  %v1627_v7 = vld [vmem:[%s10825_s21 + $0x7b] sm:$0xff] }
  0xff   : > { %8973 = vmatprep.mubr.bf16.mxu0 %v995_v14  ;;  %9006 = vmatpush3.bf16.msra.mxu0 %v10520_v42  ;;  %v1656_v10 = vpack.c.bf16 %v1627_v7, %v1626_v6  ;;  %v1630_v14 = vld [vmem:[%s10825_s21 + $0x93] sm:$0xff]  ;;  %v1647_v42 = vld [vmem:[%s10825_s21 + $0x11b] sm:$0xff] }
 0x100   : > { %9007 = vmatprep.subr.bf16.mxu0 %v10521_v43  ;;  %v10534_v6 = vld [vmem:[%s13532_s1 + $0x1a0] sm:$0xff]  }
 0x103   : > { %9008 = vmatpush3.bf16.msra.mxu0 %v10521_v43  ;;  %v1665_v43 = vpack.c.bf16 %v1645_v40, %v1644_v39  ;;  %v1978_v39 = vld [vmem:[%s10825_s21 + $0x114] sm:$0xff]  ;;  %v1979_v40 = vld [vmem:[%s10825_s21 + $0x11c] sm:$0xff] }
 0x104   : > { %9045 = vmatprep.subr.bf16.mxu0 %v10522_v44 }
 0x106   : > { %8974 = vmatmul.mubr.bf16.gmra.mrb[16].mxu0 %v11015_v15  ;;  %v1631_v15 = vld [vmem:[%s10825_s21 + $0x9b] sm:$0xff] }
 0x107   : > { %8977 = vmatprep.mubr.bf16.mxu0 %v997_v20  ;;  %v1658_v18 = vpack.c.bf16 %v1631_v15, %v1630_v14  ;;  %v1632_v20 = vld [vmem:[%s10825_s21 + $0xa3] sm:$0xff]  ;;  %v10536_v14 = vld [vmem:[%s13532_s1 + $0x1b0] sm:$0xff]  }
 0x10e   : > { %8978 = vmatmul.mubr.bf16.gmra.mrb[20].mxu0 %v998_v21  ;;  %v1633_v21 = vld [vmem:[%s10825_s21 + $0xab] sm:$0xff] }
 0x10f   : > { %8981 = vmatprep.mubr.bf16.mxu0 %v999_v26  ;;  %v1659_v25 = vpack.c.bf16 %v1633_v21, %v1632_v20  ;;  %v1660_v26 = vpack.c.bf16 %v1635_v23, %v1634_v22  ;;  %v1966_v20 = vld [vmem:[%s10825_s21 + $0xb4] sm:$0xff]  ;;  %v1967_v21 = vld [vmem:[%s10825_s21 + $0xbc] sm:$0xff] }
 0x110   : > { %v10538_v22 = vld [vmem:[%s13532_s1 + $0x1c0] sm:$0xff]  }
 0x116   : > { %8982 = vmatmul.mubr.bf16.gmra.mrb[24].mxu0 %v1000_v27  ;;  %v1636_v27 = vld [vmem:[%s10825_s21 + $0xc3] sm:$0xff] }
 0x117   : > { %8985 = vmatprep.mubr.bf16.mxu0 %v1001_v32  ;;  %v1661_v31 = vpack.c.bf16 %v1637_v28, %v1636_v27  ;;  %v1662_v32 = vpack.c.bf16 %v1639_v30, %v1638_v29  ;;  %v1970_v27 = vld [vmem:[%s10825_s21 + $0xd4] sm:$0xff]  ;;  %v1971_v28 = vld [vmem:[%s10825_s21 + $0xdc] sm:$0xff] }
 0x118   : > { %v1994_v30 = vpack.c.bf16 %v1971_v28, %v1970_v27  ;;  %v10547_v28 = vld [vmem:[%s13532_s1 + $0x208] sm:$0xff]  }
 0x11e   : > { %8986 = vmatmul.mubr.bf16.gmra.mrb[28].mxu0 %v1002_v33  ;;  %v1640_v33 = vld [vmem:[%s10825_s21 + $0xe3] sm:$0xff] }
 0x11f   : > { %8989 = vmatprep.mubr.bf16.mxu0 %v1334_v46  ;;  %v1663_v37 = vpack.c.bf16 %v1641_v34, %v1640_v33  ;;  %v1649_v46 = vld [vmem:[%s10825_s21 + $0x12b] sm:$0x3f]  ;;  %v1974_v33 = vld [vmem:[%s10825_s21 + $0xf4] sm:$0xff]  ;;  %v1975_v34 = vld [vmem:[%s10825_s21 + $0xfc] sm:$0xff] }
 0x120   : > { %v1667_v49 = vpack.c.bf16 %v1649_v46, %v1648_v45  ;;  %v1996_v36 = vpack.c.bf16 %v1975_v34, %v1974_v33  ;;  %v10539_v46 = vld [vmem:[%s13532_s1 + $0x1c8] sm:$0xff]   ;;  %v2617_v33 = vld [vmem:[%s10825_s21 + $0x5d] sm:$0xff] }
 0x126   : > { %8990 = vmatmul.mubr.bf16.gmra.mrb[32].mxu0 %v1335_v51  ;;  %v1948_v51 = vld [vmem:[%s10825_s21 + $0x24] sm:$0xff] }
 0x127   : > { %9009 = vmatprep.mubr.bf16.mxu0 %v1650_v52  ;;  %v1949_v52 = vld [vmem:[%s10825_s21 + $0x2c] sm:$0xff] }
 0x128   : > { %v11134_v55 = vpack.c.bf16 %v1949_v52, %v1948_v51  ;;  %v10544_v51 = vld [vmem:[%s13532_s1 + $0x1f0] sm:$0xff]   ;;  %v10545_v52 = vld [vmem:[%s13532_s1 + $0x1f8] sm:$0xff]  }
 0x12e   : > { %9010 = vmatmul.mubr.bf16.vlgmr.msra.gmra.mrb[0].mxu0 %v1651_v57  ;;  %v10531_v57 = vld [vmem:[%s13532_s1 + $0x188] sm:$0xff]  }
 0x12f   : > { %9046 = vmatpush3.bf16.msra.mxu0 %v10522_v44  ;;  %9013 = vmatprep.mubr.bf16.mxu0 %v1652_v58  ;;  %v1666_v44 = vpack.c.bf16 %v1647_v42, %v1646_v41  ;;  %v1952_v58 = vld [vmem:[%s10825_s21 + $0x44] sm:$0xff]  ;;  %v11213_v42 = vpack.c.bf16 %v1979_v40, %v1978_v39 }
 0x130   : > { %9047 = vmatprep.subr.bf16.mxu0 %v10523_v59 }
 0x133   : > { %9048 = vmatpush3.bf16.msra.mxu0 %v10523_v59  ;;  %v1953_v59 = vld [vmem:[%s10825_s21 + $0x4c] sm:$0xff] }
 0x134   : > { %9049 = vmatprep.subr.bf16.mxu0 %v10524_v0  ;;  %v11150_v63 = vpack.c.bf16 %v1953_v59, %v1952_v58  ;;  %v448_v58 = vld [vmem:[%s10825_s21 + $0x99] sm:$0xff] }
 0x136   : > { %9014 = vmatmul.mubr.bf16.gmra.mrb[4].mxu0 %v1653_v1  ;;  %v10533_v1 = vld [vmem:[%s13532_s1 + $0x198] sm:$0xff]  }
 0x137   : > { %9017 = vmatprep.mubr.bf16.mxu0 %v1654_v2  ;;  %9050 = vmatpush3.bf16.msra.mxu0 %v10524_v0  ;;  %v11152_v0 = vpack.c.bf16 %v1955_v61, %v1954_v60  ;;  %v1956_v2 = vld [vmem:[%s10825_s21 + $0x64] sm:$0xff] }
 0x138   : > { %9051 = vmatprep.subr.bf16.mxu0 %v10525_v3  ;;  %v449_v60 = vld [vmem:[%s10825_s21 + $0xa1] sm:$0xff]  ;;  %v450_v61 = vld [vmem:[%s10825_s21 + $0xa9] sm:$0xff] }
 0x13b   : > { %9052 = vmatpush3.bf16.msra.mxu0 %v10525_v3  ;;  %v1957_v3 = vld [vmem:[%s10825_s21 + $0x6c] sm:$0xff] }
 0x13c   : > { %9053 = vmatprep.subr.bf16.mxu0 %v10526_v8  ;;  %v11166_v7 = vpack.c.bf16 %v1957_v3, %v1956_v2 }
 0x13e   : > { %9018 = vmatmul.mubr.bf16.gmra.mrb[8].mxu0 %v1655_v9  ;;  %v10535_v9 = vld [vmem:[%s13532_s1 + $0x1a8] sm:$0xff]  }
 0x13f   : > { %9021 = vmatprep.mubr.bf16.mxu0 %v1656_v10  ;;  %9054 = vmatpush3.bf16.msra.mxu0 %v10526_v8  ;;  %v11168_v8 = vpack.c.bf16 %v1959_v5, %v1958_v4  ;;  %v1960_v10 = vld [vmem:[%s10825_s21 + $0x84] sm:$0xff] }
 0x140   : > { %9055 = vmatprep.subr.bf16.mxu0 %v10527_v11  ;;  %v453_v4 = vld [vmem:[%s10825_s21 + $0xc1] sm:$0xff]  ;;  %v454_v5 = vld [vmem:[%s10825_s21 + $0xc9] sm:$0xff] }
 0x143   : > { %9056 = vmatpush3.bf16.msra.mxu0 %v10527_v11  ;;  %v1961_v11 = vld [vmem:[%s10825_s21 + $0x8c] sm:$0xff] }
 0x144   : > { %9057 = vmatprep.subr.bf16.mxu0 %v10528_v16  ;;  %v11182_v15 = vpack.c.bf16 %v1961_v11, %v1960_v10  ;;  %v456_v10 = vld [vmem:[%s10825_s21 + $0xd9] sm:$0xff]  ;;  %v2610_v11 = vld [vmem:[%s10825_s21 + $0x25] sm:$0xff] }
 0x146   : > { %9022 = vmatmul.mubr.bf16.gmra.mrb[12].mxu0 %v1657_v17  ;;  %v10537_v17 = vld [vmem:[%s13532_s1 + $0x1b8] sm:$0xff]  }
 0x147   : > { %9025 = vmatprep.mubr.bf16.mxu0 %v1658_v18  ;;  %9058 = vmatpush3.bf16.msra.mxu0 %v10528_v16  ;;  %v11184_v16 = vpack.c.bf16 %v1963_v13, %v1962_v12  ;;  %v1964_v18 = vld [vmem:[%s10825_s21 + $0xa4] sm:$0xff]  ;;  %v2611_v12 = vld [vmem:[%s10825_s21 + $0x2d] sm:$0xff] }
 0x148   : > { %9059 = vmatprep.subr.bf16.mxu0 %v10529_v19 }
 0x14b   : > { %9060 = vmatpush3.bf16.msra.mxu0 %v10529_v19  ;;  %v1965_v19 = vld [vmem:[%s10825_s21 + $0xac] sm:$0xff] }
 0x14c   : > { %9097 = vmatprep.subr.bf16.mxu0 %v10530_v24  ;;  %v1991_v23 = vpack.c.bf16 %v1965_v19, %v1964_v18  ;;  %v459_v18 = vld [vmem:[%s10825_s21 + $0xf1] sm:$0xff] }
 0x14d   : > { %v2612_v19 = vld [vmem:[%s10825_s21 + $0x35] sm:$0xff] }
 0x14e   : > { %9026 = vmatmul.mubr.bf16.gmra.mrb[16].mxu0 %v1659_v25  ;;  %v1968_v25 = vld [vmem:[%s10825_s21 + $0xc4] sm:$0xff] }
 0x14f   : > { %9029 = vmatprep.mubr.bf16.mxu0 %v1660_v26  ;;  %v1969_v26 = vld [vmem:[%s10825_s21 + $0xcc] sm:$0xff] }
 0x150   : > { %v1993_v29 = vpack.c.bf16 %v1969_v26, %v1968_v25 }
 0x156   : > { %9030 = vmatmul.mubr.bf16.gmra.mrb[20].mxu0 %v1661_v31  ;;  %v1972_v31 = vld [vmem:[%s10825_s21 + $0xe4] sm:$0xff] }
 0x157   : > { %9033 = vmatprep.mubr.bf16.mxu0 %v1662_v32  ;;  %v1973_v32 = vld [vmem:[%s10825_s21 + $0xec] sm:$0xff] }
 0x158   : > { %v1995_v35 = vpack.c.bf16 %v1973_v32, %v1972_v31  ;;  %v463_v31 = vld [vmem:[%s10825_s21 + $0x111] sm:$0xff] }
 0x159   : > { %v2616_v32 = vld [vmem:[%s10825_s21 + $0x55] sm:$0xff] }
 0x15a   : > { %v2649_v40 = vpack.c.bf16 %v2617_v33, %v2616_v32  ;;  %v2947_v32 = vld [vmem:[%s10825_s21 + $0x4e] sm:$0xff] }
 0x15e   : > { %9034 = vmatmul.mubr.bf16.gmra.mrb[24].mxu0 %v1663_v37  ;;  %v1976_v37 = vld [vmem:[%s10825_s21 + $0x104] sm:$0xff] }
 0x15f   : > { %9037 = vmatprep.mubr.bf16.mxu0 %v1664_v38  ;;  %v1977_v38 = vld [vmem:[%s10825_s21 + $0x10c] sm:$0xff] }
 0x160   : > { %v1997_v41 = vpack.c.bf16 %v1977_v38, %v1976_v37  ;;  %v2619_v37 = vld [vmem:[%s10825_s21 + $0x6d] sm:$0xff] }
 0x161   : > { %v10548_v38 = vld [vmem:[%s13532_s1 + $0x210] sm:$0xff]  }
 0x166   : > { %9038 = vmatmul.mubr.bf16.gmra.mrb[28].mxu0 %v1665_v43  ;;  %v11217_v43 = vld [vmem:[%s10825_s21 + $0x124] sm:$0xff] }
 0x167   : > { %9041 = vmatprep.mubr.bf16.mxu0 %v1666_v44  ;;  %v1981_v44 = vld [vmem:[%s10825_s21 + $0x12c] sm:$0x3f] }
 0x168   : > { %v1999_v45 = vpack.c.bf16 %v1981_v44, %v11217_v43  ;;  %v10555_v44 = vld [vmem:[%s13535_s4 + $0x48] sm:$0xff]  }
 0x16e   : > { %9042 = vmatmul.mubr.bf16.gmra.mrb[32].mxu0 %v1667_v49  ;;  %v10542_v49 = vld [vmem:[%s13532_s1 + $0x1e0] sm:$0xff]  }
 0x16f   : > { %9061 = vmatprep.mubr.bf16.mxu0 %v1982_v50  ;;  %v10543_v50 = vld [vmem:[%s13532_s1 + $0x1e8] sm:$0xff]  }
 0x176   : > { %9062 = vmatmul.mubr.bf16.vlgmr.msra.gmra.mrb[0].mxu0 %v11134_v55 }
 0x177   : > { %9098 = vmatpush3.bf16.msra.mxu0 %v10530_v24  ;;  %9065 = vmatprep.mubr.bf16.mxu0 %v11136_v56  ;;  %v11198_v24 = vpack.c.bf16 %v1967_v21, %v1966_v20  ;;  %v2613_v20 = vld [vmem:[%s10825_s21 + $0x3d] sm:$0xff] }
 0x178   : > { %9099 = vmatprep.subr.bf16.mxu0 %v10531_v57  ;;  %v2647_v26 = vpack.c.bf16 %v2613_v20, %v2612_v19  ;;  %v2642_v19 = vld [vmem:[%s10825_s21 + $0x125] sm:$0xff]  ;;  %v2643_v20 = vld [vmem:[%s10825_s21 + $0x12d] sm:$0xff] }
 0x17b   : > { %9100 = vmatpush3.bf16.msra.mxu0 %v10531_v57 }
 0x17c   : > { %9101 = vmatprep.subr.bf16.mxu0 %v10532_v62 }
 0x17e   : > { %9066 = vmatmul.mubr.bf16.gmra.mrb[4].mxu0 %v11150_v63 }
 0x17f   : > { %9069 = vmatprep.mubr.bf16.mxu0 %v11152_v0  ;;  %9102 = vmatpush3.bf16.msra.mxu0 %v10532_v62  ;;  %v451_v62 = vld [vmem:[%s10825_s21 + $0xb1] sm:$0xff] }
 0x180   : > { %9103 = vmatprep.subr.bf16.mxu0 %v10533_v1 }
 0x183   : > { %9104 = vmatpush3.bf16.msra.mxu0 %v10533_v1  ;;  %v2311_v1 = vld [vmem:[%s10825_s21 + $0x12c] sm:$0xff] }
 0x184   : > { %9105 = vmatprep.subr.bf16.mxu0 %v10534_v6  ;;  %v2330_v3 = vpack.c.bf16 %v2311_v1, %v11217_v43  ;;  %v10554_v43 = vld [vmem:[%s13535_s4 + $0x40] sm:$0xff]  }
 0x185   : > { %9253 = vmatprep.subr.bf16.mxu1 %v10554_v43  ;;  %v2630_v1 = vld [vmem:[%s10825_s21 + $0xc5] sm:$0xff] }
 0x186   : > { %9070 = vmatmul.mubr.bf16.gmra.mrb[8].mxu0 %v11166_v7 }
 0x187   : > { %9073 = vmatprep.mubr.bf16.mxu0 %v11168_v8  ;;  %9106 = vmatpush3.bf16.msra.mxu0 %v10534_v6  ;;  %v455_v6 = vld [vmem:[%s10825_s21 + $0xd1] sm:$0xff] }
 0x188   : > { %9107 = vmatprep.subr.bf16.mxu0 %v10535_v9  ;;  %v478_v13 = vpack.c.bf16 %v456_v10, %v455_v6  ;;  %v2633_v6 = vld [vmem:[%s10825_s21 + $0xdd] sm:$0xff] }
 0x18b   : > { %9108 = vmatpush3.bf16.msra.mxu0 %v10535_v9  ;;  %v477_v9 = vpack.c.bf16 %v454_v5, %v453_v4  ;;  %v2632_v5 = vld [vmem:[%s10825_s21 + $0xd5] sm:$0xff] }
 0x18c   : > { %9109 = vmatprep.subr.bf16.mxu0 %v10536_v14 }
 0x18e   : > { %9074 = vmatmul.mubr.bf16.gmra.mrb[12].mxu0 %v11182_v15 }
 0x18f   : > { %9077 = vmatprep.mubr.bf16.mxu0 %v11184_v16  ;;  %9110 = vmatpush3.bf16.msra.mxu0 %v10536_v14 }
 0x190   : > { %9111 = vmatprep.subr.bf16.mxu0 %v10537_v17 }
 0x193   : > { %9112 = vmatpush3.bf16.msra.mxu0 %v10537_v17  ;;  %v458_v17 = vld [vmem:[%s10825_s21 + $0xe9] sm:$0xff] }
 0x194   : > { %9149 = vmatprep.subr.bf16.mxu0 %v10538_v22 }
 0x196   : > { %9078 = vmatmul.mubr.bf16.gmra.mrb[16].mxu0 %v1991_v23 }
 0x197   : > { %9081 = vmatprep.mubr.bf16.mxu0 %v11198_v24 }
 0x19e   : > { %9082 = vmatmul.mubr.bf16.gmra.mrb[20].mxu0 %v1993_v29 }
 0x19f   : > { %9085 = vmatprep.mubr.bf16.mxu0 %v1994_v30 }
 0x1a6   : > { %9086 = vmatmul.mubr.bf16.gmra.mrb[24].mxu0 %v1995_v35 }
 0x1a7   : > { %9089 = vmatprep.mubr.bf16.mxu0 %v1996_v36 }
 0x1ae   : > { %9090 = vmatmul.mubr.bf16.gmra.mrb[28].mxu0 %v1997_v41 }
 0x1af   : > { %9093 = vmatprep.mubr.bf16.mxu0 %v11213_v42 }
 0x1b6   : > { %9094 = vmatmul.mubr.bf16.gmra.mrb[32].mxu0 %v1999_v45  ;;  %v2620_v45 = vld [vmem:[%s10825_s21 + $0x75] sm:$0xff] }
 0x1b7   : > { %9113 = vmatprep.mubr.bf16.mxu0 %v11134_v55  ;;  %v446_v55 = vld [vmem:[%s10825_s21 + $0x89] sm:$0xff] }
 0x1b8   : > { %v473_v57 = vpack.c.bf16 %v446_v55, %v445_v54  ;;  %v10557_v54 = vld [vmem:[%s13535_s4 + $0x58] sm:$0xff]  }
 0x1b9   : > { %v2624_v55 = vld [vmem:[%s10825_s21 + $0x95] sm:$0xff] }
 0x1ba   : > { %8817 = vmatprep.mubr.bf16.mxu1 %v473_v57  ;;  %v2626_v57 = vld [vmem:[%s10825_s21 + $0xa5] sm:$0xff] }
 0x1be   : > { %9114 = vmatmul.mubr.bf16.vlgmr.msra.gmra.mrb[0].mxu0 %v11136_v56  ;;  %v447_v56 = vld [vmem:[%s10825_s21 + $0x91] sm:$0xff] }
 0x1bf   : > { %9150 = vmatpush3.bf16.msra.mxu0 %v10538_v22  ;;  %9117 = vmatprep.mubr.bf16.mxu0 %v11150_v63  ;;  %v474_v59 = vpack.c.bf16 %v448_v58, %v447_v56  ;;  %v475_v63 = vpack.c.bf16 %v450_v61, %v449_v60  ;;  %v460_v22 = vld [vmem:[%s10825_s21 + $0xf9] sm:$0xff]  ;;  %v2627_v58 = vld [vmem:[%s10825_s21 + $0xad] sm:$0xff] }
 0x1c0   : > { %9151 = vmatprep.subr.bf16.mxu0 %v10539_v46  ;;  %v480_v25 = vpack.c.bf16 %v460_v22, %v459_v18  ;;  %v2625_v56 = vld [vmem:[%s10825_s21 + $0x9d] sm:$0xff]  ;;  %v2654_v61 = vpack.c.bf16 %v2627_v58, %v2626_v57  ;;  %v2662_v22 = vpack.c.bf16 %v2643_v20, %v2642_v19  ;;  %v10703_v20 = vmov 0.0  }
 0x1c1   : > { %8818 = vmatmul.mubr.bf16.vlgmr.msra.gmra.mrb[0].mxu1 %v474_v59  ;;  %v10552_v59 = vld [vmem:[%s13532_s1 + $0x230] sm:$0xff]   ;;  %v2653_v60 = vpack.c.bf16 %v2625_v56, %v2624_v55  ;;  %v2641_v18 = vld [vmem:[%s10825_s21 + $0x11d] sm:$0xff]  ;;  %v2962_v55 = vld [vmem:[%s10825_s21 + $0xc6] sm:$0xff]  ;;  %4261 = vst [vmem:[#allocation2] sm:$0xff] %v10703_v20 }
 0x1c2   : > { %8821 = vmatprep.mubr.bf16.mxu1 %v475_v63  ;;  %9254 = vmatpush3.bf16.msra.mxu1 %v10554_v43  ;;  %v2628_v63 = vld [vmem:[%s10825_s21 + $0xb5] sm:$0xff]  ;;  %v2954_v43 = vld [vmem:[%s10825_s21 + $0x86] sm:$0xff]  ;;  %4262 = vst [vmem:[#allocation2 + $0x8] sm:$0xff] %v10703_v20  ;;  %4263 = vst [vmem:[#allocation2 + $0x10] sm:$0xff] %v10703_v20 }
 0x1c3   : > { %9152 = vmatpush3.bf16.msra.mxu0 %v10539_v46  ;;  %v2621_v46 = vld [vmem:[%s10825_s21 + $0x7d] sm:$0xff]  ;;  %9255 = vmatprep.subr.bf16.mxu1 %v10555_v44  ;;  %v2963_v56 = vld [vmem:[%s10825_s21 + $0xce] sm:$0xff]  ;;  %4300 = vst [vmem:[#allocation2 + $0x136] sm:$0xff] %v10703_v20  ;;  %4301 = vst [vmem:[#allocation2 + $0x13e] sm:$0xff] %v10703_v20 }
 0x1c4   : > { %9153 = vmatprep.subr.bf16.mxu0 %v10540_v47  ;;  %v2988_v58 = vpack.c.bf16 %v2963_v56, %v2962_v55  ;;  %v10561_v19 = vld [vmem:[%s13535_s4 + $0x78] sm:$0xff]   ;;  %4302 = vst [vmem:[#allocation2 + $0x146] sm:$0x1f] %v10703_v20 }
 0x1c6   : > { %9118 = vmatmul.mubr.bf16.gmra.mrb[4].mxu0 %v11152_v0  ;;  %v452_v0 = vld [vmem:[%s10825_s21 + $0xb9] sm:$0xff]  ;;  %9256 = vmatpush3.bf16.msra.mxu1 %v10555_v44  ;;  %v2955_v44 = vld [vmem:[%s10825_s21 + $0x8e] sm:$0xff] }
 0x1c7   : > { %9121 = vmatprep.mubr.bf16.mxu0 %v11166_v7  ;;  %9154 = vmatpush3.bf16.msra.mxu0 %v10540_v47  ;;  %v476_v2 = vpack.c.bf16 %v452_v0, %v451_v62  ;;  %v2312_v7 = vld [vmem:[%s10825_s21 + $0x134] sm:$0xff]  ;;  %v2622_v47 = vld [vmem:[%s10825_s21 + $0x85] sm:$0xff]  ;;  %v2629_v0 = vld [vmem:[%s10825_s21 + $0xbd] sm:$0xff] }
 0x1c8   : > { %9155 = vmatprep.subr.bf16.mxu0 %v10541_v48  ;;  %v10553_v62 = vld [vmem:[%s13532_s1 + $0x238] sm:$0xff]  }
 0x1c9   : > { %8822 = vmatmul.mubr.bf16.gmra.mrb[4].mxu1 %v476_v2  ;;  %v2631_v2 = vld [vmem:[%s10825_s21 + $0xcd] sm:$0xff] }
 0x1ca   : > { %8825 = vmatprep.mubr.bf16.mxu1 %v477_v9  ;;  %v2656_v4 = vpack.c.bf16 %v2631_v2, %v2630_v1  ;;  %v2657_v9 = vpack.c.bf16 %v2633_v6, %v2632_v5  ;;  %v2968_v1 = vld [vmem:[%s10825_s21 + $0xf6] sm:$0xff]  ;;  %v2969_v2 = vld [vmem:[%s10825_s21 + $0xfe] sm:$0xff] }
 0x1cb   : > { %9156 = vmatpush3.bf16.msra.mxu0 %v10541_v48  ;;  %v2623_v48 = vld [vmem:[%s10825_s21 + $0x8d] sm:$0xff]  ;;  %v2991_v5 = vpack.c.bf16 %v2969_v2, %v2968_v1 }
 0x1cc   : > { %9157 = vmatprep.subr.bf16.mxu0 %v10542_v49 }
 0x1ce   : > { %9122 = vmatmul.mubr.bf16.gmra.mrb[8].mxu0 %v11168_v8  ;;  %v2313_v8 = vld [vmem:[%s10825_s21 + $0x13c] sm:$0x3f] }
 0x1cf   : > { %9125 = vmatprep.mubr.bf16.mxu0 %v11182_v15  ;;  %9158 = vmatpush3.bf16.msra.mxu0 %v10542_v49  ;;  %v2331_v14 = vpack.c.bf16 %v2313_v8, %v2312_v7  ;;  %v2646_v15 = vpack.c.bf16 %v2611_v12, %v2610_v11  ;;  %v10550_v49 = vld [vmem:[%s13532_s1 + $0x220] sm:$0xff]   ;;  %v2635_v8 = vld [vmem:[%s10825_s21 + $0xed] sm:$0xff]  ;;  %v2636_v11 = vld [vmem:[%s10825_s21 + $0xf5] sm:$0xff] }
 0x1d0   : > { %9159 = vmatprep.subr.bf16.mxu0 %v10543_v50  ;;  %v2634_v7 = vld [vmem:[%s10825_s21 + $0xe5] sm:$0xff]  ;;  %v2637_v12 = vld [vmem:[%s10825_s21 + $0xfd] sm:$0xff] }
 0x1d1   : > { %8826 = vmatmul.mubr.bf16.gmra.mrb[8].mxu1 %v478_v13  ;;  %v2658_v10 = vpack.c.bf16 %v2635_v8, %v2634_v7  ;;  %v2638_v13 = vld [vmem:[%s10825_s21 + $0x105] sm:$0xff]  ;;  %v2972_v7 = vld [vmem:[%s10825_s21 + $0x116] sm:$0xff] }
 0x1d2   : > { %v2973_v8 = vld [vmem:[%s10825_s21 + $0x11e] sm:$0xff] }
 0x1d3   : > { %9160 = vmatpush3.bf16.msra.mxu0 %v10543_v50  ;;  %v2651_v50 = vpack.c.bf16 %v2621_v46, %v2620_v45  ;;  %v2984_v46 = vpack.c.bf16 %v2955_v44, %v2954_v43 }
 0x1d4   : > { %9161 = vmatprep.subr.bf16.mxu0 %v10544_v51 }
 0x1d6   : > { %9126 = vmatmul.mubr.bf16.gmra.mrb[12].mxu0 %v11184_v16  ;;  %v457_v16 = vld [vmem:[%s10825_s21 + $0xe1] sm:$0xff] }
 0x1d7   : > { %9129 = vmatprep.mubr.bf16.mxu0 %v1991_v23  ;;  %9162 = vmatpush3.bf16.msra.mxu0 %v10544_v51  ;;  %v479_v21 = vpack.c.bf16 %v458_v17, %v457_v16  ;;  %v2614_v23 = vld [vmem:[%s10825_s21 + $0x45] sm:$0xff]  ;;  %v10556_v51 = vld [vmem:[%s13535_s4 + $0x50] sm:$0xff]  }
 0x1d8   : > { %9163 = vmatprep.subr.bf16.mxu0 %v10545_v52  ;;  %9257 = vmatprep.subr.bf16.mxu1 %v10556_v51  ;;  %v2640_v17 = vld [vmem:[%s10825_s21 + $0x115] sm:$0xff] }
 0x1d9   : > { %8829 = vmatprep.mubr.bf16.mxu1 %v479_v21  ;;  %9258 = vmatpush3.bf16.msra.mxu1 %v10556_v51  ;;  %v2661_v21 = vpack.c.bf16 %v2641_v18, %v2640_v17  ;;  %v10559_v17 = vld [vmem:[%s13535_s4 + $0x68] sm:$0xff]   ;;  %v10560_v18 = vld [vmem:[%s13535_s4 + $0x70] sm:$0xff]  }
 0x1da   : > { %8830 = vmatmul.mubr.bf16.gmra.mrb[12].mxu1 %v480_v25  ;;  %9259 = vmatprep.subr.bf16.mxu1 %v10557_v54  ;;  %v2942_v25 = vld [vmem:[%s10825_s21 + $0x26] sm:$0xff] }
 0x1db   : > { %9164 = vmatpush3.bf16.msra.mxu0 %v10545_v52  ;;  %v2652_v52 = vpack.c.bf16 %v2623_v48, %v2622_v47  ;;  %v2956_v47 = vld [vmem:[%s10825_s21 + $0x96] sm:$0xff]  ;;  %v2957_v48 = vld [vmem:[%s10825_s21 + $0x9e] sm:$0xff] }
 0x1dc   : > { %9201 = vmatprep.subr.bf16.mxu0 %v11253_v53  ;;  %v2985_v51 = vpack.c.bf16 %v2957_v48, %v2956_v47 }
 0x1dd   : > { %9260 = vmatpush3.bf16.msra.mxu1 %v10557_v54  ;;  %v2961_v54 = vld [vmem:[%s10825_s21 + $0xbe] sm:$0xff] }
 0x1de   : > { %9130 = vmatmul.mubr.bf16.gmra.mrb[16].mxu0 %v11198_v24  ;;  %v2615_v24 = vld [vmem:[%s10825_s21 + $0x4d] sm:$0xff] }
 0x1df   : > { %9133 = vmatprep.mubr.bf16.mxu0 %v1993_v29  ;;  %v2648_v27 = vpack.c.bf16 %v2615_v24, %v2614_v23  ;;  %v461_v29 = vld [vmem:[%s10825_s21 + $0x101] sm:$0xff]  ;;  %v2644_v23 = vld [vmem:[%s10825_s21 + $0x135] sm:$0xff] }
 0x1e0   : > { %v2645_v24 = vld [vmem:[%s10825_s21 + $0x13d] sm:$0x3f] }
 0x1e6   : > { %9134 = vmatmul.mubr.bf16.gmra.mrb[20].mxu0 %v1994_v30  ;;  %v462_v30 = vld [vmem:[%s10825_s21 + $0x109] sm:$0xff] }
 0x1e7   : > { %9137 = vmatprep.mubr.bf16.mxu0 %v1995_v35  ;;  %v481_v34 = vpack.c.bf16 %v462_v30, %v461_v29  ;;  %v464_v35 = vld [vmem:[%s10825_s21 + $0x119] sm:$0x3f] }
 0x1e8   : > { %v482_v39 = vpack.c.bf16 %v464_v35, %v463_v31  ;;  %v2944_v29 = vld [vmem:[%s10825_s21 + $0x36] sm:$0xff]  ;;  %v2945_v30 = vld [vmem:[%s10825_s21 + $0x3e] sm:$0xff]  ;;  %v2946_v31 = vld [vmem:[%s10825_s21 + $0x46] sm:$0xff] }
 0x1e9   : > { %8833 = vmatprep.mubr.bf16.mxu1 %v481_v34  ;;  %v2979_v33 = vpack.c.bf16 %v2945_v30, %v2944_v29  ;;  %v2980_v34 = vpack.c.bf16 %v2947_v32, %v2946_v31  ;;  %v2948_v35 = vld [vmem:[%s10825_s21 + $0x56] sm:$0xff] }
 0x1ea   : > { %8834 = vmatmul.mubr.bf16.gmra.mrb[16].mxu1 %v482_v39 }
 0x1ee   : > { %9138 = vmatmul.mubr.bf16.gmra.mrb[24].mxu0 %v1996_v36  ;;  %v2618_v36 = vld [vmem:[%s10825_s21 + $0x65] sm:$0xff] }
 0x1ef   : > { %9141 = vmatprep.mubr.bf16.mxu0 %v1997_v41  ;;  %v2650_v41 = vpack.c.bf16 %v2619_v37, %v2618_v36  ;;  %v2949_v36 = vld [vmem:[%s10825_s21 + $0x5e] sm:$0xff]  ;;  %v2950_v37 = vld [vmem:[%s10825_s21 + $0x66] sm:$0xff] }
 0x1f0   : > { %v2981_v39 = vpack.c.bf16 %v2949_v36, %v2948_v35 }
 0x1f6   : > { %9142 = vmatmul.mubr.bf16.gmra.mrb[28].mxu0 %v11213_v42  ;;  %v10549_v42 = vld [vmem:[%s13532_s1 + $0x218] sm:$0xff]  }
 0x1f7   : > { %9145 = vmatprep.mubr.bf16.mxu0 %v2330_v3  ;;  %v2655_v3 = vpack.c.bf16 %v2629_v0, %v2628_v63 }
 0x1fe   : > { %9146 = vmatmul.mubr.bf16.gmra.mrb[32].mxu0 %v2331_v14  ;;  %v2639_v14 = vld [vmem:[%s10825_s21 + $0x10d] sm:$0xff] }
 0x1ff   : > { %9165 = vmatprep.mubr.bf16.mxu0 %v2646_v15  ;;  %v2659_v15 = vpack.c.bf16 %v2637_v12, %v2636_v11  ;;  %v2660_v16 = vpack.c.bf16 %v2639_v14, %v2638_v13  ;;  %v2993_v11 = vpack.c.bf16 %v2973_v8, %v2972_v7  ;;  %v2976_v13 = vld [vmem:[%s10825_s21 + $0x136] sm:$0xff]  ;;  %v2977_v14 = vld [vmem:[%s10825_s21 + $0x13e] sm:$0x3f] }
 0x206   : > { %9166 = vmatmul.mubr.bf16.vlgmr.msra.gmra.mrb[0].mxu0 %v2647_v26  ;;  %v2943_v26 = vld [vmem:[%s10825_s21 + $0x2e] sm:$0xff] }
 0x207   : > { %9202 = vmatpush3.bf16.msra.mxu0 %v11253_v53  ;;  %9169 = vmatprep.mubr.bf16.mxu0 %v2648_v27  ;;  %v10551_v53 = vld [vmem:[%s13532_s1 + $0x228] sm:$0xff]   ;;  %v2663_v27 = vpack.c.bf16 %v2645_v24, %v2644_v23  ;;  %v11403_v23 = vld [vmem:[%s13535_s4] sm:$0xff]  }
 0x208   : > { %9203 = vmatprep.subr.bf16.mxu0 %v10547_v28 }
 0x20b   : > { %9204 = vmatpush3.bf16.msra.mxu0 %v10547_v28  ;;  %v2978_v28 = vpack.c.bf16 %v2943_v26, %v2942_v25 }
 0x20c   : > { %9205 = vmatprep.subr.bf16.mxu0 %v10548_v38 }
 0x20e   : > { %9170 = vmatmul.mubr.bf16.gmra.mrb[4].mxu0 %v2649_v40 }
 0x20f   : > { %9173 = vmatprep.mubr.bf16.mxu0 %v2650_v41  ;;  %9206 = vmatpush3.bf16.msra.mxu0 %v10548_v38  ;;  %v2951_v38 = vld [vmem:[%s10825_s21 + $0x6e] sm:$0xff]  ;;  %v2952_v41 = vld [vmem:[%s10825_s21 + $0x76] sm:$0xff] }
 0x210   : > { %9207 = vmatprep.subr.bf16.mxu0 %v10549_v42  ;;  %v2982_v40 = vpack.c.bf16 %v2951_v38, %v2950_v37 }
 0x213   : > { %9208 = vmatpush3.bf16.msra.mxu0 %v10549_v42  ;;  %v2953_v42 = vld [vmem:[%s10825_s21 + $0x7e] sm:$0xff] }
 0x214   : > { %9209 = vmatprep.subr.bf16.mxu0 %v10550_v49  ;;  %v2983_v45 = vpack.c.bf16 %v2953_v42, %v2952_v41 }
 0x216   : > { %9174 = vmatmul.mubr.bf16.gmra.mrb[8].mxu0 %v2651_v50  ;;  %v2959_v50 = vld [vmem:[%s10825_s21 + $0xae] sm:$0xff] }
 0x217   : > { %9177 = vmatprep.mubr.bf16.mxu0 %v2652_v52  ;;  %9210 = vmatpush3.bf16.msra.mxu0 %v10550_v49  ;;  %v2958_v49 = vld [vmem:[%s10825_s21 + $0xa6] sm:$0xff] }
 0x218   : > { %9211 = vmatprep.subr.bf16.mxu0 %v10551_v53  ;;  %v2986_v52 = vpack.c.bf16 %v2959_v50, %v2958_v49 }
 0x21b   : > { %9212 = vmatpush3.bf16.msra.mxu0 %v10551_v53  ;;  %v2960_v53 = vld [vmem:[%s10825_s21 + $0xb6] sm:$0xff] }
 0x21c   : > { %9213 = vmatprep.subr.bf16.mxu0 %v10552_v59  ;;  %v2987_v57 = vpack.c.bf16 %v2961_v54, %v2960_v53 }
 0x21e   : > { %9178 = vmatmul.mubr.bf16.gmra.mrb[12].mxu0 %v2653_v60  ;;  %v2965_v60 = vld [vmem:[%s10825_s21 + $0xde] sm:$0xff] }
 0x21f   : > { %9181 = vmatprep.mubr.bf16.mxu0 %v2654_v61  ;;  %9214 = vmatpush3.bf16.msra.mxu0 %v10552_v59  ;;  %v2964_v59 = vld [vmem:[%s10825_s21 + $0xd6] sm:$0xff]  ;;  %v2966_v61 = vld [vmem:[%s10825_s21 + $0xe6] sm:$0xff] }
 0x220   : > { %9215 = vmatprep.subr.bf16.mxu0 %v10553_v62  ;;  %v2989_v63 = vpack.c.bf16 %v2965_v60, %v2964_v59 }
 0x223   : > { %9216 = vmatpush3.bf16.msra.mxu0 %v10553_v62  ;;  %v2967_v62 = vld [vmem:[%s10825_s21 + $0xee] sm:$0xff] }
 0x224   : > { %v2990_v0 = vpack.c.bf16 %v2967_v62, %v2966_v61 }
 0x226   : > { %9182 = vmatmul.mubr.bf16.gmra.mrb[16].mxu0 %v2655_v3  ;;  %v2970_v3 = vld [vmem:[%s10825_s21 + $0x106] sm:$0xff] }
 0x227   : > { %9185 = vmatprep.mubr.bf16.mxu0 %v2656_v4  ;;  %v2971_v4 = vld [vmem:[%s10825_s21 + $0x10e] sm:$0xff] }
 0x228   : > { %v2992_v6 = vpack.c.bf16 %v2971_v4, %v2970_v3 }
 0x22e   : > { %9186 = vmatmul.mubr.bf16.gmra.mrb[20].mxu0 %v2657_v9  ;;  %v2974_v9 = vld [vmem:[%s10825_s21 + $0x126] sm:$0xff] }
 0x22f   : > { %9189 = vmatprep.mubr.bf16.mxu0 %v2658_v10  ;;  %v2975_v10 = vld [vmem:[%s10825_s21 + $0x12e] sm:$0xff] }
 0x230   : > { %v2994_v12 = vpack.c.bf16 %v2975_v10, %v2974_v9 }
 0x236   : > { %9190 = vmatmul.mubr.bf16.gmra.mrb[24].mxu0 %v2659_v15  ;;  %v2995_v15 = vpack.c.bf16 %v2977_v14, %v2976_v13 }
 0x237   : > { %9193 = vmatprep.mubr.bf16.mxu0 %v2660_v16  ;;  %v10558_v16 = vld [vmem:[%s13535_s4 + $0x60] sm:$0xff]  }
 0x238   : > { %9261 = vmatprep.subr.bf16.mxu1 %v10558_v16 }
 0x239   : > { %9262 = vmatpush3.bf16.msra.mxu1 %v10558_v16 }
 0x23a   : > { %9263 = vmatprep.subr.bf16.mxu1 %v10559_v17 }
 0x23d   : > { %9264 = vmatpush3.bf16.msra.mxu1 %v10559_v17 }
 0x23e   : > { %9194 = vmatmul.mubr.bf16.gmra.mrb[28].mxu0 %v2661_v21  ;;  %9265 = vmatprep.subr.bf16.mxu1 %v10560_v18  ;;  %v4373_v21 = vld [vmem:[#allocation2 + $0x6] sm:$0xff] }
 0x23f   : > { %9197 = vmatprep.mubr.bf16.mxu0 %v2662_v22  ;;  %v4374_v22 = vld [vmem:[#allocation2 + $0xe] sm:$0xff] }
 0x240   : > { %v4409_v24 = vpack.c.bf16 %v4374_v22, %v4373_v21 }
 0x241   : > { %9266 = vmatpush3.bf16.msra.mxu1 %v10560_v18 }
 0x242   : > { %9267 = vmatprep.subr.bf16.mxu1 %v10561_v19  ;;  %9269 = vmatprep.mubr.bf16.mxu1 %v4409_v24 }
 0x245   : > { %9268 = vmatpush3.bf16.msra.mxu1 %v10561_v19 }
 0x246   : > { %9198 = vmatmul.mubr.bf16.gmra.mrb[32].mxu0 %v2663_v27  ;;  %9305 = vmatprep.subr.bf16.mxu1 %v11403_v23 }
 0x247   : > { %9217 = vmatprep.mubr.bf16.mxu0 %v2978_v28  ;;  %v3396_v28 = vlaneseq }
 0x249   : > { %v11414_v30 = vshrl.u32 %v3396_v28, 7 }
 0x24b   : > { %v3400_v38 = vadd.s32 24, %v11414_v30  ;;  %v3433_v43 = vadd.s32 1, %v11414_v30  ;;  %v3403_v44 = vadd.s32 48, %v11414_v30  ;;  %v3404_v48 = vadd.s32 56, %v11414_v30 }
 0x24c   : > { %v3402_v4 = vadd.s32 40, %v11414_v30  ;;  %v3407_v8 = vadd.s32 80, %v11414_v30  ;;  %v3408_v16 = vadd.s32 88, %v11414_v30 }
 0x24d   : > { %v3436_v49 = vadd.s32 1, %v3400_v38  ;;  %v3439_v53 = vadd.s32 1, %v3403_v44  ;;  %v11449_v55 = vadd.s32 1, %v3404_v48  ;;  %v3406_v44 = vadd.s32 72, %v11414_v30 }
 0x24e   : > { %9218 = vmatmul.mubr.bf16.vlgmr.msra.gmra.mrb[0].mxu0 %v2979_v33  ;;  %v11484_v13 = vadd.s32 1, %v3407_v8  ;;  %v11513_v48 = vadd.s32 1, %v3408_v16  ;;  %v3409_v8 = vadd.s32 96, %v11414_v30 }
 0x24f   : > { %9221 = vmatprep.mubr.bf16.mxu0 %v2980_v34  ;;  %v3399_v34 = vadd.s32 16, %v11414_v30 }
 0x251   : > { %v3435_v36 = vadd.s32 1, %v3399_v34 }
 0x253   : > { %v11431_v41 = vmul.u32.u64.low 3817748708, %v3435_v36  ;;  %v11432_v42 = vmul.u32.u64.high 3817748708, %v3435_v36, %v11431_v41 }
 0x255   : > { %v3497_v62 = vshrl.u32 %v11432_v42, 4  ;;  %v11509_v41 = vmul.u32.u64.low 3817748708, %v11484_v13  ;;  %v11510_v42 = vmul.u32.u64.high 3817748708, %v11484_v13, %v11509_v41 }
 0x256   : > { %9222 = vmatmul.mubr.bf16.gmra.mrb[4].mxu0 %v2981_v39  ;;  %v3398_v39 = vadd.s32 8, %v11414_v30 }
 0x257   : > { %9225 = vmatprep.mubr.bf16.mxu0 %v2982_v40  ;;  %v3498_v9 = vmul.u32 18, %v3497_v62 }
 0x258   : > { %v11442_v50 = vadd.s32 1, %v3398_v39 }
 0x259   : > { %v11492_v18 = vsub.s32 %v3435_v36, %v3498_v9 }
 0x25a   : > { %v11457_v59 = vmul.u32.u64.low 3817748708, %v11442_v50  ;;  %v11458_v60 = vmul.u32.u64.high 3817748708, %v11442_v50, %v11457_v59 }
 0x25b   : > { %vm3867_vm0 = vcmp.ne.s32.totalorder %v11492_v18, 0  ;;  %vm3903_vm1 = vcmp.lt.s32.totalorder %v11492_v18, 0  ;;  %v3975_v62 = vadd.s32 18, %v11492_v18 }
 0x25c   : > { %v3486_v20 = vshrl.u32 %v11458_v60, 4  ;;  %vm11550_vm6 = vmand %vm3903_vm1, %vm3867_vm0 }
 0x25e   : > { %9226 = vmatmul.mubr.bf16.gmra.mrb[8].mxu0 %v2983_v45 }
 0x25f   : > { %9229 = vmatprep.mubr.bf16.mxu0 %v2984_v46  ;;  %v3401_v46 = vadd.s32 32, %v11414_v30 }
 0x261   : > { %v11447_v54 = vadd.s32 1, %v3401_v46 }
 0x263   : > { %v11469_v2 = vmul.u32.u64.low 3817748708, %v11447_v54  ;;  %v11470_v3 = vmul.u32.u64.high 3817748708, %v11447_v54, %v11469_v2 }
 0x265   : > { %v3519_v24 = vshrl.u32 %v11470_v3, 4 }
 0x266   : > { %9230 = vmatmul.mubr.bf16.gmra.mrb[12].mxu0 %v2985_v51 }
 0x267   : > { %9233 = vmatprep.mubr.bf16.mxu0 %v2986_v52  ;;  %v11444_v51 = vmul.u32.u64.low 3817748708, %v3433_v43  ;;  %v11445_v52 = vmul.u32.u64.high 3817748708, %v3433_v43, %v11444_v51 }
 0x269   : > { %v3475_v10 = vshrl.u32 %v11445_v52, 4  ;;  %v3487_v52 = vmul.u32 18, %v3486_v20 }
 0x26b   : > { %v3476_v19 = vmul.u32 18, %v3475_v10 }
 0x26d   : > { %v11515_v51 = vsub.s32 %v3433_v43, %v3476_v19  ;;  %v11527_v43 = vmul.u32.u64.low 3817748708, %v11513_v48  ;;  %v11528_v3 = vmul.u32.u64.high 3817748708, %v11513_v48, %v11527_v43 }
 0x26e   : > { %9234 = vmatmul.mubr.bf16.gmra.mrb[16].mxu0 %v2987_v57 }
 0x26f   : > { %9237 = vmatprep.mubr.bf16.mxu0 %v2988_v58  ;;  %v11453_v57 = vmul.u32.u64.low 3817748708, %v3436_v49  ;;  %v11454_v58 = vmul.u32.u64.high 3817748708, %v3436_v49, %v11453_v57  ;;  %vm3865_vm2 = vcmp.ne.s32.totalorder %v11515_v51, 0  ;;  %vm3901_vm3 = vcmp.lt.s32.totalorder %v11515_v51, 0 }
 0x270   : > { %v3973_v9 = vadd.s32 18, %v11515_v51  ;;  %vm11560_vm10 = vmand %vm3901_vm3, %vm3865_vm2  ;;  %v3596_v41 = vshrl.u32 %v11528_v3, 4 }
 0x276   : > { %9238 = vmatmul.mubr.bf16.gmra.mrb[20].mxu0 %v2989_v63 }
 0x277   : > { %9241 = vmatprep.mubr.bf16.mxu0 %v2990_v0  ;;  %v11463_v63 = vmul.u32.u64.low 3817748708, %v3439_v53  ;;  %v11464_v0 = vmul.u32.u64.high 3817748708, %v3439_v53, %v11463_v63 }
 0x279   : > { %v3541_v21 = vshrl.u32 %v11464_v0, 4  ;;  %v11524_v0 = vadd.s32 1, %v3406_v44 }
 0x27b   : > { %v3542_v57 = vmul.u32 18, %v3541_v21  ;;  %v11541_v16 = vmul.u32.u64.low 3817748708, %v11524_v0  ;;  %v11542_v19 = vmul.u32.u64.high 3817748708, %v11524_v0, %v11541_v16 }
 0x27c   : > { %v11607_v16 = vsel %vm11550_vm6, %v3975_v62, %v11492_v18 }
 0x27e   : > { %9242 = vmatmul.mubr.bf16.gmra.mrb[24].mxu0 %v2991_v5 }
 0x27f   : > { %9245 = vmatprep.mubr.bf16.mxu0 %v2992_v6  ;;  %v11476_v6 = vmul.u32.u64.low 3817748708, %v11449_v55  ;;  %v11477_v7 = vmul.u32.u64.high 3817748708, %v11449_v55, %v11476_v6 }
 0x280   : > { %v3488_v6 = vsub.s32 %v11442_v50, %v3487_v52 }
 0x281   : > { %v3552_v36 = vshrl.u32 %v11477_v7, 4  ;;  %v3543_v7 = vsub.s32 %v3439_v53, %v3542_v57 }
 0x282   : > { %vm3866_vm7 = vcmp.ne.s32.totalorder %v3488_v6, 0  ;;  %vm3902_vm8 = vcmp.lt.s32.totalorder %v3488_v6, 0  ;;  %v3974_v52 = vadd.s32 18, %v3488_v6 }
 0x283   : > { %v3553_v63 = vmul.u32 18, %v3552_v36  ;;  %vm3871_vm9 = vcmp.ne.s32.totalorder %v3543_v7, 0  ;;  %vm3907_vm11 = vcmp.lt.s32.totalorder %v3543_v7, 0  ;;  %vm11571_vm1 = vmand %vm3902_vm8, %vm3866_vm7  ;;  %v3414_v36 = vadd.s32 136, %v11414_v30 }
 0x284   : > { %vm11583_vm2 = vmand %vm3907_vm11, %vm3871_vm9 }
 0x286   : > { %9246 = vmatmul.mubr.bf16.gmra.mrb[28].mxu0 %v2993_v11  ;;  %v11481_v11 = vadd.s32 1, %v3402_v4  ;;  %v3411_v4 = vadd.s32 112, %v11414_v30 }
 0x287   : > { %9249 = vmatprep.mubr.bf16.mxu0 %v2994_v12  ;;  %v3405_v12 = vadd.s32 64, %v11414_v30 }
 0x288   : > { %v11500_v28 = vmul.u32.u64.low 3817748708, %v11481_v11  ;;  %v11501_v34 = vmul.u32.u64.high 3817748708, %v11481_v11, %v11500_v28  ;;  %v11544_v53 = vadd.s32 1, %v3411_v4 }
 0x289   : > { %v11503_v38 = vadd.s32 1, %v3405_v12  ;;  %v3554_v12 = vsub.s32 %v11449_v55, %v3553_v63  ;;  %v11554_v55 = vadd.s32 1, %v3409_v8 }
 0x28b   : > { %v11519_v59 = vmul.u32.u64.low 3817748708, %v11503_v38  ;;  %v11520_v60 = vmul.u32.u64.high 3817748708, %v11503_v38, %v11519_v59  ;;  %vm3872_vm15 = vcmp.ne.s32.totalorder %v3554_v12, 0  ;;  %vm3908_vm0 = vcmp.lt.s32.totalorder %v3554_v12, 0 }
 0x28c   : > { %v3980_v3 = vadd.s32 18, %v3554_v12 }
 0x28d   : > { %v3563_v21 = vshrl.u32 %v11520_v60, 4  ;;  %v11588_v59 = vmul.u32.u64.low 3817748708, %v11554_v55  ;;  %v11589_v60 = vmul.u32.u64.high 3817748708, %v11554_v55, %v11588_v59 }
 0x28e   : > { %9250 = vmatmul.mubr.bf16.gmra.mrb[32].mxu0 %v2995_v15  ;;  %v3508_v15 = vshrl.u32 %v11454_v58, 4  ;;  %v3520_v58 = vmul.u32 18, %v3519_v24  ;;  %v3597_v59 = vmul.u32 18, %v3596_v41 }
 0x28f   : > { %v3564_v4 = vmul.u32 18, %v3563_v21  ;;  %v3607_v24 = vshrl.u32 %v11589_v60, 4 }
 0x290   : > { %v3509_v46 = vmul.u32 18, %v3508_v15  ;;  %v3521_v10 = vsub.s32 %v11447_v54, %v3520_v58  ;;  %v3585_v15 = vshrl.u32 %v11510_v42, 4  ;;  %v3979_v58 = vadd.s32 18, %v3543_v7 }
 0x291   : > { %v11577_v42 = vmul.u32.u64.low 3817748708, %v11544_v53  ;;  %v11578_v44 = vmul.u32.u64.high 3817748708, %v11544_v53, %v11577_v42  ;;  %v11625_v54 = vsel %vm11571_vm1, %v3974_v52, %v3488_v6  ;;  %v3419_v52 = vadd.s32 176, %v11414_v30 }
 0x292   : > { %v3510_v2 = vsub.s32 %v3436_v49, %v3509_v46  ;;  %v3530_v49 = vshrl.u32 %v11501_v34, 4  ;;  %vm3869_vm12 = vcmp.ne.s32.totalorder %v3521_v10, 0  ;;  %vm3905_vm13 = vcmp.lt.s32.totalorder %v3521_v10, 0 }
 0x293   : > { %v3586_v34 = vmul.u32 18, %v3585_v15  ;;  %v3412_v46 = vadd.s32 120, %v11414_v30  ;;  %vm11593_vm3 = vmand %vm3905_vm13, %vm3869_vm12  ;;  %v3977_v43 = vadd.s32 18, %v3521_v10  ;;  %v3410_v15 = vadd.s32 104, %v11414_v30 }
 0x294   : > { %v11406_v25 = vpop.f32.mrb[0].mxu1  ;;  %vm3868_vm4 = vcmp.ne.s32.totalorder %v3510_v2, 0  ;;  %vm3904_vm5 = vcmp.lt.s32.totalorder %v3510_v2, 0  ;;  %v3976_v50 = vadd.s32 18, %v3510_v2  ;;  %v3531_v28 = vmul.u32 18, %v3530_v49 }
 0x295   : > { %v11408_v26 = vpop.f32.mrb[1].mxu1  ;;  %vm11566_vm14 = vmand %vm3904_vm5, %vm3868_vm4  ;;  %v3574_v49 = vshrl.u32 %v11542_v19, 4  ;;  %v11610_v42 = vsub.s32 %v11484_v13, %v3586_v34  ;;  %v11612_v21 = vadd.s32 1, %v3412_v46  ;;  %v11629_v13 = vsel %vm11583_vm2, %v3979_v58, %v3543_v7 }
 0x296   : > { %v11410_v27 = vpop.f32.mrb[2].mxu1  ;;  %vm3944_vm4 = vmand %vm3908_vm0, %vm3872_vm15  ;;  %v11600_v8 = vsub.s32 %v11481_v11, %v3531_v28  ;;  %v11617_v11 = vsel %vm11560_vm10, %v3973_v9, %v11515_v51  ;;  %v11621_v19 = vsel %vm11566_vm14, %v3976_v50, %v3510_v2  ;;  %v11633_v18 = vsel %vm11593_vm3, %v3977_v43, %v3521_v10 }
 0x297   : > { %v11412_v29 = vpop.f32.mrb[3].mxu1  ;;  %v11635_v62 = vsel %vm3944_vm4, %v3980_v3, %v3554_v12  ;;  %v11638_v51 = vsub.s32 %v11503_v38, %v3564_v4  ;;  %v3415_v2 = vadd.s32 144, %v11414_v30  ;;  %v3575_v7 = vmul.u32 18, %v3574_v49 }
 0x298   : > { %vm3870_vm5 = vcmp.ne.s32.totalorder %v11600_v8, 0  ;;  %vm3906_vm6 = vcmp.lt.s32.totalorder %v11600_v8, 0  ;;  %v11644_v6 = vadd.s32 18, %v11600_v8  ;;  %v11646_v9 = vadd.s32 1, %v3410_v15 }
 0x299   : > { %vm3875_vm7 = vcmp.ne.s32.totalorder %v11610_v42, 0  ;;  %v11650_v10 = vsub.s32 %v11513_v48, %v3597_v59  ;;  %v3629_v38 = vshrl.u32 %v11578_v44, 4  ;;  %vm3911_vm8 = vcmp.lt.s32.totalorder %v11610_v42, 0  ;;  %vm11711_vm15 = vmand %vm3906_vm6, %vm3870_vm5 }
 0x29a   : > { %v11654_v12 = vmul.u32.u64.low 3817748708, %v11612_v21  ;;  %v11655_v50 = vmul.u32.u64.high 3817748708, %v11612_v21, %v11654_v12  ;;  %v11659_v20 = vadd.s32 18, %v11610_v42  ;;  %v3413_v28 = vadd.s32 128, %v11414_v30  ;;  %vm11727_vm0 = vmand %vm3911_vm8, %vm3875_vm7 }
 0x29b   : > { %vm3873_vm9 = vcmp.ne.s32.totalorder %v11638_v51, 0  ;;  %v11664_v34 = vadd.s32 1, %v3415_v2  ;;  %v3416_v48 = vadd.s32 152, %v11414_v30  ;;  %v11669_v41 = vsub.s32 %v11524_v0, %v3575_v7 }
 0x29c   : > { %v11416_v31 = vpop.f32.mrb[4].mxu1  ;;  %v11672_v44 = vmul.u32.u64.low 3817748708, %v11646_v9  ;;  %v11673_v46 = vmul.u32.u64.high 3817748708, %v11646_v9, %v11672_v44  ;;  %vm3909_vm10 = vcmp.lt.s32.totalorder %v11638_v51, 0  ;;  %v3981_v57 = vadd.s32 18, %v11638_v51 }
 0x29d   : > { %v11418_v32 = vpop.f32.mrb[5].mxu1  ;;  %vm3876_vm11 = vcmp.ne.s32.totalorder %v11650_v10, 0  ;;  %v3630_v58 = vmul.u32 18, %v3629_v38  ;;  %vm3912_vm12 = vcmp.lt.s32.totalorder %v11650_v10, 0  ;;  %v3608_v60 = vmul.u32 18, %v3607_v24  ;;  %vm11742_vm1 = vmand %vm3909_vm10, %vm3873_vm9 }
 0x29e   : > { %v11420_v33 = vpop.f32.mrb[6].mxu1  ;;  %v11680_v63 = vadd.s32 1, %v3413_v28  ;;  %v3417_v0 = vadd.s32 160, %v11414_v30  ;;  %v11684_v43 = vmul.u32.u64.low 3817748708, %v11664_v34  ;;  %v11685_v3 = vmul.u32.u64.high 3817748708, %v11664_v34, %v11684_v43  ;;  %vm11751_vm4 = vmand %vm3912_vm12, %vm3876_vm11 }
 0x29f   : > { %13544 = vst [vmem:[#allocation6_spill] sm:$0xff] %v11420_v33  ;;  %v11423_v35 = vpop.f32.mrb[7].mxu1  ;;  %v11687_v4 = vadd.s32 1, %v3416_v48  ;;  %v11689_v49 = vadd.s32 1, %v3414_v36  ;;  %v3984_v15 = vadd.s32 18, %v11650_v10  ;;  %vm3874_vm13 = vcmp.ne.s32.totalorder %v11669_v41, 0 }
 0x2a0   : > { %13545 = vst [vmem:[#allocation7_spill] sm:$0xff] %v11423_v35  ;;  %v11693_v59 = vadd.s32 1, %v3419_v52  ;;  %v3420_v2 = vadd.s32 184, %v11414_v30  ;;  %vm3910_vm14 = vcmp.lt.s32.totalorder %v11669_v41, 0  ;;  %v3982_v7 = vadd.s32 18, %v11669_v41 }
 0x2a1   : > { %v3631_v38 = vsub.s32 %v11544_v53, %v3630_v58  ;;  %v3640_v12 = vshrl.u32 %v11655_v50, 4  ;;  %v3609_v24 = vsub.s32 %v11554_v55, %v3608_v60  ;;  %v11705_v36 = vadd.s32 1, %v3417_v0  ;;  %vm11764_vm5 = vmand %vm3910_vm14, %vm3874_vm13 }
 0x2a2   : > { %v11702_v28 = vmul.u32.u64.low 3817748708, %v11680_v63  ;;  %v11703_v48 = vmul.u32.u64.high 3817748708, %v11680_v63, %v11702_v28  ;;  %v11716_v53 = vmul.u32.u64.low 3817748708, %v11687_v4  ;;  %v11717_v52 = vmul.u32.u64.high 3817748708, %v11687_v4, %v11716_v53 }
 0x2a3   : > { %v11720_v55 = vmul.u32.u64.low 3817748708, %v11689_v49  ;;  %v11721_v50 = vmul.u32.u64.high 3817748708, %v11689_v49, %v11720_v55  ;;  %v3618_v60 = vshrl.u32 %v11673_v46, 4  ;;  %v11736_v28 = vadd.s32 1, %v3420_v2 }
 0x2a4   : > { %v11425_v37 = vpop.f32.mrb[8].mxu1  ;;  %v11733_v0 = vmul.u32.u64.low 3817748708, %v11693_v59  ;;  %v11734_v43 = vmul.u32.u64.high 3817748708, %v11693_v59, %v11733_v0  ;;  %vm3879_vm2 = vcmp.ne.s32.totalorder %v3631_v38, 0  ;;  %vm3915_vm3 = vcmp.lt.s32.totalorder %v3631_v38, 0 }
 0x2a5   : > { %13546 = vst [vmem:[#allocation8_spill] sm:$0xff] %v11425_v37  ;;  %v11429_v40 = vpop.f32.mrb[9].mxu1  ;;  %v3987_v55 = vadd.s32 18, %v3631_v38  ;;  %v3641_v2 = vmul.u32 18, %v3640_v12  ;;  %vm3877_vm6 = vcmp.ne.s32.totalorder %v3609_v24, 0  ;;  %vm3913_vm7 = vcmp.lt.s32.totalorder %v3609_v24, 0  ;;  %vm3951_vm8 = vmand %vm3915_vm3, %vm3879_vm2 }
 0x2a6   : > { %13547 = vst [vmem:[#allocation9_spill] sm:$0xff] %v11429_v40  ;;  %v11436_v45 = vpop.f32.mrb[10].mxu1  ;;  %v3421_v12 = vadd.s32 192, %v11414_v30  ;;  %v11791_v44 = vsel %vm11742_vm1, %v3981_v57, %v11638_v51  ;;  %vm3949_vm9 = vmand %vm3913_vm7, %vm3877_vm6  ;;  %v3684_v57 = vshrl.u32 %v11717_v52, 4  ;;  %vm4048_vm7 = vcmp.ge.s32.totalorder %v11621_v19, 1 }
 0x2a7   : > { %13548 = vst [vmem:[#allocation10_spill] sm:$0xff] %v11436_v45  ;;  %v11439_v47 = vpop.f32.mrb[11].mxu1 }
 0x2a8   : > { %13549 = vst [vmem:[#allocation11_spill] sm:$0xff] %v11439_v47  ;;  %v11813_v58 = vadd.s32 1, %v3421_v12 }
 0x2ad   : > { %v11451_v56 = vpop.f32.mrb[12].mxu1 }
 0x2ae   : > { %13550 = vst [vmem:[#allocation12_spill] sm:$0xff] %v11451_v56  ;;  %v11460_v61 = vpop.f32.mrb[13].mxu1 }
 0x2af   : > { %13551 = vst [vmem:[#allocation13_spill] sm:$0xff] %v11460_v61  ;;  %v11466_v1 = vpop.f32.mrb[14].mxu1  ;;  %v11779_v61 = vmul.u32.u64.low 3817748708, %v11736_v28  ;;  %v11780_v56 = vmul.u32.u64.high 3817748708, %v11736_v28, %v11779_v61 }
 0x2b0   : > { %13552 = vst [vmem:[#allocation14_spill] sm:$0xff] %v11466_v1  ;;  %v11473_v5 = vpop.f32.mrb[15].mxu1  ;;  %v3619_v1 = vmul.u32 18, %v3618_v60  ;;  %v11798_v60 = vsel %vm11751_vm4, %v3984_v15, %v11650_v10  ;;  %v11803_v61 = vsel %vm11764_vm5, %v3982_v7, %v11669_v41  ;;  %v11816_v10 = vsub.s32 %v11612_v21, %v3641_v2 }
 0x2b1   : > { %13553 = vst [vmem:[#allocation15_spill] sm:$0xff] %v11473_v5  ;;  %v3673_v5 = vshrl.u32 %v11685_v3, 4  ;;  %v11786_v3 = vsel %vm11727_vm0, %v11659_v20, %v11610_v42  ;;  %v3651_v42 = vshrl.u32 %v11703_v48, 4  ;;  %v11810_v20 = vsel %vm3951_vm8, %v3987_v55, %v3631_v38 }
 0x2b2   : > { %v3662_v41 = vshrl.u32 %v11721_v50, 4  ;;  %v3717_v15 = vshrl.u32 %v11734_v43, 4  ;;  %vm3880_vm10 = vcmp.ne.s32.totalorder %v11816_v10, 0  ;;  %v3728_v46 = vshrl.u32 %v11780_v56, 4 }
 0x2b3   : > { %v3652_v48 = vmul.u32 18, %v3651_v42  ;;  %vm3916_vm11 = vcmp.lt.s32.totalorder %v11816_v10, 0  ;;  %v3422_v42 = vadd.s32 200, %v11414_v30 }
 0x2b4   : > { %v3663_v43 = vmul.u32 18, %v3662_v41  ;;  %v3718_v55 = vmul.u32 18, %v3717_v15  ;;  %vm11881_vm0 = vmand %vm3916_vm11, %vm3880_vm10 }
 0x2b5   : > { %v11856_v12 = vsub.s32 %v11680_v63, %v3652_v48  ;;  %v3729_v63 = vmul.u32 18, %v3728_v46 }
 0x2b6   : > { %v11869_v41 = vsub.s32 %v11693_v59, %v3718_v55 }
 0x2b7   : > { %vm3881_vm1 = vcmp.ne.s32.totalorder %v11856_v12, 0  ;;  %vm3917_vm2 = vcmp.lt.s32.totalorder %v11856_v12, 0 }
 0x2b8   : > { %vm11920_vm11 = vmand %vm3917_vm2, %vm3881_vm1  ;;  %vm4084_vm1 = vcmp.le.s32.totalorder %v11621_v19, 16 }
 0x2bd   : > { %v11486_v14 = vpop.f32.mrb[16].mxu1 }
 0x2be   : > { %13554 = vst [vmem:[#allocation16_spill] sm:$0xff] %v11486_v14  ;;  %v11490_v17 = vpop.f32.mrb[17].mxu1  ;;  %v11819_v14 = vsub.s32 %v11646_v9, %v3619_v1  ;;  %v3685_v9 = vmul.u32 18, %v3684_v57  ;;  %v11866_v57 = vsub.s32 %v11689_v49, %v3663_v43 }
 0x2bf   : > { %13555 = vst [vmem:[#allocation17_spill] sm:$0xff] %v11490_v17  ;;  %v11496_v22 = vpop.f32.mrb[18].mxu1  ;;  %v3423_v17 = vadd.s32 208, %v11414_v30 }
 0x2c0   : > { %13556 = vst [vmem:[#allocation18_spill] sm:$0xff] %v11496_v22  ;;  %v11505_v39 = vpop.f32.mrb[19].mxu1  ;;  %v11756_v0 = vmul.u32.u64.low 3817748708, %v11705_v36  ;;  %v11757_v22 = vmul.u32.u64.high 3817748708, %v11705_v36, %v11756_v0  ;;  %vm3878_vm12 = vcmp.ne.s32.totalorder %v11819_v14, 0  ;;  %vm3914_vm13 = vcmp.lt.s32.totalorder %v11819_v14, 0 }
 0x2c1   : > { %13557 = vst [vmem:[#allocation19_spill] sm:$0xff] %v11505_v39  ;;  %v3418_v39 = vadd.s32 168, %v11414_v30  ;;  %v11774_v0 = vsel %vm11711_vm15, %v11644_v6, %v11600_v8  ;;  %v3985_v8 = vadd.s32 18, %v3609_v24  ;;  %v11808_v51 = vadd.s32 1, %v3423_v17  ;;  %vm11893_vm3 = vmand %vm3914_vm13, %vm3878_vm12 }
 0x2c2   : > { %v3695_v52 = vshrl.u32 %v11757_v22, 4  ;;  %v11846_v22 = vadd.s32 18, %v11816_v10  ;;  %v11853_v2 = vadd.s32 18, %v11819_v14  ;;  %v11861_v56 = vsub.s32 %v11687_v4, %v3685_v9 }
 0x2c3   : > { %v11793_v6 = vadd.s32 1, %v3418_v39  ;;  %v3674_v39 = vmul.u32 18, %v3673_v5  ;;  %v11823_v7 = vsel %vm3949_vm9, %v3985_v8, %v3609_v24  ;;  %v3424_v5 = vadd.s32 216, %v11414_v30 }
 0x2c4   : > { %v11832_v21 = vmul.u32.u64.low 3817748708, %v11808_v51  ;;  %v11833_v53 = vmul.u32.u64.high 3817748708, %v11808_v51, %v11832_v21  ;;  %v11839_v24 = vmul.u32.u64.low 3817748708, %v11813_v58  ;;  %v11840_v50 = vmul.u32.u64.high 3817748708, %v11813_v58, %v11839_v24 }
 0x2c5   : > { %v11826_v17 = vmul.u32.u64.low 3817748708, %v11793_v6  ;;  %v11827_v38 = vmul.u32.u64.high 3817748708, %v11793_v6, %v11826_v17  ;;  %v11836_v1 = vsub.s32 %v11664_v34, %v3674_v39  ;;  %v11849_v34 = vadd.s32 1, %v3424_v5 }
 0x2c6   : > { %v3696_v8 = vmul.u32 18, %v3695_v52  ;;  %v3427_v4 = vadd.s32 240, %v11414_v30  ;;  %v3761_v59 = vshrl.u32 %v11833_v53, 4  ;;  %vm3884_vm4 = vcmp.ne.s32.totalorder %v11861_v56, 0 }
 0x2c7   : > { %vm3883_vm14 = vcmp.ne.s32.totalorder %v11836_v1, 0  ;;  %vm3919_vm15 = vcmp.lt.s32.totalorder %v11836_v1, 0  ;;  %v3991_v39 = vadd.s32 18, %v11836_v1  ;;  %v3706_v15 = vshrl.u32 %v11827_v38, 4 }
 0x2c8   : > { %v11873_v17 = vmul.u32.u64.low 3817748708, %v11849_v34  ;;  %v11874_v5 = vmul.u32.u64.high 3817748708, %v11849_v34, %v11873_v17  ;;  %v3697_v49 = vsub.s32 %v11705_v36, %v3696_v8  ;;  %vm3920_vm5 = vcmp.lt.s32.totalorder %v11861_v56, 0  ;;  %vm11908_vm8 = vmand %vm3919_vm15, %vm3883_vm14 }
 0x2c9   : > { %v3739_v52 = vshrl.u32 %v11840_v50, 4  ;;  %v11900_v21 = vadd.s32 1, %v3422_v42  ;;  %v3989_v53 = vadd.s32 18, %v11856_v12  ;;  %vm3882_vm9 = vcmp.ne.s32.totalorder %v11866_v57, 0  ;;  %vm11932_vm14 = vmand %vm3920_vm5, %vm3884_vm4 }
 0x2ca   : > { %vm3918_vm10 = vcmp.lt.s32.totalorder %v11866_v57, 0  ;;  %v3730_v9 = vsub.s32 %v11736_v28, %v3729_v63  ;;  %vm3887_vm12 = vcmp.ne.s32.totalorder %v11869_v41, 0  ;;  %vm3923_vm13 = vcmp.lt.s32.totalorder %v11869_v41, 0 }
 0x2cb   : > { %v3707_v50 = vmul.u32 18, %v3706_v15  ;;  %v11926_v43 = vadd.s32 1, %v3427_v4  ;;  %v3992_v55 = vadd.s32 18, %v11861_v56  ;;  %vm3885_vm15 = vcmp.ne.s32.totalorder %v3697_v49, 0  ;;  %vm11937_vm2 = vmand %vm3918_vm10, %vm3882_vm9 }
 0x2cc   : > { %v3762_v46 = vmul.u32 18, %v3761_v59  ;;  %v3990_v42 = vadd.s32 18, %v11866_v57  ;;  %v3740_v63 = vmul.u32 18, %v3739_v52  ;;  %vm11952_vm6 = vmand %vm3923_vm13, %vm3887_vm12  ;;  %v3995_v59 = vadd.s32 18, %v11869_v41 }
 0x2cd   : > { %v11943_v15 = vmul.u32.u64.low 3817748708, %v11900_v21  ;;  %v11944_v17 = vmul.u32.u64.high 3817748708, %v11900_v21, %v11943_v15  ;;  %v3993_v47 = vadd.s32 18, %v3697_v49  ;;  %vm3888_vm9 = vcmp.ne.s32.totalorder %v3730_v9, 0 }
 0x2ce   : > { %vm3924_vm10 = vcmp.lt.s32.totalorder %v3730_v9, 0  ;;  %vm13594_vm4 = vcmp.lt.s32.totalorder %v3697_v49, 0  ;;  %v11966_v15 = vsub.s32 %v11793_v6, %v3707_v50  ;;  %v3772_v45 = vshrl.u32 %v11874_v5, 4 }
 0x2cf   : > { %vm11961_vm5 = vmand %vm13594_vm4, %vm3885_vm15  ;;  %v11970_v40 = vmul.u32.u64.low 3817748708, %v11926_v43  ;;  %v11971_v37 = vmul.u32.u64.high 3817748708, %v11926_v43, %v11970_v40  ;;  %vm4082_vm13 = vcmp.le.s32.totalorder %v11625_v54, 16  ;;  %v11979_v35 = vsel %vm11881_vm0, %v11846_v22, %v11816_v10 }
 0x2d0   : > { %v3996_v33 = vadd.s32 18, %v3730_v9  ;;  %v11982_v6 = vsub.s32 %v11808_v51, %v3762_v46  ;;  %v3425_v5 = vadd.s32 224, %v11414_v30  ;;  %v11989_v40 = vsel %vm11893_vm3, %v11853_v2, %v11819_v14  ;;  %vm12003_vm0 = vmand %vm3924_vm10, %vm3888_vm9  ;;  %v12011_v14 = vld [vmem:[%s13533_s2] ss:$0 sm:$0xff] }
 0x2d1   : > { %v11994_v50 = vsel %vm11908_vm8, %v3991_v39, %v11836_v1  ;;  %v11999_v10 = vsel %vm11920_vm11, %v3989_v53, %v11856_v12  ;;  %v3741_v22 = vsub.s32 %v11813_v58, %v3740_v63  ;;  %v12016_v1 = vsel %vm11932_vm14, %v3992_v55, %v11861_v56 }
 0x2d2   : > { %v12021_v2 = vsel %vm11937_vm2, %v3990_v42, %v11866_v57  ;;  %v12026_v12 = vsel %vm11952_vm6, %v3995_v59, %v11869_v41  ;;  %v12030_v58 = vsel %vm11961_vm5, %v3993_v47, %v3697_v49  ;;  %vm3886_vm3 = vcmp.ne.s32.totalorder %v11966_v15, 0  ;;  %v12038_v57 = vld [vmem:[%s13534_s3] ss:$0 sm:$0xff] }
 0x2d3   : > { %vm3922_vm8 = vcmp.lt.s32.totalorder %v11966_v15, 0  ;;  %v3994_v56 = vadd.s32 18, %v11966_v15  ;;  %v3773_v39 = vmul.u32 18, %v3772_v45  ;;  %v12044_v47 = vsel %vm12003_vm0, %v3996_v33, %v3730_v9 }
 0x2d4   : > { %vm3891_vm14 = vcmp.ne.s32.totalorder %v11982_v6, 0  ;;  %vm3927_vm15 = vcmp.lt.s32.totalorder %v11982_v6, 0  ;;  %v12048_v41 = vadd.s32 1, %v3425_v5  ;;  %vm13599_vm2 = vcmp.le.s32.totalorder %v11607_v16, 16 }
 0x2d5   : > { %vm13600_vm4 = vcmp.ge.s32.totalorder %v11607_v16, 1  ;;  %vm4049_vm9 = vcmp.ge.s32.totalorder %v11633_v18, 1  ;;  %vm4085_vm10 = vcmp.le.s32.totalorder %v11633_v18, 16  ;;  %vm3889_vm0 = vcmp.ne.s32.totalorder %v3741_v22, 0 }
 0x2d6   : > { %vm12055_vm5 = vmand %vm13600_vm4, %vm13599_vm2  ;;  %vm3925_vm6 = vcmp.lt.s32.totalorder %v3741_v22, 0  ;;  %v3750_v33 = vshrl.u32 %v11944_v17, 4  ;;  %vm4088_vm12 = vcmp.le.s32.totalorder %v11635_v62, 16  ;;  %v3999_v9 = vadd.s32 18, %v11982_v6 }
 0x2d7   : > { %vm12069_vm2 = vmand %vm3922_vm8, %vm3886_vm3  ;;  %v3997_v24 = vadd.s32 18, %v3741_v22  ;;  %v3428_v28 = vadd.s32 248, %v11414_v30  ;;  %vm4086_vm11 = vcmp.le.s32.totalorder %v11774_v0, 16  ;;  %v12084_v42 = vsub.s32 %v11849_v34, %v3773_v39 }
 0x2d8   : > { %vm3963_vm3 = vmand %vm3927_vm15, %vm3891_vm14  ;;  %v3805_v63 = vshrl.u32 %v11971_v37, 4  ;;  %v12096_v52 = vmul.u32.u64.low 3817748708, %v12048_v41  ;;  %v12097_v5 = vmul.u32.u64.high 3817748708, %v12048_v41, %v12096_v52  ;;  %vm13607_vm14 = vcmp.le.s32.totalorder %v11617_v11, 16 }
 0x2d9   : > { %vm12091_vm8 = vmand %vm3925_vm6, %vm3889_vm0  ;;  %vm13608_vm15 = vcmp.ge.s32.totalorder %v11617_v11, 1  ;;  %v12107_v34 = vsel %vm12069_vm2, %v3994_v56, %v11966_v15  ;;  %v3751_v39 = vmul.u32 18, %v3750_v33  ;;  %vm13611_vm0 = vcmp.ge.s32.totalorder %v11625_v54, 1 }
 0x2da   : > { %vm4117_vm4 = vmand %vm13608_vm15, %vm13607_vm14  ;;  %v12135_v33 = vsel %vm12091_vm8, %v3997_v24, %v3741_v22  ;;  %v3806_v54 = vmul.u32 18, %v3805_v63  ;;  %vm4092_vm8 = vcmp.le.s32.totalorder %v11798_v60, 16  ;;  %vm13614_vm14 = vcmp.le.s32.totalorder %v11629_v13, 16 }
 0x2db   : > { %vm12113_vm6 = vmand %vm4048_vm7, %vm4084_vm1  ;;  %vm4055_vm7 = vcmp.ge.s32.totalorder %v11786_v3, 1  ;;  %vm4091_vm1 = vcmp.le.s32.totalorder %v11786_v3, 16  ;;  %vm13615_vm15 = vcmp.ge.s32.totalorder %v11629_v13, 1  ;;  %v3429_v59 = vadd.s32 256, %v11414_v30 }
 0x2dc   : > { %vm12129_vm2 = vmand %vm13611_vm0, %vm4082_vm13  ;;  %vm4053_vm13 = vcmp.ge.s32.totalorder %v11791_v44, 1  ;;  %v12196_v18 = vsub.s32 %v11926_v43, %v3806_v54 }
 0x321   : > { %v9219_v48 = vpop.f32.mrb[0].mxu0 }
 0x322   : > { %v3283_v45 = vmul.f32 %v9219_v48, %v12011_v14  ;;  %v3095_v38 = vpop.f32.mrb[1].mxu0 }
 0x323   : > { %v3281_v36 = vmul.f32 %v12011_v14, %v3095_v38  ;;  %v9220_v53 = vpop.f32.mrb[2].mxu0  ;;  %v12119_v38 = vsel %vm3963_vm3, %v3999_v9, %v11982_v6  ;;  %v3426_v6 = vadd.s32 232, %v11414_v30  ;;  %vm3928_vm3 = vcmp.lt.s32.totalorder %v12084_v42, 0 }
 0x324   : > { %v3326_v55 = vadd.f32 %v12038_v57, %v3283_v45  ;;  %v3284_v46 = vmul.f32 %v9220_v53, %v12011_v14  ;;  %v3098_v8 = vpop.f32.mrb[3].mxu0  ;;  %v4000_v45 = vadd.s32 18, %v12084_v42 }
 0x325   : > { %v3324_v17 = vadd.f32 %v12038_v57, %v3281_v36  ;;  %v3282_v4 = vmul.f32 %v12011_v14, %v3098_v8  ;;  %v12121_v36 = vadd.s32 1, %v3428_v28  ;;  %v12147_v28 = vsub.s32 %v11900_v21, %v3751_v39 }
 0x326   : > { %v3362_v51 = vmax.f32 %v3326_v55, 0.0  ;;  %v3327_v37 = vadd.f32 %v12038_v57, %v3284_v46  ;;  %v3431_v55 = vadd.s32 272, %v11414_v30 }
 0x327   : > { %v3360_v48 = vmax.f32 %v3324_v17, 0.0  ;;  %v3325_v11 = vadd.f32 %v12038_v57, %v3282_v4  ;;  %v12156_v17 = vmul.u32.u64.low 3817748708, %v12121_v36  ;;  %v12157_v4 = vmul.u32.u64.high 3817748708, %v12121_v36, %v12156_v17 }
 0x328   : > { %v4227_v15 = vsel %vm12055_vm5, %v3362_v51, 0.0  ;;  %v3363_v56 = vmax.f32 %v3327_v37, 0.0  ;;  %vm3892_vm5 = vcmp.ne.s32.totalorder %v12084_v42, 0  ;;  %v12172_v37 = vadd.s32 1, %v3426_v6 }
 0x329   : > { %4266 = vst [vmem:[#allocation2 + $0x28] sm:$0xff] %v4227_v15  ;;  %v4225_v53 = vsel %vm4117_vm4, %v3360_v48, 0.0  ;;  %v3361_v16 = vmax.f32 %v3325_v11, 0.0  ;;  %v9223_v49 = vpop.f32.mrb[4].mxu0  ;;  %vm4089_vm4 = vcmp.le.s32.totalorder %v11791_v44, 16  ;;  %v3783_v11 = vshrl.u32 %v12097_v5, 4 }
 0x32a   : > { %4264 = vst [vmem:[#allocation2 + $0x18] sm:$0xff] %v4225_v53  ;;  %v4228_v9 = vsel %vm12113_vm6, %v3363_v56, 0.0  ;;  %v3287_v22 = vmul.f32 %v9223_v49, %v12011_v14  ;;  %v3111_v24 = vpop.f32.mrb[5].mxu0  ;;  %vm12164_vm6 = vmand %vm13615_vm15, %vm13614_vm14  ;;  %vm13620_vm15 = vcmp.ge.s32.totalorder %v11635_v62, 1  ;;  %v12198_v6 = vadd.s32 1, %v3431_v55 }
 0x32b   : > { %4267 = vst [vmem:[#allocation2 + $0x30] sm:$0xff] %v4228_v9  ;;  %v4226_v46 = vsel %vm12129_vm2, %v3361_v16, 0.0  ;;  %v3285_v8 = vmul.f32 %v12011_v14, %v3111_v24  ;;  %v9224_v63 = vpop.f32.mrb[6].mxu0  ;;  %vm12179_vm14 = vmand %vm4049_vm9, %vm4085_vm10  ;;  %vm13623_vm9 = vcmp.ge.s32.totalorder %v11774_v0, 1  ;;  %v12230_v55 = vadd.s32 18, %v12147_v28 }
 0x32c   : > { %4265 = vst [vmem:[#allocation2 + $0x20] sm:$0xff] %v4226_v46  ;;  %v3330_v21 = vadd.f32 %v12038_v57, %v3287_v22  ;;  %v3288_v52 = vmul.f32 %v9224_v63, %v12011_v14  ;;  %v3114_v51 = vpop.f32.mrb[7].mxu0  ;;  %vm12191_vm0 = vmand %vm13620_vm15, %vm4088_vm12  ;;  %vm3890_vm12 = vcmp.ne.s32.totalorder %v12147_v28, 0  ;;  %vm3926_vm15 = vcmp.lt.s32.totalorder %v12147_v28, 0 }
 0x32d   : > { %v3328_v39 = vadd.f32 %v12038_v57, %v3285_v8  ;;  %v3286_v48 = vmul.f32 %v12011_v14, %v3114_v51  ;;  %vm12205_vm10 = vmand %vm13623_vm9, %vm4086_vm11  ;;  %v12222_v0 = vmul.u32.u64.low 3817748708, %v12172_v37  ;;  %v12223_v54 = vmul.u32.u64.high 3817748708, %v12172_v37, %v12222_v0 }
 0x32e   : > { %v3366_v15 = vmax.f32 %v3330_v21, 0.0  ;;  %v3331_v56 = vadd.f32 %v12038_v57, %v3288_v52  ;;  %vm12217_vm2 = vmand %vm3928_vm3, %vm3892_vm5  ;;  %vm4059_vm11 = vcmp.ge.s32.totalorder %v11810_v20, 1  ;;  %v3784_v46 = vmul.u32 18, %v3783_v11 }
 0x32f   : > { %v3364_v53 = vmax.f32 %v3328_v39, 0.0  ;;  %v3329_v16 = vadd.f32 %v12038_v57, %v3286_v48  ;;  %vm4057_vm5 = vcmp.ge.s32.totalorder %v11823_v7, 1  ;;  %vm4093_vm3 = vcmp.le.s32.totalorder %v11823_v7, 16  ;;  %vm12255_vm9 = vmand %vm4055_vm7, %vm4091_vm1 }
 0x330   : > { %v4231_v62 = vsel %vm12164_vm6, %v3366_v15, 0.0  ;;  %v3367_v43 = vmax.f32 %v3331_v56, 0.0  ;;  %vm4095_vm6 = vcmp.le.s32.totalorder %v11810_v20, 16  ;;  %v3432_v52 = vadd.s32 280, %v11414_v30  ;;  %vm12270_vm7 = vmand %vm4053_vm13, %vm4089_vm4 }
 0x331   : > { %4270 = vst [vmem:[#allocation2 + $0x48] sm:$0xff] %v4231_v62  ;;  %v4229_v9 = vsel %vm12179_vm14, %v3364_v53, 0.0  ;;  %v3365_v22 = vmax.f32 %v3329_v16, 0.0  ;;  %v9227_v24 = vpop.f32.mrb[8].mxu0  ;;  %v4375_v48 = vld [vmem:[#allocation2 + $0x16] sm:$0xff]  ;;  %vm4096_vm14 = vcmp.le.s32.totalorder %v11979_v35, 16  ;;  %v12247_v56 = vsel %vm12217_vm2, %v4000_v45, %v12084_v42 }
 0x332   : > { %4268 = vst [vmem:[#allocation2 + $0x38] sm:$0xff] %v4229_v9  ;;  %v4232_v8 = vsel %vm12191_vm0, %v3367_v43, 0.0  ;;  %v3291_v63 = vmul.f32 %v9227_v24, %v12011_v14  ;;  %v3127_v17 = vpop.f32.mrb[9].mxu0  ;;  %v4378_v21 = vld [vmem:[#allocation2 + $0x2e] sm:$0xff]  ;;  %v3816_v19 = vshrl.u32 %v12157_v4, 4  ;;  %v10563_v42 = vld [vmem:[%s13535_s4 + $0x8] sm:$0xff]  }
 0x333   : > { %4271 = vst [vmem:[#allocation2 + $0x50] sm:$0xff] %v4232_v8  ;;  %v4230_v51 = vsel %vm12205_vm10, %v3365_v22, 0.0  ;;  %v3289_v39 = vmul.f32 %v12011_v14, %v3127_v17  ;;  %v9228_v13 = vpop.f32.mrb[10].mxu0  ;;  %v4376_v11 = vld [vmem:[#allocation2 + $0x1e] sm:$0xff]  ;;  %v4377_v15 = vld [vmem:[#allocation2 + $0x26] sm:$0xff]  ;;  %vm3895_vm1 = vcmp.ne.s32.totalorder %v12196_v18, 0 }
 0x334   : > { %4269 = vst [vmem:[#allocation2 + $0x40] sm:$0xff] %v4230_v51  ;;  %v3334_v53 = vadd.f32 %v12038_v57, %v3291_v63  ;;  %v3292_v5 = vmul.f32 %v9228_v13, %v12011_v14  ;;  %v3130_v62 = vpop.f32.mrb[11].mxu0  ;;  %v4410_v43 = vpack.c.bf16 %v4376_v11, %v4375_v48  ;;  %v4411_v49 = vpack.c.bf16 %v4378_v21, %v4377_v15 }
 0x335   : > { %v3332_v4 = vadd.f32 %v12038_v57, %v3289_v39  ;;  %v3290_v45 = vmul.f32 %v12011_v14, %v3130_v62  ;;  %vm13632_vm10 = vcmp.ge.s32.totalorder %v11798_v60, 1  ;;  %v12287_v44 = vadd.s32 18, %v12196_v18 }
 0x336   : > { %v3370_v0 = vmax.f32 %v3334_v53, 0.0  ;;  %v3335_v9 = vadd.f32 %v12038_v57, %v3292_v5  ;;  %vm12282_vm0 = vmand %vm13632_vm10, %vm4092_vm8  ;;  %9270 = vmatmul.mubr.bf16.vlgmr.msra.gmra.mrb[20].mxu1 %v4410_v43  ;;  %v12289_v24 = vadd.s32 1, %v3429_v59  ;;  %vm13635_vm13 = vcmp.le.s32.totalorder %v11803_v61, 16 }
 0x337   : > { %v3368_v8 = vmax.f32 %v3332_v4, 0.0  ;;  %v3333_v63 = vadd.f32 %v12038_v57, %v3290_v45  ;;  %vm13636_vm4 = vcmp.ge.s32.totalorder %v11803_v61, 1  ;;  %9273 = vmatprep.mubr.bf16.mxu1 %v4411_v49  ;;  %9306 = vmatpush3.bf16.msra.mxu1 %v11403_v23  ;;  %v12302_v60 = vsub.s32 %v12048_v41, %v3784_v46  ;;  %v10564_v61 = vld [vmem:[%s13535_s4 + $0x10] sm:$0xff]   ;;  %vm12315_vm8 = vmand %vm3926_vm15, %vm3890_vm12 }
 0x338   : > { %vm12296_vm2 = vmand %vm13636_vm4, %vm13635_vm13  ;;  %v12304_v21 = vadd.s32 1, %v3432_v52  ;;  %v4235_v59 = vsel %vm12255_vm9, %v3370_v0, 0.0  ;;  %v3371_v51 = vmax.f32 %v3335_v9, 0.0  ;;  %9307 = vmatprep.subr.bf16.mxu1 %v10563_v42  ;;  %v3817_v41 = vmul.u32 18, %v3816_v19 }
 0x339   : > { %v3794_v46 = vshrl.u32 %v12223_v54, 4  ;;  %4274 = vst [vmem:[#allocation2 + $0x68] sm:$0xff] %v4235_v59  ;;  %v4233_v52 = vsel %vm12270_vm7, %v3368_v8, 0.0  ;;  %v3369_v39 = vmax.f32 %v3333_v63, 0.0  ;;  %v9231_v13 = vpop.f32.mrb[12].mxu0  ;;  %vm4063_vm9 = vcmp.ge.s32.totalorder %v11994_v50, 1 }
 0x33a   : > { %vm4099_vm10 = vcmp.le.s32.totalorder %v11994_v50, 16  ;;  %v12325_v48 = vmul.u32.u64.low 3817748708, %v12198_v6  ;;  %v12326_v11 = vmul.u32.u64.high 3817748708, %v12198_v6, %v12325_v48  ;;  %4272 = vst [vmem:[#allocation2 + $0x58] sm:$0xff] %v4233_v52  ;;  %v4236_v15 = vsel %vm12282_vm0, %v3371_v51, 0.0  ;;  %v3143_v19 = vpop.f32.mrb[13].mxu0  ;;  %vm12352_vm0 = vmand %vm4059_vm11, %vm4095_vm6 }
 0x33b   : > { %v3295_v54 = vmul.f32 %v9231_v13, %v12011_v14  ;;  %v4382_v53 = vld [vmem:[#allocation2 + $0x4e] sm:$0xff]  ;;  %v12332_v16 = vmul.u32.u64.low 3817748708, %v12289_v24  ;;  %v12333_v5 = vmul.u32.u64.high 3817748708, %v12289_v24, %v12332_v16  ;;  %4275 = vst [vmem:[#allocation2 + $0x70] sm:$0xff] %v4236_v15  ;;  %v4234_v62 = vsel %vm12296_vm2, %v3369_v39, 0.0  ;;  %v9232_v49 = vpop.f32.mrb[14].mxu0  ;;  %9308 = vmatpush3.bf16.msra.mxu1 %v10563_v42  ;;  %vm12367_vm11 = vmand %vm4057_vm5, %vm4093_vm3 }
 0x33c   : > { %v3293_v43 = vmul.f32 %v12011_v14, %v3143_v19  ;;  %v4379_v4 = vld [vmem:[#allocation2 + $0x36] sm:$0xff]  ;;  %v4380_v3 = vld [vmem:[#allocation2 + $0x3e] sm:$0xff]  ;;  %v4381_v45 = vld [vmem:[#allocation2 + $0x46] sm:$0xff]  ;;  %vm4061_vm12 = vcmp.ge.s32.totalorder %v11999_v10, 1  ;;  %vm4097_vm15 = vcmp.le.s32.totalorder %v11999_v10, 16  ;;  %v12344_v0 = vsel %vm12315_vm8, %v12230_v55, %v12147_v28  ;;  %4273 = vst [vmem:[#allocation2 + $0x60] sm:$0xff] %v4234_v62  ;;  %9309 = vmatprep.subr.bf16.mxu1 %v10564_v61 }
 0x33d   : > { %v3430_v9 = vadd.s32 264, %v11414_v30  ;;  %v3338_v22 = vadd.f32 %v12038_v57, %v3295_v54  ;;  %v3296_v42 = vmul.f32 %v9232_v49, %v12011_v14  ;;  %v3146_v63 = vpop.f32.mrb[15].mxu0  ;;  %v4412_v17 = vpack.c.bf16 %v4380_v3, %v4379_v4  ;;  %v10565_v30 = vld [vmem:[%s13535_s4 + $0x18] sm:$0xff]  }
 0x33e   : > { %v4413_v59 = vpack.c.bf16 %v4382_v53, %v4381_v45  ;;  %vm4100_vm7 = vcmp.le.s32.totalorder %v12016_v1, 16  ;;  %v3336_v20 = vadd.f32 %v12038_v57, %v3293_v43  ;;  %v3294_v55 = vmul.f32 %v12011_v14, %v3146_v63 }
 0x33f   : > { %vm3893_vm4 = vcmp.ne.s32.totalorder %v12302_v60, 0  ;;  %v12376_v51 = vsub.s32 %v12121_v36, %v3817_v41  ;;  %v3374_v23 = vmax.f32 %v3338_v22, 0.0  ;;  %v3339_v52 = vadd.f32 %v12038_v57, %v3296_v42  ;;  %9274 = vmatmul.mubr.bf16.gmra.mrb[24].mxu1 %v4412_v17 }
 0x340   : > { %vm13645_vm5 = vcmp.ge.s32.totalorder %v11979_v35, 1  ;;  %vm3929_vm8 = vcmp.lt.s32.totalorder %v12302_v60, 0  ;;  %v3795_v39 = vmul.u32 18, %v3794_v46  ;;  %v3372_v13 = vmax.f32 %v3336_v20, 0.0  ;;  %9277 = vmatprep.mubr.bf16.mxu1 %v4413_v59  ;;  %9310 = vmatpush3.bf16.msra.mxu1 %v10564_v61  ;;  %v10566_v61 = vld [vmem:[%s13535_s4 + $0x20] sm:$0xff]  }
 0x341   : > { %vm12383_vm3 = vmand %vm13645_vm5, %vm4096_vm14  ;;  %v3337_v48 = vadd.f32 %v12038_v57, %v3294_v55  ;;  %vm13648_vm6 = vcmp.le.s32.totalorder %v11989_v40, 16  ;;  %vm13649_vm13 = vcmp.ge.s32.totalorder %v11989_v40, 1  ;;  %v4239_v46 = vsel %vm12352_vm0, %v3374_v23, 0.0  ;;  %9311 = vmatprep.subr.bf16.mxu1 %v10565_v30  ;;  %v9235_v62 = vpop.f32.mrb[16].mxu0  ;;  %v4383_v63 = vld [vmem:[#allocation2 + $0x56] sm:$0xff] }
 0x342   : > { %vm12393_vm2 = vmand %vm13649_vm13, %vm13648_vm6  ;;  %v12398_v35 = vmul.u32.u64.low 3817748708, %v12304_v21  ;;  %v12399_v41 = vmul.u32.u64.high 3817748708, %v12304_v21, %v12398_v35  ;;  %v3375_v15 = vmax.f32 %v3339_v52, 0.0  ;;  %vm13652_vm14 = vcmp.lt.s32.totalorder %v12196_v18, 0  ;;  %4278 = vst [vmem:[#allocation2 + $0x88] sm:$0xff] %v4239_v46  ;;  %v3159_v4 = vpop.f32.mrb[17].mxu0 }
 0x343   : > { %vm12407_vm5 = vmand %vm13652_vm14, %vm3895_vm1  ;;  %v12412_v54 = vadd.s32 18, %v12302_v60  ;;  %v12417_v19 = vadd.s32 1, %v3430_v9  ;;  %v4237_v53 = vsel %vm12367_vm11, %v3372_v13, 0.0  ;;  %v3373_v16 = vmax.f32 %v3337_v48, 0.0  ;;  %v4386_v3 = vld [vmem:[#allocation2 + $0x6e] sm:$0xff]  ;;  %v9236_v42 = vpop.f32.mrb[18].mxu0 }
 0x344   : > { %vm3896_vm1 = vcmp.ne.s32.totalorder %v12376_v51, 0  ;;  %vm3932_vm0 = vcmp.lt.s32.totalorder %v12376_v51, 0  ;;  %4276 = vst [vmem:[#allocation2 + $0x78] sm:$0xff] %v4237_v53  ;;  %v4240_v43 = vsel %vm12383_vm3, %v3375_v15, 0.0  ;;  %v9789_v49 = vadd.f32 %v9235_v62, %v11406_v25  ;;  %v4384_v17 = vld [vmem:[#allocation2 + $0x5e] sm:$0xff]  ;;  %v4385_v59 = vld [vmem:[#allocation2 + $0x66] sm:$0xff]  ;;  %9312 = vmatpush3.bf16.msra.mxu1 %v10565_v30  ;;  %vm12463_vm13 = vmand %vm3929_vm8, %vm3893_vm4 }
 0x345   : > { %v12427_v45 = vsub.s32 %v12172_v37, %v3795_v39  ;;  %v3849_v9 = vshrl.u32 %v12326_v11, 4  ;;  %4279 = vst [vmem:[#allocation2 + $0x90] sm:$0xff] %v4240_v43  ;;  %v4238_v22 = vsel %vm12393_vm2, %v3373_v16, 0.0  ;;  %v9790_v8 = vadd.f32 %v3159_v4, %v11408_v26  ;;  %vm12445_vm2 = vmand %vm4063_vm9, %vm4099_vm10  ;;  %v3162_v20 = vpop.f32.mrb[19].mxu0  ;;  %9313 = vmatprep.subr.bf16.mxu1 %v10566_v61 }
 0x346   : > { %v12437_v25 = vsel %vm12407_vm5, %v12287_v44, %v12196_v18  ;;  %v3827_v37 = vshrl.u32 %v12333_v5, 4  ;;  %4277 = vst [vmem:[#allocation2 + $0x80] sm:$0xff] %v4238_v22  ;;  %v3299_v11 = vmul.f32 %v9789_v49, %v12011_v14  ;;  %v9791_v30 = vadd.f32 %v9236_v42, %v11410_v27  ;;  %v10567_v18 = vld [vmem:[%s13535_s4 + $0x28] sm:$0xff]   ;;  %vm12476_vm3 = vmand %vm4061_vm12, %vm4097_vm15  ;;  %v13687_v22 = vld [vmem:[#allocation10_spill] sm:$0xff] }
 0x347   : > { %v4414_v28 = vpack.c.bf16 %v4384_v17, %v4383_v63  ;;  %v4415_v55 = vpack.c.bf16 %v4386_v3, %v4385_v59  ;;  %vm4067_vm11 = vcmp.ge.s32.totalorder %v12026_v12, 1  ;;  %vm4103_vm6 = vcmp.le.s32.totalorder %v12026_v12, 16  ;;  %v13704_v12 = vld [vmem:[#allocation12_spill] sm:$0xff] }
 0x348   : > { %v3297_v50 = vmul.f32 %v9790_v8, %v12011_v14  ;;  %v9792_v44 = vadd.f32 %v3162_v20, %v11412_v29  ;;  %vm4101_vm10 = vcmp.le.s32.totalorder %v12030_v58, 16  ;;  %v3342_v52 = vadd.f32 %v12038_v57, %v3299_v11  ;;  %9314 = vmatpush3.bf16.msra.mxu1 %v10566_v61  ;;  %v10568_v61 = vld [vmem:[%s13535_s4 + $0x30] sm:$0xff]  }
 0x349   : > { %v12468_v5 = vmul.u32.u64.low 3817748708, %v12417_v19  ;;  %v12469_v23 = vmul.u32.u64.high 3817748708, %v12417_v19, %v12468_v5  ;;  %v3300_v7 = vmul.f32 %v9791_v30, %v12011_v14  ;;  %9278 = vmatmul.mubr.bf16.gmra.mrb[28].mxu1 %v4414_v28  ;;  %vm3894_vm14 = vcmp.ne.s32.totalorder %v12427_v45, 0  ;;  %9315 = vmatprep.subr.bf16.mxu1 %v10567_v18  ;;  %v9239_v16 = vpop.f32.mrb[20].mxu0  ;;  %v13672_v30 = vld [vmem:[#allocation6_spill] sm:$0xff] }
 0x34a   : > { %v3850_v39 = vmul.u32 18, %v3849_v9  ;;  %v3340_v13 = vadd.f32 %v12038_v57, %v3297_v50  ;;  %vm13661_vm5 = vcmp.ge.s32.totalorder %v12016_v1, 1  ;;  %v3298_v48 = vmul.f32 %v9792_v44, %v12011_v14  ;;  %9281 = vmatprep.mubr.bf16.mxu1 %v4415_v55  ;;  %v3175_v3 = vpop.f32.mrb[21].mxu0  ;;  %v10569_v55 = vld [vmem:[%s13535_s4 + $0x38] sm:$0xff]   ;;  %v13673_v50 = vld [vmem:[#allocation7_spill] sm:$0xff] }
 0x34b   : > { %vm12489_vm12 = vmand %vm13661_vm5, %vm4100_vm7  ;;  %vm4066_vm15 = vcmp.ge.s32.totalorder %v12107_v34, 1  ;;  %vm4102_vm4 = vcmp.le.s32.totalorder %v12107_v34, 16  ;;  %vm3930_vm8 = vcmp.lt.s32.totalorder %v12427_v45, 0  ;;  %v3828_v36 = vmul.u32 18, %v3827_v37  ;;  %v9240_v63 = vpop.f32.mrb[22].mxu0  ;;  %v4387_v17 = vld [vmem:[#allocation2 + $0x76] sm:$0xff] }
 0x34c   : > { %v3378_v35 = vmax.f32 %v3342_v52, 0.0  ;;  %v3343_v46 = vadd.f32 %v12038_v57, %v3300_v7  ;;  %vm13664_vm9 = vcmp.le.s32.totalorder %v12021_v2, 16  ;;  %vm13665_vm7 = vcmp.ge.s32.totalorder %v12021_v2, 1  ;;  %v4390_v9 = vld [vmem:[#allocation2 + $0x8e] sm:$0xff]  ;;  %9316 = vmatpush3.bf16.msra.mxu1 %v10567_v18  ;;  %v3178_v20 = vpop.f32.mrb[23].mxu0 }
 0x34d   : > { %vm12502_vm5 = vmand %vm13665_vm7, %vm13664_vm9  ;;  %v12510_v15 = vsel %vm12463_vm13, %v12412_v54, %v12302_v60  ;;  %v4004_v40 = vadd.s32 18, %v12376_v51  ;;  %v3376_v53 = vmax.f32 %v3340_v13, 0.0  ;;  %v3341_v2 = vadd.f32 %v12038_v57, %v3298_v48  ;;  %v4388_v59 = vld [vmem:[#allocation2 + $0x7e] sm:$0xff]  ;;  %v4389_v37 = vld [vmem:[#allocation2 + $0x86] sm:$0xff]  ;;  %9317 = vmatprep.subr.bf16.mxu1 %v10568_v61 }
 0x34e   : > { %vm12521_vm9 = vmand %vm3932_vm0, %vm3896_vm1  ;;  %v4002_v60 = vadd.s32 18, %v12427_v45  ;;  %v3860_v54 = vshrl.u32 %v12399_v41, 4  ;;  %v4243_v43 = vsel %vm12445_vm2, %v3378_v35, 0.0  ;;  %v3379_v49 = vmax.f32 %v3343_v46, 0.0 }
 0x34f   : > { %v9793_v4 = vadd.f32 %v9239_v16, %v11416_v31  ;;  %vm12534_vm1 = vmand %vm3930_vm8, %vm3894_vm14  ;;  %v12539_v8 = vsub.s32 %v12198_v6, %v3850_v39  ;;  %4282 = vst [vmem:[#allocation2 + $0xa8] sm:$0xff] %v4243_v43  ;;  %v4241_v41 = vsel %vm12476_vm3, %v3376_v53, 0.0  ;;  %v3377_v42 = vmax.f32 %v3341_v2, 0.0  ;;  %v13685_v2 = vld [vmem:[#allocation8_spill] sm:$0xff]  ;;  %v13686_v43 = vld [vmem:[#allocation9_spill] sm:$0xff] }
 0x350   : > { %v9794_v31 = vadd.f32 %v3175_v3, %v11418_v32  ;;  %vm4071_vm0 = vcmp.ge.s32.totalorder %v12119_v38, 1  ;;  %vm4107_vm2 = vcmp.le.s32.totalorder %v12119_v38, 16  ;;  %v12547_v11 = vsub.s32 %v12289_v24, %v3828_v36  ;;  %4280 = vst [vmem:[#allocation2 + $0x98] sm:$0xff] %v4241_v41  ;;  %9318 = vmatpush3.bf16.msra.mxu1 %v10568_v61  ;;  %vm12622_vm8 = vmand %vm4066_vm15, %vm4102_vm4 }
 0x351   : > { %v4244_v6 = vsel %vm12489_vm12, %v3379_v49, 0.0  ;;  %v3303_v26 = vmul.f32 %v9793_v4, %v12011_v14  ;;  %v9795_v32 = vadd.f32 %v9240_v63, %v13672_v30  ;;  %v4416_v28 = vpack.c.bf16 %v4388_v59, %v4387_v17  ;;  %vm12580_vm12 = vmand %vm4067_vm11, %vm4103_vm6  ;;  %9319 = vmatprep.subr.bf16.mxu1 %v10569_v55  ;;  %v9243_v1 = vpop.f32.mrb[24].mxu0 }
 0x352   : > { %4283 = vst [vmem:[#allocation2 + $0xb0] sm:$0xff] %v4244_v6  ;;  %v4242_v24 = vsel %vm12502_vm5, %v3377_v42, 0.0  ;;  %v3301_v18 = vmul.f32 %v9794_v31, %v12011_v14  ;;  %v9796_v44 = vadd.f32 %v3178_v20, %v13673_v50  ;;  %v4417_v27 = vpack.c.bf16 %v4390_v9, %v4389_v37  ;;  %v3191_v62 = vpop.f32.mrb[25].mxu0  ;;  %v13690_v6 = vld [vmem:[#allocation11_spill] sm:$0xff] }
 0x353   : > { %vm4069_vm13 = vcmp.ge.s32.totalorder %v12135_v33, 1  ;;  %vm4105_vm3 = vcmp.le.s32.totalorder %v12135_v33, 16  ;;  %4281 = vst [vmem:[#allocation2 + $0xa0] sm:$0xff] %v4242_v24  ;;  %v3346_v5 = vadd.f32 %v12038_v57, %v3303_v26  ;;  %v3304_v52 = vmul.f32 %v9795_v32, %v12011_v14  ;;  %9282 = vmatmul.mubr.bf16.gmra.mrb[32].mxu1 %v4416_v28  ;;  %v9244_v4 = vpop.f32.mrb[26].mxu0 }
 0x354   : > { %vm4108_vm14 = vcmp.le.s32.totalorder %v12247_v56, 16  ;;  %v12569_v29 = vsel %vm12521_vm9, %v4004_v40, %v12376_v51  ;;  %v12574_v7 = vsel %vm12534_vm1, %v4002_v60, %v12427_v45  ;;  %v3344_v13 = vadd.f32 %v12038_v57, %v3301_v18  ;;  %9285 = vmatprep.mubr.bf16.mxu1 %v4417_v27  ;;  %9320 = vmatpush3.bf16.msra.mxu1 %v10569_v55  ;;  %v3194_v42 = vpop.f32.mrb[27].mxu0 }
 0x355   : > { %v3302_v10 = vmul.f32 %v9796_v44, %v12011_v14  ;;  %v3861_v51 = vmul.u32 18, %v3860_v54  ;;  %v3838_v45 = vshrl.u32 %v12469_v23, 4  ;;  %v3382_v48 = vmax.f32 %v3346_v5, 0.0  ;;  %v12603_v23 = vld [vmem:[%s13535_s4 + $0x80] sm:$0xff]  }
 0x356   : > { %vm13676_vm11 = vcmp.ge.s32.totalorder %v12030_v58, 1  ;;  %v3347_v36 = vadd.f32 %v12038_v57, %v3304_v52  ;;  %vm3899_vm9 = vcmp.ne.s32.totalorder %v12539_v8, 0  ;;  %vm3935_vm1 = vcmp.lt.s32.totalorder %v12539_v8, 0  ;;  %9357 = vmatprep.subr.bf16.mxu1 %v12603_v23  ;;  %v13722_v52 = vld [vmem:[#allocation17_spill] sm:$0xff] }
 0x357   : > { %vm12593_vm6 = vmand %vm13676_vm11, %vm4101_vm10  ;;  %v3380_v35 = vmax.f32 %v3344_v13, 0.0  ;;  %vm13679_vm7 = vcmp.le.s32.totalorder %v12044_v47, 16  ;;  %vm13680_vm10 = vcmp.ge.s32.totalorder %v12044_v47, 1  ;;  %v3345_v46 = vadd.f32 %v12038_v57, %v3302_v10  ;;  %v4391_v30 = vld [vmem:[#allocation2 + $0x96] sm:$0xff] }
 0x358   : > { %vm12609_vm11 = vmand %vm13680_vm10, %vm13679_vm7  ;;  %v4007_v40 = vadd.s32 18, %v12539_v8  ;;  %vm3897_vm5 = vcmp.ne.s32.totalorder %v12547_v11, 0  ;;  %v4247_v61 = vsel %vm12580_vm12, %v3382_v48, 0.0  ;;  %v3383_v53 = vmax.f32 %v3347_v36, 0.0 }
 0x359   : > { %v9797_v16 = vadd.f32 %v9243_v1, %v13685_v2  ;;  %vm3933_vm7 = vcmp.lt.s32.totalorder %v12547_v11, 0  ;;  %4286 = vst [vmem:[#allocation2 + $0xc8] sm:$0xff] %v4247_v61  ;;  %v4245_v60 = vsel %vm12593_vm6, %v3380_v35, 0.0  ;;  %v3381_v54 = vmax.f32 %v3345_v46, 0.0  ;;  %v4394_v31 = vld [vmem:[#allocation2 + $0xae] sm:$0xff]  ;;  %vm12644_vm10 = vmand %vm3935_vm1, %vm3899_vm9  ;;  %v9247_v48 = vpop.f32.mrb[28].mxu0 }
 0x35a   : > { %v9798_v49 = vadd.f32 %v3191_v62, %v13686_v43  ;;  %vm4075_vm12 = vcmp.ge.s32.totalorder %v12437_v25, 1  ;;  %vm4111_vm4 = vcmp.le.s32.totalorder %v12437_v25, 16  ;;  %v4005_v34 = vadd.s32 18, %v12547_v11  ;;  %4284 = vst [vmem:[#allocation2 + $0xb8] sm:$0xff] %v4245_v60  ;;  %v4392_v32 = vld [vmem:[#allocation2 + $0x9e] sm:$0xff]  ;;  %v4393_v20 = vld [vmem:[#allocation2 + $0xa6] sm:$0xff] }
 0x35b   : > { %v4248_v3 = vsel %vm12609_vm11, %v3383_v53, 0.0  ;;  %v3307_v9 = vmul.f32 %v9797_v16, %v12011_v14  ;;  %v9799_v41 = vadd.f32 %v9244_v4, %v13687_v22  ;;  %vm4073_vm15 = vcmp.ge.s32.totalorder %v12510_v15, 1  ;;  %v3207_v35 = vpop.f32.mrb[29].mxu0  ;;  %v13706_v16 = vld [vmem:[#allocation14_spill] sm:$0xff]  ;;  %v13709_v4 = vld [vmem:[#allocation15_spill] sm:$0xff] }
 0x35c   : > { %vm4109_vm6 = vcmp.le.s32.totalorder %v12510_v15, 16  ;;  %v3839_v17 = vmul.u32 18, %v3838_v45  ;;  %4287 = vst [vmem:[#allocation2 + $0xd0] sm:$0xff] %v4248_v3  ;;  %v4246_v59 = vsel %vm12622_vm8, %v3381_v54, 0.0  ;;  %v3305_v37 = vmul.f32 %v9798_v49, %v12011_v14  ;;  %vm12662_vm8 = vmand %vm4071_vm0, %vm4107_vm2 }
 0x35d   : > { %v9800_v26 = vadd.f32 %v3194_v42, %v13690_v6  ;;  %vm4076_vm11 = vcmp.ge.s32.totalorder %v12569_v29, 1  ;;  %v12655_v28 = vsub.s32 %v12304_v21, %v3861_v51  ;;  %4285 = vst [vmem:[#allocation2 + $0xc0] sm:$0xff] %v4246_v59  ;;  %v3350_v55 = vadd.f32 %v12038_v57, %v3307_v9  ;;  %vm12675_vm0 = vmand %vm3933_vm7, %vm3897_vm5 }
 0x35e   : > { %v3308_v18 = vmul.f32 %v9799_v41, %v12011_v14  ;;  %v4418_v50 = vpack.c.bf16 %v4392_v32, %v4391_v30  ;;  %v4419_v44 = vpack.c.bf16 %v4394_v31, %v4393_v20  ;;  %v3348_v27 = vadd.f32 %v12038_v57, %v3305_v37  ;;  %vm12683_vm2 = vmand %vm4069_vm13, %vm4105_vm3  ;;  %v4306_v30 = vld [vmem:[#allocation2 + $0x1d] sm:$0xff] }
 0x35f   : > { %v3306_v21 = vmul.f32 %v9800_v26, %v12011_v14  ;;  %vm4112_vm9 = vcmp.le.s32.totalorder %v12569_v29, 16  ;;  %v3386_v5 = vmax.f32 %v3350_v55, 0.0  ;;  %v12691_v13 = vsel %vm12644_vm10, %v4007_v40, %v12539_v8  ;;  %v13705_v40 = vld [vmem:[#allocation13_spill] sm:$0xff] }
 0x360   : > { %v3351_v39 = vadd.f32 %v12038_v57, %v3308_v18  ;;  %9286 = vmatmul.mubr.bf16.gmra.mrb[36].mxu1 %v4418_v50  ;;  %v12694_v10 = vsub.s32 %v12417_v19, %v3839_v17  ;;  %v3384_v51 = vmax.f32 %v3348_v27, 0.0  ;;  %vm13697_vm5 = vcmp.ge.s32.totalorder %v12247_v56, 1  ;;  %v4311_v50 = vld [vmem:[#allocation2 + $0x45] sm:$0xff] }
 0x361   : > { %vm12700_vm13 = vmand %vm13697_vm5, %vm4108_vm14  ;;  %v3349_v45 = vadd.f32 %v12038_v57, %v3306_v21  ;;  %9289 = vmatprep.mubr.bf16.mxu1 %v4419_v44  ;;  %vm3900_vm3 = vcmp.ne.s32.totalorder %v12655_v28, 0  ;;  %vm3936_vm7 = vcmp.lt.s32.totalorder %v12655_v28, 0  ;;  %v4251_v19 = vsel %vm12662_vm8, %v3386_v5, 0.0  ;;  %v4395_v3 = vld [vmem:[#allocation2 + $0xb6] sm:$0xff]  ;;  %v13721_v44 = vld [vmem:[#allocation16_spill] sm:$0xff] }
 0x362   : > { %v3387_v8 = vmax.f32 %v3351_v39, 0.0  ;;  %vm13700_vm10 = vcmp.le.s32.totalorder %v12344_v0, 16  ;;  %vm13701_vm1 = vcmp.ge.s32.totalorder %v12344_v0, 1  ;;  %v9801_v36 = vadd.f32 %v9247_v48, %v13704_v12  ;;  %4290 = vst [vmem:[#allocation2 + $0xe8] sm:$0xff] %v4251_v19  ;;  %v9248_v0 = vpop.f32.mrb[30].mxu0  ;;  %vm12735_vm8 = vmand %vm3936_vm7, %vm3900_vm3 }
 0x363   : > { %vm12713_vm14 = vmand %vm13701_vm1, %vm13700_vm10  ;;  %v12721_v58 = vsel %vm12675_vm0, %v4005_v34, %v12547_v11  ;;  %v4249_v46 = vsel %vm12683_vm2, %v3384_v51, 0.0  ;;  %v3385_v1 = vmax.f32 %v3349_v45, 0.0  ;;  %v9802_v61 = vadd.f32 %v3207_v35, %v13705_v40  ;;  %v3210_v11 = vpop.f32.mrb[31].mxu0  ;;  %v4398_v60 = vld [vmem:[#allocation2 + $0xce] sm:$0xff]  ;;  %v13724_v35 = vld [vmem:[#allocation19_spill] sm:$0xff] }
 0x364   : > { %v4008_v53 = vadd.s32 18, %v12655_v28  ;;  %4288 = vst [vmem:[#allocation2 + $0xd8] sm:$0xff] %v4249_v46  ;;  %v4252_v47 = vsel %vm12700_vm13, %v3387_v8, 0.0  ;;  %v3311_v2 = vmul.f32 %v9801_v36, %v12011_v14  ;;  %v9803_v62 = vadd.f32 %v9248_v0, %v13706_v16  ;;  %v4396_v9 = vld [vmem:[#allocation2 + $0xbe] sm:$0xff]  ;;  %v4397_v22 = vld [vmem:[#allocation2 + $0xc6] sm:$0xff]  ;;  %vm12750_vm2 = vmand %vm4075_vm12, %vm4111_vm4  ;;  %v9251_v24 = vpop.f32.mrb[32].mxu0 }
 0x365   : > { %vm3898_vm1 = vcmp.ne.s32.totalorder %v12694_v10, 0  ;;  %4291 = vst [vmem:[#allocation2 + $0xf0] sm:$0xff] %v4252_v47  ;;  %v4250_v43 = vsel %vm12713_vm14, %v3385_v1, 0.0  ;;  %v3309_v49 = vmul.f32 %v9802_v61, %v12011_v14  ;;  %v9804_v34 = vadd.f32 %v3210_v11, %v13709_v4  ;;  %vm12760_vm5 = vmand %vm4073_vm15, %vm4109_vm6  ;;  %v3223_v21 = vpop.f32.mrb[33].mxu0  ;;  %v13723_v45 = vld [vmem:[#allocation18_spill] sm:$0xff] }
 0x366   : > { %vm3934_vm0 = vcmp.lt.s32.totalorder %v12694_v10, 0  ;;  %4289 = vst [vmem:[#allocation2 + $0xe0] sm:$0xff] %v4250_v43  ;;  %v3354_v41 = vadd.f32 %v12038_v57, %v3311_v2  ;;  %v3312_v31 = vmul.f32 %v9803_v62, %v12011_v14  ;;  %v4420_v63 = vpack.c.bf16 %v4396_v9, %v4395_v3  ;;  %vm12772_vm13 = vmand %vm4076_vm11, %vm4112_vm9  ;;  %v9252_v51 = vpop.f32.mrb[34].mxu0  ;;  %v10635_v11 = vld [vmem:[%s13534_s3] ss:$0 sm:$0xff] }
 0x367   : > { %v4421_v17 = vpack.c.bf16 %v4398_v60, %v4397_v22  ;;  %v3352_v59 = vadd.f32 %v12038_v57, %v3309_v49  ;;  %v3310_v25 = vmul.f32 %v9804_v34, %v12011_v14  ;;  %vm4110_vm12 = vcmp.le.s32.totalorder %v12574_v7, 16  ;;  %vm12787_vm11 = vmand %vm3934_vm0, %vm3898_vm1  ;;  %v3226_v19 = vpop.f32.mrb[35].mxu0 }
 0x368   : > { %vm4079_vm4 = vcmp.ge.s32.totalorder %v12691_v13, 1  ;;  %v3390_v6 = vmax.f32 %v3354_v41, 0.0  ;;  %v3355_v26 = vadd.f32 %v12038_v57, %v3312_v31  ;;  %9290 = vmatmul.mubr.bf16.gmra.mrb[40].mxu1 %v4420_v63  ;;  %v4044_v15 = vsel %vm12735_vm8, %v4008_v53, %v12655_v28 }
 0x369   : > { %v4006_v32 = vadd.s32 18, %v12694_v10  ;;  %v3388_v20 = vmax.f32 %v3352_v59, 0.0  ;;  %v3353_v55 = vadd.f32 %v12038_v57, %v3310_v25  ;;  %vm4115_vm15 = vcmp.le.s32.totalorder %v12691_v13, 16  ;;  %9293 = vmatprep.mubr.bf16.mxu1 %v4421_v17  ;;  %v4303_v17 = vld [vmem:[#allocation2 + $0x5] sm:$0xff]  ;;  %v4304_v59 = vld [vmem:[#allocation2 + $0xd] sm:$0xff] }
 0x36a   : > { %vm4077_vm6 = vcmp.ge.s32.totalorder %v12721_v58, 1  ;;  %v4255_v28 = vsel %vm12750_vm2, %v3390_v6, 0.0  ;;  %v3391_v18 = vmax.f32 %v3355_v26, 0.0  ;;  %vm13718_vm9 = vcmp.ge.s32.totalorder %v12574_v7, 1  ;;  %vm4151_vm8 = vmand %vm4079_vm4, %vm4115_vm15 }
 0x36b   : > { %vm12797_vm3 = vmand %vm13718_vm9, %vm4110_vm12  ;;  %v9805_v27 = vadd.f32 %v9251_v24, %v13721_v44  ;;  %vm4113_vm7 = vcmp.le.s32.totalorder %v12721_v58, 16  ;;  %4294 = vst [vmem:[#allocation2 + $0x108] sm:$0xff] %v4255_v28  ;;  %v4253_v38 = vsel %vm12760_vm5, %v3388_v20, 0.0  ;;  %v3389_v5 = vmax.f32 %v3353_v55, 0.0  ;;  %v4399_v1 = vld [vmem:[#allocation2 + $0xd6] sm:$0xff]  ;;  %v10572_v28 = vld [vmem:[%s13535_s4 + $0x90] sm:$0xff]  }
 0x36c   : > { %v9806_v39 = vadd.f32 %v3223_v21, %v13722_v52  ;;  %vm4080_vm10 = vcmp.ge.s32.totalorder %v4044_v15, 1  ;;  %4292 = vst [vmem:[#allocation2 + $0xf8] sm:$0xff] %v4253_v38  ;;  %v4256_v7 = vsel %vm12772_vm13, %v3391_v18, 0.0  ;;  %v9807_v48 = vadd.f32 %v9252_v51, %v13723_v45  ;;  %v4402_v56 = vld [vmem:[#allocation2 + $0xee] sm:$0xff]  ;;  %vm4149_vm2 = vmand %vm4077_vm6, %vm4113_vm7  ;;  %v10571_v24 = vld [vmem:[%s13535_s4 + $0x88] sm:$0xff]  }
 0x36d   : > { %v3315_v33 = vmul.f32 %v9805_v27, %v12011_v14  ;;  %v4042_v8 = vsel %vm12787_vm11, %v4006_v32, %v12694_v10  ;;  %4295 = vst [vmem:[#allocation2 + $0x110] sm:$0xff] %v4256_v7  ;;  %v4254_v12 = vsel %vm12797_vm3, %v3389_v5, 0.0  ;;  %vm4116_vm14 = vcmp.le.s32.totalorder %v4044_v15, 16  ;;  %v4400_v40 = vld [vmem:[#allocation2 + $0xde] sm:$0xff]  ;;  %v4401_v61 = vld [vmem:[#allocation2 + $0xe6] sm:$0xff]  ;;  %v4305_v20 = vld [vmem:[#allocation2 + $0x15] sm:$0xff] }
 0x36e   : > { %v3313_v36 = vmul.f32 %v9806_v39, %v12011_v14  ;;  %v9808_v46 = vadd.f32 %v3226_v19, %v13724_v35  ;;  %4293 = vst [vmem:[#allocation2 + $0x100] sm:$0xff] %v4254_v12  ;;  %v10634_v10 = vld [vmem:[%s13533_s2] ss:$0 sm:$0xff]  ;;  %v4422_v47 = vpack.c.bf16 %v4400_v40, %v4399_v1  ;;  %v4423_v2 = vpack.c.bf16 %v4402_v56, %v4401_v61  ;;  %vm4152_vm5 = vmand %vm4080_vm10, %vm4116_vm14  ;;  %v4307_v15 = vld [vmem:[#allocation2 + $0x25] sm:$0xff] }
 0x36f   : > { %v3358_v0 = vadd.f32 %v12038_v57, %v3315_v33  ;;  %v3316_v53 = vmul.f32 %v10634_v10, %v9807_v48  ;;  %vm4078_vm1 = vcmp.ge.s32.totalorder %v4042_v8, 1  ;;  %vm4114_vm0 = vcmp.le.s32.totalorder %v4042_v8, 16  ;;  %v4308_v32 = vld [vmem:[#allocation2 + $0x2d] sm:$0xff]  ;;  %v4310_v18 = vld [vmem:[#allocation2 + $0x3d] sm:$0xff]  ;;  %v4309_v27 = vld [vmem:[#allocation2 + $0x35] sm:$0xff] }
 0x370   : > { %v3356_v14 = vadd.f32 %v12038_v57, %v3313_v36  ;;  %v3314_v16 = vmul.f32 %v10634_v10, %v9808_v46  ;;  %9294 = vmatmul.mubr.bf16.gmra.mrb[44].mxu1 %v4422_v47  ;;  %vm12837_vm12 = vmand %vm4078_vm1, %vm4114_vm0  ;;  %v4339_v6 = vpack.c.bf16 %v4304_v59, %v4303_v17  ;;  %v4340_v55 = vpack.c.bf16 %v4306_v30, %v4305_v20  ;;  %v4312_v44 = vld [vmem:[#allocation2 + $0x4d] sm:$0xff]  ;;  %v4314_v52 = vld [vmem:[#allocation2 + $0x5d] sm:$0xff] }
 0x371   : > { %v3394_v62 = vmax.f32 %v3358_v0, 0.0  ;;  %v3359_v60 = vadd.f32 %v10635_v11, %v3316_v53  ;;  %9297 = vmatprep.mubr.bf16.mxu1 %v4423_v2  ;;  %v4341_v29 = vpack.c.bf16 %v4308_v32, %v4307_v15  ;;  %v4342_v21 = vpack.c.bf16 %v4310_v18, %v4309_v27  ;;  %v10573_v38 = vld [vmem:[%s13535_s4 + $0x98] sm:$0xff]   ;;  %v4313_v7 = vld [vmem:[#allocation2 + $0x55] sm:$0xff]  ;;  %v10576_v19 = vld [vmem:[%s13535_s4 + $0xb0] sm:$0xff]  }
 0x372   : > { %v3392_v54 = vmax.f32 %v3356_v14, 0.0  ;;  %v12835_v57 = vadd.f32 %v10635_v11, %v3314_v16  ;;  %v4343_v5 = vpack.c.bf16 %v4312_v44, %v4311_v50  ;;  %v4315_v39 = vld [vmem:[#allocation2 + $0x65] sm:$0xff]  ;;  %v4316_v51 = vld [vmem:[#allocation2 + $0x6d] sm:$0xff]  ;;  %v4344_v33 = vpack.c.bf16 %v4314_v52, %v4313_v7  ;;  %v10575_v45 = vld [vmem:[%s13535_s4 + $0xa8] sm:$0xff]  }
 0x373   : > { %v4259_v13 = vsel %vm4151_vm8, %v3394_v62, 0.0  ;;  %v3395_v43 = vmax.f32 %v3359_v60, 0.0  ;;  %v4403_v22 = vld [vmem:[#allocation2 + $0xf6] sm:$0xff]  ;;  %v4345_v48 = vpack.c.bf16 %v4316_v51, %v4315_v39  ;;  %v4319_v56 = vld [vmem:[#allocation2 + $0x85] sm:$0xff]  ;;  %v4320_v12 = vld [vmem:[#allocation2 + $0x8d] sm:$0xff]  ;;  %vm10704_vm4 = vmmov 1  }
 0x374   : > { %4298 = vst [vmem:[#allocation2 + $0x128] sm:$0xff] %v4259_v13  ;;  %v4257_v58 = vsel %vm4149_vm2, %v3392_v54, 0.0  ;;  %v3393_v4 = vmax.f32 %v12835_v57, 0.0  ;;  %v4406_v3 = vld [vmem:[#allocation2 + $0x10e] sm:$0xff]  ;;  %v4318_v8 = vld [vmem:[#allocation2 + $0x7d] sm:$0xff]  ;;  %v4347_v1 = vpack.c.bf16 %v4320_v12, %v4319_v56  ;;  %v4323_v0 = vld [vmem:[#allocation2 + $0xa5] sm:$0xff] }
 0x375   : > { %4296 = vst [vmem:[#allocation2 + $0x118] sm:$0xff] %v4257_v58  ;;  %v4260_v34 = vsel %vm4152_vm5, %v3395_v43, 0.0  ;;  %v4404_v41 = vld [vmem:[#allocation2 + $0xfe] sm:$0xff]  ;;  %v4405_v42 = vld [vmem:[#allocation2 + $0x106] sm:$0xff]  ;;  %v4317_v36 = vld [vmem:[#allocation2 + $0x75] sm:$0xff] }
 0x376   : > { %4299 = vst [vmem:[#allocation2 + $0x130] sm:$0x3f] %v4260_v34  ;;  %v4258_v9 = vsel %vm12837_vm12, %v3393_v4, 0.0  ;;  %v4424_v31 = vpack.c.bf16 %v4404_v41, %v4403_v22  ;;  %v4425_v63 = vpack.c.bf16 %v4406_v3, %v4405_v42  ;;  %v4346_v35 = vpack.c.bf16 %v4318_v8, %v4317_v36  ;;  %v10577_v46 = vld [vmem:[%s13535_s4 + $0xb8] sm:$0xff]   ;;  %v10578_v40 = vld [vmem:[%s13535_s4 + $0xc0] sm:$0xff]   ;;  %v4322_v61 = vld [vmem:[#allocation2 + $0x9d] sm:$0xff] }
 0x377   : > { %4297 = vst [vmem:[#allocation2 + $0x120] sm:$0xff] %v4258_v9  ;;  %v4324_v10 = vld [vmem:[#allocation2 + $0xad] sm:$0xff]  ;;  %v4321_v53 = vld [vmem:[#allocation2 + $0x95] sm:$0xff]  ;;  %v4326_v14 = vld [vmem:[#allocation2 + $0xbd] sm:$0xff] }
 0x378   : > { %9298 = vmatmul.mubr.bf16.gmra.mrb[48].mxu1 %v4424_v31  ;;  %v4348_v47 = vpack.c.bf16 %v4322_v61, %v4321_v53  ;;  %v4349_v2 = vpack.c.bf16 %v4324_v10, %v4323_v0  ;;  %v4327_v16 = vld [vmem:[#allocation2 + $0xc5] sm:$0xff]  ;;  %v4328_v62 = vld [vmem:[#allocation2 + $0xcd] sm:$0xff]  ;;  %v4325_v11 = vld [vmem:[#allocation2 + $0xb5] sm:$0xff] }
 0x379   : > { %9301 = vmatprep.mubr.bf16.mxu1 %v4425_v63  ;;  %v4350_v60 = vpack.c.bf16 %v4326_v14, %v4325_v11  ;;  %v4351_v54 = vpack.c.bf16 %v4328_v62, %v4327_v16  ;;  %v4330_v13 = vld [vmem:[#allocation2 + $0xdd] sm:$0xff]  ;;  %v4331_v43 = vld [vmem:[#allocation2 + $0xe5] sm:$0xff]  ;;  %v4332_v58 = vld [vmem:[#allocation2 + $0xed] sm:$0xff] }
 0x37a   : > { %v4329_v34 = vld [vmem:[#allocation2 + $0xd5] sm:$0xff]  ;;  %v4353_v9 = vpack.c.bf16 %v4332_v58, %v4331_v43  ;;  %v4334_v22 = vld [vmem:[#allocation2 + $0xfd] sm:$0xff]  ;;  %v4335_v41 = vld [vmem:[#allocation2 + $0x105] sm:$0xff] }
 0x37b   : > { %v4352_v3 = vpack.c.bf16 %v4330_v13, %v4329_v34  ;;  %v4336_v42 = vld [vmem:[#allocation2 + $0x10d] sm:$0xff]  ;;  %v4333_v31 = vld [vmem:[#allocation2 + $0xf5] sm:$0xff]  ;;  %v4897_v15 = vld [vmem:[#allocation2 + $0x1f] sm:$0xff] }
 0x37c   : > { %v4407_v37 = vld [vmem:[#allocation2 + $0x116] sm:$0xff]  ;;  %v4354_v63 = vpack.c.bf16 %v4334_v22, %v4333_v31  ;;  %v4355_v17 = vpack.c.bf16 %v4336_v42, %v4335_v41  ;;  %v4894_v59 = vld [vmem:[#allocation2 + $0x7] sm:$0xff]  ;;  %v4901_v50 = vld [vmem:[#allocation2 + $0x3f] sm:$0xff] }
 0x37d   : > { %v4898_v32 = vld [vmem:[#allocation2 + $0x27] sm:$0xff]  ;;  %v4899_v20 = vld [vmem:[#allocation2 + $0x2f] sm:$0xff]  ;;  %v4905_v39 = vld [vmem:[#allocation2 + $0x5f] sm:$0xff] }
 0x37e   : > { %v4408_v25 = vld [vmem:[#allocation2 + $0x11e] sm:$0xff]  ;;  %v4902_v44 = vld [vmem:[#allocation2 + $0x47] sm:$0xff]  ;;  %v4903_v27 = vld [vmem:[#allocation2 + $0x4f] sm:$0xff] }
 0x37f   : > { %v4426_v26 = vpack.c.bf16 %v4408_v25, %v4407_v37  ;;  %v4895_v37 = vld [vmem:[#allocation2 + $0xf] sm:$0xff]  ;;  %v4338_v25 = vld [vmem:[#allocation2 + $0x11d] sm:$0xff]  ;;  %v4906_v51 = vld [vmem:[#allocation2 + $0x67] sm:$0xff] }
 0x380   : > { %v10580_v18 = vld [vmem:[%s13535_s4 + $0xd0] sm:$0xff]   ;;  %v10582_v52 = vld [vmem:[%s13535_s4 + $0xe0] sm:$0xff]   ;;  %vm10636_vm13 = vmpackc.low %vm12837_vm12, %vm10704_vm4 }
 0x381   : > { %9302 = vmatmul.mubr.bf16.gmra.mrb[52].mxu1 %v4426_v26  ;;  %v4930_v26 = vpack.c.bf16 %v4895_v37, %v4894_v59  ;;  %v4907_v7 = vld [vmem:[#allocation2 + $0x6f] sm:$0xff]  ;;  %v10584_v8 = vld [vmem:[%s13535_s4 + $0xf0] sm:$0xff]   ;;  %v10603_v57 = vld [vmem:[%s13535_s4 + $0x188] sm:$0xff]  }
 0x382   : > { %9321 = vmatprep.mubr.bf16.mxu1 %v4339_v6  ;;  %v4337_v6 = vld [vmem:[#allocation2 + $0x115] sm:$0xff]  ;;  %v4909_v56 = vld [vmem:[#allocation2 + $0x7f] sm:$0xff]  ;;  %v4910_v12 = vld [vmem:[#allocation2 + $0x87] sm:$0xff] }
 0x383   : > { %v4356_v30 = vpack.c.bf16 %v4338_v25, %v4337_v6  ;;  %v4911_v36 = vld [vmem:[#allocation2 + $0x8f] sm:$0xff]  ;;  %v4913_v0 = vld [vmem:[#allocation2 + $0x9f] sm:$0xff]  ;;  %v4914_v10 = vld [vmem:[#allocation2 + $0xa7] sm:$0xff] }
 0x384   : > { %v10586_v61 = vld [vmem:[%s13535_s4 + $0x100] sm:$0xff]   ;;  %v4917_v16 = vld [vmem:[#allocation2 + $0xbf] sm:$0xff]  ;;  %v4918_v62 = vld [vmem:[#allocation2 + $0xc7] sm:$0xff] }
 0x385   : > { %v4915_v53 = vld [vmem:[#allocation2 + $0xaf] sm:$0xff]  ;;  %v4921_v43 = vld [vmem:[#allocation2 + $0xdf] sm:$0xff]  ;;  %v4922_v58 = vld [vmem:[#allocation2 + $0xe7] sm:$0xff] }
 0x386   : > { %v12919_v14 = vpack.c.bf16 %v4915_v53, %v4914_v10  ;;  %v4919_v11 = vld [vmem:[#allocation2 + $0xcf] sm:$0xff]  ;;  %v4925_v41 = vld [vmem:[#allocation2 + $0xff] sm:$0xff]  ;;  %v4926_v42 = vld [vmem:[#allocation2 + $0x107] sm:$0xff] }
 0x387   : > { %v4942_v13 = vpack.c.bf16 %v4919_v11, %v4918_v62  ;;  %v4923_v34 = vld [vmem:[#allocation2 + $0xef] sm:$0xff]  ;;  %v4929_v37 = vld [vmem:[#allocation2 + $0x11f] sm:$0xff]  ;;  %v4928_v25 = vld [vmem:[#allocation2 + $0x117] sm:$0xff] }
 0x388   : > { %v4944_v22 = vpack.c.bf16 %v4923_v34, %v4922_v58  ;;  %v4927_v31 = vld [vmem:[#allocation2 + $0x10f] sm:$0xff]  ;;  %v4947_v6 = vpack.c.bf16 %v4929_v37, %v4928_v25  ;;  %v10599_v10 = vld [vmem:[%s13535_s4 + $0x168] sm:$0xff]   ;;  %v5579_v58 = vld [vmem:[#allocation2 + $0xc0] sm:$0xff] }
 0x389   : > { %9322 = vmatmul.mubr.bf16.vlgmr.msra.gmra.mrb[20].mxu1 %v4340_v55  ;;  %v4896_v55 = vld [vmem:[#allocation2 + $0x17] sm:$0xff]  ;;  %v4946_v59 = vpack.c.bf16 %v4927_v31, %v4926_v42  ;;  %v5576_v34 = vld [vmem:[#allocation2 + $0xa8] sm:$0xff]  ;;  %v5583_v42 = vld [vmem:[#allocation2 + $0xe0] sm:$0xff] }
 0x38a   : > { %9325 = vmatprep.mubr.bf16.mxu1 %v4341_v29  ;;  %9358 = vmatpush3.bf16.msra.mxu1 %v12603_v23  ;;  %v10574_v23 = vld [vmem:[%s13535_s4 + $0xa0] sm:$0xff]   ;;  %v10579_v29 = vld [vmem:[%s13535_s4 + $0xc8] sm:$0xff]   ;;  %v5580_v31 = vld [vmem:[#allocation2 + $0xc8] sm:$0xff] }
 0x38b   : > { %9359 = vmatprep.subr.bf16.mxu1 %v10571_v24  ;;  %v5574_v11 = vld [vmem:[#allocation2 + $0x98] sm:$0xff]  ;;  %v5585_v37 = vld [vmem:[#allocation2 + $0xf0] sm:$0xff]  ;;  %v5587_v25 = vld [vmem:[#allocation2 + $0x100] sm:$0xff] }
 0x38e   : > { %9360 = vmatpush3.bf16.msra.mxu1 %v10571_v24  ;;  %v12871_v24 = vpack.c.bf16 %v4897_v15, %v4896_v55  ;;  %v10589_v15 = vld [vmem:[%s13535_s4 + $0x118] sm:$0xff]   ;;  %v10592_v55 = vld [vmem:[%s13535_s4 + $0x130] sm:$0xff]  }
 0x38f   : > { %9361 = vmatprep.subr.bf16.mxu1 %v10572_v28 }
 0x391   : > { %9326 = vmatmul.mubr.bf16.gmra.mrb[24].mxu1 %v4342_v21  ;;  %v4900_v21 = vld [vmem:[#allocation2 + $0x37] sm:$0xff] }
 0x392   : > { %9329 = vmatprep.mubr.bf16.mxu1 %v4343_v5  ;;  %9362 = vmatpush3.bf16.msra.mxu1 %v10572_v28  ;;  %v12876_v28 = vpack.c.bf16 %v4899_v20, %v4898_v32  ;;  %v10581_v5 = vld [vmem:[%s13535_s4 + $0xd8] sm:$0xff]   ;;  %v10590_v32 = vld [vmem:[%s13535_s4 + $0x120] sm:$0xff]   ;;  %v10591_v20 = vld [vmem:[%s13535_s4 + $0x128] sm:$0xff]  }
 0x393   : > { %9363 = vmatprep.subr.bf16.mxu1 %v10573_v38 }
 0x396   : > { %9364 = vmatpush3.bf16.msra.mxu1 %v10573_v38  ;;  %v12883_v38 = vpack.c.bf16 %v4901_v50, %v4900_v21  ;;  %v5559_v50 = vld [vmem:[#allocation2 + $0x20] sm:$0xff] }
 0x397   : > { %9365 = vmatprep.subr.bf16.mxu1 %v10574_v23 }
 0x399   : > { %9330 = vmatmul.mubr.bf16.gmra.mrb[28].mxu1 %v4344_v33  ;;  %v4904_v33 = vld [vmem:[#allocation2 + $0x57] sm:$0xff] }
 0x39a   : > { %9333 = vmatprep.mubr.bf16.mxu1 %v4345_v48  ;;  %9366 = vmatpush3.bf16.msra.mxu1 %v10574_v23  ;;  %v12888_v23 = vpack.c.bf16 %v4903_v27, %v4902_v44  ;;  %v10583_v48 = vld [vmem:[%s13535_s4 + $0xe8] sm:$0xff]  }
 0x39b   : > { %9367 = vmatprep.subr.bf16.mxu1 %v10575_v45  ;;  %v5558_v27 = vld [vmem:[#allocation2 + $0x18] sm:$0xff] }
 0x39c   : > { %v5594_v21 = vpack.c.bf16 %v5559_v50, %v5558_v27  ;;  %v5891_v50 = vld [vmem:[#allocation2 + $0x21] sm:$0xff] }
 0x39e   : > { %9368 = vmatpush3.bf16.msra.mxu1 %v10575_v45  ;;  %v12895_v45 = vpack.c.bf16 %v4905_v39, %v4904_v33  ;;  %v5562_v39 = vld [vmem:[#allocation2 + $0x38] sm:$0xff]  ;;  %v10596_v33 = vld [vmem:[%s13535_s4 + $0x150] sm:$0xff]  }
 0x39f   : > { %9369 = vmatprep.subr.bf16.mxu1 %v10576_v19 }
 0x3a1   : > { %9334 = vmatmul.mubr.bf16.gmra.mrb[32].mxu1 %v4346_v35  ;;  %v4908_v35 = vld [vmem:[#allocation2 + $0x77] sm:$0xff] }
 0x3a2   : > { %9337 = vmatprep.mubr.bf16.mxu1 %v4347_v1  ;;  %9370 = vmatpush3.bf16.msra.mxu1 %v10576_v19  ;;  %v12900_v19 = vpack.c.bf16 %v4907_v7, %v4906_v51  ;;  %v10585_v1 = vld [vmem:[%s13535_s4 + $0xf8] sm:$0xff]   ;;  %v10595_v51 = vld [vmem:[%s13535_s4 + $0x148] sm:$0xff]  }
 0x3a3   : > { %9371 = vmatprep.subr.bf16.mxu1 %v10577_v46 }
 0x3a6   : > { %9372 = vmatpush3.bf16.msra.mxu1 %v10577_v46  ;;  %v12907_v46 = vpack.c.bf16 %v4909_v56, %v4908_v35  ;;  %v5566_v56 = vld [vmem:[#allocation2 + $0x58] sm:$0xff]  ;;  %v10598_v35 = vld [vmem:[%s13535_s4 + $0x160] sm:$0xff]  }
 0x3a7   : > { %9409 = vmatprep.subr.bf16.mxu1 %v10578_v40 }
 0x3a9   : > { %9338 = vmatmul.mubr.bf16.gmra.mrb[36].mxu1 %v4348_v47  ;;  %v4912_v47 = vld [vmem:[#allocation2 + $0x97] sm:$0xff] }
 0x3aa   : > { %9341 = vmatprep.mubr.bf16.mxu1 %v4349_v2  ;;  %v4939_v2 = vpack.c.bf16 %v4913_v0, %v4912_v47  ;;  %v5570_v0 = vld [vmem:[#allocation2 + $0x78] sm:$0xff]  ;;  %v10600_v47 = vld [vmem:[%s13535_s4 + $0x170] sm:$0xff]  }
 0x3b1   : > { %9342 = vmatmul.mubr.bf16.gmra.mrb[40].mxu1 %v4350_v60  ;;  %v4916_v60 = vld [vmem:[#allocation2 + $0xb7] sm:$0xff] }
 0x3b2   : > { %9345 = vmatprep.mubr.bf16.mxu1 %v4351_v54  ;;  %v4941_v54 = vpack.c.bf16 %v4917_v16, %v4916_v60  ;;  %v5572_v16 = vld [vmem:[#allocation2 + $0x88] sm:$0xff] }
 0x3b3   : > { %v10601_v60 = vld [vmem:[%s13535_s4 + $0x178] sm:$0xff]  }
 0x3b9   : > { %9346 = vmatmul.mubr.bf16.gmra.mrb[44].mxu1 %v4352_v3  ;;  %v4920_v3 = vld [vmem:[#allocation2 + $0xd7] sm:$0xff] }
 0x3ba   : > { %9349 = vmatprep.mubr.bf16.mxu1 %v4353_v9  ;;  %v4943_v9 = vpack.c.bf16 %v4921_v43, %v4920_v3  ;;  %v5577_v43 = vld [vmem:[#allocation2 + $0xb0] sm:$0xff] }
 0x3bb   : > { %v5603_v3 = vpack.c.bf16 %v5577_v43, %v5576_v34  ;;  %v5910_v43 = vld [vmem:[#allocation2 + $0xb9] sm:$0xff]  ;;  %v5908_v34 = vld [vmem:[#allocation2 + $0xa9] sm:$0xff] }
 0x3c1   : > { %9350 = vmatmul.mubr.bf16.gmra.mrb[48].mxu1 %v4354_v63  ;;  %v4924_v63 = vld [vmem:[#allocation2 + $0xf7] sm:$0xff] }
 0x3c2   : > { %9353 = vmatprep.mubr.bf16.mxu1 %v4355_v17  ;;  %v4945_v17 = vpack.c.bf16 %v4925_v41, %v4924_v63  ;;  %v5581_v41 = vld [vmem:[#allocation2 + $0xd0] sm:$0xff] }
 0x3c3   : > { %v5605_v63 = vpack.c.bf16 %v5581_v41, %v5580_v31  ;;  %v5913_v41 = vld [vmem:[#allocation2 + $0xd1] sm:$0xff]  ;;  %v5915_v31 = vld [vmem:[#allocation2 + $0xe1] sm:$0xff] }
 0x3c9   : > { %9354 = vmatmul.mubr.bf16.gmra.mrb[52].mxu1 %v4356_v30  ;;  %v10588_v30 = vld [vmem:[%s13535_s4 + $0x110] sm:$0xff]  }
 0x3ca   : > { %9373 = vmatprep.mubr.bf16.mxu1 %v4930_v26  ;;  %v10587_v26 = vld [vmem:[%s13535_s4 + $0x108] sm:$0xff]  }
 0x3d1   : > { %9374 = vmatmul.mubr.bf16.vlgmr.msra.gmra.mrb[20].mxu1 %v12871_v24 }
 0x3d2   : > { %9377 = vmatprep.mubr.bf16.mxu1 %v12876_v28  ;;  %9410 = vmatpush3.bf16.msra.mxu1 %v10578_v40  ;;  %v12912_v40 = vpack.c.bf16 %v4911_v36, %v4910_v12  ;;  %v10597_v12 = vld [vmem:[%s13535_s4 + $0x158] sm:$0xff]  }
 0x3d3   : > { %9411 = vmatprep.subr.bf16.mxu1 %v10579_v29 }
 0x3d6   : > { %9412 = vmatpush3.bf16.msra.mxu1 %v10579_v29  ;;  %v10594_v29 = vld [vmem:[%s13535_s4 + $0x140] sm:$0xff]  }
 0x3d7   : > { %9413 = vmatprep.subr.bf16.mxu1 %v10580_v18 }
 0x3d9   : > { %9378 = vmatmul.mubr.bf16.gmra.mrb[24].mxu1 %v12883_v38 }
 0x3da   : > { %9381 = vmatprep.mubr.bf16.mxu1 %v12888_v23  ;;  %9414 = vmatpush3.bf16.msra.mxu1 %v10580_v18  ;;  %v5261_v18 = vld [vmem:[#allocation2 + $0x12f] sm:$0xff] }
 0x3db   : > { %9415 = vmatprep.subr.bf16.mxu1 %v10581_v5 }
 0x3de   : > { %9416 = vmatpush3.bf16.msra.mxu1 %v10581_v5  ;;  %v5563_v5 = vld [vmem:[#allocation2 + $0x40] sm:$0xff] }
 0x3df   : > { %9417 = vmatprep.subr.bf16.mxu1 %v10582_v52  ;;  %v5596_v7 = vpack.c.bf16 %v5563_v5, %v5562_v39  ;;  %v5894_v5 = vld [vmem:[#allocation2 + $0x39] sm:$0xff] }
 0x3e1   : > { %9382 = vmatmul.mubr.bf16.gmra.mrb[28].mxu1 %v12895_v45 }
 0x3e2   : > { %9385 = vmatprep.mubr.bf16.mxu1 %v12900_v19  ;;  %9418 = vmatpush3.bf16.msra.mxu1 %v10582_v52 }
 0x3e3   : > { %9419 = vmatprep.subr.bf16.mxu1 %v10583_v48 }
 0x3e6   : > { %9420 = vmatpush3.bf16.msra.mxu1 %v10583_v48  ;;  %v5567_v48 = vld [vmem:[#allocation2 + $0x60] sm:$0xff] }
 0x3e7   : > { %9421 = vmatprep.subr.bf16.mxu1 %v10584_v8  ;;  %v5598_v36 = vpack.c.bf16 %v5567_v48, %v5566_v56  ;;  %v10606_v56 = vld [vmem:[%s13535_s4 + $0x1a0] sm:$0xff]  }
 0x3e9   : > { %9386 = vmatmul.mubr.bf16.gmra.mrb[32].mxu1 %v12907_v46 }
 0x3ea   : > { %9389 = vmatprep.mubr.bf16.mxu1 %v12912_v40  ;;  %9422 = vmatpush3.bf16.msra.mxu1 %v10584_v8 }
 0x3eb   : > { %9423 = vmatprep.subr.bf16.mxu1 %v10585_v1 }
 0x3ee   : > { %9424 = vmatpush3.bf16.msra.mxu1 %v10585_v1  ;;  %v5571_v1 = vld [vmem:[#allocation2 + $0x80] sm:$0xff] }
 0x3ef   : > { %9461 = vmatprep.subr.bf16.mxu1 %v10586_v61  ;;  %v5600_v53 = vpack.c.bf16 %v5571_v1, %v5570_v0  ;;  %v10619_v0 = vld [vmem:[%s13538_s7] sm:$0xff]  }
 0x3f0   : > { %9721 = vmatprep.subr.bf16.mxu0 %v10619_v0 }
 0x3f1   : > { %9390 = vmatmul.mubr.bf16.gmra.mrb[36].mxu1 %v4939_v2  ;;  %9722 = vmatpush3.bf16.msra.mxu0 %v10619_v0  ;;  %v7313_v0 = vld [vmem:[%s10825_s21 + $0x5b] sm:$0xff] }
 0x3f2   : > { %9393 = vmatprep.mubr.bf16.mxu1 %v12919_v14 }
 0x3f9   : > { %9394 = vmatmul.mubr.bf16.gmra.mrb[40].mxu1 %v4941_v54 }
 0x3fa   : > { %9397 = vmatprep.mubr.bf16.mxu1 %v4942_v13 }
 0x401   : > { %9398 = vmatmul.mubr.bf16.gmra.mrb[44].mxu1 %v4943_v9 }
 0x402   : > { %9401 = vmatprep.mubr.bf16.mxu1 %v4944_v22 }
 0x409   : > { %9402 = vmatmul.mubr.bf16.gmra.mrb[48].mxu1 %v4945_v17 }
 0x40a   : > { %9405 = vmatprep.mubr.bf16.mxu1 %v4946_v59 }
 0x411   : > { %9406 = vmatmul.mubr.bf16.gmra.mrb[52].mxu1 %v4947_v6 }
 0x412   : > { %9425 = vmatprep.mubr.bf16.mxu1 %v12871_v24  ;;  %v10593_v24 = vld [vmem:[%s13535_s4 + $0x138] sm:$0xff]  }
 0x419   : > { %9426 = vmatmul.mubr.bf16.vlgmr.msra.gmra.mrb[20].mxu1 %v12876_v28  ;;  %v5260_v28 = vld [vmem:[#allocation2 + $0x127] sm:$0xff] }
 0x41a   : > { %9429 = vmatprep.mubr.bf16.mxu1 %v12883_v38  ;;  %9462 = vmatpush3.bf16.msra.mxu1 %v10586_v61  ;;  %v5279_v44 = vpack.c.bf16 %v5261_v18, %v5260_v28  ;;  %v5561_v38 = vld [vmem:[#allocation2 + $0x30] sm:$0xff]  ;;  %v5890_v18 = vld [vmem:[#allocation2 + $0x19] sm:$0xff] }
 0x41b   : > { %9463 = vmatprep.subr.bf16.mxu1 %v10587_v26  ;;  %v5593_v28 = vld [vmem:[#allocation2 + $0x130] sm:$0xff] }
 0x41e   : > { %9464 = vmatpush3.bf16.msra.mxu1 %v10587_v26 }
 0x41f   : > { %9465 = vmatprep.subr.bf16.mxu1 %v10588_v30 }
 0x421   : > { %9430 = vmatmul.mubr.bf16.gmra.mrb[24].mxu1 %v12888_v23  ;;  %v5560_v23 = vld [vmem:[#allocation2 + $0x28] sm:$0xff] }
 0x422   : > { %9433 = vmatprep.mubr.bf16.mxu1 %v12895_v45  ;;  %9466 = vmatpush3.bf16.msra.mxu1 %v10588_v30  ;;  %v5595_v52 = vpack.c.bf16 %v5561_v38, %v5560_v23  ;;  %v5565_v45 = vld [vmem:[#allocation2 + $0x50] sm:$0xff]  ;;  %v5586_v30 = vld [vmem:[#allocation2 + $0xf8] sm:$0xff]  ;;  %v5895_v23 = vld [vmem:[#allocation2 + $0x41] sm:$0xff] }
 0x423   : > { %9467 = vmatprep.subr.bf16.mxu1 %v10589_v15  ;;  %v5893_v38 = vld [vmem:[#allocation2 + $0x31] sm:$0xff]  ;;  %v12988_v49 = vpack.c.bf16 %v5895_v23, %v5894_v5  ;;  %v10631_v5 = vld [vmem:[%s13538_s7 + $0x30] sm:$0xff]  }
 0x424   : > { %v10611_v23 = vld [vmem:[%s13535_s4 + $0x1c8] sm:$0xff]  }
 0x426   : > { %9468 = vmatpush3.bf16.msra.mxu1 %v10589_v15  ;;  %v5608_v15 = vpack.c.bf16 %v5587_v25, %v5586_v30  ;;  %v5917_v25 = vld [vmem:[#allocation2 + $0xf1] sm:$0xff]  ;;  %v5916_v30 = vld [vmem:[#allocation2 + $0xe9] sm:$0xff] }
 0x427   : > { %9469 = vmatprep.subr.bf16.mxu1 %v10590_v32 }
 0x429   : > { %9434 = vmatmul.mubr.bf16.gmra.mrb[28].mxu1 %v12900_v19  ;;  %v5564_v19 = vld [vmem:[#allocation2 + $0x48] sm:$0xff] }
 0x42a   : > { %9437 = vmatprep.mubr.bf16.mxu1 %v12907_v46  ;;  %9470 = vmatpush3.bf16.msra.mxu1 %v10590_v32  ;;  %v5597_v8 = vpack.c.bf16 %v5565_v45, %v5564_v19  ;;  %v5569_v46 = vld [vmem:[#allocation2 + $0x70] sm:$0xff]  ;;  %v10605_v19 = vld [vmem:[%s13535_s4 + $0x198] sm:$0xff]  }
 0x42b   : > { %9471 = vmatprep.subr.bf16.mxu1 %v10591_v20  ;;  %v5589_v32 = vld [vmem:[#allocation2 + $0x110] sm:$0xff] }
 0x42c   : > { %v5896_v45 = vld [vmem:[#allocation2 + $0x49] sm:$0xff] }
 0x42e   : > { %9472 = vmatpush3.bf16.msra.mxu1 %v10591_v20  ;;  %v5590_v20 = vld [vmem:[#allocation2 + $0x118] sm:$0xff] }
 0x42f   : > { %9473 = vmatprep.subr.bf16.mxu1 %v10592_v55 }
 0x431   : > { %9438 = vmatmul.mubr.bf16.gmra.mrb[32].mxu1 %v12912_v40  ;;  %v5568_v40 = vld [vmem:[#allocation2 + $0x68] sm:$0xff] }
 0x432   : > { %9441 = vmatprep.mubr.bf16.mxu1 %v4939_v2  ;;  %9474 = vmatpush3.bf16.msra.mxu1 %v10592_v55  ;;  %v5599_v61 = vpack.c.bf16 %v5569_v46, %v5568_v40  ;;  %v5573_v2 = vld [vmem:[#allocation2 + $0x90] sm:$0xff]  ;;  %v5588_v55 = vld [vmem:[#allocation2 + $0x108] sm:$0xff]  ;;  %v10607_v40 = vld [vmem:[%s13535_s4 + $0x1a8] sm:$0xff]  }
 0x433   : > { %9475 = vmatprep.subr.bf16.mxu1 %v10593_v24  ;;  %v5601_v62 = vpack.c.bf16 %v5573_v2, %v5572_v16  ;;  %v5900_v46 = vld [vmem:[#allocation2 + $0x69] sm:$0xff]  ;;  %v5907_v2 = vld [vmem:[#allocation2 + $0xa1] sm:$0xff] }
 0x436   : > { %9476 = vmatpush3.bf16.msra.mxu1 %v10593_v24  ;;  %v5609_v24 = vpack.c.bf16 %v5589_v32, %v5588_v55  ;;  %v5921_v55 = vld [vmem:[#allocation2 + $0x111] sm:$0xff] }
 0x437   : > { %9513 = vmatprep.subr.bf16.mxu1 %v10594_v29 }
 0x439   : > { %9442 = vmatmul.mubr.bf16.gmra.mrb[36].mxu1 %v12919_v14  ;;  %v5575_v14 = vld [vmem:[#allocation2 + $0xa0] sm:$0xff] }
 0x43a   : > { %9445 = vmatprep.mubr.bf16.mxu1 %v4941_v54  ;;  %v5602_v54 = vpack.c.bf16 %v5575_v14, %v5574_v11  ;;  %v5904_v14 = vld [vmem:[#allocation2 + $0x89] sm:$0xff] }
 0x441   : > { %9446 = vmatmul.mubr.bf16.gmra.mrb[40].mxu1 %v4942_v13  ;;  %v10602_v13 = vld [vmem:[%s13535_s4 + $0x180] sm:$0xff]  }
 0x442   : > { %9449 = vmatprep.mubr.bf16.mxu1 %v4943_v9  ;;  %v5578_v9 = vld [vmem:[#allocation2 + $0xb8] sm:$0xff] }
 0x449   : > { %9450 = vmatmul.mubr.bf16.gmra.mrb[44].mxu1 %v4944_v22  ;;  %v5604_v22 = vpack.c.bf16 %v5579_v58, %v5578_v9  ;;  %v5911_v58 = vld [vmem:[#allocation2 + $0xc1] sm:$0xff] }
 0x44a   : > { %9453 = vmatprep.mubr.bf16.mxu1 %v4945_v17  ;;  %v5582_v17 = vld [vmem:[#allocation2 + $0xd8] sm:$0xff]  ;;  %v13039_v9 = vpack.c.bf16 %v5911_v58, %v5910_v43  ;;  %v7320_v43 = vld [vmem:[%s10825_s21 + $0x93] sm:$0xff]  ;;  %v7321_v58 = vld [vmem:[%s10825_s21 + $0x9b] sm:$0xff] }
 0x451   : > { %9454 = vmatmul.mubr.bf16.gmra.mrb[48].mxu1 %v4946_v59  ;;  %v5606_v59 = vpack.c.bf16 %v5583_v42, %v5582_v17  ;;  %v5914_v42 = vld [vmem:[#allocation2 + $0xd9] sm:$0xff] }
 0x452   : > { %9457 = vmatprep.mubr.bf16.mxu1 %v4947_v6  ;;  %v5584_v6 = vld [vmem:[#allocation2 + $0xe8] sm:$0xff] }
 0x453   : > { %v5607_v26 = vpack.c.bf16 %v5585_v37, %v5584_v6  ;;  %v10625_v37 = vld [vmem:[%s13538_s7 + $0x18] sm:$0xff]   ;;  %v5918_v6 = vld [vmem:[#allocation2 + $0xf9] sm:$0xff] }
 0x459   : > { %9458 = vmatmul.mubr.bf16.gmra.mrb[52].mxu1 %v5279_v44  ;;  %v5592_v44 = vld [vmem:[#allocation2 + $0x128] sm:$0xff] }
 0x45a   : > { %9477 = vmatprep.mubr.bf16.mxu1 %v5594_v21  ;;  %v5611_v27 = vpack.c.bf16 %v5593_v28, %v5592_v44  ;;  %v5926_v21 = vpack.c.bf16 %v5891_v50, %v5890_v18  ;;  %v5920_v28 = vld [vmem:[#allocation2 + $0x109] sm:$0xff]  ;;  %v10629_v44 = vld [vmem:[%s13538_s7 + $0x28] sm:$0xff]  }
 0x45b   : > { %v13064_v18 = vpack.c.bf16 %v5921_v55, %v5920_v28 }
 0x461   : > { %9478 = vmatmul.mubr.bf16.vlgmr.msra.gmra.mrb[20].mxu1 %v5595_v52  ;;  %v5892_v52 = vld [vmem:[#allocation2 + $0x29] sm:$0xff] }
 0x462   : > { %9481 = vmatprep.mubr.bf16.mxu1 %v5596_v7  ;;  %9514 = vmatpush3.bf16.msra.mxu1 %v10594_v29  ;;  %v10637_v29 = vpack.c.bf16 %v3393_v4, %v5590_v20  ;;  %v12983_v39 = vpack.c.bf16 %v5893_v38, %v5892_v52  ;;  %v10604_v4 = vld [vmem:[%s13535_s4 + $0x190] sm:$0xff]   ;;  %v10627_v20 = vld [vmem:[%s13538_s7 + $0x20] sm:$0xff]   ;;  %v10633_v52 = vld [vmem:[%s13538_s7 + $0x38] sm:$0xff]  }
 0x463   : > { %9515 = vmatprep.subr.bf16.mxu1 %v10595_v51  ;;  %v5898_v7 = vld [vmem:[#allocation2 + $0x59] sm:$0xff] }
 0x466   : > { %9516 = vmatpush3.bf16.msra.mxu1 %v10595_v51  ;;  %v5897_v51 = vld [vmem:[#allocation2 + $0x51] sm:$0xff] }
 0x467   : > { %9517 = vmatprep.subr.bf16.mxu1 %v10596_v33  ;;  %v12995_v48 = vpack.c.bf16 %v5897_v51, %v5896_v45  ;;  %v7306_v51 = vld [vmem:[%s10825_s21 + $0x23] sm:$0xff]  ;;  %v7307_v45 = vld [vmem:[%s10825_s21 + $0x2b] sm:$0xff] }
 0x469   : > { %9482 = vmatmul.mubr.bf16.gmra.mrb[24].mxu1 %v5597_v8 }
 0x46a   : > { %9485 = vmatprep.mubr.bf16.mxu1 %v5598_v36  ;;  %9518 = vmatpush3.bf16.msra.mxu1 %v10596_v33  ;;  %v5899_v33 = vld [vmem:[#allocation2 + $0x61] sm:$0xff]  ;;  %v5902_v36 = vld [vmem:[#allocation2 + $0x79] sm:$0xff] }
 0x46b   : > { %9519 = vmatprep.subr.bf16.mxu1 %v10597_v12  ;;  %v13000_v8 = vpack.c.bf16 %v5899_v33, %v5898_v7  ;;  %v10614_v7 = vld [vmem:[%s13535_s4 + $0x1e0] sm:$0xff]  }
 0x46e   : > { %9520 = vmatpush3.bf16.msra.mxu1 %v10597_v12  ;;  %v5901_v12 = vld [vmem:[#allocation2 + $0x71] sm:$0xff] }
 0x46f   : > { %9521 = vmatprep.subr.bf16.mxu1 %v10598_v35  ;;  %v13007_v1 = vpack.c.bf16 %v5901_v12, %v5900_v46  ;;  %v7310_v12 = vld [vmem:[%s10825_s21 + $0x43] sm:$0xff]  ;;  %v7311_v46 = vld [vmem:[%s10825_s21 + $0x4b] sm:$0xff] }
 0x471   : > { %9486 = vmatmul.mubr.bf16.gmra.mrb[28].mxu1 %v5599_v61 }
 0x472   : > { %9489 = vmatprep.mubr.bf16.mxu1 %v5600_v53  ;;  %9522 = vmatpush3.bf16.msra.mxu1 %v10598_v35  ;;  %v5903_v35 = vld [vmem:[#allocation2 + $0x81] sm:$0xff]  ;;  %v5905_v53 = vld [vmem:[#allocation2 + $0x91] sm:$0xff] }
 0x473   : > { %9523 = vmatprep.subr.bf16.mxu1 %v10599_v10  ;;  %v13012_v61 = vpack.c.bf16 %v5903_v35, %v5902_v36  ;;  %v13022_v16 = vpack.c.bf16 %v5905_v53, %v5904_v14  ;;  %v10616_v36 = vld [vmem:[%s13535_s4 + $0x1f0] sm:$0xff]   ;;  %v13126_v53 = vld [vmem:[%s13535_s4 + $0x200] sm:$0xff]  }
 0x476   : > { %9524 = vmatpush3.bf16.msra.mxu1 %v10599_v10  ;;  %v10608_v10 = vld [vmem:[%s13535_s4 + $0x1b0] sm:$0xff]  }
 0x477   : > { %9525 = vmatprep.subr.bf16.mxu1 %v10600_v47 }
 0x479   : > { %9490 = vmatmul.mubr.bf16.gmra.mrb[32].mxu1 %v5601_v62  ;;  %v10609_v62 = vld [vmem:[%s13535_s4 + $0x1b8] sm:$0xff]  }
 0x47a   : > { %9493 = vmatprep.mubr.bf16.mxu1 %v5602_v54  ;;  %9526 = vmatpush3.bf16.msra.mxu1 %v10600_v47  ;;  %v5906_v47 = vld [vmem:[#allocation2 + $0x99] sm:$0xff]  ;;  %v10610_v54 = vld [vmem:[%s13535_s4 + $0x1c0] sm:$0xff]  }
 0x47b   : > { %9527 = vmatprep.subr.bf16.mxu1 %v10601_v60  ;;  %v13027_v11 = vpack.c.bf16 %v5907_v2, %v5906_v47  ;;  %v7315_v2 = vld [vmem:[%s10825_s21 + $0x6b] sm:$0xff] }
 0x47e   : > { %9528 = vmatpush3.bf16.msra.mxu1 %v10601_v60  ;;  %v10621_v60 = vld [vmem:[%s13538_s7 + $0x8] sm:$0xff]  }
 0x47f   : > { %9565 = vmatprep.subr.bf16.mxu1 %v10602_v13  ;;  %9723 = vmatprep.subr.bf16.mxu0 %v10621_v60 }
 0x480   : > { %9724 = vmatpush3.bf16.msra.mxu0 %v10621_v60 }
 0x481   : > { %9494 = vmatmul.mubr.bf16.gmra.mrb[36].mxu1 %v5603_v3 }
 0x482   : > { %9497 = vmatprep.mubr.bf16.mxu1 %v5604_v22  ;;  %v10623_v22 = vld [vmem:[%s13538_s7 + $0x10] sm:$0xff]  }
 0x483   : > { %9725 = vmatprep.subr.bf16.mxu0 %v10623_v22 }
 0x484   : > { %9726 = vmatpush3.bf16.msra.mxu0 %v10623_v22 }
 0x485   : > { %9727 = vmatprep.subr.bf16.mxu0 %v10625_v37 }
 0x488   : > { %9728 = vmatpush3.bf16.msra.mxu0 %v10625_v37  ;;  %v6256_v37 = vld [vmem:[#allocation2 + $0x139] sm:$0xff] }
 0x489   : > { %9498 = vmatmul.mubr.bf16.gmra.mrb[40].mxu1 %v5605_v63  ;;  %v5912_v63 = vld [vmem:[#allocation2 + $0xc9] sm:$0xff]  ;;  %9729 = vmatprep.subr.bf16.mxu0 %v10627_v20 }
 0x48a   : > { %9501 = vmatprep.mubr.bf16.mxu1 %v5606_v59  ;;  %v13046_v17 = vpack.c.bf16 %v5913_v41, %v5912_v63  ;;  %v13048_v59 = vpack.c.bf16 %v5915_v31, %v5914_v42  ;;  %v7324_v41 = vld [vmem:[%s10825_s21 + $0xb3] sm:$0xff]  ;;  %v7325_v42 = vld [vmem:[%s10825_s21 + $0xbb] sm:$0xff]  ;;  %v7326_v31 = vld [vmem:[%s10825_s21 + $0xc3] sm:$0xff] }
 0x48b   : > { %v7350_v63 = vpack.c.bf16 %v7325_v42, %v7324_v41  ;;  %v6574_v42 = vld [vmem:[#allocation2 + $0xca] sm:$0xff] }
 0x48c   : > { %9730 = vmatpush3.bf16.msra.mxu0 %v10627_v20 }
 0x48d   : > { %9731 = vmatprep.subr.bf16.mxu0 %v10629_v44 }
 0x490   : > { %9732 = vmatpush3.bf16.msra.mxu0 %v10629_v44  ;;  %v7334_v44 = vld [vmem:[%s10825_s21 + $0x103] sm:$0xff] }
 0x491   : > { %9502 = vmatmul.mubr.bf16.gmra.mrb[44].mxu1 %v5607_v26  ;;  %v5919_v26 = vld [vmem:[#allocation2 + $0x101] sm:$0xff]  ;;  %9733 = vmatprep.subr.bf16.mxu0 %v10631_v5 }
 0x492   : > { %9505 = vmatprep.mubr.bf16.mxu1 %v5608_v15  ;;  %v13055_v15 = vpack.c.bf16 %v5917_v25, %v5916_v30  ;;  %v13057_v32 = vpack.c.bf16 %v5919_v26, %v5918_v6  ;;  %v6257_v25 = vld [vmem:[#allocation2 + $0x141] sm:$0xff]  ;;  %v7329_v26 = vld [vmem:[%s10825_s21 + $0xdb] sm:$0xff]  ;;  %v7330_v30 = vld [vmem:[%s10825_s21 + $0xe3] sm:$0xff] }
 0x493   : > { %v7328_v6 = vld [vmem:[%s10825_s21 + $0xd3] sm:$0xff]  ;;  %v6275_v55 = vpack.c.bf16 %v6257_v25, %v6256_v37 }
 0x494   : > { %9734 = vmatpush3.bf16.msra.mxu0 %v10631_v5  ;;  %v6557_v5 = vld [vmem:[#allocation2 + $0x42] sm:$0xff]  ;;  %v6578_v25 = vld [vmem:[#allocation2 + $0xea] sm:$0xff] }
 0x495   : > { %9735 = vmatprep.subr.bf16.mxu0 %v10633_v52 }
 0x498   : > { %9736 = vmatpush3.bf16.msra.mxu0 %v10633_v52  ;;  %v6559_v52 = vld [vmem:[#allocation2 + $0x52] sm:$0xff] }
 0x499   : > { %9506 = vmatmul.mubr.bf16.gmra.mrb[48].mxu1 %v5609_v24  ;;  %v5922_v24 = vld [vmem:[#allocation2 + $0x119] sm:$0xff] }
 0x49a   : > { %10638 = vmatprep.mubr.msk.bf16.mxu1 %vm10636_vm13, %v10637_v29  ;;  %v5923_v29 = vld [vmem:[#allocation2 + $0x121] sm:$0xff] }
 0x49b   : > { %v13066_v50 = vpack.c.bf16 %v5923_v29, %v5922_v24  ;;  %v6555_v24 = vld [vmem:[#allocation2 + $0x32] sm:$0xff]  ;;  %v6554_v29 = vld [vmem:[#allocation2 + $0x2a] sm:$0xff] }
 0x49c   : > { %v6590_v28 = vpack.c.bf16 %v6555_v24, %v6554_v29  ;;  %v6584_v24 = vld [vmem:[#allocation2 + $0x11a] sm:$0xff]  ;;  %v6585_v29 = vld [vmem:[#allocation2 + $0x122] sm:$0xff] }
 0x4a1   : > { %9510 = vmatmul.mubr.bf16.gmra.mrb[52].mxu1 %v5611_v27  ;;  %v5924_v27 = vld [vmem:[#allocation2 + $0x129] sm:$0xff] }
 0x4a2   : > { %9529 = vmatprep.mubr.bf16.mxu1 %v5926_v21  ;;  %v5925_v21 = vld [vmem:[#allocation2 + $0x131] sm:$0xff] }
 0x4a3   : > { %v13073_v38 = vpack.c.bf16 %v5925_v21, %v5924_v27  ;;  %v7335_v21 = vld [vmem:[%s10825_s21 + $0x10b] sm:$0xff] }
 0x4a9   : > { %9530 = vmatmul.mubr.bf16.vlgmr.msra.gmra.mrb[20].mxu1 %v12983_v39 }
 0x4aa   : > { %9533 = vmatprep.mubr.bf16.mxu1 %v12988_v49  ;;  %9566 = vmatpush3.bf16.msra.mxu1 %v10602_v13  ;;  %v5909_v13 = vld [vmem:[#allocation2 + $0xb1] sm:$0xff] }
 0x4ab   : > { %9567 = vmatprep.subr.bf16.mxu1 %v10603_v57  ;;  %v13037_v3 = vpack.c.bf16 %v5909_v13, %v5908_v34  ;;  %v7322_v34 = vld [vmem:[%s10825_s21 + $0xa3] sm:$0xff] }
 0x4ae   : > { %9568 = vmatpush3.bf16.msra.mxu1 %v10603_v57  ;;  %v10613_v57 = vld [vmem:[%s13535_s4 + $0x1d8] sm:$0xff]  }
 0x4af   : > { %9569 = vmatprep.subr.bf16.mxu1 %v10604_v4 }
 0x4b1   : > { %9534 = vmatmul.mubr.bf16.gmra.mrb[24].mxu1 %v12995_v48 }
 0x4b2   : > { %9537 = vmatprep.mubr.bf16.mxu1 %v13000_v8  ;;  %9570 = vmatpush3.bf16.msra.mxu1 %v10604_v4  ;;  %v7305_v4 = vld [vmem:[%s10825_s21 + $0x1b] sm:$0xff] }
 0x4b3   : > { %9571 = vmatprep.subr.bf16.mxu1 %v10605_v19 }
 0x4b6   : > { %9572 = vmatpush3.bf16.msra.mxu1 %v10605_v19  ;;  %v10615_v19 = vld [vmem:[%s13535_s4 + $0x1e8] sm:$0xff]  }
 0x4b7   : > { %9573 = vmatprep.subr.bf16.mxu1 %v10606_v56 }
 0x4b9   : > { %9538 = vmatmul.mubr.bf16.gmra.mrb[28].mxu1 %v13007_v1 }
 0x4ba   : > { %9541 = vmatprep.mubr.bf16.mxu1 %v13012_v61  ;;  %9574 = vmatpush3.bf16.msra.mxu1 %v10606_v56  ;;  %v7309_v56 = vld [vmem:[%s10825_s21 + $0x3b] sm:$0xff] }
 0x4bb   : > { %9575 = vmatprep.subr.bf16.mxu1 %v10607_v40 }
 0x4be   : > { %9576 = vmatpush3.bf16.msra.mxu1 %v10607_v40  ;;  %v10617_v40 = vld [vmem:[%s13535_s4 + $0x1f8] sm:$0xff]  }
 0x4bf   : > { %9577 = vmatprep.subr.bf16.mxu1 %v10608_v10 }
 0x4c1   : > { %9542 = vmatmul.mubr.bf16.gmra.mrb[32].mxu1 %v13022_v16 }
 0x4c2   : > { %9545 = vmatprep.mubr.bf16.mxu1 %v13027_v11  ;;  %9578 = vmatpush3.bf16.msra.mxu1 %v10608_v10  ;;  %v7314_v10 = vld [vmem:[%s10825_s21 + $0x63] sm:$0xff] }
 0x4c3   : > { %9579 = vmatprep.subr.bf16.mxu1 %v10609_v62  ;;  %v7345_v14 = vpack.c.bf16 %v7315_v2, %v7314_v10  ;;  %v6565_v10 = vld [vmem:[#allocation2 + $0x82] sm:$0xff]  ;;  %v6566_v2 = vld [vmem:[#allocation2 + $0x8a] sm:$0xff] }
 0x4c6   : > { %9580 = vmatpush3.bf16.msra.mxu1 %v10609_v62  ;;  %v7317_v62 = vld [vmem:[%s10825_s21 + $0x7b] sm:$0xff] }
 0x4c7   : > { %9617 = vmatprep.subr.bf16.mxu1 %v10610_v54 }
 0x4c9   : > { %9546 = vmatmul.mubr.bf16.gmra.mrb[36].mxu1 %v13037_v3 }
 0x4ca   : > { %9549 = vmatprep.mubr.bf16.mxu1 %v13039_v9 }
 0x4d1   : > { %9550 = vmatmul.mubr.bf16.gmra.mrb[40].mxu1 %v13046_v17 }
 0x4d2   : > { %9553 = vmatprep.mubr.bf16.mxu1 %v13048_v59 }
 0x4d9   : > { %9554 = vmatmul.mubr.bf16.gmra.mrb[44].mxu1 %v13055_v15 }
 0x4da   : > { %9557 = vmatprep.mubr.bf16.mxu1 %v13057_v32 }
 0x4e1   : > { %9558 = vmatmul.mubr.bf16.gmra.mrb[48].mxu1 %v13064_v18 }
 0x4e2   : > { %9561 = vmatprep.mubr.bf16.mxu1 %v13066_v50 }
 0x4e9   : > { %9562 = vmatmul.mubr.bf16.gmra.mrb[52].mxu1 %v13073_v38 }
 0x4ea   : > { %9581 = vmatprep.mubr.bf16.mxu1 %v12983_v39  ;;  %v10612_v39 = vld [vmem:[%s13535_s4 + $0x1d0] sm:$0xff]  }
 0x4f1   : > { %9582 = vmatmul.mubr.bf16.vlgmr.msra.gmra.mrb[20].mxu1 %v12988_v49  ;;  %v7304_v49 = vld [vmem:[%s10825_s21 + $0x13] sm:$0xff] }
 0x4f2   : > { %9585 = vmatprep.mubr.bf16.mxu1 %v12995_v48  ;;  %9618 = vmatpush3.bf16.msra.mxu1 %v10610_v54  ;;  %v7340_v33 = vpack.c.bf16 %v7305_v4, %v7304_v49  ;;  %v7341_v48 = vpack.c.bf16 %v7307_v45, %v7306_v51  ;;  %v7319_v54 = vld [vmem:[%s10825_s21 + $0x8b] sm:$0xff]  ;;  %v7336_v51 = vld [vmem:[%s10825_s21 + $0x113] sm:$0xff] }
 0x4f3   : > { %9619 = vmatprep.subr.bf16.mxu1 %v10611_v23  ;;  %v10620_v49 = vld [vmem:[%s13535_s4 + $0x208] sm:$0xff]   ;;  %v10622_v45 = vld [vmem:[%s13535_s4 + $0x210] sm:$0xff]  }
 0x4f4   : > { %9737 = vmatprep.mubr.bf16.mxu0 %v7340_v33  ;;  %v7338_v33 = vld [vmem:[%s10825_s21 + $0x123] sm:$0xff] }
 0x4f5   : > { %9738 = vmatmul.mubr.bf16.vlgmr.msra.gmra.mrb[36].mxu0 %v7341_v48 }
 0x4f6   : > { %9620 = vmatpush3.bf16.msra.mxu1 %v10611_v23  ;;  %v7355_v23 = vpack.c.bf16 %v7335_v21, %v7334_v44  ;;  %v6589_v21 = vld [vmem:[#allocation2 + $0x142] sm:$0xff] }
 0x4f7   : > { %9621 = vmatprep.subr.bf16.mxu1 %v10612_v39 }
 0x4f9   : > { %9586 = vmatmul.mubr.bf16.gmra.mrb[24].mxu1 %v13000_v8  ;;  %v7308_v8 = vld [vmem:[%s10825_s21 + $0x33] sm:$0xff] }
 0x4fa   : > { %9589 = vmatprep.mubr.bf16.mxu1 %v13007_v1  ;;  %9622 = vmatpush3.bf16.msra.mxu1 %v10612_v39  ;;  %v7342_v35 = vpack.c.bf16 %v7309_v56, %v7308_v8  ;;  %v7343_v1 = vpack.c.bf16 %v7311_v46, %v7310_v12  ;;  %v6560_v8 = vld [vmem:[#allocation2 + $0x5a] sm:$0xff]  ;;  %v6561_v56 = vld [vmem:[#allocation2 + $0x62] sm:$0xff]  ;;  %v6562_v46 = vld [vmem:[#allocation2 + $0x6a] sm:$0xff] }
 0x4fb   : > { %9623 = vmatprep.subr.bf16.mxu1 %v10613_v57 }
 0x4fc   : > { %9741 = vmatprep.mubr.bf16.mxu0 %v7342_v35  ;;  %v6593_v35 = vpack.c.bf16 %v6561_v56, %v6560_v8  ;;  %v6894_v8 = vld [vmem:[#allocation2 + $0x6b] sm:$0xff] }
 0x4fd   : > { %9742 = vmatmul.mubr.bf16.gmra.mrb[40].mxu0 %v7343_v1  ;;  %v10624_v1 = vld [vmem:[%s13535_s4 + $0x218] sm:$0xff]  }
 0x4fe   : > { %9624 = vmatpush3.bf16.msra.mxu1 %v10613_v57  ;;  %v6558_v57 = vld [vmem:[#allocation2 + $0x4a] sm:$0xff] }
 0x4ff   : > { %9625 = vmatprep.subr.bf16.mxu1 %v10614_v7  ;;  %v6592_v4 = vpack.c.bf16 %v6559_v52, %v6558_v57  ;;  %v6889_v57 = vld [vmem:[#allocation2 + $0x43] sm:$0xff] }
 0x501   : > { %9590 = vmatmul.mubr.bf16.gmra.mrb[28].mxu1 %v13012_v61  ;;  %v7312_v61 = vld [vmem:[%s10825_s21 + $0x53] sm:$0xff] }
 0x502   : > { %9593 = vmatprep.mubr.bf16.mxu1 %v13022_v16  ;;  %9626 = vmatpush3.bf16.msra.mxu1 %v10614_v7  ;;  %v7344_v47 = vpack.c.bf16 %v7313_v0, %v7312_v61  ;;  %v7316_v16 = vld [vmem:[%s10825_s21 + $0x73] sm:$0xff]  ;;  %v7337_v7 = vld [vmem:[%s10825_s21 + $0x11b] sm:$0xff]  ;;  %v6564_v0 = vld [vmem:[#allocation2 + $0x7a] sm:$0xff] }
 0x503   : > { %9627 = vmatprep.subr.bf16.mxu1 %v10615_v19  ;;  %v7346_v60 = vpack.c.bf16 %v7317_v62, %v7316_v16  ;;  %v7356_v48 = vpack.c.bf16 %v7337_v7, %v7336_v51  ;;  %v10626_v61 = vld [vmem:[%s13535_s4 + $0x220] sm:$0xff]   ;;  %v10630_v62 = vld [vmem:[%s13535_s4 + $0x230] sm:$0xff]  }
 0x504   : > { %9745 = vmatprep.mubr.bf16.mxu0 %v7344_v47  ;;  %v6595_v47 = vpack.c.bf16 %v6565_v10, %v6564_v0  ;;  %v6890_v51 = vld [vmem:[#allocation2 + $0x4b] sm:$0xff]  ;;  %v6901_v0 = vld [vmem:[#allocation2 + $0xa3] sm:$0xff]  ;;  %v6903_v10 = vld [vmem:[#allocation2 + $0xb3] sm:$0xff] }
 0x505   : > { %9746 = vmatmul.mubr.bf16.gmra.mrb[44].mxu0 %v7345_v14  ;;  %v10628_v14 = vld [vmem:[%s13535_s4 + $0x228] sm:$0xff]  }
 0x506   : > { %9628 = vmatpush3.bf16.msra.mxu1 %v10615_v19  ;;  %9749 = vmatprep.mubr.bf16.mxu0 %v7346_v60  ;;  %v7339_v19 = vld [vmem:[%s10825_s21 + $0x12b] sm:$0xff] }
 0x507   : > { %9629 = vmatprep.subr.bf16.mxu1 %v10616_v36  ;;  %v7357_v12 = vpack.c.bf16 %v7339_v19, %v7338_v33  ;;  %v6569_v60 = vld [vmem:[#allocation2 + $0xa2] sm:$0xff] }
 0x508   : > { %v6892_v33 = vld [vmem:[#allocation2 + $0x5b] sm:$0xff] }
 0x509   : > { %9594 = vmatmul.mubr.bf16.gmra.mrb[32].mxu1 %v13027_v11  ;;  %v7318_v11 = vld [vmem:[%s10825_s21 + $0x83] sm:$0xff] }
 0x50a   : > { %9597 = vmatprep.mubr.bf16.mxu1 %v13037_v3  ;;  %9630 = vmatpush3.bf16.msra.mxu1 %v10616_v36  ;;  %v7347_v13 = vpack.c.bf16 %v7319_v54, %v7318_v11  ;;  %v7348_v3 = vpack.c.bf16 %v7321_v58, %v7320_v43  ;;  %v6563_v36 = vld [vmem:[#allocation2 + $0x72] sm:$0xff]  ;;  %v6568_v11 = vld [vmem:[#allocation2 + $0x9a] sm:$0xff]  ;;  %v6570_v43 = vld [vmem:[#allocation2 + $0xaa] sm:$0xff] }
 0x50b   : > { %9631 = vmatprep.subr.bf16.mxu1 %v10617_v40  ;;  %v6571_v54 = vld [vmem:[#allocation2 + $0xb2] sm:$0xff]  ;;  %v10632_v58 = vld [vmem:[%s13535_s4 + $0x238] sm:$0xff]  }
 0x50d   : > { %9750 = vmatmul.mubr.bf16.gmra.mrb[48].mxu0 %v7347_v13  ;;  %v6597_v13 = vpack.c.bf16 %v6569_v60, %v6568_v11  ;;  %v6906_v60 = vld [vmem:[#allocation2 + $0xcb] sm:$0xff] }
 0x50e   : > { %9632 = vmatpush3.bf16.msra.mxu1 %v10617_v40  ;;  %9753 = vmatprep.mubr.bf16.mxu0 %v7348_v3  ;;  %v6594_v40 = vpack.c.bf16 %v6563_v36, %v6562_v46  ;;  %v6572_v3 = vld [vmem:[#allocation2 + $0xba] sm:$0xff]  ;;  %v6897_v36 = vld [vmem:[#allocation2 + $0x83] sm:$0xff] }
 0x50f   : > { %9669 = vmatprep.subr.bf16.mxu1 %v13126_v53 }
 0x511   : > { %9598 = vmatmul.mubr.bf16.gmra.mrb[36].mxu1 %v13039_v9  ;;  %v7323_v9 = vld [vmem:[%s10825_s21 + $0xab] sm:$0xff] }
 0x512   : > { %9601 = vmatprep.mubr.bf16.mxu1 %v13046_v17  ;;  %v7349_v22 = vpack.c.bf16 %v7323_v9, %v7322_v34  ;;  %v7327_v17 = vld [vmem:[%s10825_s21 + $0xcb] sm:$0xff]  ;;  %v6598_v34 = vpack.c.bf16 %v6571_v54, %v6570_v43  ;;  %v6909_v43 = vld [vmem:[#allocation2 + $0xe3] sm:$0xff] }
 0x513   : > { %v6573_v9 = vld [vmem:[#allocation2 + $0xc2] sm:$0xff] }
 0x514   : > { %v6599_v41 = vpack.c.bf16 %v6573_v9, %v6572_v3  ;;  %v6910_v3 = vld [vmem:[#allocation2 + $0xeb] sm:$0xff] }
 0x515   : > { %9754 = vmatmul.mubr.bf16.gmra.mrb[52].mxu0 %v7349_v22  ;;  %v6575_v22 = vld [vmem:[#allocation2 + $0xd2] sm:$0xff] }
 0x516   : > { %9757 = vmatprep.mubr.bf16.mxu0 %v7350_v63  ;;  %v6576_v63 = vld [vmem:[#allocation2 + $0xda] sm:$0xff] }
 0x519   : > { %9602 = vmatmul.mubr.bf16.gmra.mrb[40].mxu1 %v13048_v59  ;;  %v7351_v59 = vpack.c.bf16 %v7327_v17, %v7326_v31  ;;  %v6600_v31 = vpack.c.bf16 %v6575_v22, %v6574_v42  ;;  %v6577_v17 = vld [vmem:[#allocation2 + $0xe2] sm:$0xff]  ;;  %v6915_v42 = vld [vmem:[#allocation2 + $0x113] sm:$0xff] }
 0x51a   : > { %9605 = vmatprep.mubr.bf16.mxu1 %v13055_v15  ;;  %v7352_v15 = vpack.c.bf16 %v7329_v26, %v7328_v6  ;;  %v6601_v37 = vpack.c.bf16 %v6577_v17, %v6576_v63  ;;  %v6580_v26 = vld [vmem:[#allocation2 + $0xfa] sm:$0xff]  ;;  %v6914_v63 = vld [vmem:[#allocation2 + $0x10b] sm:$0xff] }
 0x51b   : > { %v6912_v22 = vld [vmem:[#allocation2 + $0xfb] sm:$0xff]  ;;  %v6936_v17 = vpack.c.bf16 %v6915_v42, %v6914_v63 }
 0x51d   : > { %9758 = vmatmul.mubr.bf16.gmra.mrb[56].mxu0 %v7351_v59  ;;  %v6579_v59 = vld [vmem:[#allocation2 + $0xf2] sm:$0xff] }
 0x51e   : > { %9761 = vmatprep.mubr.bf16.mxu0 %v7352_v15  ;;  %v6602_v6 = vpack.c.bf16 %v6579_v59, %v6578_v25  ;;  %v6583_v15 = vld [vmem:[#allocation2 + $0x112] sm:$0xff]  ;;  %v6916_v59 = vld [vmem:[#allocation2 + $0x11b] sm:$0xff] }
 0x51f   : > { %v6918_v25 = vld [vmem:[#allocation2 + $0x12b] sm:$0xff] }
 0x521   : > { %9606 = vmatmul.mubr.bf16.gmra.mrb[44].mxu1 %v13057_v32  ;;  %v7331_v32 = vld [vmem:[%s10825_s21 + $0xeb] sm:$0xff] }
 0x522   : > { %9609 = vmatprep.mubr.bf16.mxu1 %v13064_v18  ;;  %v7353_v20 = vpack.c.bf16 %v7331_v32, %v7330_v30  ;;  %v7332_v18 = vld [vmem:[%s10825_s21 + $0xf3] sm:$0xff] }
 0x523   : > { %v6581_v30 = vld [vmem:[#allocation2 + $0x102] sm:$0xff] }
 0x524   : > { %v6603_v32 = vpack.c.bf16 %v6581_v30, %v6580_v26 }
 0x525   : > { %9762 = vmatmul.mubr.bf16.gmra.mrb[60].mxu0 %v7353_v20  ;;  %v6582_v20 = vld [vmem:[#allocation2 + $0x10a] sm:$0xff] }
 0x529   : > { %9610 = vmatmul.mubr.bf16.gmra.mrb[48].mxu1 %v13066_v50  ;;  %v7333_v50 = vld [vmem:[%s10825_s21 + $0xfb] sm:$0xff] }
 0x52a   : > { %9613 = vmatprep.mubr.bf16.mxu1 %v13073_v38  ;;  %v7354_v27 = vpack.c.bf16 %v7333_v50, %v7332_v18  ;;  %v6556_v38 = vld [vmem:[#allocation2 + $0x3a] sm:$0xff]  ;;  %v6587_v18 = vld [vmem:[#allocation2 + $0x132] sm:$0xff]  ;;  %v6605_v50 = vpack.c.bf16 %v6585_v29, %v6584_v24 }
 0x52b   : > { %v6591_v39 = vpack.c.bf16 %v6557_v5, %v6556_v38  ;;  %v6887_v5 = vld [vmem:[#allocation2 + $0x33] sm:$0xff] }
 0x52c   : > { %9765 = vmatprep.mubr.bf16.mxu0 %v7354_v27  ;;  %v6588_v27 = vld [vmem:[#allocation2 + $0x13a] sm:$0xff] }
 0x52d   : > { %9766 = vmatmul.mubr.bf16.gmra.mrb[64].mxu0 %v7355_v23  ;;  %v6607_v38 = vpack.c.bf16 %v6589_v21, %v6588_v27  ;;  %v6886_v23 = vld [vmem:[#allocation2 + $0x2b] sm:$0xff] }
 0x52e   : > { %9769 = vmatprep.mubr.bf16.mxu0 %v7356_v48  ;;  %v6922_v52 = vpack.c.bf16 %v6887_v5, %v6886_v23  ;;  %v6895_v48 = vld [vmem:[#allocation2 + $0x73] sm:$0xff] }
 0x52f   : > { %v6926_v56 = vpack.c.bf16 %v6895_v48, %v6894_v8 }
 0x531   : > { %9614 = vmatmul.mubr.bf16.gmra.mrb[52].mxu1 %v6275_v55  ;;  %v6604_v55 = vpack.c.bf16 %v6583_v15, %v6582_v20  ;;  %v6920_v15 = vld [vmem:[#allocation2 + $0x13b] sm:$0xff] }
 0x532   : > { %9633 = vmatprep.mubr.bf16.mxu1 %v6590_v28  ;;  %v6586_v28 = vld [vmem:[#allocation2 + $0x12a] sm:$0xff] }
 0x533   : > { %v6606_v44 = vpack.c.bf16 %v6587_v18, %v6586_v28 }
 0x535   : > { %9770 = vmatmul.mubr.bf16.gmra.mrb[68].mxu0 %v7357_v12  ;;  %v6896_v12 = vld [vmem:[#allocation2 + $0x7b] sm:$0xff] }
 0x536   : > { %v6927_v46 = vpack.c.bf16 %v6897_v36, %v6896_v12 }
 0x539   : > { %9634 = vmatmul.mubr.bf16.vlgmr.msra.gmra.mrb[20].mxu1 %v6591_v39  ;;  %v6888_v39 = vld [vmem:[#allocation2 + $0x3b] sm:$0xff] }
 0x53a   : > { %9637 = vmatprep.mubr.bf16.mxu1 %v6592_v4  ;;  %9670 = vmatpush3.bf16.msra.mxu1 %v13126_v53  ;;  %v6567_v53 = vld [vmem:[#allocation2 + $0x92] sm:$0xff]  ;;  %v6923_v4 = vpack.c.bf16 %v6889_v57, %v6888_v39 }
 0x53b   : > { %9671 = vmatprep.subr.bf16.mxu1 %v10620_v49  ;;  %v6596_v16 = vpack.c.bf16 %v6567_v53, %v6566_v2 }
 0x53e   : > { %9672 = vmatpush3.bf16.msra.mxu1 %v10620_v49  ;;  %v6891_v49 = vld [vmem:[#allocation2 + $0x53] sm:$0xff] }
 0x53f   : > { %9673 = vmatprep.subr.bf16.mxu1 %v10622_v45  ;;  %v6924_v7 = vpack.c.bf16 %v6891_v49, %v6890_v51 }
 0x541   : > { %9638 = vmatmul.mubr.bf16.gmra.mrb[24].mxu1 %v6593_v35  ;;  %v6899_v35 = vld [vmem:[#allocation2 + $0x93] sm:$0xff] }
 0x542   : > { %9641 = vmatprep.mubr.bf16.mxu1 %v6594_v40  ;;  %9674 = vmatpush3.bf16.msra.mxu1 %v10622_v45  ;;  %v6893_v45 = vld [vmem:[#allocation2 + $0x63] sm:$0xff] }
 0x543   : > { %9675 = vmatprep.subr.bf16.mxu1 %v10624_v1  ;;  %v6925_v19 = vpack.c.bf16 %v6893_v45, %v6892_v33 }
 0x546   : > { %9676 = vmatpush3.bf16.msra.mxu1 %v10624_v1  ;;  %v6898_v1 = vld [vmem:[#allocation2 + $0x8b] sm:$0xff] }
 0x547   : > { %9677 = vmatprep.subr.bf16.mxu1 %v10626_v61  ;;  %v6928_v40 = vpack.c.bf16 %v6899_v35, %v6898_v1 }
 0x549   : > { %9642 = vmatmul.mubr.bf16.gmra.mrb[28].mxu1 %v6595_v47  ;;  %v6902_v47 = vld [vmem:[#allocation2 + $0xab] sm:$0xff] }
 0x54a   : > { %9645 = vmatprep.mubr.bf16.mxu1 %v6596_v16  ;;  %9678 = vmatpush3.bf16.msra.mxu1 %v10626_v61  ;;  %v6900_v61 = vld [vmem:[#allocation2 + $0x9b] sm:$0xff]  ;;  %v6930_v2 = vpack.c.bf16 %v6903_v10, %v6902_v47  ;;  %v6905_v16 = vld [vmem:[#allocation2 + $0xc3] sm:$0xff] }
 0x54b   : > { %9679 = vmatprep.subr.bf16.mxu1 %v10628_v14  ;;  %v6929_v53 = vpack.c.bf16 %v6901_v0, %v6900_v61 }
 0x54e   : > { %9680 = vmatpush3.bf16.msra.mxu1 %v10628_v14  ;;  %v6904_v14 = vld [vmem:[#allocation2 + $0xbb] sm:$0xff] }
 0x54f   : > { %9681 = vmatprep.subr.bf16.mxu1 %v10630_v62  ;;  %v6931_v11 = vpack.c.bf16 %v6905_v16, %v6904_v14  ;;  %v13253_v16 = vld [vmem:[%s13540_s9] ss:$0 sm:$0xff] }
 0x551   : > { %9646 = vmatmul.mubr.bf16.gmra.mrb[32].mxu1 %v6597_v13  ;;  %v6908_v13 = vld [vmem:[#allocation2 + $0xdb] sm:$0xff] }
 0x552   : > { %9649 = vmatprep.mubr.bf16.mxu1 %v6598_v34  ;;  %9682 = vmatpush3.bf16.msra.mxu1 %v10630_v62  ;;  %v6907_v62 = vld [vmem:[#allocation2 + $0xd3] sm:$0xff]  ;;  %v6933_v34 = vpack.c.bf16 %v6909_v43, %v6908_v13 }
 0x553   : > { %9683 = vmatprep.subr.bf16.mxu1 %v10632_v58  ;;  %v6932_v54 = vpack.c.bf16 %v6907_v62, %v6906_v60 }
 0x556   : > { %9684 = vmatpush3.bf16.msra.mxu1 %v10632_v58  ;;  %v6911_v58 = vld [vmem:[#allocation2 + $0xf3] sm:$0xff] }
 0x557   : > { %v6934_v9 = vpack.c.bf16 %v6911_v58, %v6910_v3 }
 0x559   : > { %9650 = vmatmul.mubr.bf16.gmra.mrb[36].mxu1 %v6599_v41  ;;  %v6913_v41 = vld [vmem:[#allocation2 + $0x103] sm:$0xff] }
 0x55a   : > { %9653 = vmatprep.mubr.bf16.mxu1 %v6600_v31  ;;  %v6935_v31 = vpack.c.bf16 %v6913_v41, %v6912_v22 }
 0x561   : > { %9654 = vmatmul.mubr.bf16.gmra.mrb[40].mxu1 %v6601_v37  ;;  %v6917_v37 = vld [vmem:[#allocation2 + $0x123] sm:$0xff] }
 0x562   : > { %9657 = vmatprep.mubr.bf16.mxu1 %v6602_v6  ;;  %v6919_v6 = vld [vmem:[#allocation2 + $0x133] sm:$0xff]  ;;  %v6937_v26 = vpack.c.bf16 %v6917_v37, %v6916_v59 }
 0x563   : > { %v6938_v30 = vpack.c.bf16 %v6919_v6, %v6918_v25 }
 0x569   : > { %9658 = vmatmul.mubr.bf16.gmra.mrb[44].mxu1 %v6603_v32  ;;  %v6921_v32 = vld [vmem:[#allocation2 + $0x143] sm:$0xff] }
 0x56a   : > { %9661 = vmatprep.mubr.bf16.mxu1 %v6604_v55  ;;  %v6939_v20 = vpack.c.bf16 %v6921_v32, %v6920_v15 }
 0x571   : > { %9662 = vmatmul.mubr.bf16.gmra.mrb[48].mxu1 %v6605_v50 }
 0x572   : > { %9665 = vmatprep.mubr.bf16.mxu1 %v6606_v44 }
 0x579   : > { %9666 = vmatmul.mubr.bf16.gmra.mrb[52].mxu1 %v6607_v38 }
 0x57a   : > { %9685 = vmatprep.mubr.bf16.mxu1 %v6922_v52 }
 0x581   : > { %9686 = vmatmul.mubr.bf16.vlgmr.msra.gmra.mrb[20].mxu1 %v6923_v4 }
 0x582   : > { %9689 = vmatprep.mubr.bf16.mxu1 %v6924_v7 }
 0x589   : > { %9690 = vmatmul.mubr.bf16.gmra.mrb[24].mxu1 %v6925_v19 }
 0x58a   : > { %9693 = vmatprep.mubr.bf16.mxu1 %v6926_v56 }
 0x591   : > { %9694 = vmatmul.mubr.bf16.gmra.mrb[28].mxu1 %v6927_v46 }
 0x592   : > { %9697 = vmatprep.mubr.bf16.mxu1 %v6928_v40 }
 0x599   : > { %9698 = vmatmul.mubr.bf16.gmra.mrb[32].mxu1 %v6929_v53 }
 0x59a   : > { %9701 = vmatprep.mubr.bf16.mxu1 %v6930_v2  ;;  %v13247_v2 = vld [vmem:[%s13539_s8] ss:$0 sm:$0xff] }
 0x5a1   : > { %9702 = vmatmul.mubr.bf16.gmra.mrb[36].mxu1 %v6931_v11  ;;  %v13259_v11 = vld [vmem:[%s13536_s5] ss:$0 sm:$0xff] }
 0x5a2   : > { %9705 = vmatprep.mubr.bf16.mxu1 %v6932_v54  ;;  %v13265_v54 = vld [vmem:[%s13537_s6] ss:$0 sm:$0xff] }
 0x5a9   : > { %9706 = vmatmul.mubr.bf16.gmra.mrb[40].mxu1 %v6933_v34 }
 0x5aa   : > { %9709 = vmatprep.mubr.bf16.mxu1 %v6934_v9 }
 0x5b1   : > { %9710 = vmatmul.mubr.bf16.gmra.mrb[44].mxu1 %v6935_v31 }
 0x5b2   : > { %9713 = vmatprep.mubr.bf16.mxu1 %v6936_v17 }
 0x5b9   : > { %9714 = vmatmul.mubr.bf16.gmra.mrb[48].mxu1 %v6937_v26 }
 0x5ba   : > { %9717 = vmatprep.mubr.bf16.mxu1 %v6938_v30 }
 0x5c1   : > { %9718 = vmatmul.mubr.bf16.gmra.mrb[52].mxu1 %v6939_v20 }
 0x5c8   : > { %v9739_v55 = vpop.f32.mrb[36].mxu0 }
 0x5c9   : > { %v7456_v24 = vpop.f32.mrb[37].mxu0  ;;  %v7608_v14 = vmul.f32 %v9739_v55, %v13247_v2 }
 0x5ca   : > { %v9740_v29 = vpop.f32.mrb[38].mxu0  ;;  %v7606_v62 = vmul.f32 %v13247_v2, %v7456_v24 }
 0x5cb   : > { %v7459_v28 = vpop.f32.mrb[39].mxu0  ;;  %v7651_v13 = vadd.f32 %v13253_v16, %v7608_v14  ;;  %v7609_v58 = vmul.f32 %v9740_v29, %v13247_v2 }
 0x5cc   : > { %v7649_v3 = vadd.f32 %v13253_v16, %v7606_v62  ;;  %v7607_v22 = vmul.f32 %v13247_v2, %v7459_v28 }
 0x5cd   : > { %v7652_v25 = vadd.f32 %v13253_v16, %v7609_v58 }
 0x5ce   : > { %v7650_v15 = vadd.f32 %v13253_v16, %v7607_v22 }
 0x5d0   : > { %v9743_v18 = vpop.f32.mrb[40].mxu0 }
 0x5d1   : > { %v7472_v50 = vpop.f32.mrb[41].mxu0  ;;  %v7612_v26 = vmul.f32 %v9743_v18, %v13247_v2 }
 0x5d2   : > { %v13184_v44 = vpop.f32.mrb[42].mxu0  ;;  %v7610_v20 = vmul.f32 %v13247_v2, %v7472_v50 }
 0x5d3   : > { %v13186_v27 = vpop.f32.mrb[43].mxu0  ;;  %v7655_v62 = vadd.f32 %v13253_v16, %v7612_v26  ;;  %v7613_v50 = vmul.f32 %v13184_v44, %v13247_v2 }
 0x5d4   : > { %v7653_v58 = vadd.f32 %v13253_v16, %v7610_v20 }
 0x5d8   : > { %v13188_v21 = vpop.f32.mrb[44].mxu0 }
 0x5d9   : > { %v13190_v38 = vpop.f32.mrb[45].mxu0 }
 0x5da   : > { %v13192_v5 = vpop.f32.mrb[46].mxu0  ;;  %v7614_v26 = vmul.f32 %v13247_v2, %v13190_v38 }
 0x5db   : > { %v13194_v23 = vpop.f32.mrb[47].mxu0 }
 0x5dc   : > { %v7657_v38 = vadd.f32 %v13253_v16, %v7614_v26 }
 0x5e0   : > { %v13196_v52 = vpop.f32.mrb[48].mxu0 }
 0x5e1   : > { %v13198_v39 = vpop.f32.mrb[49].mxu0 }
 0x5e2   : > { %v13200_v57 = vpop.f32.mrb[50].mxu0 }
 0x5e3   : > { %v13202_v49 = vpop.f32.mrb[51].mxu0  ;;  %v7621_v26 = vmul.f32 %v13200_v57, %v13247_v2 }
 0x5e8   : > { %v13204_v4 = vpop.f32.mrb[52].mxu0 }
 0x5e9   : > { %v13206_v51 = vpop.f32.mrb[53].mxu0 }
 0x5ea   : > { %v13208_v7 = vpop.f32.mrb[54].mxu0 }
 0x5eb   : > { %v13210_v33 = vpop.f32.mrb[55].mxu0 }
 0x5f0   : > { %v13212_v45 = vpop.f32.mrb[56].mxu0 }
 0x5f1   : > { %v13214_v48 = vpop.f32.mrb[57].mxu0 }
 0x5f2   : > { %v13216_v19 = vpop.f32.mrb[58].mxu0 }
 0x5f3   : > { %v13218_v8 = vpop.f32.mrb[59].mxu0 }
 0x5f8   : > { %v13220_v56 = vpop.f32.mrb[60].mxu0 }
 0x5f9   : > { %v13222_v12 = vpop.f32.mrb[61].mxu0 }
 0x5fa   : > { %v13224_v36 = vpop.f32.mrb[62].mxu0 }
 0x5fb   : > { %v13226_v35 = vpop.f32.mrb[63].mxu0 }
 0x600   : > { %v13228_v46 = vpop.f32.mrb[64].mxu0 }
 0x601   : > { %v13230_v1 = vpop.f32.mrb[65].mxu0 }
 0x602   : > { %v13232_v40 = vpop.f32.mrb[66].mxu0 }
 0x603   : > { %v13234_v61 = vpop.f32.mrb[67].mxu0 }
 0x608   : > { %v13236_v0 = vpop.f32.mrb[68].mxu0 }
 0x609   : > { %v13238_v10 = vpop.f32.mrb[69].mxu0 }
 0x60a   : > { %v13240_v53 = vpop.f32.mrb[70].mxu0 }
 0x60b   : > { %v13242_v47 = vpop.f32.mrb[71].mxu0 }
 0x654   : > { %v9687_v60 = vpop.f32.mrb[20].mxu1 }
 0x655   : > { %v7227_v43 = vmul.f32 %v9687_v60, %v13259_v11  ;;  %v7039_v34 = vpop.f32.mrb[21].mxu1 }
 0x656   : > { %v7225_v9 = vmul.f32 %v13259_v11, %v7039_v34  ;;  %v9688_v41 = vpop.f32.mrb[22].mxu1 }
 0x657   : > { %v7270_v42 = vadd.f32 %v13265_v54, %v7227_v43  ;;  %v7228_v31 = vmul.f32 %v9688_v41, %v13259_v11  ;;  %v7042_v63 = vpop.f32.mrb[23].mxu1 }
 0x658   : > { %v7268_v17 = vadd.f32 %v13265_v54, %v7225_v9  ;;  %v7226_v59 = vmul.f32 %v13259_v11, %v7042_v63 }
 0x659   : > { %v7687_v37 = vadd.f32 %v7651_v13, %v7270_v42  ;;  %v7271_v6 = vadd.f32 %v13265_v54, %v7228_v31 }
 0x65a   : > { %v7685_v30 = vadd.f32 %v7649_v3, %v7268_v17  ;;  %v7269_v32 = vadd.f32 %v13265_v54, %v7226_v59  ;;  %v7611_v3 = vmul.f32 %v13247_v2, %v13186_v27  ;;  %v7656_v17 = vadd.f32 %v13253_v16, %v7613_v50 }
 0x65b   : > { %v7723_v55 = vmax.f32 %v7687_v37, 0.0  ;;  %v7688_v24 = vadd.f32 %v7652_v25, %v7271_v6  ;;  %v7616_v27 = vmul.f32 %v13188_v21, %v13247_v2 }
 0x65c   : > { %v7721_v29 = vmax.f32 %v7685_v30, 0.0  ;;  %v7686_v28 = vadd.f32 %v7650_v15, %v7269_v32  ;;  %v9691_v14 = vpop.f32.mrb[24].mxu1  ;;  %v7654_v25 = vadd.f32 %v13253_v16, %v7611_v3 }
 0x65d   : > { %7759 = vst [vmem:[%s13285_s29 + $0x10] sm:$0xff] %v7723_v55  ;;  %v7724_v18 = vmax.f32 %v7688_v24, 0.0  ;;  %v7231_v60 = vmul.f32 %v9691_v14, %v13259_v11  ;;  %v7055_v13 = vpop.f32.mrb[25].mxu1  ;;  %v7659_v21 = vadd.f32 %v13253_v16, %v7616_v27 }
 0x65e   : > { %7757 = vst [vmem:[%s13285_s29] sm:$0xff] %v7721_v29  ;;  %v7722_v43 = vmax.f32 %v7686_v28, 0.0  ;;  %v7229_v34 = vmul.f32 %v13259_v11, %v7055_v13  ;;  %v9692_v9 = vpop.f32.mrb[26].mxu1  ;;  %v7617_v28 = vmul.f32 %v13192_v5, %v13247_v2 }
 0x65f   : > { %7760 = vst [vmem:[%s13285_s29 + $0x18] sm:$0xff] %v7724_v18  ;;  %v7274_v22 = vadd.f32 %v13265_v54, %v7231_v60  ;;  %v7232_v41 = vmul.f32 %v9692_v9, %v13259_v11  ;;  %v7058_v42 = vpop.f32.mrb[27].mxu1  ;;  %v7615_v60 = vmul.f32 %v13247_v2, %v13194_v23  ;;  %v7620_v23 = vmul.f32 %v13196_v52, %v13247_v2 }
 0x660   : > { %7758 = vst [vmem:[%s13285_s29 + $0x8] sm:$0xff] %v7722_v43  ;;  %v7272_v44 = vadd.f32 %v13265_v54, %v7229_v34  ;;  %v7230_v31 = vmul.f32 %v13259_v11, %v7058_v42  ;;  %v7660_v9 = vadd.f32 %v13253_v16, %v7617_v28 }
 0x661   : > { %v7691_v63 = vadd.f32 %v7655_v62, %v7274_v22  ;;  %v7275_v59 = vadd.f32 %v13265_v54, %v7232_v41  ;;  %v7658_v42 = vadd.f32 %v13253_v16, %v7615_v60  ;;  %v7663_v52 = vadd.f32 %v13253_v16, %v7620_v23 }
 0x662   : > { %v7689_v37 = vadd.f32 %v7653_v58, %v7272_v44  ;;  %v7273_v6 = vadd.f32 %v13265_v54, %v7230_v31  ;;  %v7618_v31 = vmul.f32 %v13247_v2, %v13198_v39  ;;  %v7625_v23 = vmul.f32 %v13208_v7, %v13247_v2 }
 0x663   : > { %v7727_v30 = vmax.f32 %v7691_v63, 0.0  ;;  %v7692_v15 = vadd.f32 %v7656_v17, %v7275_v59 }
 0x664   : > { %v7725_v32 = vmax.f32 %v7689_v37, 0.0  ;;  %v7690_v20 = vadd.f32 %v7654_v25, %v7273_v6  ;;  %v9695_v55 = vpop.f32.mrb[28].mxu1  ;;  %v7661_v39 = vadd.f32 %v13253_v16, %v7618_v31  ;;  %v7623_v31 = vmul.f32 %v13247_v2, %v13210_v33 }
 0x665   : > { %7763 = vst [vmem:[%s13285_s29 + $0x30] sm:$0xff] %v7727_v30  ;;  %v7728_v24 = vmax.f32 %v7692_v15, 0.0  ;;  %v7235_v29 = vmul.f32 %v9695_v55, %v13259_v11  ;;  %v7071_v14 = vpop.f32.mrb[29].mxu1  ;;  %v7628_v33 = vmul.f32 %v13212_v45, %v13247_v2 }
 0x666   : > { %7761 = vst [vmem:[%s13285_s29 + $0x20] sm:$0xff] %v7725_v32  ;;  %v7726_v18 = vmax.f32 %v7690_v20, 0.0  ;;  %v7233_v62 = vmul.f32 %v13259_v11, %v7071_v14  ;;  %v9696_v50 = vpop.f32.mrb[30].mxu1  ;;  %v7619_v20 = vmul.f32 %v13247_v2, %v13202_v49  ;;  %v7624_v49 = vmul.f32 %v13204_v4, %v13247_v2 }
 0x667   : > { %7764 = vst [vmem:[%s13285_s29 + $0x38] sm:$0xff] %v7728_v24  ;;  %v7278_v13 = vadd.f32 %v13265_v54, %v7235_v29  ;;  %v7236_v43 = vmul.f32 %v9696_v50, %v13259_v11  ;;  %v7074_v58 = vpop.f32.mrb[31].mxu1  ;;  %v7671_v45 = vadd.f32 %v13253_v16, %v7628_v33 }
 0x668   : > { %7762 = vst [vmem:[%s13285_s29 + $0x28] sm:$0xff] %v7726_v18  ;;  %v7276_v5 = vadd.f32 %v13265_v54, %v7233_v62  ;;  %v7234_v34 = vmul.f32 %v13259_v11, %v7074_v58  ;;  %v7664_v18 = vadd.f32 %v13253_v16, %v7621_v26  ;;  %v7662_v60 = vadd.f32 %v13253_v16, %v7619_v20 }
 0x669   : > { %v7695_v3 = vadd.f32 %v7659_v21, %v7278_v13  ;;  %v7279_v22 = vadd.f32 %v13265_v54, %v7236_v43  ;;  %v7622_v13 = vmul.f32 %v13247_v2, %v13206_v51  ;;  %v7667_v4 = vadd.f32 %v13253_v16, %v7624_v49 }
 0x66a   : > { %v7693_v41 = vadd.f32 %v7657_v38, %v7276_v5  ;;  %v7277_v44 = vadd.f32 %v13265_v54, %v7234_v34  ;;  %v7627_v49 = vmul.f32 %v13247_v2, %v13218_v8  ;;  %v7632_v8 = vmul.f32 %v13220_v56, %v13247_v2 }
 0x66b   : > { %v7731_v63 = vmax.f32 %v7695_v3, 0.0  ;;  %v7696_v17 = vadd.f32 %v7660_v9, %v7279_v22  ;;  %v7665_v51 = vadd.f32 %v13253_v16, %v7622_v13 }
 0x66c   : > { %v7729_v59 = vmax.f32 %v7693_v41, 0.0  ;;  %v7694_v27 = vadd.f32 %v7658_v42, %v7277_v44  ;;  %v9699_v37 = vpop.f32.mrb[32].mxu1  ;;  %v7675_v56 = vadd.f32 %v13253_v16, %v7632_v8 }
 0x66d   : > { %7767 = vst [vmem:[%s13285_s29 + $0x50] sm:$0xff] %v7731_v63  ;;  %v7732_v25 = vmax.f32 %v7696_v17, 0.0  ;;  %v7239_v6 = vmul.f32 %v9699_v37, %v13259_v11  ;;  %v7087_v30 = vpop.f32.mrb[33].mxu1 }
 0x66e   : > { %7765 = vst [vmem:[%s13285_s29 + $0x40] sm:$0xff] %v7729_v59  ;;  %v7730_v15 = vmax.f32 %v7694_v27, 0.0  ;;  %v7237_v32 = vmul.f32 %v13259_v11, %v7087_v30  ;;  %v9700_v55 = vpop.f32.mrb[34].mxu1  ;;  %v7666_v30 = vadd.f32 %v13253_v16, %v7623_v31 }
 0x66f   : > { %7768 = vst [vmem:[%s13285_s29 + $0x58] sm:$0xff] %v7732_v25  ;;  %v7282_v24 = vadd.f32 %v13265_v54, %v7239_v6  ;;  %v7240_v21 = vmul.f32 %v9700_v55, %v13259_v11  ;;  %v7090_v29 = vpop.f32.mrb[35].mxu1 }
 0x670   : > { %7766 = vst [vmem:[%s13285_s29 + $0x48] sm:$0xff] %v7730_v15  ;;  %v7280_v57 = vadd.f32 %v13265_v54, %v7237_v32  ;;  %v7238_v28 = vmul.f32 %v13259_v11, %v7090_v29 }
 0x671   : > { %v7699_v14 = vadd.f32 %v7663_v52, %v7282_v24  ;;  %v7283_v38 = vadd.f32 %v13265_v54, %v7240_v21  ;;  %v7668_v52 = vadd.f32 %v13253_v16, %v7625_v23 }
 0x672   : > { %v7697_v62 = vadd.f32 %v7661_v39, %v7280_v57  ;;  %v7281_v50 = vadd.f32 %v13265_v54, %v7238_v28  ;;  %v7626_v39 = vmul.f32 %v13247_v2, %v13214_v48  ;;  %v7629_v28 = vmul.f32 %v13216_v19, %v13247_v2 }
 0x673   : > { %v7735_v43 = vmax.f32 %v7699_v14, 0.0  ;;  %v7700_v58 = vadd.f32 %v7664_v18, %v7283_v38 }
 0x674   : > { %v7733_v5 = vmax.f32 %v7697_v62, 0.0  ;;  %v7698_v34 = vadd.f32 %v7662_v60, %v7281_v50  ;;  %v9703_v3 = vpop.f32.mrb[36].mxu1  ;;  %v7669_v48 = vadd.f32 %v13253_v16, %v7626_v39 }
 0x675   : > { %7771 = vst [vmem:[%s13285_s29 + $0x70] sm:$0xff] %v7735_v43  ;;  %v7736_v9 = vmax.f32 %v7700_v58, 0.0  ;;  %v7243_v22 = vmul.f32 %v9703_v3, %v13259_v11  ;;  %v7103_v41 = vpop.f32.mrb[37].mxu1 }
 0x676   : > { %7769 = vst [vmem:[%s13285_s29 + $0x60] sm:$0xff] %v7733_v5  ;;  %v7734_v42 = vmax.f32 %v7698_v34, 0.0  ;;  %v7241_v44 = vmul.f32 %v13259_v11, %v7103_v41  ;;  %v9704_v63 = vpop.f32.mrb[38].mxu1  ;;  %v7672_v5 = vadd.f32 %v13253_v16, %v7629_v28 }
 0x677   : > { %7772 = vst [vmem:[%s13285_s29 + $0x78] sm:$0xff] %v7736_v9  ;;  %v7286_v17 = vadd.f32 %v13265_v54, %v7243_v22  ;;  %v7244_v59 = vmul.f32 %v9704_v63, %v13259_v11  ;;  %v7106_v27 = vpop.f32.mrb[39].mxu1  ;;  %v7670_v9 = vadd.f32 %v13253_v16, %v7627_v49  ;;  %v7630_v22 = vmul.f32 %v13247_v2, %v13222_v12 }
 0x678   : > { %7770 = vst [vmem:[%s13285_s29 + $0x68] sm:$0xff] %v7734_v42  ;;  %v7284_v7 = vadd.f32 %v13265_v54, %v7241_v44  ;;  %v7242_v37 = vmul.f32 %v13259_v11, %v7106_v27 }
 0x679   : > { %v7703_v25 = vadd.f32 %v7667_v4, %v7286_v17  ;;  %v7287_v6 = vadd.f32 %v13265_v54, %v7244_v59  ;;  %v7633_v17 = vmul.f32 %v13224_v36, %v13247_v2  ;;  %v7673_v12 = vadd.f32 %v13253_v16, %v7630_v22 }
 0x67a   : > { %v7701_v26 = vadd.f32 %v7665_v51, %v7284_v7  ;;  %v7285_v15 = vadd.f32 %v13265_v54, %v7242_v37  ;;  %v7631_v37 = vmul.f32 %v13247_v2, %v13226_v35  ;;  %v7636_v35 = vmul.f32 %v13228_v46, %v13247_v2 }
 0x67b   : > { %v7739_v32 = vmax.f32 %v7703_v25, 0.0  ;;  %v7704_v20 = vadd.f32 %v7668_v52, %v7287_v6  ;;  %v7638_v22 = vmul.f32 %v13247_v2, %v13238_v10 }
 0x67c   : > { %v7737_v55 = vmax.f32 %v7701_v26, 0.0  ;;  %v7702_v24 = vadd.f32 %v7666_v30, %v7285_v15  ;;  %v9707_v21 = vpop.f32.mrb[40].mxu1  ;;  %v7676_v15 = vadd.f32 %v13253_v16, %v7633_v17  ;;  %v7679_v46 = vadd.f32 %v13253_v16, %v7636_v35 }
 0x67d   : > { %7775 = vst [vmem:[%s13285_s29 + $0x90] sm:$0xff] %v7739_v32  ;;  %v7740_v29 = vmax.f32 %v7704_v20, 0.0  ;;  %v7247_v57 = vmul.f32 %v9707_v21, %v13259_v11  ;;  %v7119_v14 = vpop.f32.mrb[41].mxu1  ;;  %v7674_v20 = vadd.f32 %v13253_v16, %v7631_v37 }
 0x67e   : > { %7773 = vst [vmem:[%s13285_s29 + $0x80] sm:$0xff] %v7737_v55  ;;  %v7738_v18 = vmax.f32 %v7702_v24, 0.0  ;;  %v7245_v38 = vmul.f32 %v13259_v11, %v7119_v14  ;;  %v9708_v62 = vpop.f32.mrb[42].mxu1  ;;  %v7634_v24 = vmul.f32 %v13247_v2, %v13230_v1 }
 0x67f   : > { %7776 = vst [vmem:[%s13285_s29 + $0x98] sm:$0xff] %v7740_v29  ;;  %v7290_v60 = vadd.f32 %v13265_v54, %v7247_v57  ;;  %v7248_v50 = vmul.f32 %v9708_v62, %v13259_v11  ;;  %v7122_v13 = vpop.f32.mrb[43].mxu1 }
 0x680   : > { %7774 = vst [vmem:[%s13285_s29 + $0x88] sm:$0xff] %v7738_v18  ;;  %v7288_v19 = vadd.f32 %v13265_v54, %v7245_v38  ;;  %v7246_v43 = vmul.f32 %v13259_v11, %v7122_v13  ;;  %v7677_v1 = vadd.f32 %v13253_v16, %v7634_v24 }
 0x681   : > { %v7707_v58 = vadd.f32 %v7671_v45, %v7290_v60  ;;  %v7291_v34 = vadd.f32 %v13265_v54, %v7248_v50  ;;  %v7635_v60 = vmul.f32 %v13247_v2, %v13234_v61  ;;  %v7640_v61 = vmul.f32 %v13236_v0, %v13247_v2 }
 0x682   : > { %v7705_v3 = vadd.f32 %v7669_v48, %v7288_v19  ;;  %v7289_v4 = vadd.f32 %v13265_v54, %v7246_v43  ;;  %v7637_v48 = vmul.f32 %v13232_v40, %v13247_v2 }
 0x683   : > { %v7743_v23 = vmax.f32 %v7707_v58, 0.0  ;;  %v7708_v41 = vadd.f32 %v7672_v5, %v7291_v34  ;;  %v7683_v0 = vadd.f32 %v13253_v16, %v7640_v61 }
 0x684   : > { %v7741_v42 = vmax.f32 %v7705_v3, 0.0  ;;  %v7706_v51 = vadd.f32 %v7670_v9, %v7289_v4  ;;  %v9711_v44 = vpop.f32.mrb[44].mxu1  ;;  %v7680_v34 = vadd.f32 %v13253_v16, %v7637_v48  ;;  %v7678_v9 = vadd.f32 %v13253_v16, %v7635_v60 }
 0x685   : > { %7779 = vst [vmem:[%s13285_s29 + $0xb0] sm:$0xff] %v7743_v23  ;;  %v7744_v31 = vmax.f32 %v7708_v41, 0.0  ;;  %v7251_v63 = vmul.f32 %v9711_v44, %v13259_v11  ;;  %v7135_v59 = vpop.f32.mrb[45].mxu1 }
 0x686   : > { %7777 = vst [vmem:[%s13285_s29 + $0xa0] sm:$0xff] %v7741_v42  ;;  %v7742_v27 = vmax.f32 %v7706_v51, 0.0  ;;  %v7249_v7 = vmul.f32 %v13259_v11, %v7135_v59  ;;  %v9712_v25 = vpop.f32.mrb[46].mxu1  ;;  %v7681_v59 = vadd.f32 %v13253_v16, %v7638_v22 }
 0x687   : > { %7780 = vst [vmem:[%s13285_s29 + $0xb8] sm:$0xff] %v7744_v31  ;;  %v7294_v52 = vadd.f32 %v13265_v54, %v7251_v63  ;;  %v7252_v6 = vmul.f32 %v9712_v25, %v13259_v11  ;;  %v7138_v33 = vpop.f32.mrb[47].mxu1  ;;  %v7641_v63 = vmul.f32 %v13240_v53, %v13247_v2 }
 0x688   : > { %7778 = vst [vmem:[%s13285_s29 + $0xa8] sm:$0xff] %v7742_v27  ;;  %v7292_v36 = vadd.f32 %v13265_v54, %v7249_v7  ;;  %v7250_v26 = vmul.f32 %v13259_v11, %v7138_v33 }
 0x689   : > { %v7711_v30 = vadd.f32 %v7675_v56, %v7294_v52  ;;  %v7295_v39 = vadd.f32 %v13265_v54, %v7252_v6 }
 0x68a   : > { %v7709_v32 = vadd.f32 %v7673_v12, %v7292_v36  ;;  %v7293_v55 = vadd.f32 %v13265_v54, %v7250_v26  ;;  %v7639_v12 = vmul.f32 %v13247_v2, %v13242_v47  ;;  %v7684_v36 = vadd.f32 %v13253_v16, %v7641_v63 }
 0x68b   : > { %v7747_v21 = vmax.f32 %v7711_v30, 0.0  ;;  %v7712_v29 = vadd.f32 %v7676_v15, %v7295_v39 }
 0x68c   : > { %v7745_v45 = vmax.f32 %v7709_v32, 0.0  ;;  %v7710_v57 = vadd.f32 %v7674_v20, %v7293_v55  ;;  %v9715_v28 = vpop.f32.mrb[48].mxu1  ;;  %v7682_v26 = vadd.f32 %v13253_v16, %v7639_v12 }
 0x68d   : > { %7783 = vst [vmem:[%s13285_s29 + $0xd0] sm:$0xff] %v7747_v21  ;;  %v7748_v14 = vmax.f32 %v7712_v29, 0.0  ;;  %v7255_v18 = vmul.f32 %v9715_v28, %v13259_v11  ;;  %v7151_v38 = vpop.f32.mrb[49].mxu1 }
 0x68e   : > { %7781 = vst [vmem:[%s13285_s29 + $0xc0] sm:$0xff] %v7745_v45  ;;  %v7746_v49 = vmax.f32 %v7710_v57, 0.0  ;;  %v7253_v62 = vmul.f32 %v13259_v11, %v7151_v38  ;;  %v9716_v50 = vpop.f32.mrb[50].mxu1 }
 0x68f   : > { %7784 = vst [vmem:[%s13285_s29 + $0xd8] sm:$0xff] %v7748_v14  ;;  %v7298_v13 = vadd.f32 %v13265_v54, %v7255_v18  ;;  %v7256_v19 = vmul.f32 %v9716_v50, %v13259_v11  ;;  %v7154_v43 = vpop.f32.mrb[51].mxu1 }
 0x690   : > { %7782 = vst [vmem:[%s13285_s29 + $0xc8] sm:$0xff] %v7746_v49  ;;  %v7296_v40 = vadd.f32 %v13265_v54, %v7253_v62  ;;  %v7254_v58 = vmul.f32 %v13259_v11, %v7154_v43 }
 0x691   : > { %v7715_v5 = vadd.f32 %v7679_v46, %v7298_v13  ;;  %v7299_v8 = vadd.f32 %v13265_v54, %v7256_v19 }
 0x692   : > { %v7713_v3 = vadd.f32 %v7677_v1, %v7296_v40  ;;  %v7297_v4 = vadd.f32 %v13265_v54, %v7254_v58 }
 0x693   : > { %v7751_v23 = vmax.f32 %v7715_v5, 0.0  ;;  %v7716_v41 = vadd.f32 %v7680_v34, %v7299_v8 }
 0x694   : > { %v7749_v42 = vmax.f32 %v7713_v3, 0.0  ;;  %v7714_v51 = vadd.f32 %v7678_v9, %v7297_v4  ;;  %v9719_v44 = vpop.f32.mrb[52].mxu1 }
 0x695   : > { %7787 = vst [vmem:[%s13285_s29 + $0xf0] sm:$0xff] %v7751_v23  ;;  %v7752_v31 = vmax.f32 %v7716_v41, 0.0  ;;  %v7259_v56 = vmul.f32 %v9719_v44, %v13259_v11  ;;  %v7167_v17 = vpop.f32.mrb[53].mxu1 }
 0x696   : > { %7785 = vst [vmem:[%s13285_s29 + $0xe0] sm:$0xff] %v7749_v42  ;;  %v7750_v10 = vmax.f32 %v7714_v51, 0.0  ;;  %v7257_v27 = vmul.f32 %v13259_v11, %v7167_v17  ;;  %v9720_v7 = vpop.f32.mrb[54].mxu1 }
 0x697   : > { %7788 = vst [vmem:[%s13285_s29 + $0xf8] sm:$0xff] %v7752_v31  ;;  %v7302_v37 = vadd.f32 %v13265_v54, %v7259_v56  ;;  %v7260_v25 = vmul.f32 %v9720_v7, %v13259_v11  ;;  %v7170_v52 = vpop.f32.mrb[55].mxu1 }
 0x698   : > { %7786 = vst [vmem:[%s13285_s29 + $0xe8] sm:$0xff] %v7750_v10  ;;  %v7300_v53 = vadd.f32 %v13265_v54, %v7257_v27  ;;  %v7258_v6 = vmul.f32 %v13259_v11, %v7170_v52 }
 0x699   : > { %v7719_v33 = vadd.f32 %v7683_v0, %v7302_v37  ;;  %v7303_v47 = vadd.f32 %v13265_v54, %v7260_v25 }
 0x69a   : > { %v7717_v2 = vadd.f32 %v7681_v59, %v7300_v53  ;;  %v7301_v30 = vadd.f32 %v13265_v54, %v7258_v6 }
 0x69b   : > { %v7755_v15 = vmax.f32 %v7719_v33, 0.0  ;;  %v7720_v39 = vadd.f32 %v7684_v36, %v7303_v47 }
 0x69c   : > { %v7753_v11 = vmax.f32 %v7717_v2, 0.0  ;;  %v7718_v35 = vadd.f32 %v7682_v26, %v7301_v30 }
 0x69d   : > { %7791 = vst [vmem:[%s13285_s29 + $0x110] sm:$0xff] %v7755_v15  ;;  %v7756_v32 = vmax.f32 %v7720_v39, 0.0 }
 0x69e   : > { %7789 = vst [vmem:[%s13285_s29 + $0x100] sm:$0xff] %v7753_v11  ;;  %v7754_v20 = vmax.f32 %v7718_v35, 0.0 }
 0x69f   : > { %7792 = vst [vmem:[%s13285_s29 + $0x118] sm:$0xff] %v7756_v32 }
 0x6a0   : > { %7790 = vst [vmem:[%s13285_s29 + $0x108] sm:$0xff] %v7754_v20 }
 0x6a1   : > { %10652 = shalt.err (!%p10649_p3)
}
 0x6a2   : > { %s10653_s25 = scalar_lea.hbm %s13481_s18, 4608  ;;  %s10657_s12 = scalar_lea.hbm %s13541_s10, 9216 }
 0x6a3   : > { %p10654_p4 = scmp.ne.s32.totalorder %s13481_s18, %s10653_s25  ;;  %p10658_p9 = scmp.lt.u32.totalorder %s13481_s18, %s13541_s10 }
 0x6a4   : > { %p10659_p10 = scmp.lt.u32.totalorder %s10657_s12, %s10653_s25  ;;  %p10661_p12 = scmp.lt.u32.totalorder %s10653_s25, %s13481_s18 }
 0x6a5   : > { %p10655_p7 = pnand %p10654_p4, %p10801_p5 }
 0x6a6   : > { %p10660_p11 = por %p10659_p10, %p10658_p9 }
 0x6a7   : > { %p10656_p8 = pneg %p10655_p7 }
 0x6a8   : > { %p10662_p13 = por %p10661_p12, %p10660_p11 }
 0x6aa   : > { %p10663_p0 = pnand %p10662_p13, %p10656_p8 }
 0x6ac   : > { %10666 = shalt.err (!%p10663_p0)
}
 0x6ad   : > { %s10706_s20 = smov 128   ;;  %s10707_s27 = smov 8  }
 0x6ae   : > { %10440 = dma.vmem_to_hbm [thread:$0]  (%p10801_p5), %s13484_s11, 4608, %s13481_s18, %s13490_s17, %s10706_s20, %s10706_s20, %s10707_s27  }
 0x6af PF: > { %p10446_p1 = scmp.ge.s32.totalorder %s10701_s16, 2  ;;  %s7822_s28 = sand.u32 1, %s10689_s13  }
 0x6b0   : > { %s7823_s25 = scalar_lea.sflag [#allocation4], %s7822_s28 }
 0x6b1   : > { %p10443_p2 = pnand %p10446_p1, %p10805_p6 }
 0x6b3   : > { %10684 = dma.done.wait (!%p10443_p2), %s7823_s25, 4608  }
 0x6b4   : > { %10686 = vsyncadd (!%p10443_p2), %s7823_s25, 4294962688  ;;  %p20_p3 = scmp.ge.s32.totalorder %s10788_s19, 4   ;;  %s13727_s13 = smov %s10693_s14 }
 0x6b5   : > { %s13728_s14 = smov %s10697_s15  ;;  %s13729_s15 = smov %s10799_s22 }
 0x6b6   : > { %s13730_s16 = smov %s10788_s19  ;;  %22 = sbr.rel (!%p20_p3) target bundleno = 3 (0x3), region = 111 }
 0x6bd   :  { %7828 = vsyncpa [#allocation4], 1 }
 0x6be   :  { %7830 = vsyncpa [#allocation4 + $0x1], 1 }

// kernel: tpu_custom_call.1
= control target key start
LH: loop header
LB: loop body
LE: loop exit
PB: predicated region body
PF: predicated region fallthrough
CT: control target
= control target key end

     0   :  { %15 = vsyncpa [#allocation4], 0  ;;  %s13531_s0 = inlined_call_operand.vmem [shape: f32[2,324,128], index: 0, kind: input, shape index: {}]   ;;  %s13532_s1 = inlined_call_operand.vmem [shape: bf16[9,128,128], index: 1, kind: input, shape index: {}]   ;;  %s13533_s2 = inlined_call_operand.vmem [shape: f32[1,128], index: 2, kind: input, shape index: {}]   ;;  %s13534_s3 = inlined_call_operand.vmem [shape: f32[1,128], index: 3, kind: input, shape index: {}]   ;;  %s13535_s4 = inlined_call_operand.vmem [shape: bf16[9,128,128], index: 4, kind: input, shape index: {}]   ;;  %s13536_s5 = inlined_call_operand.vmem [shape: f32[1,128], index: 5, kind: input, shape index: {}]   ;;  %s13537_s6 = inlined_call_operand.vmem [shape: f32[1,128], index: 6, kind: input, shape index: {}]   ;;  %s13538_s7 = inlined_call_operand.vmem [shape: bf16[128,128], index: 7, kind: input, shape index: {}]   ;;  %s13539_s8 = inlined_call_operand.vmem [shape: f32[1,128], index: 8, kind: input, shape index: {}]   ;;  %s13540_s9 = inlined_call_operand.vmem [shape: f32[1,128], index: 9, kind: input, shape index: {}]   ;;  %s13541_s10 = inlined_call_operand.hbm [shape: f32[2,288,128], index: 10, kind: output, shape index: {}]  }
   0x1   :  { %17 = vsyncpa [#allocation4 + $0x1], 0  ;;  %s10763_s13 = smov 0   ;;  %s10765_s14 = smov 0  }
   0x2   :  { %s10767_s15 = smov 0   ;;  %s10769_s16 = smov 0  }
   0x3 LB: > { %s10784_s17 = sadd.s32 4294967295, %s10701_s16   ;;  %s7869_s18 = sadd.s32 4294967294, %s10701_s16   ;;  %s10701_s16 = sphi %s10769_s16, %s13730_s16   ;;  %s10697_s15 = sphi %s10767_s15, %s13729_s15   ;;  %s10693_s14 = sphi %s10765_s14, %s13728_s14   ;;  %s10689_s13 = sphi %s10763_s13, %s13727_s13  }
   0x4   : > { %s10788_s19 = sadd.s32 1, %s10701_s16   ;;  %s245_s20 = sadd.s32 1, %s10697_s15 }
   0x5   : > { %s242_s21 = ssub.s32 %s10701_s16, %s10788_s19  ;;  %p255_p0 = scmp.ne.s32.totalorder %s10697_s15, %s10693_s14 }
   0x6   : > { %p243_p1 = scmp.eq.s32.totalorder %s242_s21, 0  ;;  %p256_p2 = scmp.eq.s32.totalorder %s10784_s17, 1 }
   0x7   : > { %p261_p3 = scmp.ne.s32.totalorder %s10693_s14, %s10689_s13  ;;  %p262_p4 = scmp.eq.s32.totalorder %s7869_s18, 1 }
   0x8   : > { %s10799_s22 = scalar_select %p243_p1, %s10697_s15, %s245_s20  }
   0x9   : > { %p10801_p5 = por %p256_p2, %p255_p0  ;;  %p10805_p6 = por %p262_p4, %p261_p3 }
   0xa   : > { %p7872_p7 = scmp.ge.s32.totalorder %s10701_s16, 1  ;;  %p315_p8 = scmp.lt.s32.totalorder %s10701_s16, 3 }
   0xc   : > { %p316_p9 = pnand %p7872_p7, %p315_p8 }
   0xe   : > { %319 = sbr.rel (%p316_p9) target bundleno = 1711 (0x6af), region = 60 }
  0x15   : > { %v10482_v0 = vld [vmem:[%s13532_s1 + $0x40] sm:$0xff]   ;;  %p353_p10 = scmp.lt.s32.totalorder %s10784_s17, 1  ;;  %v10483_v1 = vld [vmem:[%s13532_s1 + $0x48] sm:$0xff]   ;;  %v10484_v2 = vld [vmem:[%s13532_s1 + $0x50] sm:$0xff]   ;;  %s350_s25 = sand.u32 1, %s10693_s14  }
  0x16   : > { %8785 = vmatprep.subr.bf16.mxu0 %v10482_v0  ;;  %9773 = vmatprep.subr.bf16.mxu1 %v10482_v0  ;;  %v10485_v3 = vld [vmem:[%s13532_s1 + $0x58] sm:$0xff]   ;;  %v10486_v7 = vld [vmem:[%s13532_s1 + $0x60] sm:$0xff]   ;;  %v10487_v8 = vld [vmem:[%s13532_s1 + $0x68] sm:$0xff]   ;;  %s10365_s28 = smul.u32 288, %s350_s25  ;;  %s10705_s26 = smov [#allocation3]  }
  0x17   : > { %s354_s29 = scalar_select %p353_p10, %s10784_s17, 1  ;;  %8786 = vmatpush3.bf16.msra.mxu0 %v10482_v0  ;;  %9781 = vmatpush3.bf16.msra.mxu1 %v10482_v0  ;;  %v10488_v9 = vld [vmem:[%s13532_s1 + $0x70] sm:$0xff]   ;;  %v10489_v10 = vld [vmem:[%s13532_s1 + $0x78] sm:$0xff]   ;;  %v10490_v13 = vld [vmem:[%s13532_s1] sm:$0xff]  }
  0x18   : > { %8787 = vmatprep.subr.bf16.mxu0 %v10483_v1  ;;  %9774 = vmatprep.subr.bf16.mxu1 %v10483_v1  ;;  %v10491_v18 = vld [vmem:[%s13532_s1 + $0x8] sm:$0xff]   ;;  %v10492_v21 = vld [vmem:[%s13532_s1 + $0x10] sm:$0xff]   ;;  %v10493_v26 = vld [vmem:[%s13532_s1 + $0x18] sm:$0xff]   ;;  %s10439_s30 = smul.u32 4608, %s10784_s17  ;;  %s13490_s17 = scalar_lea.sflag [#allocation4], %s350_s25 }
  0x19   : > { %s10366_s12 = smul.u32 328, %s354_s29  ;;  %v10494_v29 = vld [vmem:[%s13532_s1 + $0x20] sm:$0xff]   ;;  %v10495_v34 = vld [vmem:[%s13532_s1 + $0x28] sm:$0xff]   ;;  %v10496_v37 = vld [vmem:[%s13532_s1 + $0x30] sm:$0xff]   ;;  %s13285_s29 = scalar_lea.vmem [#allocation3], %s10365_s28 }
  0x1a   : > { %v10497_v42 = vld [vmem:[%s13532_s1 + $0x38] sm:$0xff]   ;;  %v10498_v45 = vld [vmem:[%s13532_s1 + $0x80] sm:$0xff]   ;;  %v10499_v49 = vld [vmem:[%s13532_s1 + $0x88] sm:$0xff]   ;;  %s7807_s11 = sshll.u32 %s13285_s29, 4  ;;  %s13481_s18 = scalar_lea.hbm %s13541_s10, %s10439_s30  ;;  %s13484_s11 = int_to_ptr.vmem [resolvable:$true] %s7807_s11 }
  0x1b   : > { %s10825_s21 = scalar_lea.vmem %s13531_s0, %s10366_s12  ;;  %8788 = vmatpush3.bf16.msra.mxu0 %v10483_v1  ;;  %9782 = vmatpush3.bf16.msra.mxu1 %v10483_v1  ;;  %v10500_v55 = vld [vmem:[%s13532_s1 + $0x90] sm:$0xff]   ;;  %v10501_v57 = vld [vmem:[%s13532_s1 + $0x98] sm:$0xff]   ;;  %v10502_v63 = vld [vmem:[%s13532_s1 + $0xa0] sm:$0xff]   ;;  %s10639_s20 = scalar_lea.vmem %s13484_s11, 4608 }
  0x1c   : > { %8789 = vmatprep.subr.bf16.mxu0 %v10484_v2  ;;  %v429_v4 = vld [vmem:[%s10825_s21 + $0x1] sm:$0xff]  ;;  %v430_v5 = vld [vmem:[%s10825_s21 + $0x9] sm:$0xff]  ;;  %9775 = vmatprep.subr.bf16.mxu1 %v10484_v2  ;;  %v431_v11 = vld [vmem:[%s10825_s21 + $0x11] sm:$0xff]  ;;  %p10640_p11 = scmp.ne.s32.totalorder %s13484_s11, %s10639_s20  ;;  %s10643_s27 = sshll.u32 %s10705_s26, 4  ;;  %s10644_s27 = int_to_ptr.vmem [resolvable:$false] %s10643_s27 }
  0x1d   : > { %v465_v6 = vpack.c.bf16 %v430_v5, %v429_v4  ;;  %v432_v12 = vld [vmem:[%s10825_s21 + $0x19] sm:$0xff]  ;;  %v433_v14 = vld [vmem:[%s10825_s21 + $0x21] sm:$0xff]  ;;  %v434_v15 = vld [vmem:[%s10825_s21 + $0x29] sm:$0xff]  ;;  %s10645_s28 = scalar_lea.vmem %s10644_s27, 9216  ;;  %p10646_p0 = scmp.lt.s32.totalorder %s13484_s11, %s10644_s27 }
  0x1e   : > { %v466_v16 = vpack.c.bf16 %v432_v12, %v431_v11  ;;  %v467_v17 = vpack.c.bf16 %v434_v15, %v433_v14  ;;  %v435_v19 = vld [vmem:[%s10825_s21 + $0x31] sm:$0xff]  ;;  %v436_v20 = vld [vmem:[%s10825_s21 + $0x39] sm:$0xff]  ;;  %v437_v22 = vld [vmem:[%s10825_s21 + $0x41] sm:$0xff]  ;;  %p10641_p12 = pnand %p10640_p11, %p10801_p5  ;;  %p10647_p1 = scmp.lt.s32.totalorder %s10645_s28, %s10639_s20 }
  0x1f   : > { %8790 = vmatpush3.bf16.msra.mxu0 %v10484_v2  ;;  %8801 = vmatprep.mubr.bf16.mxu0 %v465_v6  ;;  %v438_v23 = vld [vmem:[%s10825_s21 + $0x49] sm:$0xff]  ;;  %v468_v24 = vpack.c.bf16 %v436_v20, %v435_v19  ;;  %v439_v27 = vld [vmem:[%s10825_s21 + $0x51] sm:$0xff]  ;;  %v440_v28 = vld [vmem:[%s10825_s21 + $0x59] sm:$0xff] }
  0x20   : > { %8791 = vmatprep.subr.bf16.mxu0 %v10485_v3  ;;  %9783 = vmatpush3.bf16.msra.mxu1 %v10484_v2  ;;  %v469_v25 = vpack.c.bf16 %v438_v23, %v437_v22  ;;  %v441_v30 = vld [vmem:[%s10825_s21 + $0x61] sm:$0xff]  ;;  %v442_v31 = vld [vmem:[%s10825_s21 + $0x69] sm:$0xff]  ;;  %v470_v32 = vpack.c.bf16 %v440_v28, %v439_v27  ;;  %v443_v35 = vld [vmem:[%s10825_s21 + $0x71] sm:$0xff]  ;;  %p10642_p13 = pneg %p10641_p12  ;;  %p10648_p2 = por %p10647_p1, %p10646_p0 }
  0x21   : > { %9776 = vmatprep.subr.bf16.mxu1 %v10485_v3  ;;  %v471_v33 = vpack.c.bf16 %v442_v31, %v441_v30  ;;  %v444_v36 = vld [vmem:[%s10825_s21 + $0x79] sm:$0xff]  ;;  %v360_v39 = vld [vmem:[%s10825_s21 + $0x8] sm:$0xff]  ;;  %v361_v43 = vld [vmem:[%s10825_s21 + $0x10] sm:$0xff] }
  0x22   : > { %v359_v38 = vld [vmem:[%s10825_s21] sm:$0xff]  ;;  %v472_v40 = vpack.c.bf16 %v444_v36, %v443_v35  ;;  %v362_v44 = vld [vmem:[%s10825_s21 + $0x18] sm:$0xff]  ;;  %v364_v47 = vld [vmem:[%s10825_s21 + $0x28] sm:$0xff]  ;;  %p10649_p3 = pnand %p10648_p2, %p10642_p13 }
  0x23   : > { %8792 = vmatpush3.bf16.msra.mxu0 %v10485_v3  ;;  %v395_v41 = vpack.c.bf16 %v360_v39, %v359_v38  ;;  %v363_v46 = vld [vmem:[%s10825_s21 + $0x20] sm:$0xff]  ;;  %v396_v48 = vpack.c.bf16 %v362_v44, %v361_v43  ;;  %v365_v51 = vld [vmem:[%s10825_s21 + $0x30] sm:$0xff]  ;;  %v366_v52 = vld [vmem:[%s10825_s21 + $0x38] sm:$0xff] }
  0x24   : > { %8793 = vmatprep.subr.bf16.mxu0 %v10486_v7  ;;  %9784 = vmatpush3.bf16.msra.mxu1 %v10485_v3  ;;  %v397_v50 = vpack.c.bf16 %v364_v47, %v363_v46  ;;  %v367_v53 = vld [vmem:[%s10825_s21 + $0x40] sm:$0xff]  ;;  %v368_v54 = vld [vmem:[%s10825_s21 + $0x48] sm:$0xff]  ;;  %v398_v56 = vpack.c.bf16 %v366_v52, %v365_v51  ;;  %v369_v59 = vld [vmem:[%s10825_s21 + $0x50] sm:$0xff] }
  0x25   : > { %9777 = vmatprep.subr.bf16.mxu1 %v10486_v7  ;;  %v399_v58 = vpack.c.bf16 %v368_v54, %v367_v53  ;;  %v370_v60 = vld [vmem:[%s10825_s21 + $0x58] sm:$0xff]  ;;  %v371_v61 = vld [vmem:[%s10825_s21 + $0x60] sm:$0xff]  ;;  %v372_v62 = vld [vmem:[%s10825_s21 + $0x68] sm:$0xff] }
  0x26   : > { %v400_v0 = vpack.c.bf16 %v370_v60, %v369_v59  ;;  %v10503_v1 = vld [vmem:[%s13532_s1 + $0xa8] sm:$0xff]   ;;  %v401_v2 = vpack.c.bf16 %v372_v62, %v371_v61  ;;  %v373_v3 = vld [vmem:[%s10825_s21 + $0x70] sm:$0xff]  ;;  %v374_v4 = vld [vmem:[%s10825_s21 + $0x78] sm:$0xff] }
  0x27   : > { %8794 = vmatpush3.bf16.msra.mxu0 %v10486_v7  ;;  %v375_v5 = vld [vmem:[%s10825_s21 + $0x80] sm:$0xff]  ;;  %v376_v6 = vld [vmem:[%s10825_s21 + $0x88] sm:$0xff]  ;;  %v377_v11 = vld [vmem:[%s10825_s21 + $0x90] sm:$0xff] }
  0x28   : > { %8795 = vmatprep.subr.bf16.mxu0 %v10487_v8  ;;  %9785 = vmatpush3.bf16.msra.mxu1 %v10486_v7  ;;  %v10504_v7 = vld [vmem:[%s13532_s1 + $0xb0] sm:$0xff]   ;;  %v378_v12 = vld [vmem:[%s10825_s21 + $0x98] sm:$0xff]  ;;  %v380_v14 = vld [vmem:[%s10825_s21 + $0xa8] sm:$0xff] }
  0x29   : > { %9778 = vmatprep.subr.bf16.mxu1 %v10487_v8  ;;  %v10506_v15 = vld [vmem:[%s13532_s1 + $0xc0] sm:$0xff]   ;;  %v382_v19 = vld [vmem:[%s10825_s21 + $0xb8] sm:$0xff]  ;;  %v388_v27 = vld [vmem:[%s10825_s21 + $0xe8] sm:$0xff] }
  0x2a   : > { %v383_v20 = vld [vmem:[%s10825_s21 + $0xc0] sm:$0xff]  ;;  %v389_v30 = vld [vmem:[%s10825_s21 + $0xf0] sm:$0xff]  ;;  %v390_v31 = vld [vmem:[%s10825_s21 + $0xf8] sm:$0xff] }
  0x2b   : > { %8796 = vmatpush3.bf16.msra.mxu0 %v10487_v8  ;;  %v393_v36 = vld [vmem:[%s10825_s21 + $0x110] sm:$0xff]  ;;  %v950_v38 = vld [vmem:[%s10825_s21 + $0x2] sm:$0xff]  ;;  %v953_v43 = vld [vmem:[%s10825_s21 + $0x1a] sm:$0xff] }
  0x2c   : > { %8797 = vmatprep.subr.bf16.mxu0 %v10488_v9  ;;  %9786 = vmatpush3.bf16.msra.mxu1 %v10487_v8  ;;  %v402_v8 = vpack.c.bf16 %v374_v4, %v373_v3  ;;  %v951_v39 = vld [vmem:[%s10825_s21 + $0xa] sm:$0xff]  ;;  %v954_v44 = vld [vmem:[%s10825_s21 + $0x22] sm:$0xff] }
  0x2d   : > { %9779 = vmatprep.subr.bf16.mxu1 %v10488_v9  ;;  %v10507_v47 = vld [vmem:[%s13532_s1 + $0xc8] sm:$0xff]   ;;  %v10508_v53 = vld [vmem:[%s13532_s1 + $0xd0] sm:$0xff]   ;;  %v10510_v61 = vld [vmem:[%s13532_s1 + $0xe0] sm:$0xff]  }
  0x2e   : > { %v958_v51 = vld [vmem:[%s10825_s21 + $0x42] sm:$0xff]  ;;  %v959_v52 = vld [vmem:[%s10825_s21 + $0x4a] sm:$0xff] }
  0x2f   : > { %8798 = vmatpush3.bf16.msra.mxu0 %v10488_v9  ;;  %v962_v59 = vld [vmem:[%s10825_s21 + $0x62] sm:$0xff]  ;;  %v963_v60 = vld [vmem:[%s10825_s21 + $0x6a] sm:$0xff] }
  0x30   : > { %8799 = vmatprep.subr.bf16.mxu0 %v10489_v10  ;;  %9787 = vmatpush3.bf16.msra.mxu1 %v10488_v9  ;;  %v10505_v9 = vld [vmem:[%s13532_s1 + $0xb8] sm:$0xff]   ;;  %v966_v3 = vld [vmem:[%s10825_s21 + $0x82] sm:$0xff]  ;;  %v967_v4 = vld [vmem:[%s10825_s21 + $0x8a] sm:$0xff] }
  0x31   : > { %9780 = vmatprep.subr.bf16.mxu1 %v10489_v10 }
  0x33   : > { %8800 = vmatpush3.bf16.msra.mxu0 %v10489_v10 }
  0x34   : > { %8837 = vmatprep.subr.bf16.mxu0 %v10490_v13  ;;  %9788 = vmatpush3.bf16.msra.mxu1 %v10489_v10  ;;  %v403_v10 = vpack.c.bf16 %v376_v6, %v375_v5  ;;  %v10512_v5 = vld [vmem:[%s13532_s1 + $0xf0] sm:$0xff]  }
  0x36   : > { %8802 = vmatmul.mubr.bf16.vlgmr.msra.gmra.mrb[0].mxu0 %v466_v16  ;;  %v404_v16 = vpack.c.bf16 %v378_v12, %v377_v11  ;;  %v970_v11 = vld [vmem:[%s10825_s21 + $0xa2] sm:$0xff]  ;;  %v971_v12 = vld [vmem:[%s10825_s21 + $0xaa] sm:$0xff] }
  0x37   : > { %8838 = vmatpush3.bf16.msra.mxu0 %v10490_v13  ;;  %8805 = vmatprep.mubr.bf16.mxu0 %v467_v17  ;;  %v379_v13 = vld [vmem:[%s10825_s21 + $0xa0] sm:$0xff] }
  0x38   : > { %8839 = vmatprep.subr.bf16.mxu0 %v10491_v18  ;;  %v405_v17 = vpack.c.bf16 %v380_v14, %v379_v13  ;;  %v10514_v13 = vld [vmem:[%s13532_s1 + $0x100] sm:$0xff]  }
  0x3b   : > { %8840 = vmatpush3.bf16.msra.mxu0 %v10491_v18  ;;  %v381_v18 = vld [vmem:[%s10825_s21 + $0xb0] sm:$0xff] }
  0x3c   : > { %8841 = vmatprep.subr.bf16.mxu0 %v10492_v21  ;;  %v406_v22 = vpack.c.bf16 %v382_v19, %v381_v18  ;;  %v974_v18 = vld [vmem:[%s10825_s21 + $0xc2] sm:$0xff]  ;;  %v975_v19 = vld [vmem:[%s10825_s21 + $0xca] sm:$0xff] }
  0x3e   : > { %8806 = vmatmul.mubr.bf16.gmra.mrb[4].mxu0 %v468_v24  ;;  %v385_v24 = vld [vmem:[%s10825_s21 + $0xd0] sm:$0xff] }
  0x3f   : > { %8842 = vmatpush3.bf16.msra.mxu0 %v10492_v21  ;;  %8809 = vmatprep.mubr.bf16.mxu0 %v469_v25  ;;  %v384_v21 = vld [vmem:[%s10825_s21 + $0xc8] sm:$0xff]  ;;  %v386_v25 = vld [vmem:[%s10825_s21 + $0xd8] sm:$0xff] }
  0x40   : > { %8843 = vmatprep.subr.bf16.mxu0 %v10493_v26  ;;  %v407_v23 = vpack.c.bf16 %v384_v21, %v383_v20  ;;  %v408_v28 = vpack.c.bf16 %v386_v25, %v385_v24  ;;  %v998_v21 = vpack.c.bf16 %v975_v19, %v974_v18  ;;  %v978_v24 = vld [vmem:[%s10825_s21 + $0xe2] sm:$0xff]  ;;  %v979_v25 = vld [vmem:[%s10825_s21 + $0xea] sm:$0xff]  ;;  %v10529_v19 = vld [vmem:[%s13532_s1 + $0x178] sm:$0xff]  }
  0x43   : > { %8844 = vmatpush3.bf16.msra.mxu0 %v10493_v26  ;;  %v387_v26 = vld [vmem:[%s10825_s21 + $0xe0] sm:$0xff] }
  0x44   : > { %8845 = vmatprep.subr.bf16.mxu0 %v10494_v29 }
  0x46   : > { %8810 = vmatmul.mubr.bf16.gmra.mrb[8].mxu0 %v470_v32  ;;  %v391_v32 = vld [vmem:[%s10825_s21 + $0x100] sm:$0xff] }
  0x47   : > { %8846 = vmatpush3.bf16.msra.mxu0 %v10494_v29  ;;  %8813 = vmatprep.mubr.bf16.mxu0 %v471_v33  ;;  %v409_v29 = vpack.c.bf16 %v388_v27, %v387_v26  ;;  %v392_v33 = vld [vmem:[%s10825_s21 + $0x108] sm:$0xff]  ;;  %v1000_v27 = vpack.c.bf16 %v979_v25, %v978_v24  ;;  %v10530_v24 = vld [vmem:[%s13532_s1 + $0x180] sm:$0xff]  }
  0x48   : > { %8847 = vmatprep.subr.bf16.mxu0 %v10495_v34  ;;  %v411_v35 = vpack.c.bf16 %v392_v33, %v391_v32 }
  0x4b   : > { %8848 = vmatpush3.bf16.msra.mxu0 %v10495_v34  ;;  %v410_v34 = vpack.c.bf16 %v390_v31, %v389_v30  ;;  %v982_v30 = vld [vmem:[%s10825_s21 + $0x102] sm:$0xff]  ;;  %v983_v31 = vld [vmem:[%s10825_s21 + $0x10a] sm:$0xff] }
  0x4c   : > { %8849 = vmatprep.subr.bf16.mxu0 %v10496_v37  ;;  %v1002_v33 = vpack.c.bf16 %v983_v31, %v982_v30  ;;  %v1639_v30 = vld [vmem:[%s10825_s21 + $0xdb] sm:$0xff] }
  0x4e   : > { %8814 = vmatmul.mubr.bf16.gmra.mrb[12].mxu0 %v472_v40 }
  0x4f   : > { %8850 = vmatpush3.bf16.msra.mxu0 %v10496_v37  ;;  %8853 = vmatprep.mubr.bf16.mxu0 %v395_v41  ;;  %v394_v37 = vld [vmem:[%s10825_s21 + $0x118] sm:$0x3f]  ;;  %v986_v41 = vpack.c.bf16 %v951_v39, %v950_v38  ;;  %v10516_v38 = vld [vmem:[%s13532_s1 + $0x110] sm:$0xff]  }
  0x50   : > { %8851 = vmatprep.subr.bf16.mxu0 %v10497_v42  ;;  %v412_v40 = vpack.c.bf16 %v394_v37, %v393_v36  ;;  %v10515_v37 = vld [vmem:[%s13532_s1 + $0x108] sm:$0xff]   ;;  %v10517_v39 = vld [vmem:[%s13532_s1 + $0x118] sm:$0xff]  }
  0x53   : > { %8852 = vmatpush3.bf16.msra.mxu0 %v10497_v42  ;;  %v952_v42 = vld [vmem:[%s10825_s21 + $0x12] sm:$0xff] }
  0x54   : > { %8889 = vmatprep.subr.bf16.mxu0 %v10498_v45  ;;  %v10951_v46 = vpack.c.bf16 %v953_v43, %v952_v42  ;;  %v10520_v42 = vld [vmem:[%s13532_s1 + $0x130] sm:$0xff]   ;;  %v10521_v43 = vld [vmem:[%s13532_s1 + $0x138] sm:$0xff]  }
  0x56   : > { %8854 = vmatmul.mubr.bf16.vlgmr.msra.gmra.mrb[0].mxu0 %v396_v48 }
  0x57   : > { %8890 = vmatpush3.bf16.msra.mxu0 %v10498_v45  ;;  %8857 = vmatprep.mubr.bf16.mxu0 %v397_v50  ;;  %v955_v45 = vld [vmem:[%s10825_s21 + $0x2a] sm:$0xff]  ;;  %v957_v50 = vld [vmem:[%s10825_s21 + $0x3a] sm:$0xff] }
  0x58   : > { %8891 = vmatprep.subr.bf16.mxu0 %v10499_v49  ;;  %v10956_v48 = vpack.c.bf16 %v955_v45, %v954_v44  ;;  %v10522_v44 = vld [vmem:[%s13532_s1 + $0x140] sm:$0xff]  }
  0x59   : > { %v1315_v45 = vld [vmem:[%s10825_s21 + $0x11a] sm:$0xff] }
  0x5b   : > { %8892 = vmatpush3.bf16.msra.mxu0 %v10499_v49  ;;  %v956_v49 = vld [vmem:[%s10825_s21 + $0x32] sm:$0xff] }
  0x5c   : > { %8893 = vmatprep.subr.bf16.mxu0 %v10500_v55  ;;  %v10967_v54 = vpack.c.bf16 %v957_v50, %v956_v49  ;;  %v1614_v49 = vld [vmem:[%s10825_s21 + $0x13] sm:$0xff]  ;;  %v1615_v50 = vld [vmem:[%s10825_s21 + $0x1b] sm:$0xff] }
  0x5e   : > { %8858 = vmatmul.mubr.bf16.gmra.mrb[4].mxu0 %v398_v56  ;;  %v10972_v56 = vpack.c.bf16 %v959_v52, %v958_v51  ;;  %v1650_v52 = vpack.c.bf16 %v1615_v50, %v1614_v49 }
  0x5f   : > { %8861 = vmatprep.mubr.bf16.mxu0 %v399_v58  ;;  %8894 = vmatpush3.bf16.msra.mxu0 %v10500_v55  ;;  %v10509_v55 = vld [vmem:[%s13532_s1 + $0xd8] sm:$0xff]  }
  0x60   : > { %8895 = vmatprep.subr.bf16.mxu0 %v10501_v57  ;;  %v961_v58 = vld [vmem:[%s10825_s21 + $0x5a] sm:$0xff] }
  0x63   : > { %8896 = vmatpush3.bf16.msra.mxu0 %v10501_v57  ;;  %v960_v57 = vld [vmem:[%s10825_s21 + $0x52] sm:$0xff] }
  0x64   : > { %8897 = vmatprep.subr.bf16.mxu0 %v10502_v63  ;;  %v10983_v62 = vpack.c.bf16 %v961_v58, %v960_v57 }
  0x66   : > { %8862 = vmatmul.mubr.bf16.gmra.mrb[8].mxu0 %v400_v0  ;;  %v10511_v0 = vld [vmem:[%s13532_s1 + $0xe8] sm:$0xff]  }
  0x67   : > { %8865 = vmatprep.mubr.bf16.mxu0 %v401_v2  ;;  %8898 = vmatpush3.bf16.msra.mxu0 %v10502_v63  ;;  %v10985_v63 = vpack.c.bf16 %v963_v60, %v962_v59  ;;  %v965_v2 = vld [vmem:[%s10825_s21 + $0x7a] sm:$0xff]  ;;  %v10523_v59 = vld [vmem:[%s13532_s1 + $0x148] sm:$0xff]  }
  0x68   : > { %8899 = vmatprep.subr.bf16.mxu0 %v10503_v1  ;;  %v1620_v60 = vld [vmem:[%s10825_s21 + $0x43] sm:$0xff] }
  0x6b   : > { %8900 = vmatpush3.bf16.msra.mxu0 %v10503_v1  ;;  %v964_v1 = vld [vmem:[%s10825_s21 + $0x72] sm:$0xff] }
  0x6c   : > { %8901 = vmatprep.subr.bf16.mxu0 %v10504_v7  ;;  %v10999_v6 = vpack.c.bf16 %v965_v2, %v964_v1 }
  0x6e   : > { %8866 = vmatmul.mubr.bf16.gmra.mrb[12].mxu0 %v402_v8  ;;  %v10513_v8 = vld [vmem:[%s13532_s1 + $0xf8] sm:$0xff]  }
  0x6f   : > { %8869 = vmatprep.mubr.bf16.mxu0 %v403_v10  ;;  %8902 = vmatpush3.bf16.msra.mxu0 %v10504_v7  ;;  %v11001_v7 = vpack.c.bf16 %v967_v4, %v966_v3  ;;  %v969_v10 = vld [vmem:[%s10825_s21 + $0x9a] sm:$0xff]  ;;  %v1624_v4 = vld [vmem:[%s10825_s21 + $0x63] sm:$0xff] }
  0x70   : > { %8903 = vmatprep.subr.bf16.mxu0 %v10505_v9  ;;  %v10525_v3 = vld [vmem:[%s13532_s1 + $0x158] sm:$0xff]  }
  0x73   : > { %8904 = vmatpush3.bf16.msra.mxu0 %v10505_v9  ;;  %v968_v9 = vld [vmem:[%s10825_s21 + $0x92] sm:$0xff] }
  0x74   : > { %8941 = vmatprep.subr.bf16.mxu0 %v10506_v15  ;;  %v995_v14 = vpack.c.bf16 %v969_v10, %v968_v9 }
  0x76   : > { %8870 = vmatmul.mubr.bf16.gmra.mrb[16].mxu0 %v404_v16  ;;  %v972_v16 = vld [vmem:[%s10825_s21 + $0xb2] sm:$0xff] }
  0x77   : > { %8873 = vmatprep.mubr.bf16.mxu0 %v405_v17  ;;  %v973_v17 = vld [vmem:[%s10825_s21 + $0xba] sm:$0xff] }
  0x78   : > { %v997_v20 = vpack.c.bf16 %v973_v17, %v972_v16  ;;  %v10528_v16 = vld [vmem:[%s13532_s1 + $0x170] sm:$0xff]  }
  0x7e   : > { %8874 = vmatmul.mubr.bf16.gmra.mrb[20].mxu0 %v406_v22  ;;  %v976_v22 = vld [vmem:[%s10825_s21 + $0xd2] sm:$0xff] }
  0x7f   : > { %8877 = vmatprep.mubr.bf16.mxu0 %v407_v23  ;;  %v977_v23 = vld [vmem:[%s10825_s21 + $0xda] sm:$0xff] }
  0x80   : > { %v999_v26 = vpack.c.bf16 %v977_v23, %v976_v22  ;;  %v1634_v22 = vld [vmem:[%s10825_s21 + $0xb3] sm:$0xff]  ;;  %v1635_v23 = vld [vmem:[%s10825_s21 + $0xbb] sm:$0xff] }
  0x86   : > { %8878 = vmatmul.mubr.bf16.gmra.mrb[24].mxu0 %v408_v28  ;;  %v980_v28 = vld [vmem:[%s10825_s21 + $0xf2] sm:$0xff] }
  0x87   : > { %8881 = vmatprep.mubr.bf16.mxu0 %v409_v29  ;;  %v981_v29 = vld [vmem:[%s10825_s21 + $0xfa] sm:$0xff] }
  0x88   : > { %v1001_v32 = vpack.c.bf16 %v981_v29, %v980_v28  ;;  %v1637_v28 = vld [vmem:[%s10825_s21 + $0xcb] sm:$0xff]  ;;  %v1638_v29 = vld [vmem:[%s10825_s21 + $0xd3] sm:$0xff] }
  0x8e   : > { %8882 = vmatmul.mubr.bf16.gmra.mrb[28].mxu0 %v410_v34  ;;  %v984_v34 = vld [vmem:[%s10825_s21 + $0x112] sm:$0xff] }
  0x8f   : > { %8885 = vmatprep.mubr.bf16.mxu0 %v411_v35  ;;  %v985_v35 = vld [vmem:[%s10825_s21 + $0x11a] sm:$0x3f] }
  0x90   : > { %v1003_v36 = vpack.c.bf16 %v985_v35, %v984_v34  ;;  %v1642_v35 = vld [vmem:[%s10825_s21 + $0xf3] sm:$0xff] }
  0x96   : > { %8886 = vmatmul.mubr.bf16.gmra.mrb[32].mxu0 %v412_v40  ;;  %v10518_v40 = vld [vmem:[%s13532_s1 + $0x120] sm:$0xff]  }
  0x97   : > { %8905 = vmatprep.mubr.bf16.mxu0 %v986_v41  ;;  %v10519_v41 = vld [vmem:[%s13532_s1 + $0x128] sm:$0xff]  }
  0x9e   : > { %8906 = vmatmul.mubr.bf16.vlgmr.msra.gmra.mrb[0].mxu0 %v10951_v46 }
  0x9f   : > { %8942 = vmatpush3.bf16.msra.mxu0 %v10506_v15  ;;  %8909 = vmatprep.mubr.bf16.mxu0 %v10956_v48  ;;  %v11015_v15 = vpack.c.bf16 %v971_v12, %v970_v11  ;;  %v10527_v11 = vld [vmem:[%s13532_s1 + $0x168] sm:$0xff]  }
  0xa0   : > { %8943 = vmatprep.subr.bf16.mxu0 %v10507_v47  ;;  %v1628_v12 = vld [vmem:[%s10825_s21 + $0x83] sm:$0xff] }
  0xa3   : > { %8944 = vmatpush3.bf16.msra.mxu0 %v10507_v47  ;;  %v1316_v47 = vld [vmem:[%s10825_s21 + $0x122] sm:$0xff] }
  0xa4   : > { %8945 = vmatprep.subr.bf16.mxu0 %v10508_v53 }
  0xa6   : > { %8910 = vmatmul.mubr.bf16.gmra.mrb[4].mxu0 %v10967_v54 }
  0xa7   : > { %8913 = vmatprep.mubr.bf16.mxu0 %v10972_v56  ;;  %8946 = vmatpush3.bf16.msra.mxu0 %v10508_v53  ;;  %v1616_v53 = vld [vmem:[%s10825_s21 + $0x23] sm:$0xff] }
  0xa8   : > { %8947 = vmatprep.subr.bf16.mxu0 %v10509_v55 }
  0xab   : > { %8948 = vmatpush3.bf16.msra.mxu0 %v10509_v55  ;;  %v1618_v55 = vld [vmem:[%s10825_s21 + $0x33] sm:$0xff] }
  0xac   : > { %8949 = vmatprep.subr.bf16.mxu0 %v10510_v61 }
  0xae   : > { %8914 = vmatmul.mubr.bf16.gmra.mrb[8].mxu0 %v10983_v62 }
  0xaf   : > { %8917 = vmatprep.mubr.bf16.mxu0 %v10985_v63  ;;  %8950 = vmatpush3.bf16.msra.mxu0 %v10510_v61  ;;  %v1621_v61 = vld [vmem:[%s10825_s21 + $0x4b] sm:$0xff] }
  0xb0   : > { %8951 = vmatprep.subr.bf16.mxu0 %v10511_v0  ;;  %v1653_v1 = vpack.c.bf16 %v1621_v61, %v1620_v60  ;;  %v1954_v60 = vld [vmem:[%s10825_s21 + $0x54] sm:$0xff]  ;;  %v1955_v61 = vld [vmem:[%s10825_s21 + $0x5c] sm:$0xff] }
  0xb3   : > { %8952 = vmatpush3.bf16.msra.mxu0 %v10511_v0  ;;  %v10524_v0 = vld [vmem:[%s13532_s1 + $0x150] sm:$0xff]  }
  0xb4   : > { %8953 = vmatprep.subr.bf16.mxu0 %v10512_v5 }
  0xb6   : > { %8918 = vmatmul.mubr.bf16.gmra.mrb[12].mxu0 %v10999_v6 }
  0xb7   : > { %8921 = vmatprep.mubr.bf16.mxu0 %v11001_v7  ;;  %8954 = vmatpush3.bf16.msra.mxu0 %v10512_v5  ;;  %v1625_v5 = vld [vmem:[%s10825_s21 + $0x6b] sm:$0xff] }
  0xb8   : > { %8955 = vmatprep.subr.bf16.mxu0 %v10513_v8  ;;  %v1655_v9 = vpack.c.bf16 %v1625_v5, %v1624_v4  ;;  %v1958_v4 = vld [vmem:[%s10825_s21 + $0x74] sm:$0xff]  ;;  %v1959_v5 = vld [vmem:[%s10825_s21 + $0x7c] sm:$0xff] }
  0xbb   : > { %8956 = vmatpush3.bf16.msra.mxu0 %v10513_v8  ;;  %v10526_v8 = vld [vmem:[%s13532_s1 + $0x160] sm:$0xff]  }
  0xbc   : > { %8993 = vmatprep.subr.bf16.mxu0 %v10514_v13 }
  0xbe   : > { %8922 = vmatmul.mubr.bf16.gmra.mrb[16].mxu0 %v995_v14 }
  0xbf   : > { %8925 = vmatprep.mubr.bf16.mxu0 %v11015_v15 }
  0xc6   : > { %8926 = vmatmul.mubr.bf16.gmra.mrb[20].mxu0 %v997_v20 }
  0xc7   : > { %8929 = vmatprep.mubr.bf16.mxu0 %v998_v21 }
  0xce   : > { %8930 = vmatmul.mubr.bf16.gmra.mrb[24].mxu0 %v999_v26 }
  0xcf   : > { %8933 = vmatprep.mubr.bf16.mxu0 %v1000_v27 }
  0xd6   : > { %8934 = vmatmul.mubr.bf16.gmra.mrb[28].mxu0 %v1001_v32 }
  0xd7   : > { %8937 = vmatprep.mubr.bf16.mxu0 %v1002_v33 }
  0xde   : > { %8938 = vmatmul.mubr.bf16.gmra.mrb[32].mxu0 %v1003_v36  ;;  %v1643_v36 = vld [vmem:[%s10825_s21 + $0xfb] sm:$0xff] }
  0xdf   : > { %8957 = vmatprep.mubr.bf16.mxu0 %v10951_v46  ;;  %v1334_v46 = vpack.c.bf16 %v1315_v45, %v984_v34  ;;  %v1641_v34 = vld [vmem:[%s10825_s21 + $0xeb] sm:$0xff]  ;;  %v1648_v45 = vld [vmem:[%s10825_s21 + $0x123] sm:$0xff] }
  0xe6   : > { %8958 = vmatmul.mubr.bf16.vlgmr.msra.gmra.mrb[0].mxu0 %v10956_v48  ;;  %v1317_v48 = vld [vmem:[%s10825_s21 + $0x12a] sm:$0x3f] }
  0xe7   : > { %8994 = vmatpush3.bf16.msra.mxu0 %v10514_v13  ;;  %8961 = vmatprep.mubr.bf16.mxu0 %v10967_v54  ;;  %v1335_v51 = vpack.c.bf16 %v1317_v48, %v1316_v47  ;;  %v1617_v54 = vld [vmem:[%s10825_s21 + $0x2b] sm:$0xff]  ;;  %v1946_v47 = vld [vmem:[%s10825_s21 + $0x14] sm:$0xff]  ;;  %v1947_v48 = vld [vmem:[%s10825_s21 + $0x1c] sm:$0xff] }
  0xe8   : > { %8995 = vmatprep.subr.bf16.mxu0 %v10515_v37  ;;  %v1651_v57 = vpack.c.bf16 %v1617_v54, %v1616_v53  ;;  %v1629_v13 = vld [vmem:[%s10825_s21 + $0x8b] sm:$0xff]  ;;  %v1982_v50 = vpack.c.bf16 %v1947_v48, %v1946_v47  ;;  %v1950_v53 = vld [vmem:[%s10825_s21 + $0x34] sm:$0xff]  ;;  %v1951_v54 = vld [vmem:[%s10825_s21 + $0x3c] sm:$0xff] }
  0xe9   : > { %v1657_v17 = vpack.c.bf16 %v1629_v13, %v1628_v12  ;;  %v1962_v12 = vld [vmem:[%s10825_s21 + $0x94] sm:$0xff]  ;;  %v1963_v13 = vld [vmem:[%s10825_s21 + $0x9c] sm:$0xff] }
  0xea   : > { %v10540_v47 = vld [vmem:[%s13532_s1 + $0x1d0] sm:$0xff]   ;;  %v10541_v48 = vld [vmem:[%s13532_s1 + $0x1d8] sm:$0xff]  }
  0xeb   : > { %8996 = vmatpush3.bf16.msra.mxu0 %v10515_v37 }
  0xec   : > { %8997 = vmatprep.subr.bf16.mxu0 %v10516_v38 }
  0xee   : > { %8962 = vmatmul.mubr.bf16.gmra.mrb[4].mxu0 %v10972_v56  ;;  %v1619_v56 = vld [vmem:[%s10825_s21 + $0x3b] sm:$0xff] }
  0xef   : > { %8965 = vmatprep.mubr.bf16.mxu0 %v10983_v62  ;;  %8998 = vmatpush3.bf16.msra.mxu0 %v10516_v38  ;;  %v1652_v58 = vpack.c.bf16 %v1619_v56, %v1618_v55  ;;  %v1622_v62 = vld [vmem:[%s10825_s21 + $0x53] sm:$0xff]  ;;  %v1664_v38 = vpack.c.bf16 %v1643_v36, %v1642_v35  ;;  %v11136_v56 = vpack.c.bf16 %v1951_v54, %v1950_v53  ;;  %v11253_v53 = vld [vmem:[%s13532_s1 + $0x200] sm:$0xff]  }
  0xf0   : > { %8999 = vmatprep.subr.bf16.mxu0 %v10517_v39  ;;  %v445_v54 = vld [vmem:[%s10825_s21 + $0x81] sm:$0xff] }
  0xf3   : > { %9000 = vmatpush3.bf16.msra.mxu0 %v10517_v39  ;;  %v1644_v39 = vld [vmem:[%s10825_s21 + $0x103] sm:$0xff] }
  0xf4   : > { %9001 = vmatprep.subr.bf16.mxu0 %v10518_v40 }
  0xf6   : > { %8966 = vmatmul.mubr.bf16.gmra.mrb[8].mxu0 %v10985_v63  ;;  %v1623_v63 = vld [vmem:[%s10825_s21 + $0x5b] sm:$0xff] }
  0xf7   : > { %8969 = vmatprep.mubr.bf16.mxu0 %v10999_v6  ;;  %9002 = vmatpush3.bf16.msra.mxu0 %v10518_v40  ;;  %v1654_v2 = vpack.c.bf16 %v1623_v63, %v1622_v62  ;;  %v1626_v6 = vld [vmem:[%s10825_s21 + $0x73] sm:$0xff]  ;;  %v1645_v40 = vld [vmem:[%s10825_s21 + $0x10b] sm:$0xff] }
  0xf8   : > { %9003 = vmatprep.subr.bf16.mxu0 %v10519_v41  ;;  %v10532_v62 = vld [vmem:[%s13532_s1 + $0x190] sm:$0xff]  }
  0xfb   : > { %9004 = vmatpush3.bf16.msra.mxu0 %v10519_v41  ;;  %v1646_v41 = vld [vmem:[%s10825_s21 + $0x113] sm:$0xff] }
  0xfc   : > { %9005 = vmatprep.subr.bf16.mxu0 %v10520_v42 }
  0xfe   : > { %8970 = vmatmul.mubr.bf16.gmra.mrb[12].mxu0 %v11001_v7  ;;  %v1627_v7 = vld [vmem:[%s10825_s21 + $0x7b] sm:$0xff] }
  0xff   : > { %8973 = vmatprep.mubr.bf16.mxu0 %v995_v14  ;;  %9006 = vmatpush3.bf16.msra.mxu0 %v10520_v42  ;;  %v1656_v10 = vpack.c.bf16 %v1627_v7, %v1626_v6  ;;  %v1630_v14 = vld [vmem:[%s10825_s21 + $0x93] sm:$0xff]  ;;  %v1647_v42 = vld [vmem:[%s10825_s21 + $0x11b] sm:$0xff] }
 0x100   : > { %9007 = vmatprep.subr.bf16.mxu0 %v10521_v43  ;;  %v10534_v6 = vld [vmem:[%s13532_s1 + $0x1a0] sm:$0xff]  }
 0x103   : > { %9008 = vmatpush3.bf16.msra.mxu0 %v10521_v43  ;;  %v1665_v43 = vpack.c.bf16 %v1645_v40, %v1644_v39  ;;  %v1978_v39 = vld [vmem:[%s10825_s21 + $0x114] sm:$0xff]  ;;  %v1979_v40 = vld [vmem:[%s10825_s21 + $0x11c] sm:$0xff] }
 0x104   : > { %9045 = vmatprep.subr.bf16.mxu0 %v10522_v44 }
 0x106   : > { %8974 = vmatmul.mubr.bf16.gmra.mrb[16].mxu0 %v11015_v15  ;;  %v1631_v15 = vld [vmem:[%s10825_s21 + $0x9b] sm:$0xff] }
 0x107   : > { %8977 = vmatprep.mubr.bf16.mxu0 %v997_v20  ;;  %v1658_v18 = vpack.c.bf16 %v1631_v15, %v1630_v14  ;;  %v1632_v20 = vld [vmem:[%s10825_s21 + $0xa3] sm:$0xff]  ;;  %v10536_v14 = vld [vmem:[%s13532_s1 + $0x1b0] sm:$0xff]  }
 0x10e   : > { %8978 = vmatmul.mubr.bf16.gmra.mrb[20].mxu0 %v998_v21  ;;  %v1633_v21 = vld [vmem:[%s10825_s21 + $0xab] sm:$0xff] }
 0x10f   : > { %8981 = vmatprep.mubr.bf16.mxu0 %v999_v26  ;;  %v1659_v25 = vpack.c.bf16 %v1633_v21, %v1632_v20  ;;  %v1660_v26 = vpack.c.bf16 %v1635_v23, %v1634_v22  ;;  %v1966_v20 = vld [vmem:[%s10825_s21 + $0xb4] sm:$0xff]  ;;  %v1967_v21 = vld [vmem:[%s10825_s21 + $0xbc] sm:$0xff] }
 0x110   : > { %v10538_v22 = vld [vmem:[%s13532_s1 + $0x1c0] sm:$0xff]  }
 0x116   : > { %8982 = vmatmul.mubr.bf16.gmra.mrb[24].mxu0 %v1000_v27  ;;  %v1636_v27 = vld [vmem:[%s10825_s21 + $0xc3] sm:$0xff] }
 0x117   : > { %8985 = vmatprep.mubr.bf16.mxu0 %v1001_v32  ;;  %v1661_v31 = vpack.c.bf16 %v1637_v28, %v1636_v27  ;;  %v1662_v32 = vpack.c.bf16 %v1639_v30, %v1638_v29  ;;  %v1970_v27 = vld [vmem:[%s10825_s21 + $0xd4] sm:$0xff]  ;;  %v1971_v28 = vld [vmem:[%s10825_s21 + $0xdc] sm:$0xff] }
 0x118   : > { %v1994_v30 = vpack.c.bf16 %v1971_v28, %v1970_v27  ;;  %v10547_v28 = vld [vmem:[%s13532_s1 + $0x208] sm:$0xff]  }
 0x11e   : > { %8986 = vmatmul.mubr.bf16.gmra.mrb[28].mxu0 %v1002_v33  ;;  %v1640_v33 = vld [vmem:[%s10825_s21 + $0xe3] sm:$0xff] }
 0x11f   : > { %8989 = vmatprep.mubr.bf16.mxu0 %v1334_v46  ;;  %v1663_v37 = vpack.c.bf16 %v1641_v34, %v1640_v33  ;;  %v1649_v46 = vld [vmem:[%s10825_s21 + $0x12b] sm:$0x3f]  ;;  %v1974_v33 = vld [vmem:[%s10825_s21 + $0xf4] sm:$0xff]  ;;  %v1975_v34 = vld [vmem:[%s10825_s21 + $0xfc] sm:$0xff] }
 0x120   : > { %v1667_v49 = vpack.c.bf16 %v1649_v46, %v1648_v45  ;;  %v1996_v36 = vpack.c.bf16 %v1975_v34, %v1974_v33  ;;  %v10539_v46 = vld [vmem:[%s13532_s1 + $0x1c8] sm:$0xff]   ;;  %v2617_v33 = vld [vmem:[%s10825_s21 + $0x5d] sm:$0xff] }
 0x126   : > { %8990 = vmatmul.mubr.bf16.gmra.mrb[32].mxu0 %v1335_v51  ;;  %v1948_v51 = vld [vmem:[%s10825_s21 + $0x24] sm:$0xff] }
 0x127   : > { %9009 = vmatprep.mubr.bf16.mxu0 %v1650_v52  ;;  %v1949_v52 = vld [vmem:[%s10825_s21 + $0x2c] sm:$0xff] }
 0x128   : > { %v11134_v55 = vpack.c.bf16 %v1949_v52, %v1948_v51  ;;  %v10544_v51 = vld [vmem:[%s13532_s1 + $0x1f0] sm:$0xff]   ;;  %v10545_v52 = vld [vmem:[%s13532_s1 + $0x1f8] sm:$0xff]  }
 0x12e   : > { %9010 = vmatmul.mubr.bf16.vlgmr.msra.gmra.mrb[0].mxu0 %v1651_v57  ;;  %v10531_v57 = vld [vmem:[%s13532_s1 + $0x188] sm:$0xff]  }
 0x12f   : > { %9046 = vmatpush3.bf16.msra.mxu0 %v10522_v44  ;;  %9013 = vmatprep.mubr.bf16.mxu0 %v1652_v58  ;;  %v1666_v44 = vpack.c.bf16 %v1647_v42, %v1646_v41  ;;  %v1952_v58 = vld [vmem:[%s10825_s21 + $0x44] sm:$0xff]  ;;  %v11213_v42 = vpack.c.bf16 %v1979_v40, %v1978_v39 }
 0x130   : > { %9047 = vmatprep.subr.bf16.mxu0 %v10523_v59 }
 0x133   : > { %9048 = vmatpush3.bf16.msra.mxu0 %v10523_v59  ;;  %v1953_v59 = vld [vmem:[%s10825_s21 + $0x4c] sm:$0xff] }
 0x134   : > { %9049 = vmatprep.subr.bf16.mxu0 %v10524_v0  ;;  %v11150_v63 = vpack.c.bf16 %v1953_v59, %v1952_v58  ;;  %v448_v58 = vld [vmem:[%s10825_s21 + $0x99] sm:$0xff] }
 0x136   : > { %9014 = vmatmul.mubr.bf16.gmra.mrb[4].mxu0 %v1653_v1  ;;  %v10533_v1 = vld [vmem:[%s13532_s1 + $0x198] sm:$0xff]  }
 0x137   : > { %9017 = vmatprep.mubr.bf16.mxu0 %v1654_v2  ;;  %9050 = vmatpush3.bf16.msra.mxu0 %v10524_v0  ;;  %v11152_v0 = vpack.c.bf16 %v1955_v61, %v1954_v60  ;;  %v1956_v2 = vld [vmem:[%s10825_s21 + $0x64] sm:$0xff] }
 0x138   : > { %9051 = vmatprep.subr.bf16.mxu0 %v10525_v3  ;;  %v449_v60 = vld [vmem:[%s10825_s21 + $0xa1] sm:$0xff]  ;;  %v450_v61 = vld [vmem:[%s10825_s21 + $0xa9] sm:$0xff] }
 0x13b   : > { %9052 = vmatpush3.bf16.msra.mxu0 %v10525_v3  ;;  %v1957_v3 = vld [vmem:[%s10825_s21 + $0x6c] sm:$0xff] }
 0x13c   : > { %9053 = vmatprep.subr.bf16.mxu0 %v10526_v8  ;;  %v11166_v7 = vpack.c.bf16 %v1957_v3, %v1956_v2 }
 0x13e   : > { %9018 = vmatmul.mubr.bf16.gmra.mrb[8].mxu0 %v1655_v9  ;;  %v10535_v9 = vld [vmem:[%s13532_s1 + $0x1a8] sm:$0xff]  }
 0x13f   : > { %9021 = vmatprep.mubr.bf16.mxu0 %v1656_v10  ;;  %9054 = vmatpush3.bf16.msra.mxu0 %v10526_v8  ;;  %v11168_v8 = vpack.c.bf16 %v1959_v5, %v1958_v4  ;;  %v1960_v10 = vld [vmem:[%s10825_s21 + $0x84] sm:$0xff] }
 0x140   : > { %9055 = vmatprep.subr.bf16.mxu0 %v10527_v11  ;;  %v453_v4 = vld [vmem:[%s10825_s21 + $0xc1] sm:$0xff]  ;;  %v454_v5 = vld [vmem:[%s10825_s21 + $0xc9] sm:$0xff] }
 0x143   : > { %9056 = vmatpush3.bf16.msra.mxu0 %v10527_v11  ;;  %v1961_v11 = vld [vmem:[%s10825_s21 + $0x8c] sm:$0xff] }
 0x144   : > { %9057 = vmatprep.subr.bf16.mxu0 %v10528_v16  ;;  %v11182_v15 = vpack.c.bf16 %v1961_v11, %v1960_v10  ;;  %v456_v10 = vld [vmem:[%s10825_s21 + $0xd9] sm:$0xff]  ;;  %v2610_v11 = vld [vmem:[%s10825_s21 + $0x25] sm:$0xff] }
 0x146   : > { %9022 = vmatmul.mubr.bf16.gmra.mrb[12].mxu0 %v1657_v17  ;;  %v10537_v17 = vld [vmem:[%s13532_s1 + $0x1b8] sm:$0xff]  }
 0x147   : > { %9025 = vmatprep.mubr.bf16.mxu0 %v1658_v18  ;;  %9058 = vmatpush3.bf16.msra.mxu0 %v10528_v16  ;;  %v11184_v16 = vpack.c.bf16 %v1963_v13, %v1962_v12  ;;  %v1964_v18 = vld [vmem:[%s10825_s21 + $0xa4] sm:$0xff]  ;;  %v2611_v12 = vld [vmem:[%s10825_s21 + $0x2d] sm:$0xff] }
 0x148   : > { %9059 = vmatprep.subr.bf16.mxu0 %v10529_v19 }
 0x14b   : > { %9060 = vmatpush3.bf16.msra.mxu0 %v10529_v19  ;;  %v1965_v19 = vld [vmem:[%s10825_s21 + $0xac] sm:$0xff] }
 0x14c   : > { %9097 = vmatprep.subr.bf16.mxu0 %v10530_v24  ;;  %v1991_v23 = vpack.c.bf16 %v1965_v19, %v1964_v18  ;;  %v459_v18 = vld [vmem:[%s10825_s21 + $0xf1] sm:$0xff] }
 0x14d   : > { %v2612_v19 = vld [vmem:[%s10825_s21 + $0x35] sm:$0xff] }
 0x14e   : > { %9026 = vmatmul.mubr.bf16.gmra.mrb[16].mxu0 %v1659_v25  ;;  %v1968_v25 = vld [vmem:[%s10825_s21 + $0xc4] sm:$0xff] }
 0x14f   : > { %9029 = vmatprep.mubr.bf16.mxu0 %v1660_v26  ;;  %v1969_v26 = vld [vmem:[%s10825_s21 + $0xcc] sm:$0xff] }
 0x150   : > { %v1993_v29 = vpack.c.bf16 %v1969_v26, %v1968_v25 }
 0x156   : > { %9030 = vmatmul.mubr.bf16.gmra.mrb[20].mxu0 %v1661_v31  ;;  %v1972_v31 = vld [vmem:[%s10825_s21 + $0xe4] sm:$0xff] }
 0x157   : > { %9033 = vmatprep.mubr.bf16.mxu0 %v1662_v32  ;;  %v1973_v32 = vld [vmem:[%s10825_s21 + $0xec] sm:$0xff] }
 0x158   : > { %v1995_v35 = vpack.c.bf16 %v1973_v32, %v1972_v31  ;;  %v463_v31 = vld [vmem:[%s10825_s21 + $0x111] sm:$0xff] }
 0x159   : > { %v2616_v32 = vld [vmem:[%s10825_s21 + $0x55] sm:$0xff] }
 0x15a   : > { %v2649_v40 = vpack.c.bf16 %v2617_v33, %v2616_v32  ;;  %v2947_v32 = vld [vmem:[%s10825_s21 + $0x4e] sm:$0xff] }
 0x15e   : > { %9034 = vmatmul.mubr.bf16.gmra.mrb[24].mxu0 %v1663_v37  ;;  %v1976_v37 = vld [vmem:[%s10825_s21 + $0x104] sm:$0xff] }
 0x15f   : > { %9037 = vmatprep.mubr.bf16.mxu0 %v1664_v38  ;;  %v1977_v38 = vld [vmem:[%s10825_s21 + $0x10c] sm:$0xff] }
 0x160   : > { %v1997_v41 = vpack.c.bf16 %v1977_v38, %v1976_v37  ;;  %v2619_v37 = vld [vmem:[%s10825_s21 + $0x6d] sm:$0xff] }
 0x161   : > { %v10548_v38 = vld [vmem:[%s13532_s1 + $0x210] sm:$0xff]  }
 0x166   : > { %9038 = vmatmul.mubr.bf16.gmra.mrb[28].mxu0 %v1665_v43  ;;  %v11217_v43 = vld [vmem:[%s10825_s21 + $0x124] sm:$0xff] }
 0x167   : > { %9041 = vmatprep.mubr.bf16.mxu0 %v1666_v44  ;;  %v1981_v44 = vld [vmem:[%s10825_s21 + $0x12c] sm:$0x3f] }
 0x168   : > { %v1999_v45 = vpack.c.bf16 %v1981_v44, %v11217_v43  ;;  %v10555_v44 = vld [vmem:[%s13535_s4 + $0x48] sm:$0xff]  }
 0x16e   : > { %9042 = vmatmul.mubr.bf16.gmra.mrb[32].mxu0 %v1667_v49  ;;  %v10542_v49 = vld [vmem:[%s13532_s1 + $0x1e0] sm:$0xff]  }
 0x16f   : > { %9061 = vmatprep.mubr.bf16.mxu0 %v1982_v50  ;;  %v10543_v50 = vld [vmem:[%s13532_s1 + $0x1e8] sm:$0xff]  }
 0x176   : > { %9062 = vmatmul.mubr.bf16.vlgmr.msra.gmra.mrb[0].mxu0 %v11134_v55 }
 0x177   : > { %9098 = vmatpush3.bf16.msra.mxu0 %v10530_v24  ;;  %9065 = vmatprep.mubr.bf16.mxu0 %v11136_v56  ;;  %v11198_v24 = vpack.c.bf16 %v1967_v21, %v1966_v20  ;;  %v2613_v20 = vld [vmem:[%s10825_s21 + $0x3d] sm:$0xff] }
 0x178   : > { %9099 = vmatprep.subr.bf16.mxu0 %v10531_v57  ;;  %v2647_v26 = vpack.c.bf16 %v2613_v20, %v2612_v19  ;;  %v2642_v19 = vld [vmem:[%s10825_s21 + $0x125] sm:$0xff]  ;;  %v2643_v20 = vld [vmem:[%s10825_s21 + $0x12d] sm:$0xff] }
 0x17b   : > { %9100 = vmatpush3.bf16.msra.mxu0 %v10531_v57 }
 0x17c   : > { %9101 = vmatprep.subr.bf16.mxu0 %v10532_v62 }
 0x17e   : > { %9066 = vmatmul.mubr.bf16.gmra.mrb[4].mxu0 %v11150_v63 }
 0x17f   : > { %9069 = vmatprep.mubr.bf16.mxu0 %v11152_v0  ;;  %9102 = vmatpush3.bf16.msra.mxu0 %v10532_v62  ;;  %v451_v62 = vld [vmem:[%s10825_s21 + $0xb1] sm:$0xff] }
 0x180   : > { %9103 = vmatprep.subr.bf16.mxu0 %v10533_v1 }
 0x183   : > { %9104 = vmatpush3.bf16.msra.mxu0 %v10533_v1  ;;  %v2311_v1 = vld [vmem:[%s10825_s21 + $0x12c] sm:$0xff] }
 0x184   : > { %9105 = vmatprep.subr.bf16.mxu0 %v10534_v6  ;;  %v2330_v3 = vpack.c.bf16 %v2311_v1, %v11217_v43  ;;  %v10554_v43 = vld [vmem:[%s13535_s4 + $0x40] sm:$0xff]  }
 0x185   : > { %9253 = vmatprep.subr.bf16.mxu1 %v10554_v43  ;;  %v2630_v1 = vld [vmem:[%s10825_s21 + $0xc5] sm:$0xff] }
 0x186   : > { %9070 = vmatmul.mubr.bf16.gmra.mrb[8].mxu0 %v11166_v7 }
 0x187   : > { %9073 = vmatprep.mubr.bf16.mxu0 %v11168_v8  ;;  %9106 = vmatpush3.bf16.msra.mxu0 %v10534_v6  ;;  %v455_v6 = vld [vmem:[%s10825_s21 + $0xd1] sm:$0xff] }
 0x188   : > { %9107 = vmatprep.subr.bf16.mxu0 %v10535_v9  ;;  %v478_v13 = vpack.c.bf16 %v456_v10, %v455_v6  ;;  %v2633_v6 = vld [vmem:[%s10825_s21 + $0xdd] sm:$0xff] }
 0x18b   : > { %9108 = vmatpush3.bf16.msra.mxu0 %v10535_v9  ;;  %v477_v9 = vpack.c.bf16 %v454_v5, %v453_v4  ;;  %v2632_v5 = vld [vmem:[%s10825_s21 + $0xd5] sm:$0xff] }
 0x18c   : > { %9109 = vmatprep.subr.bf16.mxu0 %v10536_v14 }
 0x18e   : > { %9074 = vmatmul.mubr.bf16.gmra.mrb[12].mxu0 %v11182_v15 }
 0x18f   : > { %9077 = vmatprep.mubr.bf16.mxu0 %v11184_v16  ;;  %9110 = vmatpush3.bf16.msra.mxu0 %v10536_v14 }
 0x190   : > { %9111 = vmatprep.subr.bf16.mxu0 %v10537_v17 }
 0x193   : > { %9112 = vmatpush3.bf16.msra.mxu0 %v10537_v17  ;;  %v458_v17 = vld [vmem:[%s10825_s21 + $0xe9] sm:$0xff] }
 0x194   : > { %9149 = vmatprep.subr.bf16.mxu0 %v10538_v22 }
 0x196   : > { %9078 = vmatmul.mubr.bf16.gmra.mrb[16].mxu0 %v1991_v23 }
 0x197   : > { %9081 = vmatprep.mubr.bf16.mxu0 %v11198_v24 }
 0x19e   : > { %9082 = vmatmul.mubr.bf16.gmra.mrb[20].mxu0 %v1993_v29 }
 0x19f   : > { %9085 = vmatprep.mubr.bf16.mxu0 %v1994_v30 }
 0x1a6   : > { %9086 = vmatmul.mubr.bf16.gmra.mrb[24].mxu0 %v1995_v35 }
 0x1a7   : > { %9089 = vmatprep.mubr.bf16.mxu0 %v1996_v36 }
 0x1ae   : > { %9090 = vmatmul.mubr.bf16.gmra.mrb[28].mxu0 %v1997_v41 }
 0x1af   : > { %9093 = vmatprep.mubr.bf16.mxu0 %v11213_v42 }
 0x1b6   : > { %9094 = vmatmul.mubr.bf16.gmra.mrb[32].mxu0 %v1999_v45  ;;  %v2620_v45 = vld [vmem:[%s10825_s21 + $0x75] sm:$0xff] }
 0x1b7   : > { %9113 = vmatprep.mubr.bf16.mxu0 %v11134_v55  ;;  %v446_v55 = vld [vmem:[%s10825_s21 + $0x89] sm:$0xff] }
 0x1b8   : > { %v473_v57 = vpack.c.bf16 %v446_v55, %v445_v54  ;;  %v10557_v54 = vld [vmem:[%s13535_s4 + $0x58] sm:$0xff]  }
 0x1b9   : > { %v2624_v55 = vld [vmem:[%s10825_s21 + $0x95] sm:$0xff] }
 0x1ba   : > { %8817 = vmatprep.mubr.bf16.mxu1 %v473_v57  ;;  %v2626_v57 = vld [vmem:[%s10825_s21 + $0xa5] sm:$0xff] }
 0x1be   : > { %9114 = vmatmul.mubr.bf16.vlgmr.msra.gmra.mrb[0].mxu0 %v11136_v56  ;;  %v447_v56 = vld [vmem:[%s10825_s21 + $0x91] sm:$0xff] }
 0x1bf   : > { %9150 = vmatpush3.bf16.msra.mxu0 %v10538_v22  ;;  %9117 = vmatprep.mubr.bf16.mxu0 %v11150_v63  ;;  %v474_v59 = vpack.c.bf16 %v448_v58, %v447_v56  ;;  %v475_v63 = vpack.c.bf16 %v450_v61, %v449_v60  ;;  %v460_v22 = vld [vmem:[%s10825_s21 + $0xf9] sm:$0xff]  ;;  %v2627_v58 = vld [vmem:[%s10825_s21 + $0xad] sm:$0xff] }
 0x1c0   : > { %9151 = vmatprep.subr.bf16.mxu0 %v10539_v46  ;;  %v480_v25 = vpack.c.bf16 %v460_v22, %v459_v18  ;;  %v2625_v56 = vld [vmem:[%s10825_s21 + $0x9d] sm:$0xff]  ;;  %v2654_v61 = vpack.c.bf16 %v2627_v58, %v2626_v57  ;;  %v2662_v22 = vpack.c.bf16 %v2643_v20, %v2642_v19  ;;  %v10703_v20 = vmov 0.0  }
 0x1c1   : > { %8818 = vmatmul.mubr.bf16.vlgmr.msra.gmra.mrb[0].mxu1 %v474_v59  ;;  %v10552_v59 = vld [vmem:[%s13532_s1 + $0x230] sm:$0xff]   ;;  %v2653_v60 = vpack.c.bf16 %v2625_v56, %v2624_v55  ;;  %v2641_v18 = vld [vmem:[%s10825_s21 + $0x11d] sm:$0xff]  ;;  %v2962_v55 = vld [vmem:[%s10825_s21 + $0xc6] sm:$0xff]  ;;  %4261 = vst [vmem:[#allocation2] sm:$0xff] %v10703_v20 }
 0x1c2   : > { %8821 = vmatprep.mubr.bf16.mxu1 %v475_v63  ;;  %9254 = vmatpush3.bf16.msra.mxu1 %v10554_v43  ;;  %v2628_v63 = vld [vmem:[%s10825_s21 + $0xb5] sm:$0xff]  ;;  %v2954_v43 = vld [vmem:[%s10825_s21 + $0x86] sm:$0xff]  ;;  %4262 = vst [vmem:[#allocation2 + $0x8] sm:$0xff] %v10703_v20  ;;  %4263 = vst [vmem:[#allocation2 + $0x10] sm:$0xff] %v10703_v20 }
 0x1c3   : > { %9152 = vmatpush3.bf16.msra.mxu0 %v10539_v46  ;;  %v2621_v46 = vld [vmem:[%s10825_s21 + $0x7d] sm:$0xff]  ;;  %9255 = vmatprep.subr.bf16.mxu1 %v10555_v44  ;;  %v2963_v56 = vld [vmem:[%s10825_s21 + $0xce] sm:$0xff]  ;;  %4300 = vst [vmem:[#allocation2 + $0x136] sm:$0xff] %v10703_v20  ;;  %4301 = vst [vmem:[#allocation2 + $0x13e] sm:$0xff] %v10703_v20 }
 0x1c4   : > { %9153 = vmatprep.subr.bf16.mxu0 %v10540_v47  ;;  %v2988_v58 = vpack.c.bf16 %v2963_v56, %v2962_v55  ;;  %v10561_v19 = vld [vmem:[%s13535_s4 + $0x78] sm:$0xff]   ;;  %4302 = vst [vmem:[#allocation2 + $0x146] sm:$0x1f] %v10703_v20 }
 0x1c6   : > { %9118 = vmatmul.mubr.bf16.gmra.mrb[4].mxu0 %v11152_v0  ;;  %v452_v0 = vld [vmem:[%s10825_s21 + $0xb9] sm:$0xff]  ;;  %9256 = vmatpush3.bf16.msra.mxu1 %v10555_v44  ;;  %v2955_v44 = vld [vmem:[%s10825_s21 + $0x8e] sm:$0xff] }
 0x1c7   : > { %9121 = vmatprep.mubr.bf16.mxu0 %v11166_v7  ;;  %9154 = vmatpush3.bf16.msra.mxu0 %v10540_v47  ;;  %v476_v2 = vpack.c.bf16 %v452_v0, %v451_v62  ;;  %v2312_v7 = vld [vmem:[%s10825_s21 + $0x134] sm:$0xff]  ;;  %v2622_v47 = vld [vmem:[%s10825_s21 + $0x85] sm:$0xff]  ;;  %v2629_v0 = vld [vmem:[%s10825_s21 + $0xbd] sm:$0xff] }
 0x1c8   : > { %9155 = vmatprep.subr.bf16.mxu0 %v10541_v48  ;;  %v10553_v62 = vld [vmem:[%s13532_s1 + $0x238] sm:$0xff]  }
 0x1c9   : > { %8822 = vmatmul.mubr.bf16.gmra.mrb[4].mxu1 %v476_v2  ;;  %v2631_v2 = vld [vmem:[%s10825_s21 + $0xcd] sm:$0xff] }
 0x1ca   : > { %8825 = vmatprep.mubr.bf16.mxu1 %v477_v9  ;;  %v2656_v4 = vpack.c.bf16 %v2631_v2, %v2630_v1  ;;  %v2657_v9 = vpack.c.bf16 %v2633_v6, %v2632_v5  ;;  %v2968_v1 = vld [vmem:[%s10825_s21 + $0xf6] sm:$0xff]  ;;  %v2969_v2 = vld [vmem:[%s10825_s21 + $0xfe] sm:$0xff] }
 0x1cb   : > { %9156 = vmatpush3.bf16.msra.mxu0 %v10541_v48  ;;  %v2623_v48 = vld [vmem:[%s10825_s21 + $0x8d] sm:$0xff]  ;;  %v2991_v5 = vpack.c.bf16 %v2969_v2, %v2968_v1 }
 0x1cc   : > { %9157 = vmatprep.subr.bf16.mxu0 %v10542_v49 }
 0x1ce   : > { %9122 = vmatmul.mubr.bf16.gmra.mrb[8].mxu0 %v11168_v8  ;;  %v2313_v8 = vld [vmem:[%s10825_s21 + $0x13c] sm:$0x3f] }
 0x1cf   : > { %9125 = vmatprep.mubr.bf16.mxu0 %v11182_v15  ;;  %9158 = vmatpush3.bf16.msra.mxu0 %v10542_v49  ;;  %v2331_v14 = vpack.c.bf16 %v2313_v8, %v2312_v7  ;;  %v2646_v15 = vpack.c.bf16 %v2611_v12, %v2610_v11  ;;  %v10550_v49 = vld [vmem:[%s13532_s1 + $0x220] sm:$0xff]   ;;  %v2635_v8 = vld [vmem:[%s10825_s21 + $0xed] sm:$0xff]  ;;  %v2636_v11 = vld [vmem:[%s10825_s21 + $0xf5] sm:$0xff] }
 0x1d0   : > { %9159 = vmatprep.subr.bf16.mxu0 %v10543_v50  ;;  %v2634_v7 = vld [vmem:[%s10825_s21 + $0xe5] sm:$0xff]  ;;  %v2637_v12 = vld [vmem:[%s10825_s21 + $0xfd] sm:$0xff] }
 0x1d1   : > { %8826 = vmatmul.mubr.bf16.gmra.mrb[8].mxu1 %v478_v13  ;;  %v2658_v10 = vpack.c.bf16 %v2635_v8, %v2634_v7  ;;  %v2638_v13 = vld [vmem:[%s10825_s21 + $0x105] sm:$0xff]  ;;  %v2972_v7 = vld [vmem:[%s10825_s21 + $0x116] sm:$0xff] }
 0x1d2   : > { %v2973_v8 = vld [vmem:[%s10825_s21 + $0x11e] sm:$0xff] }
 0x1d3   : > { %9160 = vmatpush3.bf16.msra.mxu0 %v10543_v50  ;;  %v2651_v50 = vpack.c.bf16 %v2621_v46, %v2620_v45  ;;  %v2984_v46 = vpack.c.bf16 %v2955_v44, %v2954_v43 }
 0x1d4   : > { %9161 = vmatprep.subr.bf16.mxu0 %v10544_v51 }
 0x1d6   : > { %9126 = vmatmul.mubr.bf16.gmra.mrb[12].mxu0 %v11184_v16  ;;  %v457_v16 = vld [vmem:[%s10825_s21 + $0xe1] sm:$0xff] }
 0x1d7   : > { %9129 = vmatprep.mubr.bf16.mxu0 %v1991_v23  ;;  %9162 = vmatpush3.bf16.msra.mxu0 %v10544_v51  ;;  %v479_v21 = vpack.c.bf16 %v458_v17, %v457_v16  ;;  %v2614_v23 = vld [vmem:[%s10825_s21 + $0x45] sm:$0xff]  ;;  %v10556_v51 = vld [vmem:[%s13535_s4 + $0x50] sm:$0xff]  }
 0x1d8   : > { %9163 = vmatprep.subr.bf16.mxu0 %v10545_v52  ;;  %9257 = vmatprep.subr.bf16.mxu1 %v10556_v51  ;;  %v2640_v17 = vld [vmem:[%s10825_s21 + $0x115] sm:$0xff] }
 0x1d9   : > { %8829 = vmatprep.mubr.bf16.mxu1 %v479_v21  ;;  %9258 = vmatpush3.bf16.msra.mxu1 %v10556_v51  ;;  %v2661_v21 = vpack.c.bf16 %v2641_v18, %v2640_v17  ;;  %v10559_v17 = vld [vmem:[%s13535_s4 + $0x68] sm:$0xff]   ;;  %v10560_v18 = vld [vmem:[%s13535_s4 + $0x70] sm:$0xff]  }
 0x1da   : > { %8830 = vmatmul.mubr.bf16.gmra.mrb[12].mxu1 %v480_v25  ;;  %9259 = vmatprep.subr.bf16.mxu1 %v10557_v54  ;;  %v2942_v25 = vld [vmem:[%s10825_s21 + $0x26] sm:$0xff] }
 0x1db   : > { %9164 = vmatpush3.bf16.msra.mxu0 %v10545_v52  ;;  %v2652_v52 = vpack.c.bf16 %v2623_v48, %v2622_v47  ;;  %v2956_v47 = vld [vmem:[%s10825_s21 + $0x96] sm:$0xff]  ;;  %v2957_v48 = vld [vmem:[%s10825_s21 + $0x9e] sm:$0xff] }
 0x1dc   : > { %9201 = vmatprep.subr.bf16.mxu0 %v11253_v53  ;;  %v2985_v51 = vpack.c.bf16 %v2957_v48, %v2956_v47 }
 0x1dd   : > { %9260 = vmatpush3.bf16.msra.mxu1 %v10557_v54  ;;  %v2961_v54 = vld [vmem:[%s10825_s21 + $0xbe] sm:$0xff] }
 0x1de   : > { %9130 = vmatmul.mubr.bf16.gmra.mrb[16].mxu0 %v11198_v24  ;;  %v2615_v24 = vld [vmem:[%s10825_s21 + $0x4d] sm:$0xff] }
 0x1df   : > { %9133 = vmatprep.mubr.bf16.mxu0 %v1993_v29  ;;  %v2648_v27 = vpack.c.bf16 %v2615_v24, %v2614_v23  ;;  %v461_v29 = vld [vmem:[%s10825_s21 + $0x101] sm:$0xff]  ;;  %v2644_v23 = vld [vmem:[%s10825_s21 + $0x135] sm:$0xff] }
 0x1e0   : > { %v2645_v24 = vld [vmem:[%s10825_s21 + $0x13d] sm:$0x3f] }
 0x1e6   : > { %9134 = vmatmul.mubr.bf16.gmra.mrb[20].mxu0 %v1994_v30  ;;  %v462_v30 = vld [vmem:[%s10825_s21 + $0x109] sm:$0xff] }
 0x1e7   : > { %9137 = vmatprep.mubr.bf16.mxu0 %v1995_v35  ;;  %v481_v34 = vpack.c.bf16 %v462_v30, %v461_v29  ;;  %v464_v35 = vld [vmem:[%s10825_s21 + $0x119] sm:$0x3f] }
 0x1e8   : > { %v482_v39 = vpack.c.bf16 %v464_v35, %v463_v31  ;;  %v2944_v29 = vld [vmem:[%s10825_s21 + $0x36] sm:$0xff]  ;;  %v2945_v30 = vld [vmem:[%s10825_s21 + $0x3e] sm:$0xff]  ;;  %v2946_v31 = vld [vmem:[%s10825_s21 + $0x46] sm:$0xff] }
 0x1e9   : > { %8833 = vmatprep.mubr.bf16.mxu1 %v481_v34  ;;  %v2979_v33 = vpack.c.bf16 %v2945_v30, %v2944_v29  ;;  %v2980_v34 = vpack.c.bf16 %v2947_v32, %v2946_v31  ;;  %v2948_v35 = vld [vmem:[%s10825_s21 + $0x56] sm:$0xff] }
 0x1ea   : > { %8834 = vmatmul.mubr.bf16.gmra.mrb[16].mxu1 %v482_v39 }
 0x1ee   : > { %9138 = vmatmul.mubr.bf16.gmra.mrb[24].mxu0 %v1996_v36  ;;  %v2618_v36 = vld [vmem:[%s10825_s21 + $0x65] sm:$0xff] }
 0x1ef   : > { %9141 = vmatprep.mubr.bf16.mxu0 %v1997_v41  ;;  %v2650_v41 = vpack.c.bf16 %v2619_v37, %v2618_v36  ;;  %v2949_v36 = vld [vmem:[%s10825_s21 + $0x5e] sm:$0xff]  ;;  %v2950_v37 = vld [vmem:[%s10825_s21 + $0x66] sm:$0xff] }
 0x1f0   : > { %v2981_v39 = vpack.c.bf16 %v2949_v36, %v2948_v35 }
 0x1f6   : > { %9142 = vmatmul.mubr.bf16.gmra.mrb[28].mxu0 %v11213_v42  ;;  %v10549_v42 = vld [vmem:[%s13532_s1 + $0x218] sm:$0xff]  }
 0x1f7   : > { %9145 = vmatprep.mubr.bf16.mxu0 %v2330_v3  ;;  %v2655_v3 = vpack.c.bf16 %v2629_v0, %v2628_v63 }
 0x1fe   : > { %9146 = vmatmul.mubr.bf16.gmra.mrb[32].mxu0 %v2331_v14  ;;  %v2639_v14 = vld [vmem:[%s10825_s21 + $0x10d] sm:$0xff] }
 0x1ff   : > { %9165 = vmatprep.mubr.bf16.mxu0 %v2646_v15  ;;  %v2659_v15 = vpack.c.bf16 %v2637_v12, %v2636_v11  ;;  %v2660_v16 = vpack.c.bf16 %v2639_v14, %v2638_v13  ;;  %v2993_v11 = vpack.c.bf16 %v2973_v8, %v2972_v7  ;;  %v2976_v13 = vld [vmem:[%s10825_s21 + $0x136] sm:$0xff]  ;;  %v2977_v14 = vld [vmem:[%s10825_s21 + $0x13e] sm:$0x3f] }
 0x206   : > { %9166 = vmatmul.mubr.bf16.vlgmr.msra.gmra.mrb[0].mxu0 %v2647_v26  ;;  %v2943_v26 = vld [vmem:[%s10825_s21 + $0x2e] sm:$0xff] }
 0x207   : > { %9202 = vmatpush3.bf16.msra.mxu0 %v11253_v53  ;;  %9169 = vmatprep.mubr.bf16.mxu0 %v2648_v27  ;;  %v10551_v53 = vld [vmem:[%s13532_s1 + $0x228] sm:$0xff]   ;;  %v2663_v27 = vpack.c.bf16 %v2645_v24, %v2644_v23  ;;  %v11403_v23 = vld [vmem:[%s13535_s4] sm:$0xff]  }
 0x208   : > { %9203 = vmatprep.subr.bf16.mxu0 %v10547_v28 }
 0x20b   : > { %9204 = vmatpush3.bf16.msra.mxu0 %v10547_v28  ;;  %v2978_v28 = vpack.c.bf16 %v2943_v26, %v2942_v25 }
 0x20c   : > { %9205 = vmatprep.subr.bf16.mxu0 %v10548_v38 }
 0x20e   : > { %9170 = vmatmul.mubr.bf16.gmra.mrb[4].mxu0 %v2649_v40 }
 0x20f   : > { %9173 = vmatprep.mubr.bf16.mxu0 %v2650_v41  ;;  %9206 = vmatpush3.bf16.msra.mxu0 %v10548_v38  ;;  %v2951_v38 = vld [vmem:[%s10825_s21 + $0x6e] sm:$0xff]  ;;  %v2952_v41 = vld [vmem:[%s10825_s21 + $0x76] sm:$0xff] }
 0x210   : > { %9207 = vmatprep.subr.bf16.mxu0 %v10549_v42  ;;  %v2982_v40 = vpack.c.bf16 %v2951_v38, %v2950_v37 }
 0x213   : > { %9208 = vmatpush3.bf16.msra.mxu0 %v10549_v42  ;;  %v2953_v42 = vld [vmem:[%s10825_s21 + $0x7e] sm:$0xff] }
 0x214   : > { %9209 = vmatprep.subr.bf16.mxu0 %v10550_v49  ;;  %v2983_v45 = vpack.c.bf16 %v2953_v42, %v2952_v41 }
 0x216   : > { %9174 = vmatmul.mubr.bf16.gmra.mrb[8].mxu0 %v2651_v50  ;;  %v2959_v50 = vld [vmem:[%s10825_s21 + $0xae] sm:$0xff] }
 0x217   : > { %9177 = vmatprep.mubr.bf16.mxu0 %v2652_v52  ;;  %9210 = vmatpush3.bf16.msra.mxu0 %v10550_v49  ;;  %v2958_v49 = vld [vmem:[%s10825_s21 + $0xa6] sm:$0xff] }
 0x218   : > { %9211 = vmatprep.subr.bf16.mxu0 %v10551_v53  ;;  %v2986_v52 = vpack.c.bf16 %v2959_v50, %v2958_v49 }
 0x21b   : > { %9212 = vmatpush3.bf16.msra.mxu0 %v10551_v53  ;;  %v2960_v53 = vld [vmem:[%s10825_s21 + $0xb6] sm:$0xff] }
 0x21c   : > { %9213 = vmatprep.subr.bf16.mxu0 %v10552_v59  ;;  %v2987_v57 = vpack.c.bf16 %v2961_v54, %v2960_v53 }
 0x21e   : > { %9178 = vmatmul.mubr.bf16.gmra.mrb[12].mxu0 %v2653_v60  ;;  %v2965_v60 = vld [vmem:[%s10825_s21 + $0xde] sm:$0xff] }
 0x21f   : > { %9181 = vmatprep.mubr.bf16.mxu0 %v2654_v61  ;;  %9214 = vmatpush3.bf16.msra.mxu0 %v10552_v59  ;;  %v2964_v59 = vld [vmem:[%s10825_s21 + $0xd6] sm:$0xff]  ;;  %v2966_v61 = vld [vmem:[%s10825_s21 + $0xe6] sm:$0xff] }
 0x220   : > { %9215 = vmatprep.subr.bf16.mxu0 %v10553_v62  ;;  %v2989_v63 = vpack.c.bf16 %v2965_v60, %v2964_v59 }
 0x223   : > { %9216 = vmatpush3.bf16.msra.mxu0 %v10553_v62  ;;  %v2967_v62 = vld [vmem:[%s10825_s21 + $0xee] sm:$0xff] }
 0x224   : > { %v2990_v0 = vpack.c.bf16 %v2967_v62, %v2966_v61 }
 0x226   : > { %9182 = vmatmul.mubr.bf16.gmra.mrb[16].mxu0 %v2655_v3  ;;  %v2970_v3 = vld [vmem:[%s10825_s21 + $0x106] sm:$0xff] }
 0x227   : > { %9185 = vmatprep.mubr.bf16.mxu0 %v2656_v4  ;;  %v2971_v4 = vld [vmem:[%s10825_s21 + $0x10e] sm:$0xff] }
 0x228   : > { %v2992_v6 = vpack.c.bf16 %v2971_v4, %v2970_v3 }
 0x22e   : > { %9186 = vmatmul.mubr.bf16.gmra.mrb[20].mxu0 %v2657_v9  ;;  %v2974_v9 = vld [vmem:[%s10825_s21 + $0x126] sm:$0xff] }
 0x22f   : > { %9189 = vmatprep.mubr.bf16.mxu0 %v2658_v10  ;;  %v2975_v10 = vld [vmem:[%s10825_s21 + $0x12e] sm:$0xff] }
 0x230   : > { %v2994_v12 = vpack.c.bf16 %v2975_v10, %v2974_v9 }
 0x236   : > { %9190 = vmatmul.mubr.bf16.gmra.mrb[24].mxu0 %v2659_v15  ;;  %v2995_v15 = vpack.c.bf16 %v2977_v14, %v2976_v13 }
 0x237   : > { %9193 = vmatprep.mubr.bf16.mxu0 %v2660_v16  ;;  %v10558_v16 = vld [vmem:[%s13535_s4 + $0x60] sm:$0xff]  }
 0x238   : > { %9261 = vmatprep.subr.bf16.mxu1 %v10558_v16 }
 0x239   : > { %9262 = vmatpush3.bf16.msra.mxu1 %v10558_v16 }
 0x23a   : > { %9263 = vmatprep.subr.bf16.mxu1 %v10559_v17 }
 0x23d   : > { %9264 = vmatpush3.bf16.msra.mxu1 %v10559_v17 }
 0x23e   : > { %9194 = vmatmul.mubr.bf16.gmra.mrb[28].mxu0 %v2661_v21  ;;  %9265 = vmatprep.subr.bf16.mxu1 %v10560_v18  ;;  %v4373_v21 = vld [vmem:[#allocation2 + $0x6] sm:$0xff] }
 0x23f   : > { %9197 = vmatprep.mubr.bf16.mxu0 %v2662_v22  ;;  %v4374_v22 = vld [vmem:[#allocation2 + $0xe] sm:$0xff] }
 0x240   : > { %v4409_v24 = vpack.c.bf16 %v4374_v22, %v4373_v21 }
 0x241   : > { %9266 = vmatpush3.bf16.msra.mxu1 %v10560_v18 }
 0x242   : > { %9267 = vmatprep.subr.bf16.mxu1 %v10561_v19  ;;  %9269 = vmatprep.mubr.bf16.mxu1 %v4409_v24 }
 0x245   : > { %9268 = vmatpush3.bf16.msra.mxu1 %v10561_v19 }
 0x246   : > { %9198 = vmatmul.mubr.bf16.gmra.mrb[32].mxu0 %v2663_v27  ;;  %9305 = vmatprep.subr.bf16.mxu1 %v11403_v23 }
 0x247   : > { %9217 = vmatprep.mubr.bf16.mxu0 %v2978_v28  ;;  %v3396_v28 = vlaneseq }
 0x249   : > { %v11414_v30 = vshrl.u32 %v3396_v28, 7 }
 0x24b   : > { %v3400_v38 = vadd.s32 24, %v11414_v30  ;;  %v3433_v43 = vadd.s32 1, %v11414_v30  ;;  %v3403_v44 = vadd.s32 48, %v11414_v30  ;;  %v3404_v48 = vadd.s32 56, %v11414_v30 }
 0x24c   : > { %v3402_v4 = vadd.s32 40, %v11414_v30  ;;  %v3407_v8 = vadd.s32 80, %v11414_v30  ;;  %v3408_v16 = vadd.s32 88, %v11414_v30 }
 0x24d   : > { %v3436_v49 = vadd.s32 1, %v3400_v38  ;;  %v3439_v53 = vadd.s32 1, %v3403_v44  ;;  %v11449_v55 = vadd.s32 1, %v3404_v48  ;;  %v3406_v44 = vadd.s32 72, %v11414_v30 }
 0x24e   : > { %9218 = vmatmul.mubr.bf16.vlgmr.msra.gmra.mrb[0].mxu0 %v2979_v33  ;;  %v11484_v13 = vadd.s32 1, %v3407_v8  ;;  %v11513_v48 = vadd.s32 1, %v3408_v16  ;;  %v3409_v8 = vadd.s32 96, %v11414_v30 }
 0x24f   : > { %9221 = vmatprep.mubr.bf16.mxu0 %v2980_v34  ;;  %v3399_v34 = vadd.s32 16, %v11414_v30 }
 0x251   : > { %v3435_v36 = vadd.s32 1, %v3399_v34 }
 0x253   : > { %v11431_v41 = vmul.u32.u64.low 3817748708, %v3435_v36  ;;  %v11432_v42 = vmul.u32.u64.high 3817748708, %v3435_v36, %v11431_v41 }
 0x255   : > { %v3497_v62 = vshrl.u32 %v11432_v42, 4  ;;  %v11509_v41 = vmul.u32.u64.low 3817748708, %v11484_v13  ;;  %v11510_v42 = vmul.u32.u64.high 3817748708, %v11484_v13, %v11509_v41 }
 0x256   : > { %9222 = vmatmul.mubr.bf16.gmra.mrb[4].mxu0 %v2981_v39  ;;  %v3398_v39 = vadd.s32 8, %v11414_v30 }
 0x257   : > { %9225 = vmatprep.mubr.bf16.mxu0 %v2982_v40  ;;  %v3498_v9 = vmul.u32 18, %v3497_v62 }
 0x258   : > { %v11442_v50 = vadd.s32 1, %v3398_v39 }
 0x259   : > { %v11492_v18 = vsub.s32 %v3435_v36, %v3498_v9 }
 0x25a   : > { %v11457_v59 = vmul.u32.u64.low 3817748708, %v11442_v50  ;;  %v11458_v60 = vmul.u32.u64.high 3817748708, %v11442_v50, %v11457_v59 }
 0x25b   : > { %vm3867_vm0 = vcmp.ne.s32.totalorder %v11492_v18, 0  ;;  %vm3903_vm1 = vcmp.lt.s32.totalorder %v11492_v18, 0  ;;  %v3975_v62 = vadd.s32 18, %v11492_v18 }
 0x25c   : > { %v3486_v20 = vshrl.u32 %v11458_v60, 4  ;;  %vm11550_vm6 = vmand %vm3903_vm1, %vm3867_vm0 }
 0x25e   : > { %9226 = vmatmul.mubr.bf16.gmra.mrb[8].mxu0 %v2983_v45 }
 0x25f   : > { %9229 = vmatprep.mubr.bf16.mxu0 %v2984_v46  ;;  %v3401_v46 = vadd.s32 32, %v11414_v30 }
 0x261   : > { %v11447_v54 = vadd.s32 1, %v3401_v46 }
 0x263   : > { %v11469_v2 = vmul.u32.u64.low 3817748708, %v11447_v54  ;;  %v11470_v3 = vmul.u32.u64.high 3817748708, %v11447_v54, %v11469_v2 }
 0x265   : > { %v3519_v24 = vshrl.u32 %v11470_v3, 4 }
 0x266   : > { %9230 = vmatmul.mubr.bf16.gmra.mrb[12].mxu0 %v2985_v51 }
 0x267   : > { %9233 = vmatprep.mubr.bf16.mxu0 %v2986_v52  ;;  %v11444_v51 = vmul.u32.u64.low 3817748708, %v3433_v43  ;;  %v11445_v52 = vmul.u32.u64.high 3817748708, %v3433_v43, %v11444_v51 }
 0x269   : > { %v3475_v10 = vshrl.u32 %v11445_v52, 4  ;;  %v3487_v52 = vmul.u32 18, %v3486_v20 }
 0x26b   : > { %v3476_v19 = vmul.u32 18, %v3475_v10 }
 0x26d   : > { %v11515_v51 = vsub.s32 %v3433_v43, %v3476_v19  ;;  %v11527_v43 = vmul.u32.u64.low 3817748708, %v11513_v48  ;;  %v11528_v3 = vmul.u32.u64.high 3817748708, %v11513_v48, %v11527_v43 }
 0x26e   : > { %9234 = vmatmul.mubr.bf16.gmra.mrb[16].mxu0 %v2987_v57 }
 0x26f   : > { %9237 = vmatprep.mubr.bf16.mxu0 %v2988_v58  ;;  %v11453_v57 = vmul.u32.u64.low 3817748708, %v3436_v49  ;;  %v11454_v58 = vmul.u32.u64.high 3817748708, %v3436_v49, %v11453_v57  ;;  %vm3865_vm2 = vcmp.ne.s32.totalorder %v11515_v51, 0  ;;  %vm3901_vm3 = vcmp.lt.s32.totalorder %v11515_v51, 0 }
 0x270   : > { %v3973_v9 = vadd.s32 18, %v11515_v51  ;;  %vm11560_vm10 = vmand %vm3901_vm3, %vm3865_vm2  ;;  %v3596_v41 = vshrl.u32 %v11528_v3, 4 }
 0x276   : > { %9238 = vmatmul.mubr.bf16.gmra.mrb[20].mxu0 %v2989_v63 }
 0x277   : > { %9241 = vmatprep.mubr.bf16.mxu0 %v2990_v0  ;;  %v11463_v63 = vmul.u32.u64.low 3817748708, %v3439_v53  ;;  %v11464_v0 = vmul.u32.u64.high 3817748708, %v3439_v53, %v11463_v63 }
 0x279   : > { %v3541_v21 = vshrl.u32 %v11464_v0, 4  ;;  %v11524_v0 = vadd.s32 1, %v3406_v44 }
 0x27b   : > { %v3542_v57 = vmul.u32 18, %v3541_v21  ;;  %v11541_v16 = vmul.u32.u64.low 3817748708, %v11524_v0  ;;  %v11542_v19 = vmul.u32.u64.high 3817748708, %v11524_v0, %v11541_v16 }
 0x27c   : > { %v11607_v16 = vsel %vm11550_vm6, %v3975_v62, %v11492_v18 }
 0x27e   : > { %9242 = vmatmul.mubr.bf16.gmra.mrb[24].mxu0 %v2991_v5 }
 0x27f   : > { %9245 = vmatprep.mubr.bf16.mxu0 %v2992_v6  ;;  %v11476_v6 = vmul.u32.u64.low 3817748708, %v11449_v55  ;;  %v11477_v7 = vmul.u32.u64.high 3817748708, %v11449_v55, %v11476_v6 }
 0x280   : > { %v3488_v6 = vsub.s32 %v11442_v50, %v3487_v52 }
 0x281   : > { %v3552_v36 = vshrl.u32 %v11477_v7, 4  ;;  %v3543_v7 = vsub.s32 %v3439_v53, %v3542_v57 }
 0x282   : > { %vm3866_vm7 = vcmp.ne.s32.totalorder %v3488_v6, 0  ;;  %vm3902_vm8 = vcmp.lt.s32.totalorder %v3488_v6, 0  ;;  %v3974_v52 = vadd.s32 18, %v3488_v6 }
 0x283   : > { %v3553_v63 = vmul.u32 18, %v3552_v36  ;;  %vm3871_vm9 = vcmp.ne.s32.totalorder %v3543_v7, 0  ;;  %vm3907_vm11 = vcmp.lt.s32.totalorder %v3543_v7, 0  ;;  %vm11571_vm1 = vmand %vm3902_vm8, %vm3866_vm7  ;;  %v3414_v36 = vadd.s32 136, %v11414_v30 }
 0x284   : > { %vm11583_vm2 = vmand %vm3907_vm11, %vm3871_vm9 }
 0x286   : > { %9246 = vmatmul.mubr.bf16.gmra.mrb[28].mxu0 %v2993_v11  ;;  %v11481_v11 = vadd.s32 1, %v3402_v4  ;;  %v3411_v4 = vadd.s32 112, %v11414_v30 }
 0x287   : > { %9249 = vmatprep.mubr.bf16.mxu0 %v2994_v12  ;;  %v3405_v12 = vadd.s32 64, %v11414_v30 }
 0x288   : > { %v11500_v28 = vmul.u32.u64.low 3817748708, %v11481_v11  ;;  %v11501_v34 = vmul.u32.u64.high 3817748708, %v11481_v11, %v11500_v28  ;;  %v11544_v53 = vadd.s32 1, %v3411_v4 }
 0x289   : > { %v11503_v38 = vadd.s32 1, %v3405_v12  ;;  %v3554_v12 = vsub.s32 %v11449_v55, %v3553_v63  ;;  %v11554_v55 = vadd.s32 1, %v3409_v8 }
 0x28b   : > { %v11519_v59 = vmul.u32.u64.low 3817748708, %v11503_v38  ;;  %v11520_v60 = vmul.u32.u64.high 3817748708, %v11503_v38, %v11519_v59  ;;  %vm3872_vm15 = vcmp.ne.s32.totalorder %v3554_v12, 0  ;;  %vm3908_vm0 = vcmp.lt.s32.totalorder %v3554_v12, 0 }
 0x28c   : > { %v3980_v3 = vadd.s32 18, %v3554_v12 }
 0x28d   : > { %v3563_v21 = vshrl.u32 %v11520_v60, 4  ;;  %v11588_v59 = vmul.u32.u64.low 3817748708, %v11554_v55  ;;  %v11589_v60 = vmul.u32.u64.high 3817748708, %v11554_v55, %v11588_v59 }
 0x28e   : > { %9250 = vmatmul.mubr.bf16.gmra.mrb[32].mxu0 %v2995_v15  ;;  %v3508_v15 = vshrl.u32 %v11454_v58, 4  ;;  %v3520_v58 = vmul.u32 18, %v3519_v24  ;;  %v3597_v59 = vmul.u32 18, %v3596_v41 }
 0x28f   : > { %v3564_v4 = vmul.u32 18, %v3563_v21  ;;  %v3607_v24 = vshrl.u32 %v11589_v60, 4 }
 0x290   : > { %v3509_v46 = vmul.u32 18, %v3508_v15  ;;  %v3521_v10 = vsub.s32 %v11447_v54, %v3520_v58  ;;  %v3585_v15 = vshrl.u32 %v11510_v42, 4  ;;  %v3979_v58 = vadd.s32 18, %v3543_v7 }
 0x291   : > { %v11577_v42 = vmul.u32.u64.low 3817748708, %v11544_v53  ;;  %v11578_v44 = vmul.u32.u64.high 3817748708, %v11544_v53, %v11577_v42  ;;  %v11625_v54 = vsel %vm11571_vm1, %v3974_v52, %v3488_v6  ;;  %v3419_v52 = vadd.s32 176, %v11414_v30 }
 0x292   : > { %v3510_v2 = vsub.s32 %v3436_v49, %v3509_v46  ;;  %v3530_v49 = vshrl.u32 %v11501_v34, 4  ;;  %vm3869_vm12 = vcmp.ne.s32.totalorder %v3521_v10, 0  ;;  %vm3905_vm13 = vcmp.lt.s32.totalorder %v3521_v10, 0 }
 0x293   : > { %v3586_v34 = vmul.u32 18, %v3585_v15  ;;  %v3412_v46 = vadd.s32 120, %v11414_v30  ;;  %vm11593_vm3 = vmand %vm3905_vm13, %vm3869_vm12  ;;  %v3977_v43 = vadd.s32 18, %v3521_v10  ;;  %v3410_v15 = vadd.s32 104, %v11414_v30 }
 0x294   : > { %v11406_v25 = vpop.f32.mrb[0].mxu1  ;;  %vm3868_vm4 = vcmp.ne.s32.totalorder %v3510_v2, 0  ;;  %vm3904_vm5 = vcmp.lt.s32.totalorder %v3510_v2, 0  ;;  %v3976_v50 = vadd.s32 18, %v3510_v2  ;;  %v3531_v28 = vmul.u32 18, %v3530_v49 }
 0x295   : > { %v11408_v26 = vpop.f32.mrb[1].mxu1  ;;  %vm11566_vm14 = vmand %vm3904_vm5, %vm3868_vm4  ;;  %v3574_v49 = vshrl.u32 %v11542_v19, 4  ;;  %v11610_v42 = vsub.s32 %v11484_v13, %v3586_v34  ;;  %v11612_v21 = vadd.s32 1, %v3412_v46  ;;  %v11629_v13 = vsel %vm11583_vm2, %v3979_v58, %v3543_v7 }
 0x296   : > { %v11410_v27 = vpop.f32.mrb[2].mxu1  ;;  %vm3944_vm4 = vmand %vm3908_vm0, %vm3872_vm15  ;;  %v11600_v8 = vsub.s32 %v11481_v11, %v3531_v28  ;;  %v11617_v11 = vsel %vm11560_vm10, %v3973_v9, %v11515_v51  ;;  %v11621_v19 = vsel %vm11566_vm14, %v3976_v50, %v3510_v2  ;;  %v11633_v18 = vsel %vm11593_vm3, %v3977_v43, %v3521_v10 }
 0x297   : > { %v11412_v29 = vpop.f32.mrb[3].mxu1  ;;  %v11635_v62 = vsel %vm3944_vm4, %v3980_v3, %v3554_v12  ;;  %v11638_v51 = vsub.s32 %v11503_v38, %v3564_v4  ;;  %v3415_v2 = vadd.s32 144, %v11414_v30  ;;  %v3575_v7 = vmul.u32 18, %v3574_v49 }
 0x298   : > { %vm3870_vm5 = vcmp.ne.s32.totalorder %v11600_v8, 0  ;;  %vm3906_vm6 = vcmp.lt.s32.totalorder %v11600_v8, 0  ;;  %v11644_v6 = vadd.s32 18, %v11600_v8  ;;  %v11646_v9 = vadd.s32 1, %v3410_v15 }
 0x299   : > { %vm3875_vm7 = vcmp.ne.s32.totalorder %v11610_v42, 0  ;;  %v11650_v10 = vsub.s32 %v11513_v48, %v3597_v59  ;;  %v3629_v38 = vshrl.u32 %v11578_v44, 4  ;;  %vm3911_vm8 = vcmp.lt.s32.totalorder %v11610_v42, 0  ;;  %vm11711_vm15 = vmand %vm3906_vm6, %vm3870_vm5 }
 0x29a   : > { %v11654_v12 = vmul.u32.u64.low 3817748708, %v11612_v21  ;;  %v11655_v50 = vmul.u32.u64.high 3817748708, %v11612_v21, %v11654_v12  ;;  %v11659_v20 = vadd.s32 18, %v11610_v42  ;;  %v3413_v28 = vadd.s32 128, %v11414_v30  ;;  %vm11727_vm0 = vmand %vm3911_vm8, %vm3875_vm7 }
 0x29b   : > { %vm3873_vm9 = vcmp.ne.s32.totalorder %v11638_v51, 0  ;;  %v11664_v34 = vadd.s32 1, %v3415_v2  ;;  %v3416_v48 = vadd.s32 152, %v11414_v30  ;;  %v11669_v41 = vsub.s32 %v11524_v0, %v3575_v7 }
 0x29c   : > { %v11416_v31 = vpop.f32.mrb[4].mxu1  ;;  %v11672_v44 = vmul.u32.u64.low 3817748708, %v11646_v9  ;;  %v11673_v46 = vmul.u32.u64.high 3817748708, %v11646_v9, %v11672_v44  ;;  %vm3909_vm10 = vcmp.lt.s32.totalorder %v11638_v51, 0  ;;  %v3981_v57 = vadd.s32 18, %v11638_v51 }
 0x29d   : > { %v11418_v32 = vpop.f32.mrb[5].mxu1  ;;  %vm3876_vm11 = vcmp.ne.s32.totalorder %v11650_v10, 0  ;;  %v3630_v58 = vmul.u32 18, %v3629_v38  ;;  %vm3912_vm12 = vcmp.lt.s32.totalorder %v11650_v10, 0  ;;  %v3608_v60 = vmul.u32 18, %v3607_v24  ;;  %vm11742_vm1 = vmand %vm3909_vm10, %vm3873_vm9 }
 0x29e   : > { %v11420_v33 = vpop.f32.mrb[6].mxu1  ;;  %v11680_v63 = vadd.s32 1, %v3413_v28  ;;  %v3417_v0 = vadd.s32 160, %v11414_v30  ;;  %v11684_v43 = vmul.u32.u64.low 3817748708, %v11664_v34  ;;  %v11685_v3 = vmul.u32.u64.high 3817748708, %v11664_v34, %v11684_v43  ;;  %vm11751_vm4 = vmand %vm3912_vm12, %vm3876_vm11 }
 0x29f   : > { %13544 = vst [vmem:[#allocation6_spill] sm:$0xff] %v11420_v33  ;;  %v11423_v35 = vpop.f32.mrb[7].mxu1  ;;  %v11687_v4 = vadd.s32 1, %v3416_v48  ;;  %v11689_v49 = vadd.s32 1, %v3414_v36  ;;  %v3984_v15 = vadd.s32 18, %v11650_v10  ;;  %vm3874_vm13 = vcmp.ne.s32.totalorder %v11669_v41, 0 }
 0x2a0   : > { %13545 = vst [vmem:[#allocation7_spill] sm:$0xff] %v11423_v35  ;;  %v11693_v59 = vadd.s32 1, %v3419_v52  ;;  %v3420_v2 = vadd.s32 184, %v11414_v30  ;;  %vm3910_vm14 = vcmp.lt.s32.totalorder %v11669_v41, 0  ;;  %v3982_v7 = vadd.s32 18, %v11669_v41 }
 0x2a1   : > { %v3631_v38 = vsub.s32 %v11544_v53, %v3630_v58  ;;  %v3640_v12 = vshrl.u32 %v11655_v50, 4  ;;  %v3609_v24 = vsub.s32 %v11554_v55, %v3608_v60  ;;  %v11705_v36 = vadd.s32 1, %v3417_v0  ;;  %vm11764_vm5 = vmand %vm3910_vm14, %vm3874_vm13 }
 0x2a2   : > { %v11702_v28 = vmul.u32.u64.low 3817748708, %v11680_v63  ;;  %v11703_v48 = vmul.u32.u64.high 3817748708, %v11680_v63, %v11702_v28  ;;  %v11716_v53 = vmul.u32.u64.low 3817748708, %v11687_v4  ;;  %v11717_v52 = vmul.u32.u64.high 3817748708, %v11687_v4, %v11716_v53 }
 0x2a3   : > { %v11720_v55 = vmul.u32.u64.low 3817748708, %v11689_v49  ;;  %v11721_v50 = vmul.u32.u64.high 3817748708, %v11689_v49, %v11720_v55  ;;  %v3618_v60 = vshrl.u32 %v11673_v46, 4  ;;  %v11736_v28 = vadd.s32 1, %v3420_v2 }
 0x2a4   : > { %v11425_v37 = vpop.f32.mrb[8].mxu1  ;;  %v11733_v0 = vmul.u32.u64.low 3817748708, %v11693_v59  ;;  %v11734_v43 = vmul.u32.u64.high 3817748708, %v11693_v59, %v11733_v0  ;;  %vm3879_vm2 = vcmp.ne.s32.totalorder %v3631_v38, 0  ;;  %vm3915_vm3 = vcmp.lt.s32.totalorder %v3631_v38, 0 }
 0x2a5   : > { %13546 = vst [vmem:[#allocation8_spill] sm:$0xff] %v11425_v37  ;;  %v11429_v40 = vpop.f32.mrb[9].mxu1  ;;  %v3987_v55 = vadd.s32 18, %v3631_v38  ;;  %v3641_v2 = vmul.u32 18, %v3640_v12  ;;  %vm3877_vm6 = vcmp.ne.s32.totalorder %v3609_v24, 0  ;;  %vm3913_vm7 = vcmp.lt.s32.totalorder %v3609_v24, 0  ;;  %vm3951_vm8 = vmand %vm3915_vm3, %vm3879_vm2 }
 0x2a6   : > { %13547 = vst [vmem:[#allocation9_spill] sm:$0xff] %v11429_v40  ;;  %v11436_v45 = vpop.f32.mrb[10].mxu1  ;;  %v3421_v12 = vadd.s32 192, %v11414_v30  ;;  %v11791_v44 = vsel %vm11742_vm1, %v3981_v57, %v11638_v51  ;;  %vm3949_vm9 = vmand %vm3913_vm7, %vm3877_vm6  ;;  %v3684_v57 = vshrl.u32 %v11717_v52, 4  ;;  %vm4048_vm7 = vcmp.ge.s32.totalorder %v11621_v19, 1 }
 0x2a7   : > { %13548 = vst [vmem:[#allocation10_spill] sm:$0xff] %v11436_v45  ;;  %v11439_v47 = vpop.f32.mrb[11].mxu1 }
 0x2a8   : > { %13549 = vst [vmem:[#allocation11_spill] sm:$0xff] %v11439_v47  ;;  %v11813_v58 = vadd.s32 1, %v3421_v12 }
 0x2ad   : > { %v11451_v56 = vpop.f32.mrb[12].mxu1 }
 0x2ae   : > { %13550 = vst [vmem:[#allocation12_spill] sm:$0xff] %v11451_v56  ;;  %v11460_v61 = vpop.f32.mrb[13].mxu1 }
 0x2af   : > { %13551 = vst [vmem:[#allocation13_spill] sm:$0xff] %v11460_v61  ;;  %v11466_v1 = vpop.f32.mrb[14].mxu1  ;;  %v11779_v61 = vmul.u32.u64.low 3817748708, %v11736_v28  ;;  %v11780_v56 = vmul.u32.u64.high 3817748708, %v11736_v28, %v11779_v61 }
 0x2b0   : > { %13552 = vst [vmem:[#allocation14_spill] sm:$0xff] %v11466_v1  ;;  %v11473_v5 = vpop.f32.mrb[15].mxu1  ;;  %v3619_v1 = vmul.u32 18, %v3618_v60  ;;  %v11798_v60 = vsel %vm11751_vm4, %v3984_v15, %v11650_v10  ;;  %v11803_v61 = vsel %vm11764_vm5, %v3982_v7, %v11669_v41  ;;  %v11816_v10 = vsub.s32 %v11612_v21, %v3641_v2 }
 0x2b1   : > { %13553 = vst [vmem:[#allocation15_spill] sm:$0xff] %v11473_v5  ;;  %v3673_v5 = vshrl.u32 %v11685_v3, 4  ;;  %v11786_v3 = vsel %vm11727_vm0, %v11659_v20, %v11610_v42  ;;  %v3651_v42 = vshrl.u32 %v11703_v48, 4  ;;  %v11810_v20 = vsel %vm3951_vm8, %v3987_v55, %v3631_v38 }
 0x2b2   : > { %v3662_v41 = vshrl.u32 %v11721_v50, 4  ;;  %v3717_v15 = vshrl.u32 %v11734_v43, 4  ;;  %vm3880_vm10 = vcmp.ne.s32.totalorder %v11816_v10, 0  ;;  %v3728_v46 = vshrl.u32 %v11780_v56, 4 }
 0x2b3   : > { %v3652_v48 = vmul.u32 18, %v3651_v42  ;;  %vm3916_vm11 = vcmp.lt.s32.totalorder %v11816_v10, 0  ;;  %v3422_v42 = vadd.s32 200, %v11414_v30 }
 0x2b4   : > { %v3663_v43 = vmul.u32 18, %v3662_v41  ;;  %v3718_v55 = vmul.u32 18, %v3717_v15  ;;  %vm11881_vm0 = vmand %vm3916_vm11, %vm3880_vm10 }
 0x2b5   : > { %v11856_v12 = vsub.s32 %v11680_v63, %v3652_v48  ;;  %v3729_v63 = vmul.u32 18, %v3728_v46 }
 0x2b6   : > { %v11869_v41 = vsub.s32 %v11693_v59, %v3718_v55 }
 0x2b7   : > { %vm3881_vm1 = vcmp.ne.s32.totalorder %v11856_v12, 0  ;;  %vm3917_vm2 = vcmp.lt.s32.totalorder %v11856_v12, 0 }
 0x2b8   : > { %vm11920_vm11 = vmand %vm3917_vm2, %vm3881_vm1  ;;  %vm4084_vm1 = vcmp.le.s32.totalorder %v11621_v19, 16 }
 0x2bd   : > { %v11486_v14 = vpop.f32.mrb[16].mxu1 }
 0x2be   : > { %13554 = vst [vmem:[#allocation16_spill] sm:$0xff] %v11486_v14  ;;  %v11490_v17 = vpop.f32.mrb[17].mxu1  ;;  %v11819_v14 = vsub.s32 %v11646_v9, %v3619_v1  ;;  %v3685_v9 = vmul.u32 18, %v3684_v57  ;;  %v11866_v57 = vsub.s32 %v11689_v49, %v3663_v43 }
 0x2bf   : > { %13555 = vst [vmem:[#allocation17_spill] sm:$0xff] %v11490_v17  ;;  %v11496_v22 = vpop.f32.mrb[18].mxu1  ;;  %v3423_v17 = vadd.s32 208, %v11414_v30 }
 0x2c0   : > { %13556 = vst [vmem:[#allocation18_spill] sm:$0xff] %v11496_v22  ;;  %v11505_v39 = vpop.f32.mrb[19].mxu1  ;;  %v11756_v0 = vmul.u32.u64.low 3817748708, %v11705_v36  ;;  %v11757_v22 = vmul.u32.u64.high 3817748708, %v11705_v36, %v11756_v0  ;;  %vm3878_vm12 = vcmp.ne.s32.totalorder %v11819_v14, 0  ;;  %vm3914_vm13 = vcmp.lt.s32.totalorder %v11819_v14, 0 }
 0x2c1   : > { %13557 = vst [vmem:[#allocation19_spill] sm:$0xff] %v11505_v39  ;;  %v3418_v39 = vadd.s32 168, %v11414_v30  ;;  %v11774_v0 = vsel %vm11711_vm15, %v11644_v6, %v11600_v8  ;;  %v3985_v8 = vadd.s32 18, %v3609_v24  ;;  %v11808_v51 = vadd.s32 1, %v3423_v17  ;;  %vm11893_vm3 = vmand %vm3914_vm13, %vm3878_vm12 }
 0x2c2   : > { %v3695_v52 = vshrl.u32 %v11757_v22, 4  ;;  %v11846_v22 = vadd.s32 18, %v11816_v10  ;;  %v11853_v2 = vadd.s32 18, %v11819_v14  ;;  %v11861_v56 = vsub.s32 %v11687_v4, %v3685_v9 }
 0x2c3   : > { %v11793_v6 = vadd.s32 1, %v3418_v39  ;;  %v3674_v39 = vmul.u32 18, %v3673_v5  ;;  %v11823_v7 = vsel %vm3949_vm9, %v3985_v8, %v3609_v24  ;;  %v3424_v5 = vadd.s32 216, %v11414_v30 }
 0x2c4   : > { %v11832_v21 = vmul.u32.u64.low 3817748708, %v11808_v51  ;;  %v11833_v53 = vmul.u32.u64.high 3817748708, %v11808_v51, %v11832_v21  ;;  %v11839_v24 = vmul.u32.u64.low 3817748708, %v11813_v58  ;;  %v11840_v50 = vmul.u32.u64.high 3817748708, %v11813_v58, %v11839_v24 }
 0x2c5   : > { %v11826_v17 = vmul.u32.u64.low 3817748708, %v11793_v6  ;;  %v11827_v38 = vmul.u32.u64.high 3817748708, %v11793_v6, %v11826_v17  ;;  %v11836_v1 = vsub.s32 %v11664_v34, %v3674_v39  ;;  %v11849_v34 = vadd.s32 1, %v3424_v5 }
 0x2c6   : > { %v3696_v8 = vmul.u32 18, %v3695_v52  ;;  %v3427_v4 = vadd.s32 240, %v11414_v30  ;;  %v3761_v59 = vshrl.u32 %v11833_v53, 4  ;;  %vm3884_vm4 = vcmp.ne.s32.totalorder %v11861_v56, 0 }
 0x2c7   : > { %vm3883_vm14 = vcmp.ne.s32.totalorder %v11836_v1, 0  ;;  %vm3919_vm15 = vcmp.lt.s32.totalorder %v11836_v1, 0  ;;  %v3991_v39 = vadd.s32 18, %v11836_v1  ;;  %v3706_v15 = vshrl.u32 %v11827_v38, 4 }
 0x2c8   : > { %v11873_v17 = vmul.u32.u64.low 3817748708, %v11849_v34  ;;  %v11874_v5 = vmul.u32.u64.high 3817748708, %v11849_v34, %v11873_v17  ;;  %v3697_v49 = vsub.s32 %v11705_v36, %v3696_v8  ;;  %vm3920_vm5 = vcmp.lt.s32.totalorder %v11861_v56, 0  ;;  %vm11908_vm8 = vmand %vm3919_vm15, %vm3883_vm14 }
 0x2c9   : > { %v3739_v52 = vshrl.u32 %v11840_v50, 4  ;;  %v11900_v21 = vadd.s32 1, %v3422_v42  ;;  %v3989_v53 = vadd.s32 18, %v11856_v12  ;;  %vm3882_vm9 = vcmp.ne.s32.totalorder %v11866_v57, 0  ;;  %vm11932_vm14 = vmand %vm3920_vm5, %vm3884_vm4 }
 0x2ca   : > { %vm3918_vm10 = vcmp.lt.s32.totalorder %v11866_v57, 0  ;;  %v3730_v9 = vsub.s32 %v11736_v28, %v3729_v63  ;;  %vm3887_vm12 = vcmp.ne.s32.totalorder %v11869_v41, 0  ;;  %vm3923_vm13 = vcmp.lt.s32.totalorder %v11869_v41, 0 }
 0x2cb   : > { %v3707_v50 = vmul.u32 18, %v3706_v15  ;;  %v11926_v43 = vadd.s32 1, %v3427_v4  ;;  %v3992_v55 = vadd.s32 18, %v11861_v56  ;;  %vm3885_vm15 = vcmp.ne.s32.totalorder %v3697_v49, 0  ;;  %vm11937_vm2 = vmand %vm3918_vm10, %vm3882_vm9 }
 0x2cc   : > { %v3762_v46 = vmul.u32 18, %v3761_v59  ;;  %v3990_v42 = vadd.s32 18, %v11866_v57  ;;  %v3740_v63 = vmul.u32 18, %v3739_v52  ;;  %vm11952_vm6 = vmand %vm3923_vm13, %vm3887_vm12  ;;  %v3995_v59 = vadd.s32 18, %v11869_v41 }
 0x2cd   : > { %v11943_v15 = vmul.u32.u64.low 3817748708, %v11900_v21  ;;  %v11944_v17 = vmul.u32.u64.high 3817748708, %v11900_v21, %v11943_v15  ;;  %v3993_v47 = vadd.s32 18, %v3697_v49  ;;  %vm3888_vm9 = vcmp.ne.s32.totalorder %v3730_v9, 0 }
 0x2ce   : > { %vm3924_vm10 = vcmp.lt.s32.totalorder %v3730_v9, 0  ;;  %vm13594_vm4 = vcmp.lt.s32.totalorder %v3697_v49, 0  ;;  %v11966_v15 = vsub.s32 %v11793_v6, %v3707_v50  ;;  %v3772_v45 = vshrl.u32 %v11874_v5, 4 }
 0x2cf   : > { %vm11961_vm5 = vmand %vm13594_vm4, %vm3885_vm15  ;;  %v11970_v40 = vmul.u32.u64.low 3817748708, %v11926_v43  ;;  %v11971_v37 = vmul.u32.u64.high 3817748708, %v11926_v43, %v11970_v40  ;;  %vm4082_vm13 = vcmp.le.s32.totalorder %v11625_v54, 16  ;;  %v11979_v35 = vsel %vm11881_vm0, %v11846_v22, %v11816_v10 }
 0x2d0   : > { %v3996_v33 = vadd.s32 18, %v3730_v9  ;;  %v11982_v6 = vsub.s32 %v11808_v51, %v3762_v46  ;;  %v3425_v5 = vadd.s32 224, %v11414_v30  ;;  %v11989_v40 = vsel %vm11893_vm3, %v11853_v2, %v11819_v14  ;;  %vm12003_vm0 = vmand %vm3924_vm10, %vm3888_vm9  ;;  %v12011_v14 = vld [vmem:[%s13533_s2] ss:$0 sm:$0xff] }
 0x2d1   : > { %v11994_v50 = vsel %vm11908_vm8, %v3991_v39, %v11836_v1  ;;  %v11999_v10 = vsel %vm11920_vm11, %v3989_v53, %v11856_v12  ;;  %v3741_v22 = vsub.s32 %v11813_v58, %v3740_v63  ;;  %v12016_v1 = vsel %vm11932_vm14, %v3992_v55, %v11861_v56 }
 0x2d2   : > { %v12021_v2 = vsel %vm11937_vm2, %v3990_v42, %v11866_v57  ;;  %v12026_v12 = vsel %vm11952_vm6, %v3995_v59, %v11869_v41  ;;  %v12030_v58 = vsel %vm11961_vm5, %v3993_v47, %v3697_v49  ;;  %vm3886_vm3 = vcmp.ne.s32.totalorder %v11966_v15, 0  ;;  %v12038_v57 = vld [vmem:[%s13534_s3] ss:$0 sm:$0xff] }
 0x2d3   : > { %vm3922_vm8 = vcmp.lt.s32.totalorder %v11966_v15, 0  ;;  %v3994_v56 = vadd.s32 18, %v11966_v15  ;;  %v3773_v39 = vmul.u32 18, %v3772_v45  ;;  %v12044_v47 = vsel %vm12003_vm0, %v3996_v33, %v3730_v9 }
 0x2d4   : > { %vm3891_vm14 = vcmp.ne.s32.totalorder %v11982_v6, 0  ;;  %vm3927_vm15 = vcmp.lt.s32.totalorder %v11982_v6, 0  ;;  %v12048_v41 = vadd.s32 1, %v3425_v5  ;;  %vm13599_vm2 = vcmp.le.s32.totalorder %v11607_v16, 16 }
 0x2d5   : > { %vm13600_vm4 = vcmp.ge.s32.totalorder %v11607_v16, 1  ;;  %vm4049_vm9 = vcmp.ge.s32.totalorder %v11633_v18, 1  ;;  %vm4085_vm10 = vcmp.le.s32.totalorder %v11633_v18, 16  ;;  %vm3889_vm0 = vcmp.ne.s32.totalorder %v3741_v22, 0 }
 0x2d6   : > { %vm12055_vm5 = vmand %vm13600_vm4, %vm13599_vm2  ;;  %vm3925_vm6 = vcmp.lt.s32.totalorder %v3741_v22, 0  ;;  %v3750_v33 = vshrl.u32 %v11944_v17, 4  ;;  %vm4088_vm12 = vcmp.le.s32.totalorder %v11635_v62, 16  ;;  %v3999_v9 = vadd.s32 18, %v11982_v6 }
 0x2d7   : > { %vm12069_vm2 = vmand %vm3922_vm8, %vm3886_vm3  ;;  %v3997_v24 = vadd.s32 18, %v3741_v22  ;;  %v3428_v28 = vadd.s32 248, %v11414_v30  ;;  %vm4086_vm11 = vcmp.le.s32.totalorder %v11774_v0, 16  ;;  %v12084_v42 = vsub.s32 %v11849_v34, %v3773_v39 }
 0x2d8   : > { %vm3963_vm3 = vmand %vm3927_vm15, %vm3891_vm14  ;;  %v3805_v63 = vshrl.u32 %v11971_v37, 4  ;;  %v12096_v52 = vmul.u32.u64.low 3817748708, %v12048_v41  ;;  %v12097_v5 = vmul.u32.u64.high 3817748708, %v12048_v41, %v12096_v52  ;;  %vm13607_vm14 = vcmp.le.s32.totalorder %v11617_v11, 16 }
 0x2d9   : > { %vm12091_vm8 = vmand %vm3925_vm6, %vm3889_vm0  ;;  %vm13608_vm15 = vcmp.ge.s32.totalorder %v11617_v11, 1  ;;  %v12107_v34 = vsel %vm12069_vm2, %v3994_v56, %v11966_v15  ;;  %v3751_v39 = vmul.u32 18, %v3750_v33  ;;  %vm13611_vm0 = vcmp.ge.s32.totalorder %v11625_v54, 1 }
 0x2da   : > { %vm4117_vm4 = vmand %vm13608_vm15, %vm13607_vm14  ;;  %v12135_v33 = vsel %vm12091_vm8, %v3997_v24, %v3741_v22  ;;  %v3806_v54 = vmul.u32 18, %v3805_v63  ;;  %vm4092_vm8 = vcmp.le.s32.totalorder %v11798_v60, 16  ;;  %vm13614_vm14 = vcmp.le.s32.totalorder %v11629_v13, 16 }
 0x2db   : > { %vm12113_vm6 = vmand %vm4048_vm7, %vm4084_vm1  ;;  %vm4055_vm7 = vcmp.ge.s32.totalorder %v11786_v3, 1  ;;  %vm4091_vm1 = vcmp.le.s32.totalorder %v11786_v3, 16  ;;  %vm13615_vm15 = vcmp.ge.s32.totalorder %v11629_v13, 1  ;;  %v3429_v59 = vadd.s32 256, %v11414_v30 }
 0x2dc   : > { %vm12129_vm2 = vmand %vm13611_vm0, %vm4082_vm13  ;;  %vm4053_vm13 = vcmp.ge.s32.totalorder %v11791_v44, 1  ;;  %v12196_v18 = vsub.s32 %v11926_v43, %v3806_v54 }
 0x321   : > { %v9219_v48 = vpop.f32.mrb[0].mxu0 }
 0x322   : > { %v3283_v45 = vmul.f32 %v9219_v48, %v12011_v14  ;;  %v3095_v38 = vpop.f32.mrb[1].mxu0 }
 0x323   : > { %v3281_v36 = vmul.f32 %v12011_v14, %v3095_v38  ;;  %v9220_v53 = vpop.f32.mrb[2].mxu0  ;;  %v12119_v38 = vsel %vm3963_vm3, %v3999_v9, %v11982_v6  ;;  %v3426_v6 = vadd.s32 232, %v11414_v30  ;;  %vm3928_vm3 = vcmp.lt.s32.totalorder %v12084_v42, 0 }
 0x324   : > { %v3326_v55 = vadd.f32 %v12038_v57, %v3283_v45  ;;  %v3284_v46 = vmul.f32 %v9220_v53, %v12011_v14  ;;  %v3098_v8 = vpop.f32.mrb[3].mxu0  ;;  %v4000_v45 = vadd.s32 18, %v12084_v42 }
 0x325   : > { %v3324_v17 = vadd.f32 %v12038_v57, %v3281_v36  ;;  %v3282_v4 = vmul.f32 %v12011_v14, %v3098_v8  ;;  %v12121_v36 = vadd.s32 1, %v3428_v28  ;;  %v12147_v28 = vsub.s32 %v11900_v21, %v3751_v39 }
 0x326   : > { %v3362_v51 = vmax.f32 %v3326_v55, 0.0  ;;  %v3327_v37 = vadd.f32 %v12038_v57, %v3284_v46  ;;  %v3431_v55 = vadd.s32 272, %v11414_v30 }
 0x327   : > { %v3360_v48 = vmax.f32 %v3324_v17, 0.0  ;;  %v3325_v11 = vadd.f32 %v12038_v57, %v3282_v4  ;;  %v12156_v17 = vmul.u32.u64.low 3817748708, %v12121_v36  ;;  %v12157_v4 = vmul.u32.u64.high 3817748708, %v12121_v36, %v12156_v17 }
 0x328   : > { %v4227_v15 = vsel %vm12055_vm5, %v3362_v51, 0.0  ;;  %v3363_v56 = vmax.f32 %v3327_v37, 0.0  ;;  %vm3892_vm5 = vcmp.ne.s32.totalorder %v12084_v42, 0  ;;  %v12172_v37 = vadd.s32 1, %v3426_v6 }
 0x329   : > { %4266 = vst [vmem:[#allocation2 + $0x28] sm:$0xff] %v4227_v15  ;;  %v4225_v53 = vsel %vm4117_vm4, %v3360_v48, 0.0  ;;  %v3361_v16 = vmax.f32 %v3325_v11, 0.0  ;;  %v9223_v49 = vpop.f32.mrb[4].mxu0  ;;  %vm4089_vm4 = vcmp.le.s32.totalorder %v11791_v44, 16  ;;  %v3783_v11 = vshrl.u32 %v12097_v5, 4 }
 0x32a   : > { %4264 = vst [vmem:[#allocation2 + $0x18] sm:$0xff] %v4225_v53  ;;  %v4228_v9 = vsel %vm12113_vm6, %v3363_v56, 0.0  ;;  %v3287_v22 = vmul.f32 %v9223_v49, %v12011_v14  ;;  %v3111_v24 = vpop.f32.mrb[5].mxu0  ;;  %vm12164_vm6 = vmand %vm13615_vm15, %vm13614_vm14  ;;  %vm13620_vm15 = vcmp.ge.s32.totalorder %v11635_v62, 1  ;;  %v12198_v6 = vadd.s32 1, %v3431_v55 }
 0x32b   : > { %4267 = vst [vmem:[#allocation2 + $0x30] sm:$0xff] %v4228_v9  ;;  %v4226_v46 = vsel %vm12129_vm2, %v3361_v16, 0.0  ;;  %v3285_v8 = vmul.f32 %v12011_v14, %v3111_v24  ;;  %v9224_v63 = vpop.f32.mrb[6].mxu0  ;;  %vm12179_vm14 = vmand %vm4049_vm9, %vm4085_vm10  ;;  %vm13623_vm9 = vcmp.ge.s32.totalorder %v11774_v0, 1  ;;  %v12230_v55 = vadd.s32 18, %v12147_v28 }
 0x32c   : > { %4265 = vst [vmem:[#allocation2 + $0x20] sm:$0xff] %v4226_v46  ;;  %v3330_v21 = vadd.f32 %v12038_v57, %v3287_v22  ;;  %v3288_v52 = vmul.f32 %v9224_v63, %v12011_v14  ;;  %v3114_v51 = vpop.f32.mrb[7].mxu0  ;;  %vm12191_vm0 = vmand %vm13620_vm15, %vm4088_vm12  ;;  %vm3890_vm12 = vcmp.ne.s32.totalorder %v12147_v28, 0  ;;  %vm3926_vm15 = vcmp.lt.s32.totalorder %v12147_v28, 0 }
 0x32d   : > { %v3328_v39 = vadd.f32 %v12038_v57, %v3285_v8  ;;  %v3286_v48 = vmul.f32 %v12011_v14, %v3114_v51  ;;  %vm12205_vm10 = vmand %vm13623_vm9, %vm4086_vm11  ;;  %v12222_v0 = vmul.u32.u64.low 3817748708, %v12172_v37  ;;  %v12223_v54 = vmul.u32.u64.high 3817748708, %v12172_v37, %v12222_v0 }
 0x32e   : > { %v3366_v15 = vmax.f32 %v3330_v21, 0.0  ;;  %v3331_v56 = vadd.f32 %v12038_v57, %v3288_v52  ;;  %vm12217_vm2 = vmand %vm3928_vm3, %vm3892_vm5  ;;  %vm4059_vm11 = vcmp.ge.s32.totalorder %v11810_v20, 1  ;;  %v3784_v46 = vmul.u32 18, %v3783_v11 }
 0x32f   : > { %v3364_v53 = vmax.f32 %v3328_v39, 0.0  ;;  %v3329_v16 = vadd.f32 %v12038_v57, %v3286_v48  ;;  %vm4057_vm5 = vcmp.ge.s32.totalorder %v11823_v7, 1  ;;  %vm4093_vm3 = vcmp.le.s32.totalorder %v11823_v7, 16  ;;  %vm12255_vm9 = vmand %vm4055_vm7, %vm4091_vm1 }
 0x330   : > { %v4231_v62 = vsel %vm12164_vm6, %v3366_v15, 0.0  ;;  %v3367_v43 = vmax.f32 %v3331_v56, 0.0  ;;  %vm4095_vm6 = vcmp.le.s32.totalorder %v11810_v20, 16  ;;  %v3432_v52 = vadd.s32 280, %v11414_v30  ;;  %vm12270_vm7 = vmand %vm4053_vm13, %vm4089_vm4 }
 0x331   : > { %4270 = vst [vmem:[#allocation2 + $0x48] sm:$0xff] %v4231_v62  ;;  %v4229_v9 = vsel %vm12179_vm14, %v3364_v53, 0.0  ;;  %v3365_v22 = vmax.f32 %v3329_v16, 0.0  ;;  %v9227_v24 = vpop.f32.mrb[8].mxu0  ;;  %v4375_v48 = vld [vmem:[#allocation2 + $0x16] sm:$0xff]  ;;  %vm4096_vm14 = vcmp.le.s32.totalorder %v11979_v35, 16  ;;  %v12247_v56 = vsel %vm12217_vm2, %v4000_v45, %v12084_v42 }
 0x332   : > { %4268 = vst [vmem:[#allocation2 + $0x38] sm:$0xff] %v4229_v9  ;;  %v4232_v8 = vsel %vm12191_vm0, %v3367_v43, 0.0  ;;  %v3291_v63 = vmul.f32 %v9227_v24, %v12011_v14  ;;  %v3127_v17 = vpop.f32.mrb[9].mxu0  ;;  %v4378_v21 = vld [vmem:[#allocation2 + $0x2e] sm:$0xff]  ;;  %v3816_v19 = vshrl.u32 %v12157_v4, 4  ;;  %v10563_v42 = vld [vmem:[%s13535_s4 + $0x8] sm:$0xff]  }
 0x333   : > { %4271 = vst [vmem:[#allocation2 + $0x50] sm:$0xff] %v4232_v8  ;;  %v4230_v51 = vsel %vm12205_vm10, %v3365_v22, 0.0  ;;  %v3289_v39 = vmul.f32 %v12011_v14, %v3127_v17  ;;  %v9228_v13 = vpop.f32.mrb[10].mxu0  ;;  %v4376_v11 = vld [vmem:[#allocation2 + $0x1e] sm:$0xff]  ;;  %v4377_v15 = vld [vmem:[#allocation2 + $0x26] sm:$0xff]  ;;  %vm3895_vm1 = vcmp.ne.s32.totalorder %v12196_v18, 0 }
 0x334   : > { %4269 = vst [vmem:[#allocation2 + $0x40] sm:$0xff] %v4230_v51  ;;  %v3334_v53 = vadd.f32 %v12038_v57, %v3291_v63  ;;  %v3292_v5 = vmul.f32 %v9228_v13, %v12011_v14  ;;  %v3130_v62 = vpop.f32.mrb[11].mxu0  ;;  %v4410_v43 = vpack.c.bf16 %v4376_v11, %v4375_v48  ;;  %v4411_v49 = vpack.c.bf16 %v4378_v21, %v4377_v15 }
 0x335   : > { %v3332_v4 = vadd.f32 %v12038_v57, %v3289_v39  ;;  %v3290_v45 = vmul.f32 %v12011_v14, %v3130_v62  ;;  %vm13632_vm10 = vcmp.ge.s32.totalorder %v11798_v60, 1  ;;  %v12287_v44 = vadd.s32 18, %v12196_v18 }
 0x336   : > { %v3370_v0 = vmax.f32 %v3334_v53, 0.0  ;;  %v3335_v9 = vadd.f32 %v12038_v57, %v3292_v5  ;;  %vm12282_vm0 = vmand %vm13632_vm10, %vm4092_vm8  ;;  %9270 = vmatmul.mubr.bf16.vlgmr.msra.gmra.mrb[20].mxu1 %v4410_v43  ;;  %v12289_v24 = vadd.s32 1, %v3429_v59  ;;  %vm13635_vm13 = vcmp.le.s32.totalorder %v11803_v61, 16 }
 0x337   : > { %v3368_v8 = vmax.f32 %v3332_v4, 0.0  ;;  %v3333_v63 = vadd.f32 %v12038_v57, %v3290_v45  ;;  %vm13636_vm4 = vcmp.ge.s32.totalorder %v11803_v61, 1  ;;  %9273 = vmatprep.mubr.bf16.mxu1 %v4411_v49  ;;  %9306 = vmatpush3.bf16.msra.mxu1 %v11403_v23  ;;  %v12302_v60 = vsub.s32 %v12048_v41, %v3784_v46  ;;  %v10564_v61 = vld [vmem:[%s13535_s4 + $0x10] sm:$0xff]   ;;  %vm12315_vm8 = vmand %vm3926_vm15, %vm3890_vm12 }
 0x338   : > { %vm12296_vm2 = vmand %vm13636_vm4, %vm13635_vm13  ;;  %v12304_v21 = vadd.s32 1, %v3432_v52  ;;  %v4235_v59 = vsel %vm12255_vm9, %v3370_v0, 0.0  ;;  %v3371_v51 = vmax.f32 %v3335_v9, 0.0  ;;  %9307 = vmatprep.subr.bf16.mxu1 %v10563_v42  ;;  %v3817_v41 = vmul.u32 18, %v3816_v19 }
 0x339   : > { %v3794_v46 = vshrl.u32 %v12223_v54, 4  ;;  %4274 = vst [vmem:[#allocation2 + $0x68] sm:$0xff] %v4235_v59  ;;  %v4233_v52 = vsel %vm12270_vm7, %v3368_v8, 0.0  ;;  %v3369_v39 = vmax.f32 %v3333_v63, 0.0  ;;  %v9231_v13 = vpop.f32.mrb[12].mxu0  ;;  %vm4063_vm9 = vcmp.ge.s32.totalorder %v11994_v50, 1 }
 0x33a   : > { %vm4099_vm10 = vcmp.le.s32.totalorder %v11994_v50, 16  ;;  %v12325_v48 = vmul.u32.u64.low 3817748708, %v12198_v6  ;;  %v12326_v11 = vmul.u32.u64.high 3817748708, %v12198_v6, %v12325_v48  ;;  %4272 = vst [vmem:[#allocation2 + $0x58] sm:$0xff] %v4233_v52  ;;  %v4236_v15 = vsel %vm12282_vm0, %v3371_v51, 0.0  ;;  %v3143_v19 = vpop.f32.mrb[13].mxu0  ;;  %vm12352_vm0 = vmand %vm4059_vm11, %vm4095_vm6 }
 0x33b   : > { %v3295_v54 = vmul.f32 %v9231_v13, %v12011_v14  ;;  %v4382_v53 = vld [vmem:[#allocation2 + $0x4e] sm:$0xff]  ;;  %v12332_v16 = vmul.u32.u64.low 3817748708, %v12289_v24  ;;  %v12333_v5 = vmul.u32.u64.high 3817748708, %v12289_v24, %v12332_v16  ;;  %4275 = vst [vmem:[#allocation2 + $0x70] sm:$0xff] %v4236_v15  ;;  %v4234_v62 = vsel %vm12296_vm2, %v3369_v39, 0.0  ;;  %v9232_v49 = vpop.f32.mrb[14].mxu0  ;;  %9308 = vmatpush3.bf16.msra.mxu1 %v10563_v42  ;;  %vm12367_vm11 = vmand %vm4057_vm5, %vm4093_vm3 }
 0x33c   : > { %v3293_v43 = vmul.f32 %v12011_v14, %v3143_v19  ;;  %v4379_v4 = vld [vmem:[#allocation2 + $0x36] sm:$0xff]  ;;  %v4380_v3 = vld [vmem:[#allocation2 + $0x3e] sm:$0xff]  ;;  %v4381_v45 = vld [vmem:[#allocation2 + $0x46] sm:$0xff]  ;;  %vm4061_vm12 = vcmp.ge.s32.totalorder %v11999_v10, 1  ;;  %vm4097_vm15 = vcmp.le.s32.totalorder %v11999_v10, 16  ;;  %v12344_v0 = vsel %vm12315_vm8, %v12230_v55, %v12147_v28  ;;  %4273 = vst [vmem:[#allocation2 + $0x60] sm:$0xff] %v4234_v62  ;;  %9309 = vmatprep.subr.bf16.mxu1 %v10564_v61 }
 0x33d   : > { %v3430_v9 = vadd.s32 264, %v11414_v30  ;;  %v3338_v22 = vadd.f32 %v12038_v57, %v3295_v54  ;;  %v3296_v42 = vmul.f32 %v9232_v49, %v12011_v14  ;;  %v3146_v63 = vpop.f32.mrb[15].mxu0  ;;  %v4412_v17 = vpack.c.bf16 %v4380_v3, %v4379_v4  ;;  %v10565_v30 = vld [vmem:[%s13535_s4 + $0x18] sm:$0xff]  }
 0x33e   : > { %v4413_v59 = vpack.c.bf16 %v4382_v53, %v4381_v45  ;;  %vm4100_vm7 = vcmp.le.s32.totalorder %v12016_v1, 16  ;;  %v3336_v20 = vadd.f32 %v12038_v57, %v3293_v43  ;;  %v3294_v55 = vmul.f32 %v12011_v14, %v3146_v63 }
 0x33f   : > { %vm3893_vm4 = vcmp.ne.s32.totalorder %v12302_v60, 0  ;;  %v12376_v51 = vsub.s32 %v12121_v36, %v3817_v41  ;;  %v3374_v23 = vmax.f32 %v3338_v22, 0.0  ;;  %v3339_v52 = vadd.f32 %v12038_v57, %v3296_v42  ;;  %9274 = vmatmul.mubr.bf16.gmra.mrb[24].mxu1 %v4412_v17 }
 0x340   : > { %vm13645_vm5 = vcmp.ge.s32.totalorder %v11979_v35, 1  ;;  %vm3929_vm8 = vcmp.lt.s32.totalorder %v12302_v60, 0  ;;  %v3795_v39 = vmul.u32 18, %v3794_v46  ;;  %v3372_v13 = vmax.f32 %v3336_v20, 0.0  ;;  %9277 = vmatprep.mubr.bf16.mxu1 %v4413_v59  ;;  %9310 = vmatpush3.bf16.msra.mxu1 %v10564_v61  ;;  %v10566_v61 = vld [vmem:[%s13535_s4 + $0x20] sm:$0xff]  }
 0x341   : > { %vm12383_vm3 = vmand %vm13645_vm5, %vm4096_vm14  ;;  %v3337_v48 = vadd.f32 %v12038_v57, %v3294_v55  ;;  %vm13648_vm6 = vcmp.le.s32.totalorder %v11989_v40, 16  ;;  %vm13649_vm13 = vcmp.ge.s32.totalorder %v11989_v40, 1  ;;  %v4239_v46 = vsel %vm12352_vm0, %v3374_v23, 0.0  ;;  %9311 = vmatprep.subr.bf16.mxu1 %v10565_v30  ;;  %v9235_v62 = vpop.f32.mrb[16].mxu0  ;;  %v4383_v63 = vld [vmem:[#allocation2 + $0x56] sm:$0xff] }
 0x342   : > { %vm12393_vm2 = vmand %vm13649_vm13, %vm13648_vm6  ;;  %v12398_v35 = vmul.u32.u64.low 3817748708, %v12304_v21  ;;  %v12399_v41 = vmul.u32.u64.high 3817748708, %v12304_v21, %v12398_v35  ;;  %v3375_v15 = vmax.f32 %v3339_v52, 0.0  ;;  %vm13652_vm14 = vcmp.lt.s32.totalorder %v12196_v18, 0  ;;  %4278 = vst [vmem:[#allocation2 + $0x88] sm:$0xff] %v4239_v46  ;;  %v3159_v4 = vpop.f32.mrb[17].mxu0 }
 0x343   : > { %vm12407_vm5 = vmand %vm13652_vm14, %vm3895_vm1  ;;  %v12412_v54 = vadd.s32 18, %v12302_v60  ;;  %v12417_v19 = vadd.s32 1, %v3430_v9  ;;  %v4237_v53 = vsel %vm12367_vm11, %v3372_v13, 0.0  ;;  %v3373_v16 = vmax.f32 %v3337_v48, 0.0  ;;  %v4386_v3 = vld [vmem:[#allocation2 + $0x6e] sm:$0xff]  ;;  %v9236_v42 = vpop.f32.mrb[18].mxu0 }
 0x344   : > { %vm3896_vm1 = vcmp.ne.s32.totalorder %v12376_v51, 0  ;;  %vm3932_vm0 = vcmp.lt.s32.totalorder %v12376_v51, 0  ;;  %4276 = vst [vmem:[#allocation2 + $0x78] sm:$0xff] %v4237_v53  ;;  %v4240_v43 = vsel %vm12383_vm3, %v3375_v15, 0.0  ;;  %v9789_v49 = vadd.f32 %v9235_v62, %v11406_v25  ;;  %v4384_v17 = vld [vmem:[#allocation2 + $0x5e] sm:$0xff]  ;;  %v4385_v59 = vld [vmem:[#allocation2 + $0x66] sm:$0xff]  ;;  %9312 = vmatpush3.bf16.msra.mxu1 %v10565_v30  ;;  %vm12463_vm13 = vmand %vm3929_vm8, %vm3893_vm4 }
 0x345   : > { %v12427_v45 = vsub.s32 %v12172_v37, %v3795_v39  ;;  %v3849_v9 = vshrl.u32 %v12326_v11, 4  ;;  %4279 = vst [vmem:[#allocation2 + $0x90] sm:$0xff] %v4240_v43  ;;  %v4238_v22 = vsel %vm12393_vm2, %v3373_v16, 0.0  ;;  %v9790_v8 = vadd.f32 %v3159_v4, %v11408_v26  ;;  %vm12445_vm2 = vmand %vm4063_vm9, %vm4099_vm10  ;;  %v3162_v20 = vpop.f32.mrb[19].mxu0  ;;  %9313 = vmatprep.subr.bf16.mxu1 %v10566_v61 }
 0x346   : > { %v12437_v25 = vsel %vm12407_vm5, %v12287_v44, %v12196_v18  ;;  %v3827_v37 = vshrl.u32 %v12333_v5, 4  ;;  %4277 = vst [vmem:[#allocation2 + $0x80] sm:$0xff] %v4238_v22  ;;  %v3299_v11 = vmul.f32 %v9789_v49, %v12011_v14  ;;  %v9791_v30 = vadd.f32 %v9236_v42, %v11410_v27  ;;  %v10567_v18 = vld [vmem:[%s13535_s4 + $0x28] sm:$0xff]   ;;  %vm12476_vm3 = vmand %vm4061_vm12, %vm4097_vm15  ;;  %v13687_v22 = vld [vmem:[#allocation10_spill] sm:$0xff] }
 0x347   : > { %v4414_v28 = vpack.c.bf16 %v4384_v17, %v4383_v63  ;;  %v4415_v55 = vpack.c.bf16 %v4386_v3, %v4385_v59  ;;  %vm4067_vm11 = vcmp.ge.s32.totalorder %v12026_v12, 1  ;;  %vm4103_vm6 = vcmp.le.s32.totalorder %v12026_v12, 16  ;;  %v13704_v12 = vld [vmem:[#allocation12_spill] sm:$0xff] }
 0x348   : > { %v3297_v50 = vmul.f32 %v9790_v8, %v12011_v14  ;;  %v9792_v44 = vadd.f32 %v3162_v20, %v11412_v29  ;;  %vm4101_vm10 = vcmp.le.s32.totalorder %v12030_v58, 16  ;;  %v3342_v52 = vadd.f32 %v12038_v57, %v3299_v11  ;;  %9314 = vmatpush3.bf16.msra.mxu1 %v10566_v61  ;;  %v10568_v61 = vld [vmem:[%s13535_s4 + $0x30] sm:$0xff]  }
 0x349   : > { %v12468_v5 = vmul.u32.u64.low 3817748708, %v12417_v19  ;;  %v12469_v23 = vmul.u32.u64.high 3817748708, %v12417_v19, %v12468_v5  ;;  %v3300_v7 = vmul.f32 %v9791_v30, %v12011_v14  ;;  %9278 = vmatmul.mubr.bf16.gmra.mrb[28].mxu1 %v4414_v28  ;;  %vm3894_vm14 = vcmp.ne.s32.totalorder %v12427_v45, 0  ;;  %9315 = vmatprep.subr.bf16.mxu1 %v10567_v18  ;;  %v9239_v16 = vpop.f32.mrb[20].mxu0  ;;  %v13672_v30 = vld [vmem:[#allocation6_spill] sm:$0xff] }
 0x34a   : > { %v3850_v39 = vmul.u32 18, %v3849_v9  ;;  %v3340_v13 = vadd.f32 %v12038_v57, %v3297_v50  ;;  %vm13661_vm5 = vcmp.ge.s32.totalorder %v12016_v1, 1  ;;  %v3298_v48 = vmul.f32 %v9792_v44, %v12011_v14  ;;  %9281 = vmatprep.mubr.bf16.mxu1 %v4415_v55  ;;  %v3175_v3 = vpop.f32.mrb[21].mxu0  ;;  %v10569_v55 = vld [vmem:[%s13535_s4 + $0x38] sm:$0xff]   ;;  %v13673_v50 = vld [vmem:[#allocation7_spill] sm:$0xff] }
 0x34b   : > { %vm12489_vm12 = vmand %vm13661_vm5, %vm4100_vm7  ;;  %vm4066_vm15 = vcmp.ge.s32.totalorder %v12107_v34, 1  ;;  %vm4102_vm4 = vcmp.le.s32.totalorder %v12107_v34, 16  ;;  %vm3930_vm8 = vcmp.lt.s32.totalorder %v12427_v45, 0  ;;  %v3828_v36 = vmul.u32 18, %v3827_v37  ;;  %v9240_v63 = vpop.f32.mrb[22].mxu0  ;;  %v4387_v17 = vld [vmem:[#allocation2 + $0x76] sm:$0xff] }
 0x34c   : > { %v3378_v35 = vmax.f32 %v3342_v52, 0.0  ;;  %v3343_v46 = vadd.f32 %v12038_v57, %v3300_v7  ;;  %vm13664_vm9 = vcmp.le.s32.totalorder %v12021_v2, 16  ;;  %vm13665_vm7 = vcmp.ge.s32.totalorder %v12021_v2, 1  ;;  %v4390_v9 = vld [vmem:[#allocation2 + $0x8e] sm:$0xff]  ;;  %9316 = vmatpush3.bf16.msra.mxu1 %v10567_v18  ;;  %v3178_v20 = vpop.f32.mrb[23].mxu0 }
 0x34d   : > { %vm12502_vm5 = vmand %vm13665_vm7, %vm13664_vm9  ;;  %v12510_v15 = vsel %vm12463_vm13, %v12412_v54, %v12302_v60  ;;  %v4004_v40 = vadd.s32 18, %v12376_v51  ;;  %v3376_v53 = vmax.f32 %v3340_v13, 0.0  ;;  %v3341_v2 = vadd.f32 %v12038_v57, %v3298_v48  ;;  %v4388_v59 = vld [vmem:[#allocation2 + $0x7e] sm:$0xff]  ;;  %v4389_v37 = vld [vmem:[#allocation2 + $0x86] sm:$0xff]  ;;  %9317 = vmatprep.subr.bf16.mxu1 %v10568_v61 }
 0x34e   : > { %vm12521_vm9 = vmand %vm3932_vm0, %vm3896_vm1  ;;  %v4002_v60 = vadd.s32 18, %v12427_v45  ;;  %v3860_v54 = vshrl.u32 %v12399_v41, 4  ;;  %v4243_v43 = vsel %vm12445_vm2, %v3378_v35, 0.0  ;;  %v3379_v49 = vmax.f32 %v3343_v46, 0.0 }
 0x34f   : > { %v9793_v4 = vadd.f32 %v9239_v16, %v11416_v31  ;;  %vm12534_vm1 = vmand %vm3930_vm8, %vm3894_vm14  ;;  %v12539_v8 = vsub.s32 %v12198_v6, %v3850_v39  ;;  %4282 = vst [vmem:[#allocation2 + $0xa8] sm:$0xff] %v4243_v43  ;;  %v4241_v41 = vsel %vm12476_vm3, %v3376_v53, 0.0  ;;  %v3377_v42 = vmax.f32 %v3341_v2, 0.0  ;;  %v13685_v2 = vld [vmem:[#allocation8_spill] sm:$0xff]  ;;  %v13686_v43 = vld [vmem:[#allocation9_spill] sm:$0xff] }
 0x350   : > { %v9794_v31 = vadd.f32 %v3175_v3, %v11418_v32  ;;  %vm4071_vm0 = vcmp.ge.s32.totalorder %v12119_v38, 1  ;;  %vm4107_vm2 = vcmp.le.s32.totalorder %v12119_v38, 16  ;;  %v12547_v11 = vsub.s32 %v12289_v24, %v3828_v36  ;;  %4280 = vst [vmem:[#allocation2 + $0x98] sm:$0xff] %v4241_v41  ;;  %9318 = vmatpush3.bf16.msra.mxu1 %v10568_v61  ;;  %vm12622_vm8 = vmand %vm4066_vm15, %vm4102_vm4 }
 0x351   : > { %v4244_v6 = vsel %vm12489_vm12, %v3379_v49, 0.0  ;;  %v3303_v26 = vmul.f32 %v9793_v4, %v12011_v14  ;;  %v9795_v32 = vadd.f32 %v9240_v63, %v13672_v30  ;;  %v4416_v28 = vpack.c.bf16 %v4388_v59, %v4387_v17  ;;  %vm12580_vm12 = vmand %vm4067_vm11, %vm4103_vm6  ;;  %9319 = vmatprep.subr.bf16.mxu1 %v10569_v55  ;;  %v9243_v1 = vpop.f32.mrb[24].mxu0 }
 0x352   : > { %4283 = vst [vmem:[#allocation2 + $0xb0] sm:$0xff] %v4244_v6  ;;  %v4242_v24 = vsel %vm12502_vm5, %v3377_v42, 0.0  ;;  %v3301_v18 = vmul.f32 %v9794_v31, %v12011_v14  ;;  %v9796_v44 = vadd.f32 %v3178_v20, %v13673_v50  ;;  %v4417_v27 = vpack.c.bf16 %v4390_v9, %v4389_v37  ;;  %v3191_v62 = vpop.f32.mrb[25].mxu0  ;;  %v13690_v6 = vld [vmem:[#allocation11_spill] sm:$0xff] }
 0x353   : > { %vm4069_vm13 = vcmp.ge.s32.totalorder %v12135_v33, 1  ;;  %vm4105_vm3 = vcmp.le.s32.totalorder %v12135_v33, 16  ;;  %4281 = vst [vmem:[#allocation2 + $0xa0] sm:$0xff] %v4242_v24  ;;  %v3346_v5 = vadd.f32 %v12038_v57, %v3303_v26  ;;  %v3304_v52 = vmul.f32 %v9795_v32, %v12011_v14  ;;  %9282 = vmatmul.mubr.bf16.gmra.mrb[32].mxu1 %v4416_v28  ;;  %v9244_v4 = vpop.f32.mrb[26].mxu0 }
 0x354   : > { %vm4108_vm14 = vcmp.le.s32.totalorder %v12247_v56, 16  ;;  %v12569_v29 = vsel %vm12521_vm9, %v4004_v40, %v12376_v51  ;;  %v12574_v7 = vsel %vm12534_vm1, %v4002_v60, %v12427_v45  ;;  %v3344_v13 = vadd.f32 %v12038_v57, %v3301_v18  ;;  %9285 = vmatprep.mubr.bf16.mxu1 %v4417_v27  ;;  %9320 = vmatpush3.bf16.msra.mxu1 %v10569_v55  ;;  %v3194_v42 = vpop.f32.mrb[27].mxu0 }
 0x355   : > { %v3302_v10 = vmul.f32 %v9796_v44, %v12011_v14  ;;  %v3861_v51 = vmul.u32 18, %v3860_v54  ;;  %v3838_v45 = vshrl.u32 %v12469_v23, 4  ;;  %v3382_v48 = vmax.f32 %v3346_v5, 0.0  ;;  %v12603_v23 = vld [vmem:[%s13535_s4 + $0x80] sm:$0xff]  }
 0x356   : > { %vm13676_vm11 = vcmp.ge.s32.totalorder %v12030_v58, 1  ;;  %v3347_v36 = vadd.f32 %v12038_v57, %v3304_v52  ;;  %vm3899_vm9 = vcmp.ne.s32.totalorder %v12539_v8, 0  ;;  %vm3935_vm1 = vcmp.lt.s32.totalorder %v12539_v8, 0  ;;  %9357 = vmatprep.subr.bf16.mxu1 %v12603_v23  ;;  %v13722_v52 = vld [vmem:[#allocation17_spill] sm:$0xff] }
 0x357   : > { %vm12593_vm6 = vmand %vm13676_vm11, %vm4101_vm10  ;;  %v3380_v35 = vmax.f32 %v3344_v13, 0.0  ;;  %vm13679_vm7 = vcmp.le.s32.totalorder %v12044_v47, 16  ;;  %vm13680_vm10 = vcmp.ge.s32.totalorder %v12044_v47, 1  ;;  %v3345_v46 = vadd.f32 %v12038_v57, %v3302_v10  ;;  %v4391_v30 = vld [vmem:[#allocation2 + $0x96] sm:$0xff] }
 0x358   : > { %vm12609_vm11 = vmand %vm13680_vm10, %vm13679_vm7  ;;  %v4007_v40 = vadd.s32 18, %v12539_v8  ;;  %vm3897_vm5 = vcmp.ne.s32.totalorder %v12547_v11, 0  ;;  %v4247_v61 = vsel %vm12580_vm12, %v3382_v48, 0.0  ;;  %v3383_v53 = vmax.f32 %v3347_v36, 0.0 }
 0x359   : > { %v9797_v16 = vadd.f32 %v9243_v1, %v13685_v2  ;;  %vm3933_vm7 = vcmp.lt.s32.totalorder %v12547_v11, 0  ;;  %4286 = vst [vmem:[#allocation2 + $0xc8] sm:$0xff] %v4247_v61  ;;  %v4245_v60 = vsel %vm12593_vm6, %v3380_v35, 0.0  ;;  %v3381_v54 = vmax.f32 %v3345_v46, 0.0  ;;  %v4394_v31 = vld [vmem:[#allocation2 + $0xae] sm:$0xff]  ;;  %vm12644_vm10 = vmand %vm3935_vm1, %vm3899_vm9  ;;  %v9247_v48 = vpop.f32.mrb[28].mxu0 }
 0x35a   : > { %v9798_v49 = vadd.f32 %v3191_v62, %v13686_v43  ;;  %vm4075_vm12 = vcmp.ge.s32.totalorder %v12437_v25, 1  ;;  %vm4111_vm4 = vcmp.le.s32.totalorder %v12437_v25, 16  ;;  %v4005_v34 = vadd.s32 18, %v12547_v11  ;;  %4284 = vst [vmem:[#allocation2 + $0xb8] sm:$0xff] %v4245_v60  ;;  %v4392_v32 = vld [vmem:[#allocation2 + $0x9e] sm:$0xff]  ;;  %v4393_v20 = vld [vmem:[#allocation2 + $0xa6] sm:$0xff] }
 0x35b   : > { %v4248_v3 = vsel %vm12609_vm11, %v3383_v53, 0.0  ;;  %v3307_v9 = vmul.f32 %v9797_v16, %v12011_v14  ;;  %v9799_v41 = vadd.f32 %v9244_v4, %v13687_v22  ;;  %vm4073_vm15 = vcmp.ge.s32.totalorder %v12510_v15, 1  ;;  %v3207_v35 = vpop.f32.mrb[29].mxu0  ;;  %v13706_v16 = vld [vmem:[#allocation14_spill] sm:$0xff]  ;;  %v13709_v4 = vld [vmem:[#allocation15_spill] sm:$0xff] }
 0x35c   : > { %vm4109_vm6 = vcmp.le.s32.totalorder %v12510_v15, 16  ;;  %v3839_v17 = vmul.u32 18, %v3838_v45  ;;  %4287 = vst [vmem:[#allocation2 + $0xd0] sm:$0xff] %v4248_v3  ;;  %v4246_v59 = vsel %vm12622_vm8, %v3381_v54, 0.0  ;;  %v3305_v37 = vmul.f32 %v9798_v49, %v12011_v14  ;;  %vm12662_vm8 = vmand %vm4071_vm0, %vm4107_vm2 }
 0x35d   : > { %v9800_v26 = vadd.f32 %v3194_v42, %v13690_v6  ;;  %vm4076_vm11 = vcmp.ge.s32.totalorder %v12569_v29, 1  ;;  %v12655_v28 = vsub.s32 %v12304_v21, %v3861_v51  ;;  %4285 = vst [vmem:[#allocation2 + $0xc0] sm:$0xff] %v4246_v59  ;;  %v3350_v55 = vadd.f32 %v12038_v57, %v3307_v9  ;;  %vm12675_vm0 = vmand %vm3933_vm7, %vm3897_vm5 }
 0x35e   : > { %v3308_v18 = vmul.f32 %v9799_v41, %v12011_v14  ;;  %v4418_v50 = vpack.c.bf16 %v4392_v32, %v4391_v30  ;;  %v4419_v44 = vpack.c.bf16 %v4394_v31, %v4393_v20  ;;  %v3348_v27 = vadd.f32 %v12038_v57, %v3305_v37  ;;  %vm12683_vm2 = vmand %vm4069_vm13, %vm4105_vm3  ;;  %v4306_v30 = vld [vmem:[#allocation2 + $0x1d] sm:$0xff] }
 0x35f   : > { %v3306_v21 = vmul.f32 %v9800_v26, %v12011_v14  ;;  %vm4112_vm9 = vcmp.le.s32.totalorder %v12569_v29, 16  ;;  %v3386_v5 = vmax.f32 %v3350_v55, 0.0  ;;  %v12691_v13 = vsel %vm12644_vm10, %v4007_v40, %v12539_v8  ;;  %v13705_v40 = vld [vmem:[#allocation13_spill] sm:$0xff] }
 0x360   : > { %v3351_v39 = vadd.f32 %v12038_v57, %v3308_v18  ;;  %9286 = vmatmul.mubr.bf16.gmra.mrb[36].mxu1 %v4418_v50  ;;  %v12694_v10 = vsub.s32 %v12417_v19, %v3839_v17  ;;  %v3384_v51 = vmax.f32 %v3348_v27, 0.0  ;;  %vm13697_vm5 = vcmp.ge.s32.totalorder %v12247_v56, 1  ;;  %v4311_v50 = vld [vmem:[#allocation2 + $0x45] sm:$0xff] }
 0x361   : > { %vm12700_vm13 = vmand %vm13697_vm5, %vm4108_vm14  ;;  %v3349_v45 = vadd.f32 %v12038_v57, %v3306_v21  ;;  %9289 = vmatprep.mubr.bf16.mxu1 %v4419_v44  ;;  %vm3900_vm3 = vcmp.ne.s32.totalorder %v12655_v28, 0  ;;  %vm3936_vm7 = vcmp.lt.s32.totalorder %v12655_v28, 0  ;;  %v4251_v19 = vsel %vm12662_vm8, %v3386_v5, 0.0  ;;  %v4395_v3 = vld [vmem:[#allocation2 + $0xb6] sm:$0xff]  ;;  %v13721_v44 = vld [vmem:[#allocation16_spill] sm:$0xff] }
 0x362   : > { %v3387_v8 = vmax.f32 %v3351_v39, 0.0  ;;  %vm13700_vm10 = vcmp.le.s32.totalorder %v12344_v0, 16  ;;  %vm13701_vm1 = vcmp.ge.s32.totalorder %v12344_v0, 1  ;;  %v9801_v36 = vadd.f32 %v9247_v48, %v13704_v12  ;;  %4290 = vst [vmem:[#allocation2 + $0xe8] sm:$0xff] %v4251_v19  ;;  %v9248_v0 = vpop.f32.mrb[30].mxu0  ;;  %vm12735_vm8 = vmand %vm3936_vm7, %vm3900_vm3 }
 0x363   : > { %vm12713_vm14 = vmand %vm13701_vm1, %vm13700_vm10  ;;  %v12721_v58 = vsel %vm12675_vm0, %v4005_v34, %v12547_v11  ;;  %v4249_v46 = vsel %vm12683_vm2, %v3384_v51, 0.0  ;;  %v3385_v1 = vmax.f32 %v3349_v45, 0.0  ;;  %v9802_v61 = vadd.f32 %v3207_v35, %v13705_v40  ;;  %v3210_v11 = vpop.f32.mrb[31].mxu0  ;;  %v4398_v60 = vld [vmem:[#allocation2 + $0xce] sm:$0xff]  ;;  %v13724_v35 = vld [vmem:[#allocation19_spill] sm:$0xff] }
 0x364   : > { %v4008_v53 = vadd.s32 18, %v12655_v28  ;;  %4288 = vst [vmem:[#allocation2 + $0xd8] sm:$0xff] %v4249_v46  ;;  %v4252_v47 = vsel %vm12700_vm13, %v3387_v8, 0.0  ;;  %v3311_v2 = vmul.f32 %v9801_v36, %v12011_v14  ;;  %v9803_v62 = vadd.f32 %v9248_v0, %v13706_v16  ;;  %v4396_v9 = vld [vmem:[#allocation2 + $0xbe] sm:$0xff]  ;;  %v4397_v22 = vld [vmem:[#allocation2 + $0xc6] sm:$0xff]  ;;  %vm12750_vm2 = vmand %vm4075_vm12, %vm4111_vm4  ;;  %v9251_v24 = vpop.f32.mrb[32].mxu0 }
 0x365   : > { %vm3898_vm1 = vcmp.ne.s32.totalorder %v12694_v10, 0  ;;  %4291 = vst [vmem:[#allocation2 + $0xf0] sm:$0xff] %v4252_v47  ;;  %v4250_v43 = vsel %vm12713_vm14, %v3385_v1, 0.0  ;;  %v3309_v49 = vmul.f32 %v9802_v61, %v12011_v14  ;;  %v9804_v34 = vadd.f32 %v3210_v11, %v13709_v4  ;;  %vm12760_vm5 = vmand %vm4073_vm15, %vm4109_vm6  ;;  %v3223_v21 = vpop.f32.mrb[33].mxu0  ;;  %v13723_v45 = vld [vmem:[#allocation18_spill] sm:$0xff] }
 0x366   : > { %vm3934_vm0 = vcmp.lt.s32.totalorder %v12694_v10, 0  ;;  %4289 = vst [vmem:[#allocation2 + $0xe0] sm:$0xff] %v4250_v43  ;;  %v3354_v41 = vadd.f32 %v12038_v57, %v3311_v2  ;;  %v3312_v31 = vmul.f32 %v9803_v62, %v12011_v14  ;;  %v4420_v63 = vpack.c.bf16 %v4396_v9, %v4395_v3  ;;  %vm12772_vm13 = vmand %vm4076_vm11, %vm4112_vm9  ;;  %v9252_v51 = vpop.f32.mrb[34].mxu0  ;;  %v10635_v11 = vld [vmem:[%s13534_s3] ss:$0 sm:$0xff] }
 0x367   : > { %v4421_v17 = vpack.c.bf16 %v4398_v60, %v4397_v22  ;;  %v3352_v59 = vadd.f32 %v12038_v57, %v3309_v49  ;;  %v3310_v25 = vmul.f32 %v9804_v34, %v12011_v14  ;;  %vm4110_vm12 = vcmp.le.s32.totalorder %v12574_v7, 16  ;;  %vm12787_vm11 = vmand %vm3934_vm0, %vm3898_vm1  ;;  %v3226_v19 = vpop.f32.mrb[35].mxu0 }
 0x368   : > { %vm4079_vm4 = vcmp.ge.s32.totalorder %v12691_v13, 1  ;;  %v3390_v6 = vmax.f32 %v3354_v41, 0.0  ;;  %v3355_v26 = vadd.f32 %v12038_v57, %v3312_v31  ;;  %9290 = vmatmul.mubr.bf16.gmra.mrb[40].mxu1 %v4420_v63  ;;  %v4044_v15 = vsel %vm12735_vm8, %v4008_v53, %v12655_v28 }
 0x369   : > { %v4006_v32 = vadd.s32 18, %v12694_v10  ;;  %v3388_v20 = vmax.f32 %v3352_v59, 0.0  ;;  %v3353_v55 = vadd.f32 %v12038_v57, %v3310_v25  ;;  %vm4115_vm15 = vcmp.le.s32.totalorder %v12691_v13, 16  ;;  %9293 = vmatprep.mubr.bf16.mxu1 %v4421_v17  ;;  %v4303_v17 = vld [vmem:[#allocation2 + $0x5] sm:$0xff]  ;;  %v4304_v59 = vld [vmem:[#allocation2 + $0xd] sm:$0xff] }
 0x36a   : > { %vm4077_vm6 = vcmp.ge.s32.totalorder %v12721_v58, 1  ;;  %v4255_v28 = vsel %vm12750_vm2, %v3390_v6, 0.0  ;;  %v3391_v18 = vmax.f32 %v3355_v26, 0.0  ;;  %vm13718_vm9 = vcmp.ge.s32.totalorder %v12574_v7, 1  ;;  %vm4151_vm8 = vmand %vm4079_vm4, %vm4115_vm15 }
 0x36b   : > { %vm12797_vm3 = vmand %vm13718_vm9, %vm4110_vm12  ;;  %v9805_v27 = vadd.f32 %v9251_v24, %v13721_v44  ;;  %vm4113_vm7 = vcmp.le.s32.totalorder %v12721_v58, 16  ;;  %4294 = vst [vmem:[#allocation2 + $0x108] sm:$0xff] %v4255_v28  ;;  %v4253_v38 = vsel %vm12760_vm5, %v3388_v20, 0.0  ;;  %v3389_v5 = vmax.f32 %v3353_v55, 0.0  ;;  %v4399_v1 = vld [vmem:[#allocation2 + $0xd6] sm:$0xff]  ;;  %v10572_v28 = vld [vmem:[%s13535_s4 + $0x90] sm:$0xff]  }
 0x36c   : > { %v9806_v39 = vadd.f32 %v3223_v21, %v13722_v52  ;;  %vm4080_vm10 = vcmp.ge.s32.totalorder %v4044_v15, 1  ;;  %4292 = vst [vmem:[#allocation2 + $0xf8] sm:$0xff] %v4253_v38  ;;  %v4256_v7 = vsel %vm12772_vm13, %v3391_v18, 0.0  ;;  %v9807_v48 = vadd.f32 %v9252_v51, %v13723_v45  ;;  %v4402_v56 = vld [vmem:[#allocation2 + $0xee] sm:$0xff]  ;;  %vm4149_vm2 = vmand %vm4077_vm6, %vm4113_vm7  ;;  %v10571_v24 = vld [vmem:[%s13535_s4 + $0x88] sm:$0xff]  }
 0x36d   : > { %v3315_v33 = vmul.f32 %v9805_v27, %v12011_v14  ;;  %v4042_v8 = vsel %vm12787_vm11, %v4006_v32, %v12694_v10  ;;  %4295 = vst [vmem:[#allocation2 + $0x110] sm:$0xff] %v4256_v7  ;;  %v4254_v12 = vsel %vm12797_vm3, %v3389_v5, 0.0  ;;  %vm4116_vm14 = vcmp.le.s32.totalorder %v4044_v15, 16  ;;  %v4400_v40 = vld [vmem:[#allocation2 + $0xde] sm:$0xff]  ;;  %v4401_v61 = vld [vmem:[#allocation2 + $0xe6] sm:$0xff]  ;;  %v4305_v20 = vld [vmem:[#allocation2 + $0x15] sm:$0xff] }
 0x36e   : > { %v3313_v36 = vmul.f32 %v9806_v39, %v12011_v14  ;;  %v9808_v46 = vadd.f32 %v3226_v19, %v13724_v35  ;;  %4293 = vst [vmem:[#allocation2 + $0x100] sm:$0xff] %v4254_v12  ;;  %v10634_v10 = vld [vmem:[%s13533_s2] ss:$0 sm:$0xff]  ;;  %v4422_v47 = vpack.c.bf16 %v4400_v40, %v4399_v1  ;;  %v4423_v2 = vpack.c.bf16 %v4402_v56, %v4401_v61  ;;  %vm4152_vm5 = vmand %vm4080_vm10, %vm4116_vm14  ;;  %v4307_v15 = vld [vmem:[#allocation2 + $0x25] sm:$0xff] }
 0x36f   : > { %v3358_v0 = vadd.f32 %v12038_v57, %v3315_v33  ;;  %v3316_v53 = vmul.f32 %v10634_v10, %v9807_v48  ;;  %vm4078_vm1 = vcmp.ge.s32.totalorder %v4042_v8, 1  ;;  %vm4114_vm0 = vcmp.le.s32.totalorder %v4042_v8, 16  ;;  %v4308_v32 = vld [vmem:[#allocation2 + $0x2d] sm:$0xff]  ;;  %v4310_v18 = vld [vmem:[#allocation2 + $0x3d] sm:$0xff]  ;;  %v4309_v27 = vld [vmem:[#allocation2 + $0x35] sm:$0xff] }
 0x370   : > { %v3356_v14 = vadd.f32 %v12038_v57, %v3313_v36  ;;  %v3314_v16 = vmul.f32 %v10634_v10, %v9808_v46  ;;  %9294 = vmatmul.mubr.bf16.gmra.mrb[44].mxu1 %v4422_v47  ;;  %vm12837_vm12 = vmand %vm4078_vm1, %vm4114_vm0  ;;  %v4339_v6 = vpack.c.bf16 %v4304_v59, %v4303_v17  ;;  %v4340_v55 = vpack.c.bf16 %v4306_v30, %v4305_v20  ;;  %v4312_v44 = vld [vmem:[#allocation2 + $0x4d] sm:$0xff]  ;;  %v4314_v52 = vld [vmem:[#allocation2 + $0x5d] sm:$0xff] }
 0x371   : > { %v3394_v62 = vmax.f32 %v3358_v0, 0.0  ;;  %v3359_v60 = vadd.f32 %v10635_v11, %v3316_v53  ;;  %9297 = vmatprep.mubr.bf16.mxu1 %v4423_v2  ;;  %v4341_v29 = vpack.c.bf16 %v4308_v32, %v4307_v15  ;;  %v4342_v21 = vpack.c.bf16 %v4310_v18, %v4309_v27  ;;  %v10573_v38 = vld [vmem:[%s13535_s4 + $0x98] sm:$0xff]   ;;  %v4313_v7 = vld [vmem:[#allocation2 + $0x55] sm:$0xff]  ;;  %v10576_v19 = vld [vmem:[%s13535_s4 + $0xb0] sm:$0xff]  }
 0x372   : > { %v3392_v54 = vmax.f32 %v3356_v14, 0.0  ;;  %v12835_v57 = vadd.f32 %v10635_v11, %v3314_v16  ;;  %v4343_v5 = vpack.c.bf16 %v4312_v44, %v4311_v50  ;;  %v4315_v39 = vld [vmem:[#allocation2 + $0x65] sm:$0xff]  ;;  %v4316_v51 = vld [vmem:[#allocation2 + $0x6d] sm:$0xff]  ;;  %v4344_v33 = vpack.c.bf16 %v4314_v52, %v4313_v7  ;;  %v10575_v45 = vld [vmem:[%s13535_s4 + $0xa8] sm:$0xff]  }
 0x373   : > { %v4259_v13 = vsel %vm4151_vm8, %v3394_v62, 0.0  ;;  %v3395_v43 = vmax.f32 %v3359_v60, 0.0  ;;  %v4403_v22 = vld [vmem:[#allocation2 + $0xf6] sm:$0xff]  ;;  %v4345_v48 = vpack.c.bf16 %v4316_v51, %v4315_v39  ;;  %v4319_v56 = vld [vmem:[#allocation2 + $0x85] sm:$0xff]  ;;  %v4320_v12 = vld [vmem:[#allocation2 + $0x8d] sm:$0xff]  ;;  %vm10704_vm4 = vmmov 1  }
 0x374   : > { %4298 = vst [vmem:[#allocation2 + $0x128] sm:$0xff] %v4259_v13  ;;  %v4257_v58 = vsel %vm4149_vm2, %v3392_v54, 0.0  ;;  %v3393_v4 = vmax.f32 %v12835_v57, 0.0  ;;  %v4406_v3 = vld [vmem:[#allocation2 + $0x10e] sm:$0xff]  ;;  %v4318_v8 = vld [vmem:[#allocation2 + $0x7d] sm:$0xff]  ;;  %v4347_v1 = vpack.c.bf16 %v4320_v12, %v4319_v56  ;;  %v4323_v0 = vld [vmem:[#allocation2 + $0xa5] sm:$0xff] }
 0x375   : > { %4296 = vst [vmem:[#allocation2 + $0x118] sm:$0xff] %v4257_v58  ;;  %v4260_v34 = vsel %vm4152_vm5, %v3395_v43, 0.0  ;;  %v4404_v41 = vld [vmem:[#allocation2 + $0xfe] sm:$0xff]  ;;  %v4405_v42 = vld [vmem:[#allocation2 + $0x106] sm:$0xff]  ;;  %v4317_v36 = vld [vmem:[#allocation2 + $0x75] sm:$0xff] }
 0x376   : > { %4299 = vst [vmem:[#allocation2 + $0x130] sm:$0x3f] %v4260_v34  ;;  %v4258_v9 = vsel %vm12837_vm12, %v3393_v4, 0.0  ;;  %v4424_v31 = vpack.c.bf16 %v4404_v41, %v4403_v22  ;;  %v4425_v63 = vpack.c.bf16 %v4406_v3, %v4405_v42  ;;  %v4346_v35 = vpack.c.bf16 %v4318_v8, %v4317_v36  ;;  %v10577_v46 = vld [vmem:[%s13535_s4 + $0xb8] sm:$0xff]   ;;  %v10578_v40 = vld [vmem:[%s13535_s4 + $0xc0] sm:$0xff]   ;;  %v4322_v61 = vld [vmem:[#allocation2 + $0x9d] sm:$0xff] }
 0x377   : > { %4297 = vst [vmem:[#allocation2 + $0x120] sm:$0xff] %v4258_v9  ;;  %v4324_v10 = vld [vmem:[#allocation2 + $0xad] sm:$0xff]  ;;  %v4321_v53 = vld [vmem:[#allocation2 + $0x95] sm:$0xff]  ;;  %v4326_v14 = vld [vmem:[#allocation2 + $0xbd] sm:$0xff] }
 0x378   : > { %9298 = vmatmul.mubr.bf16.gmra.mrb[48].mxu1 %v4424_v31  ;;  %v4348_v47 = vpack.c.bf16 %v4322_v61, %v4321_v53  ;;  %v4349_v2 = vpack.c.bf16 %v4324_v10, %v4323_v0  ;;  %v4327_v16 = vld [vmem:[#allocation2 + $0xc5] sm:$0xff]  ;;  %v4328_v62 = vld [vmem:[#allocation2 + $0xcd] sm:$0xff]  ;;  %v4325_v11 = vld [vmem:[#allocation2 + $0xb5] sm:$0xff] }
 0x379   : > { %9301 = vmatprep.mubr.bf16.mxu1 %v4425_v63  ;;  %v4350_v60 = vpack.c.bf16 %v4326_v14, %v4325_v11  ;;  %v4351_v54 = vpack.c.bf16 %v4328_v62, %v4327_v16  ;;  %v4330_v13 = vld [vmem:[#allocation2 + $0xdd] sm:$0xff]  ;;  %v4331_v43 = vld [vmem:[#allocation2 + $0xe5] sm:$0xff]  ;;  %v4332_v58 = vld [vmem:[#allocation2 + $0xed] sm:$0xff] }
 0x37a   : > { %v4329_v34 = vld [vmem:[#allocation2 + $0xd5] sm:$0xff]  ;;  %v4353_v9 = vpack.c.bf16 %v4332_v58, %v4331_v43  ;;  %v4334_v22 = vld [vmem:[#allocation2 + $0xfd] sm:$0xff]  ;;  %v4335_v41 = vld [vmem:[#allocation2 + $0x105] sm:$0xff] }
 0x37b   : > { %v4352_v3 = vpack.c.bf16 %v4330_v13, %v4329_v34  ;;  %v4336_v42 = vld [vmem:[#allocation2 + $0x10d] sm:$0xff]  ;;  %v4333_v31 = vld [vmem:[#allocation2 + $0xf5] sm:$0xff]  ;;  %v4897_v15 = vld [vmem:[#allocation2 + $0x1f] sm:$0xff] }
 0x37c   : > { %v4407_v37 = vld [vmem:[#allocation2 + $0x116] sm:$0xff]  ;;  %v4354_v63 = vpack.c.bf16 %v4334_v22, %v4333_v31  ;;  %v4355_v17 = vpack.c.bf16 %v4336_v42, %v4335_v41  ;;  %v4894_v59 = vld [vmem:[#allocation2 + $0x7] sm:$0xff]  ;;  %v4901_v50 = vld [vmem:[#allocation2 + $0x3f] sm:$0xff] }
 0x37d   : > { %v4898_v32 = vld [vmem:[#allocation2 + $0x27] sm:$0xff]  ;;  %v4899_v20 = vld [vmem:[#allocation2 + $0x2f] sm:$0xff]  ;;  %v4905_v39 = vld [vmem:[#allocation2 + $0x5f] sm:$0xff] }
 0x37e   : > { %v4408_v25 = vld [vmem:[#allocation2 + $0x11e] sm:$0xff]  ;;  %v4902_v44 = vld [vmem:[#allocation2 + $0x47] sm:$0xff]  ;;  %v4903_v27 = vld [vmem:[#allocation2 + $0x4f] sm:$0xff] }
 0x37f   : > { %v4426_v26 = vpack.c.bf16 %v4408_v25, %v4407_v37  ;;  %v4895_v37 = vld [vmem:[#allocation2 + $0xf] sm:$0xff]  ;;  %v4338_v25 = vld [vmem:[#allocation2 + $0x11d] sm:$0xff]  ;;  %v4906_v51 = vld [vmem:[#allocation2 + $0x67] sm:$0xff] }
 0x380   : > { %v10580_v18 = vld [vmem:[%s13535_s4 + $0xd0] sm:$0xff]   ;;  %v10582_v52 = vld [vmem:[%s13535_s4 + $0xe0] sm:$0xff]   ;;  %vm10636_vm13 = vmpackc.low %vm12837_vm12, %vm10704_vm4 }
 0x381   : > { %9302 = vmatmul.mubr.bf16.gmra.mrb[52].mxu1 %v4426_v26  ;;  %v4930_v26 = vpack.c.bf16 %v4895_v37, %v4894_v59  ;;  %v4907_v7 = vld [vmem:[#allocation2 + $0x6f] sm:$0xff]  ;;  %v10584_v8 = vld [vmem:[%s13535_s4 + $0xf0] sm:$0xff]   ;;  %v10603_v57 = vld [vmem:[%s13535_s4 + $0x188] sm:$0xff]  }
 0x382   : > { %9321 = vmatprep.mubr.bf16.mxu1 %v4339_v6  ;;  %v4337_v6 = vld [vmem:[#allocation2 + $0x115] sm:$0xff]  ;;  %v4909_v56 = vld [vmem:[#allocation2 + $0x7f] sm:$0xff]  ;;  %v4910_v12 = vld [vmem:[#allocation2 + $0x87] sm:$0xff] }
 0x383   : > { %v4356_v30 = vpack.c.bf16 %v4338_v25, %v4337_v6  ;;  %v4911_v36 = vld [vmem:[#allocation2 + $0x8f] sm:$0xff]  ;;  %v4913_v0 = vld [vmem:[#allocation2 + $0x9f] sm:$0xff]  ;;  %v4914_v10 = vld [vmem:[#allocation2 + $0xa7] sm:$0xff] }
 0x384   : > { %v10586_v61 = vld [vmem:[%s13535_s4 + $0x100] sm:$0xff]   ;;  %v4917_v16 = vld [vmem:[#allocation2 + $0xbf] sm:$0xff]  ;;  %v4918_v62 = vld [vmem:[#allocation2 + $0xc7] sm:$0xff] }
 0x385   : > { %v4915_v53 = vld [vmem:[#allocation2 + $0xaf] sm:$0xff]  ;;  %v4921_v43 = vld [vmem:[#allocation2 + $0xdf] sm:$0xff]  ;;  %v4922_v58 = vld [vmem:[#allocation2 + $0xe7] sm:$0xff] }
 0x386   : > { %v12919_v14 = vpack.c.bf16 %v4915_v53, %v4914_v10  ;;  %v4919_v11 = vld [vmem:[#allocation2 + $0xcf] sm:$0xff]  ;;  %v4925_v41 = vld [vmem:[#allocation2 + $0xff] sm:$0xff]  ;;  %v4926_v42 = vld [vmem:[#allocation2 + $0x107] sm:$0xff] }
 0x387   : > { %v4942_v13 = vpack.c.bf16 %v4919_v11, %v4918_v62  ;;  %v4923_v34 = vld [vmem:[#allocation2 + $0xef] sm:$0xff]  ;;  %v4929_v37 = vld [vmem:[#allocation2 + $0x11f] sm:$0xff]  ;;  %v4928_v25 = vld [vmem:[#allocation2 + $0x117] sm:$0xff] }
 0x388   : > { %v4944_v22 = vpack.c.bf16 %v4923_v34, %v4922_v58  ;;  %v4927_v31 = vld [vmem:[#allocation2 + $0x10f] sm:$0xff]  ;;  %v4947_v6 = vpack.c.bf16 %v4929_v37, %v4928_v25  ;;  %v10599_v10 = vld [vmem:[%s13535_s4 + $0x168] sm:$0xff]   ;;  %v5579_v58 = vld [vmem:[#allocation2 + $0xc0] sm:$0xff] }
 0x389   : > { %9322 = vmatmul.mubr.bf16.vlgmr.msra.gmra.mrb[20].mxu1 %v4340_v55  ;;  %v4896_v55 = vld [vmem:[#allocation2 + $0x17] sm:$0xff]  ;;  %v4946_v59 = vpack.c.bf16 %v4927_v31, %v4926_v42  ;;  %v5576_v34 = vld [vmem:[#allocation2 + $0xa8] sm:$0xff]  ;;  %v5583_v42 = vld [vmem:[#allocation2 + $0xe0] sm:$0xff] }
 0x38a   : > { %9325 = vmatprep.mubr.bf16.mxu1 %v4341_v29  ;;  %9358 = vmatpush3.bf16.msra.mxu1 %v12603_v23  ;;  %v10574_v23 = vld [vmem:[%s13535_s4 + $0xa0] sm:$0xff]   ;;  %v10579_v29 = vld [vmem:[%s13535_s4 + $0xc8] sm:$0xff]   ;;  %v5580_v31 = vld [vmem:[#allocation2 + $0xc8] sm:$0xff] }
 0x38b   : > { %9359 = vmatprep.subr.bf16.mxu1 %v10571_v24  ;;  %v5574_v11 = vld [vmem:[#allocation2 + $0x98] sm:$0xff]  ;;  %v5585_v37 = vld [vmem:[#allocation2 + $0xf0] sm:$0xff]  ;;  %v5587_v25 = vld [vmem:[#allocation2 + $0x100] sm:$0xff] }
 0x38e   : > { %9360 = vmatpush3.bf16.msra.mxu1 %v10571_v24  ;;  %v12871_v24 = vpack.c.bf16 %v4897_v15, %v4896_v55  ;;  %v10589_v15 = vld [vmem:[%s13535_s4 + $0x118] sm:$0xff]   ;;  %v10592_v55 = vld [vmem:[%s13535_s4 + $0x130] sm:$0xff]  }
 0x38f   : > { %9361 = vmatprep.subr.bf16.mxu1 %v10572_v28 }
 0x391   : > { %9326 = vmatmul.mubr.bf16.gmra.mrb[24].mxu1 %v4342_v21  ;;  %v4900_v21 = vld [vmem:[#allocation2 + $0x37] sm:$0xff] }
 0x392   : > { %9329 = vmatprep.mubr.bf16.mxu1 %v4343_v5  ;;  %9362 = vmatpush3.bf16.msra.mxu1 %v10572_v28  ;;  %v12876_v28 = vpack.c.bf16 %v4899_v20, %v4898_v32  ;;  %v10581_v5 = vld [vmem:[%s13535_s4 + $0xd8] sm:$0xff]   ;;  %v10590_v32 = vld [vmem:[%s13535_s4 + $0x120] sm:$0xff]   ;;  %v10591_v20 = vld [vmem:[%s13535_s4 + $0x128] sm:$0xff]  }
 0x393   : > { %9363 = vmatprep.subr.bf16.mxu1 %v10573_v38 }
 0x396   : > { %9364 = vmatpush3.bf16.msra.mxu1 %v10573_v38  ;;  %v12883_v38 = vpack.c.bf16 %v4901_v50, %v4900_v21  ;;  %v5559_v50 = vld [vmem:[#allocation2 + $0x20] sm:$0xff] }
 0x397   : > { %9365 = vmatprep.subr.bf16.mxu1 %v10574_v23 }
 0x399   : > { %9330 = vmatmul.mubr.bf16.gmra.mrb[28].mxu1 %v4344_v33  ;;  %v4904_v33 = vld [vmem:[#allocation2 + $0x57] sm:$0xff] }
 0x39a   : > { %9333 = vmatprep.mubr.bf16.mxu1 %v4345_v48  ;;  %9366 = vmatpush3.bf16.msra.mxu1 %v10574_v23  ;;  %v12888_v23 = vpack.c.bf16 %v4903_v27, %v4902_v44  ;;  %v10583_v48 = vld [vmem:[%s13535_s4 + $0xe8] sm:$0xff]  }
 0x39b   : > { %9367 = vmatprep.subr.bf16.mxu1 %v10575_v45  ;;  %v5558_v27 = vld [vmem:[#allocation2 + $0x18] sm:$0xff] }
 0x39c   : > { %v5594_v21 = vpack.c.bf16 %v5559_v50, %v5558_v27  ;;  %v5891_v50 = vld [vmem:[#allocation2 + $0x21] sm:$0xff] }
 0x39e   : > { %9368 = vmatpush3.bf16.msra.mxu1 %v10575_v45  ;;  %v12895_v45 = vpack.c.bf16 %v4905_v39, %v4904_v33  ;;  %v5562_v39 = vld [vmem:[#allocation2 + $0x38] sm:$0xff]  ;;  %v10596_v33 = vld [vmem:[%s13535_s4 + $0x150] sm:$0xff]  }
 0x39f   : > { %9369 = vmatprep.subr.bf16.mxu1 %v10576_v19 }
 0x3a1   : > { %9334 = vmatmul.mubr.bf16.gmra.mrb[32].mxu1 %v4346_v35  ;;  %v4908_v35 = vld [vmem:[#allocation2 + $0x77] sm:$0xff] }
 0x3a2   : > { %9337 = vmatprep.mubr.bf16.mxu1 %v4347_v1  ;;  %9370 = vmatpush3.bf16.msra.mxu1 %v10576_v19  ;;  %v12900_v19 = vpack.c.bf16 %v4907_v7, %v4906_v51  ;;  %v10585_v1 = vld [vmem:[%s13535_s4 + $0xf8] sm:$0xff]   ;;  %v10595_v51 = vld [vmem:[%s13535_s4 + $0x148] sm:$0xff]  }
 0x3a3   : > { %9371 = vmatprep.subr.bf16.mxu1 %v10577_v46 }
 0x3a6   : > { %9372 = vmatpush3.bf16.msra.mxu1 %v10577_v46  ;;  %v12907_v46 = vpack.c.bf16 %v4909_v56, %v4908_v35  ;;  %v5566_v56 = vld [vmem:[#allocation2 + $0x58] sm:$0xff]  ;;  %v10598_v35 = vld [vmem:[%s13535_s4 + $0x160] sm:$0xff]  }
 0x3a7   : > { %9409 = vmatprep.subr.bf16.mxu1 %v10578_v40 }
 0x3a9   : > { %9338 = vmatmul.mubr.bf16.gmra.mrb[36].mxu1 %v4348_v47  ;;  %v4912_v47 = vld [vmem:[#allocation2 + $0x97] sm:$0xff] }
 0x3aa   : > { %9341 = vmatprep.mubr.bf16.mxu1 %v4349_v2  ;;  %v4939_v2 = vpack.c.bf16 %v4913_v0, %v4912_v47  ;;  %v5570_v0 = vld [vmem:[#allocation2 + $0x78] sm:$0xff]  ;;  %v10600_v47 = vld [vmem:[%s13535_s4 + $0x170] sm:$0xff]  }
 0x3b1   : > { %9342 = vmatmul.mubr.bf16.gmra.mrb[40].mxu1 %v4350_v60  ;;  %v4916_v60 = vld [vmem:[#allocation2 + $0xb7] sm:$0xff] }
 0x3b2   : > { %9345 = vmatprep.mubr.bf16.mxu1 %v4351_v54  ;;  %v4941_v54 = vpack.c.bf16 %v4917_v16, %v4916_v60  ;;  %v5572_v16 = vld [vmem:[#allocation2 + $0x88] sm:$0xff] }
 0x3b3   : > { %v10601_v60 = vld [vmem:[%s13535_s4 + $0x178] sm:$0xff]  }
 0x3b9   : > { %9346 = vmatmul.mubr.bf16.gmra.mrb[44].mxu1 %v4352_v3  ;;  %v4920_v3 = vld [vmem:[#allocation2 + $0xd7] sm:$0xff] }
 0x3ba   : > { %9349 = vmatprep.mubr.bf16.mxu1 %v4353_v9  ;;  %v4943_v9 = vpack.c.bf16 %v4921_v43, %v4920_v3  ;;  %v5577_v43 = vld [vmem:[#allocation2 + $0xb0] sm:$0xff] }
 0x3bb   : > { %v5603_v3 = vpack.c.bf16 %v5577_v43, %v5576_v34  ;;  %v5910_v43 = vld [vmem:[#allocation2 + $0xb9] sm:$0xff]  ;;  %v5908_v34 = vld [vmem:[#allocation2 + $0xa9] sm:$0xff] }
 0x3c1   : > { %9350 = vmatmul.mubr.bf16.gmra.mrb[48].mxu1 %v4354_v63  ;;  %v4924_v63 = vld [vmem:[#allocation2 + $0xf7] sm:$0xff] }
 0x3c2   : > { %9353 = vmatprep.mubr.bf16.mxu1 %v4355_v17  ;;  %v4945_v17 = vpack.c.bf16 %v4925_v41, %v4924_v63  ;;  %v5581_v41 = vld [vmem:[#allocation2 + $0xd0] sm:$0xff] }
 0x3c3   : > { %v5605_v63 = vpack.c.bf16 %v5581_v41, %v5580_v31  ;;  %v5913_v41 = vld [vmem:[#allocation2 + $0xd1] sm:$0xff]  ;;  %v5915_v31 = vld [vmem:[#allocation2 + $0xe1] sm:$0xff] }
 0x3c9   : > { %9354 = vmatmul.mubr.bf16.gmra.mrb[52].mxu1 %v4356_v30  ;;  %v10588_v30 = vld [vmem:[%s13535_s4 + $0x110] sm:$0xff]  }
 0x3ca   : > { %9373 = vmatprep.mubr.bf16.mxu1 %v4930_v26  ;;  %v10587_v26 = vld [vmem:[%s13535_s4 + $0x108] sm:$0xff]  }
 0x3d1   : > { %9374 = vmatmul.mubr.bf16.vlgmr.msra.gmra.mrb[20].mxu1 %v12871_v24 }
 0x3d2   : > { %9377 = vmatprep.mubr.bf16.mxu1 %v12876_v28  ;;  %9410 = vmatpush3.bf16.msra.mxu1 %v10578_v40  ;;  %v12912_v40 = vpack.c.bf16 %v4911_v36, %v4910_v12  ;;  %v10597_v12 = vld [vmem:[%s13535_s4 + $0x158] sm:$0xff]  }
 0x3d3   : > { %9411 = vmatprep.subr.bf16.mxu1 %v10579_v29 }
 0x3d6   : > { %9412 = vmatpush3.bf16.msra.mxu1 %v10579_v29  ;;  %v10594_v29 = vld [vmem:[%s13535_s4 + $0x140] sm:$0xff]  }
 0x3d7   : > { %9413 = vmatprep.subr.bf16.mxu1 %v10580_v18 }
 0x3d9   : > { %9378 = vmatmul.mubr.bf16.gmra.mrb[24].mxu1 %v12883_v38 }
 0x3da   : > { %9381 = vmatprep.mubr.bf16.mxu1 %v12888_v23  ;;  %9414 = vmatpush3.bf16.msra.mxu1 %v10580_v18  ;;  %v5261_v18 = vld [vmem:[#allocation2 + $0x12f] sm:$0xff] }
 0x3db   : > { %9415 = vmatprep.subr.bf16.mxu1 %v10581_v5 }
 0x3de   : > { %9416 = vmatpush3.bf16.msra.mxu1 %v10581_v5  ;;  %v5563_v5 = vld [vmem:[#allocation2 + $0x40] sm:$0xff] }
 0x3df   : > { %9417 = vmatprep.subr.bf16.mxu1 %v10582_v52  ;;  %v5596_v7 = vpack.c.bf16 %v5563_v5, %v5562_v39  ;;  %v5894_v5 = vld [vmem:[#allocation2 + $0x39] sm:$0xff] }
 0x3e1   : > { %9382 = vmatmul.mubr.bf16.gmra.mrb[28].mxu1 %v12895_v45 }
 0x3e2   : > { %9385 = vmatprep.mubr.bf16.mxu1 %v12900_v19  ;;  %9418 = vmatpush3.bf16.msra.mxu1 %v10582_v52 }
 0x3e3   : > { %9419 = vmatprep.subr.bf16.mxu1 %v10583_v48 }
 0x3e6   : > { %9420 = vmatpush3.bf16.msra.mxu1 %v10583_v48  ;;  %v5567_v48 = vld [vmem:[#allocation2 + $0x60] sm:$0xff] }
 0x3e7   : > { %9421 = vmatprep.subr.bf16.mxu1 %v10584_v8  ;;  %v5598_v36 = vpack.c.bf16 %v5567_v48, %v5566_v56  ;;  %v10606_v56 = vld [vmem:[%s13535_s4 + $0x1a0] sm:$0xff]  }
 0x3e9   : > { %9386 = vmatmul.mubr.bf16.gmra.mrb[32].mxu1 %v12907_v46 }
 0x3ea   : > { %9389 = vmatprep.mubr.bf16.mxu1 %v12912_v40  ;;  %9422 = vmatpush3.bf16.msra.mxu1 %v10584_v8 }
 0x3eb   : > { %9423 = vmatprep.subr.bf16.mxu1 %v10585_v1 }
 0x3ee   : > { %9424 = vmatpush3.bf16.msra.mxu1 %v10585_v1  ;;  %v5571_v1 = vld [vmem:[#allocation2 + $0x80] sm:$0xff] }
 0x3ef   : > { %9461 = vmatprep.subr.bf16.mxu1 %v10586_v61  ;;  %v5600_v53 = vpack.c.bf16 %v5571_v1, %v5570_v0  ;;  %v10619_v0 = vld [vmem:[%s13538_s7] sm:$0xff]  }
 0x3f0   : > { %9721 = vmatprep.subr.bf16.mxu0 %v10619_v0 }
 0x3f1   : > { %9390 = vmatmul.mubr.bf16.gmra.mrb[36].mxu1 %v4939_v2  ;;  %9722 = vmatpush3.bf16.msra.mxu0 %v10619_v0  ;;  %v7313_v0 = vld [vmem:[%s10825_s21 + $0x5b] sm:$0xff] }
 0x3f2   : > { %9393 = vmatprep.mubr.bf16.mxu1 %v12919_v14 }
 0x3f9   : > { %9394 = vmatmul.mubr.bf16.gmra.mrb[40].mxu1 %v4941_v54 }
 0x3fa   : > { %9397 = vmatprep.mubr.bf16.mxu1 %v4942_v13 }
 0x401   : > { %9398 = vmatmul.mubr.bf16.gmra.mrb[44].mxu1 %v4943_v9 }
 0x402   : > { %9401 = vmatprep.mubr.bf16.mxu1 %v4944_v22 }
 0x409   : > { %9402 = vmatmul.mubr.bf16.gmra.mrb[48].mxu1 %v4945_v17 }
 0x40a   : > { %9405 = vmatprep.mubr.bf16.mxu1 %v4946_v59 }
 0x411   : > { %9406 = vmatmul.mubr.bf16.gmra.mrb[52].mxu1 %v4947_v6 }
 0x412   : > { %9425 = vmatprep.mubr.bf16.mxu1 %v12871_v24  ;;  %v10593_v24 = vld [vmem:[%s13535_s4 + $0x138] sm:$0xff]  }
 0x419   : > { %9426 = vmatmul.mubr.bf16.vlgmr.msra.gmra.mrb[20].mxu1 %v12876_v28  ;;  %v5260_v28 = vld [vmem:[#allocation2 + $0x127] sm:$0xff] }
 0x41a   : > { %9429 = vmatprep.mubr.bf16.mxu1 %v12883_v38  ;;  %9462 = vmatpush3.bf16.msra.mxu1 %v10586_v61  ;;  %v5279_v44 = vpack.c.bf16 %v5261_v18, %v5260_v28  ;;  %v5561_v38 = vld [vmem:[#allocation2 + $0x30] sm:$0xff]  ;;  %v5890_v18 = vld [vmem:[#allocation2 + $0x19] sm:$0xff] }
 0x41b   : > { %9463 = vmatprep.subr.bf16.mxu1 %v10587_v26  ;;  %v5593_v28 = vld [vmem:[#allocation2 + $0x130] sm:$0xff] }
 0x41e   : > { %9464 = vmatpush3.bf16.msra.mxu1 %v10587_v26 }
 0x41f   : > { %9465 = vmatprep.subr.bf16.mxu1 %v10588_v30 }
 0x421   : > { %9430 = vmatmul.mubr.bf16.gmra.mrb[24].mxu1 %v12888_v23  ;;  %v5560_v23 = vld [vmem:[#allocation2 + $0x28] sm:$0xff] }
 0x422   : > { %9433 = vmatprep.mubr.bf16.mxu1 %v12895_v45  ;;  %9466 = vmatpush3.bf16.msra.mxu1 %v10588_v30  ;;  %v5595_v52 = vpack.c.bf16 %v5561_v38, %v5560_v23  ;;  %v5565_v45 = vld [vmem:[#allocation2 + $0x50] sm:$0xff]  ;;  %v5586_v30 = vld [vmem:[#allocation2 + $0xf8] sm:$0xff]  ;;  %v5895_v23 = vld [vmem:[#allocation2 + $0x41] sm:$0xff] }
 0x423   : > { %9467 = vmatprep.subr.bf16.mxu1 %v10589_v15  ;;  %v5893_v38 = vld [vmem:[#allocation2 + $0x31] sm:$0xff]  ;;  %v12988_v49 = vpack.c.bf16 %v5895_v23, %v5894_v5  ;;  %v10631_v5 = vld [vmem:[%s13538_s7 + $0x30] sm:$0xff]  }
 0x424   : > { %v10611_v23 = vld [vmem:[%s13535_s4 + $0x1c8] sm:$0xff]  }
 0x426   : > { %9468 = vmatpush3.bf16.msra.mxu1 %v10589_v15  ;;  %v5608_v15 = vpack.c.bf16 %v5587_v25, %v5586_v30  ;;  %v5917_v25 = vld [vmem:[#allocation2 + $0xf1] sm:$0xff]  ;;  %v5916_v30 = vld [vmem:[#allocation2 + $0xe9] sm:$0xff] }
 0x427   : > { %9469 = vmatprep.subr.bf16.mxu1 %v10590_v32 }
 0x429   : > { %9434 = vmatmul.mubr.bf16.gmra.mrb[28].mxu1 %v12900_v19  ;;  %v5564_v19 = vld [vmem:[#allocation2 + $0x48] sm:$0xff] }
 0x42a   : > { %9437 = vmatprep.mubr.bf16.mxu1 %v12907_v46  ;;  %9470 = vmatpush3.bf16.msra.mxu1 %v10590_v32  ;;  %v5597_v8 = vpack.c.bf16 %v5565_v45, %v5564_v19  ;;  %v5569_v46 = vld [vmem:[#allocation2 + $0x70] sm:$0xff]  ;;  %v10605_v19 = vld [vmem:[%s13535_s4 + $0x198] sm:$0xff]  }
 0x42b   : > { %9471 = vmatprep.subr.bf16.mxu1 %v10591_v20  ;;  %v5589_v32 = vld [vmem:[#allocation2 + $0x110] sm:$0xff] }
 0x42c   : > { %v5896_v45 = vld [vmem:[#allocation2 + $0x49] sm:$0xff] }
 0x42e   : > { %9472 = vmatpush3.bf16.msra.mxu1 %v10591_v20  ;;  %v5590_v20 = vld [vmem:[#allocation2 + $0x118] sm:$0xff] }
 0x42f   : > { %9473 = vmatprep.subr.bf16.mxu1 %v10592_v55 }
 0x431   : > { %9438 = vmatmul.mubr.bf16.gmra.mrb[32].mxu1 %v12912_v40  ;;  %v5568_v40 = vld [vmem:[#allocation2 + $0x68] sm:$0xff] }
 0x432   : > { %9441 = vmatprep.mubr.bf16.mxu1 %v4939_v2  ;;  %9474 = vmatpush3.bf16.msra.mxu1 %v10592_v55  ;;  %v5599_v61 = vpack.c.bf16 %v5569_v46, %v5568_v40  ;;  %v5573_v2 = vld [vmem:[#allocation2 + $0x90] sm:$0xff]  ;;  %v5588_v55 = vld [vmem:[#allocation2 + $0x108] sm:$0xff]  ;;  %v10607_v40 = vld [vmem:[%s13535_s4 + $0x1a8] sm:$0xff]  }
 0x433   : > { %9475 = vmatprep.subr.bf16.mxu1 %v10593_v24  ;;  %v5601_v62 = vpack.c.bf16 %v5573_v2, %v5572_v16  ;;  %v5900_v46 = vld [vmem:[#allocation2 + $0x69] sm:$0xff]  ;;  %v5907_v2 = vld [vmem:[#allocation2 + $0xa1] sm:$0xff] }
 0x436   : > { %9476 = vmatpush3.bf16.msra.mxu1 %v10593_v24  ;;  %v5609_v24 = vpack.c.bf16 %v5589_v32, %v5588_v55  ;;  %v5921_v55 = vld [vmem:[#allocation2 + $0x111] sm:$0xff] }
 0x437   : > { %9513 = vmatprep.subr.bf16.mxu1 %v10594_v29 }
 0x439   : > { %9442 = vmatmul.mubr.bf16.gmra.mrb[36].mxu1 %v12919_v14  ;;  %v5575_v14 = vld [vmem:[#allocation2 + $0xa0] sm:$0xff] }
 0x43a   : > { %9445 = vmatprep.mubr.bf16.mxu1 %v4941_v54  ;;  %v5602_v54 = vpack.c.bf16 %v5575_v14, %v5574_v11  ;;  %v5904_v14 = vld [vmem:[#allocation2 + $0x89] sm:$0xff] }
 0x441   : > { %9446 = vmatmul.mubr.bf16.gmra.mrb[40].mxu1 %v4942_v13  ;;  %v10602_v13 = vld [vmem:[%s13535_s4 + $0x180] sm:$0xff]  }
 0x442   : > { %9449 = vmatprep.mubr.bf16.mxu1 %v4943_v9  ;;  %v5578_v9 = vld [vmem:[#allocation2 + $0xb8] sm:$0xff] }
 0x449   : > { %9450 = vmatmul.mubr.bf16.gmra.mrb[44].mxu1 %v4944_v22  ;;  %v5604_v22 = vpack.c.bf16 %v5579_v58, %v5578_v9  ;;  %v5911_v58 = vld [vmem:[#allocation2 + $0xc1] sm:$0xff] }
 0x44a   : > { %9453 = vmatprep.mubr.bf16.mxu1 %v4945_v17  ;;  %v5582_v17 = vld [vmem:[#allocation2 + $0xd8] sm:$0xff]  ;;  %v13039_v9 = vpack.c.bf16 %v5911_v58, %v5910_v43  ;;  %v7320_v43 = vld [vmem:[%s10825_s21 + $0x93] sm:$0xff]  ;;  %v7321_v58 = vld [vmem:[%s10825_s21 + $0x9b] sm:$0xff] }
 0x451   : > { %9454 = vmatmul.mubr.bf16.gmra.mrb[48].mxu1 %v4946_v59  ;;  %v5606_v59 = vpack.c.bf16 %v5583_v42, %v5582_v17  ;;  %v5914_v42 = vld [vmem:[#allocation2 + $0xd9] sm:$0xff] }
 0x452   : > { %9457 = vmatprep.mubr.bf16.mxu1 %v4947_v6  ;;  %v5584_v6 = vld [vmem:[#allocation2 + $0xe8] sm:$0xff] }
 0x453   : > { %v5607_v26 = vpack.c.bf16 %v5585_v37, %v5584_v6  ;;  %v10625_v37 = vld [vmem:[%s13538_s7 + $0x18] sm:$0xff]   ;;  %v5918_v6 = vld [vmem:[#allocation2 + $0xf9] sm:$0xff] }
 0x459   : > { %9458 = vmatmul.mubr.bf16.gmra.mrb[52].mxu1 %v5279_v44  ;;  %v5592_v44 = vld [vmem:[#allocation2 + $0x128] sm:$0xff] }
 0x45a   : > { %9477 = vmatprep.mubr.bf16.mxu1 %v5594_v21  ;;  %v5611_v27 = vpack.c.bf16 %v5593_v28, %v5592_v44  ;;  %v5926_v21 = vpack.c.bf16 %v5891_v50, %v5890_v18  ;;  %v5920_v28 = vld [vmem:[#allocation2 + $0x109] sm:$0xff]  ;;  %v10629_v44 = vld [vmem:[%s13538_s7 + $0x28] sm:$0xff]  }
 0x45b   : > { %v13064_v18 = vpack.c.bf16 %v5921_v55, %v5920_v28 }
 0x461   : > { %9478 = vmatmul.mubr.bf16.vlgmr.msra.gmra.mrb[20].mxu1 %v5595_v52  ;;  %v5892_v52 = vld [vmem:[#allocation2 + $0x29] sm:$0xff] }
 0x462   : > { %9481 = vmatprep.mubr.bf16.mxu1 %v5596_v7  ;;  %9514 = vmatpush3.bf16.msra.mxu1 %v10594_v29  ;;  %v10637_v29 = vpack.c.bf16 %v3393_v4, %v5590_v20  ;;  %v12983_v39 = vpack.c.bf16 %v5893_v38, %v5892_v52  ;;  %v10604_v4 = vld [vmem:[%s13535_s4 + $0x190] sm:$0xff]   ;;  %v10627_v20 = vld [vmem:[%s13538_s7 + $0x20] sm:$0xff]   ;;  %v10633_v52 = vld [vmem:[%s13538_s7 + $0x38] sm:$0xff]  }
 0x463   : > { %9515 = vmatprep.subr.bf16.mxu1 %v10595_v51  ;;  %v5898_v7 = vld [vmem:[#allocation2 + $0x59] sm:$0xff] }
 0x466   : > { %9516 = vmatpush3.bf16.msra.mxu1 %v10595_v51  ;;  %v5897_v51 = vld [vmem:[#allocation2 + $0x51] sm:$0xff] }
 0x467   : > { %9517 = vmatprep.subr.bf16.mxu1 %v10596_v33  ;;  %v12995_v48 = vpack.c.bf16 %v5897_v51, %v5896_v45  ;;  %v7306_v51 = vld [vmem:[%s10825_s21 + $0x23] sm:$0xff]  ;;  %v7307_v45 = vld [vmem:[%s10825_s21 + $0x2b] sm:$0xff] }
 0x469   : > { %9482 = vmatmul.mubr.bf16.gmra.mrb[24].mxu1 %v5597_v8 }
 0x46a   : > { %9485 = vmatprep.mubr.bf16.mxu1 %v5598_v36  ;;  %9518 = vmatpush3.bf16.msra.mxu1 %v10596_v33  ;;  %v5899_v33 = vld [vmem:[#allocation2 + $0x61] sm:$0xff]  ;;  %v5902_v36 = vld [vmem:[#allocation2 + $0x79] sm:$0xff] }
 0x46b   : > { %9519 = vmatprep.subr.bf16.mxu1 %v10597_v12  ;;  %v13000_v8 = vpack.c.bf16 %v5899_v33, %v5898_v7  ;;  %v10614_v7 = vld [vmem:[%s13535_s4 + $0x1e0] sm:$0xff]  }
 0x46e   : > { %9520 = vmatpush3.bf16.msra.mxu1 %v10597_v12  ;;  %v5901_v12 = vld [vmem:[#allocation2 + $0x71] sm:$0xff] }
 0x46f   : > { %9521 = vmatprep.subr.bf16.mxu1 %v10598_v35  ;;  %v13007_v1 = vpack.c.bf16 %v5901_v12, %v5900_v46  ;;  %v7310_v12 = vld [vmem:[%s10825_s21 + $0x43] sm:$0xff]  ;;  %v7311_v46 = vld [vmem:[%s10825_s21 + $0x4b] sm:$0xff] }
 0x471   : > { %9486 = vmatmul.mubr.bf16.gmra.mrb[28].mxu1 %v5599_v61 }
 0x472   : > { %9489 = vmatprep.mubr.bf16.mxu1 %v5600_v53  ;;  %9522 = vmatpush3.bf16.msra.mxu1 %v10598_v35  ;;  %v5903_v35 = vld [vmem:[#allocation2 + $0x81] sm:$0xff]  ;;  %v5905_v53 = vld [vmem:[#allocation2 + $0x91] sm:$0xff] }
 0x473   : > { %9523 = vmatprep.subr.bf16.mxu1 %v10599_v10  ;;  %v13012_v61 = vpack.c.bf16 %v5903_v35, %v5902_v36  ;;  %v13022_v16 = vpack.c.bf16 %v5905_v53, %v5904_v14  ;;  %v10616_v36 = vld [vmem:[%s13535_s4 + $0x1f0] sm:$0xff]   ;;  %v13126_v53 = vld [vmem:[%s13535_s4 + $0x200] sm:$0xff]  }
 0x476   : > { %9524 = vmatpush3.bf16.msra.mxu1 %v10599_v10  ;;  %v10608_v10 = vld [vmem:[%s13535_s4 + $0x1b0] sm:$0xff]  }
 0x477   : > { %9525 = vmatprep.subr.bf16.mxu1 %v10600_v47 }
 0x479   : > { %9490 = vmatmul.mubr.bf16.gmra.mrb[32].mxu1 %v5601_v62  ;;  %v10609_v62 = vld [vmem:[%s13535_s4 + $0x1b8] sm:$0xff]  }
 0x47a   : > { %9493 = vmatprep.mubr.bf16.mxu1 %v5602_v54  ;;  %9526 = vmatpush3.bf16.msra.mxu1 %v10600_v47  ;;  %v5906_v47 = vld [vmem:[#allocation2 + $0x99] sm:$0xff]  ;;  %v10610_v54 = vld [vmem:[%s13535_s4 + $0x1c0] sm:$0xff]  }
 0x47b   : > { %9527 = vmatprep.subr.bf16.mxu1 %v10601_v60  ;;  %v13027_v11 = vpack.c.bf16 %v5907_v2, %v5906_v47  ;;  %v7315_v2 = vld [vmem:[%s10825_s21 + $0x6b] sm:$0xff] }
 0x47e   : > { %9528 = vmatpush3.bf16.msra.mxu1 %v10601_v60  ;;  %v10621_v60 = vld [vmem:[%s13538_s7 + $0x8] sm:$0xff]  }
 0x47f   : > { %9565 = vmatprep.subr.bf16.mxu1 %v10602_v13  ;;  %9723 = vmatprep.subr.bf16.mxu0 %v10621_v60 }
 0x480   : > { %9724 = vmatpush3.bf16.msra.mxu0 %v10621_v60 }
 0x481   : > { %9494 = vmatmul.mubr.bf16.gmra.mrb[36].mxu1 %v5603_v3 }
 0x482   : > { %9497 = vmatprep.mubr.bf16.mxu1 %v5604_v22  ;;  %v10623_v22 = vld [vmem:[%s13538_s7 + $0x10] sm:$0xff]  }
 0x483   : > { %9725 = vmatprep.subr.bf16.mxu0 %v10623_v22 }
 0x484   : > { %9726 = vmatpush3.bf16.msra.mxu0 %v10623_v22 }
 0x485   : > { %9727 = vmatprep.subr.bf16.mxu0 %v10625_v37 }
 0x488   : > { %9728 = vmatpush3.bf16.msra.mxu0 %v10625_v37  ;;  %v6256_v37 = vld [vmem:[#allocation2 + $0x139] sm:$0xff] }
 0x489   : > { %9498 = vmatmul.mubr.bf16.gmra.mrb[40].mxu1 %v5605_v63  ;;  %v5912_v63 = vld [vmem:[#allocation2 + $0xc9] sm:$0xff]  ;;  %9729 = vmatprep.subr.bf16.mxu0 %v10627_v20 }
 0x48a   : > { %9501 = vmatprep.mubr.bf16.mxu1 %v5606_v59  ;;  %v13046_v17 = vpack.c.bf16 %v5913_v41, %v5912_v63  ;;  %v13048_v59 = vpack.c.bf16 %v5915_v31, %v5914_v42  ;;  %v7324_v41 = vld [vmem:[%s10825_s21 + $0xb3] sm:$0xff]  ;;  %v7325_v42 = vld [vmem:[%s10825_s21 + $0xbb] sm:$0xff]  ;;  %v7326_v31 = vld [vmem:[%s10825_s21 + $0xc3] sm:$0xff] }
 0x48b   : > { %v7350_v63 = vpack.c.bf16 %v7325_v42, %v7324_v41  ;;  %v6574_v42 = vld [vmem:[#allocation2 + $0xca] sm:$0xff] }
 0x48c   : > { %9730 = vmatpush3.bf16.msra.mxu0 %v10627_v20 }
 0x48d   : > { %9731 = vmatprep.subr.bf16.mxu0 %v10629_v44 }
 0x490   : > { %9732 = vmatpush3.bf16.msra.mxu0 %v10629_v44  ;;  %v7334_v44 = vld [vmem:[%s10825_s21 + $0x103] sm:$0xff] }
 0x491   : > { %9502 = vmatmul.mubr.bf16.gmra.mrb[44].mxu1 %v5607_v26  ;;  %v5919_v26 = vld [vmem:[#allocation2 + $0x101] sm:$0xff]  ;;  %9733 = vmatprep.subr.bf16.mxu0 %v10631_v5 }
 0x492   : > { %9505 = vmatprep.mubr.bf16.mxu1 %v5608_v15  ;;  %v13055_v15 = vpack.c.bf16 %v5917_v25, %v5916_v30  ;;  %v13057_v32 = vpack.c.bf16 %v5919_v26, %v5918_v6  ;;  %v6257_v25 = vld [vmem:[#allocation2 + $0x141] sm:$0xff]  ;;  %v7329_v26 = vld [vmem:[%s10825_s21 + $0xdb] sm:$0xff]  ;;  %v7330_v30 = vld [vmem:[%s10825_s21 + $0xe3] sm:$0xff] }
 0x493   : > { %v7328_v6 = vld [vmem:[%s10825_s21 + $0xd3] sm:$0xff]  ;;  %v6275_v55 = vpack.c.bf16 %v6257_v25, %v6256_v37 }
 0x494   : > { %9734 = vmatpush3.bf16.msra.mxu0 %v10631_v5  ;;  %v6557_v5 = vld [vmem:[#allocation2 + $0x42] sm:$0xff]  ;;  %v6578_v25 = vld [vmem:[#allocation2 + $0xea] sm:$0xff] }
 0x495   : > { %9735 = vmatprep.subr.bf16.mxu0 %v10633_v52 }
 0x498   : > { %9736 = vmatpush3.bf16.msra.mxu0 %v10633_v52  ;;  %v6559_v52 = vld [vmem:[#allocation2 + $0x52] sm:$0xff] }
 0x499   : > { %9506 = vmatmul.mubr.bf16.gmra.mrb[48].mxu1 %v5609_v24  ;;  %v5922_v24 = vld [vmem:[#allocation2 + $0x119] sm:$0xff] }
 0x49a   : > { %10638 = vmatprep.mubr.msk.bf16.mxu1 %vm10636_vm13, %v10637_v29  ;;  %v5923_v29 = vld [vmem:[#allocation2 + $0x121] sm:$0xff] }
 0x49b   : > { %v13066_v50 = vpack.c.bf16 %v5923_v29, %v5922_v24  ;;  %v6555_v24 = vld [vmem:[#allocation2 + $0x32] sm:$0xff]  ;;  %v6554_v29 = vld [vmem:[#allocation2 + $0x2a] sm:$0xff] }
 0x49c   : > { %v6590_v28 = vpack.c.bf16 %v6555_v24, %v6554_v29  ;;  %v6584_v24 = vld [vmem:[#allocation2 + $0x11a] sm:$0xff]  ;;  %v6585_v29 = vld [vmem:[#allocation2 + $0x122] sm:$0xff] }
 0x4a1   : > { %9510 = vmatmul.mubr.bf16.gmra.mrb[52].mxu1 %v5611_v27  ;;  %v5924_v27 = vld [vmem:[#allocation2 + $0x129] sm:$0xff] }
 0x4a2   : > { %9529 = vmatprep.mubr.bf16.mxu1 %v5926_v21  ;;  %v5925_v21 = vld [vmem:[#allocation2 + $0x131] sm:$0xff] }
 0x4a3   : > { %v13073_v38 = vpack.c.bf16 %v5925_v21, %v5924_v27  ;;  %v7335_v21 = vld [vmem:[%s10825_s21 + $0x10b] sm:$0xff] }
 0x4a9   : > { %9530 = vmatmul.mubr.bf16.vlgmr.msra.gmra.mrb[20].mxu1 %v12983_v39 }
 0x4aa   : > { %9533 = vmatprep.mubr.bf16.mxu1 %v12988_v49  ;;  %9566 = vmatpush3.bf16.msra.mxu1 %v10602_v13  ;;  %v5909_v13 = vld [vmem:[#allocation2 + $0xb1] sm:$0xff] }
 0x4ab   : > { %9567 = vmatprep.subr.bf16.mxu1 %v10603_v57  ;;  %v13037_v3 = vpack.c.bf16 %v5909_v13, %v5908_v34  ;;  %v7322_v34 = vld [vmem:[%s10825_s21 + $0xa3] sm:$0xff] }
 0x4ae   : > { %9568 = vmatpush3.bf16.msra.mxu1 %v10603_v57  ;;  %v10613_v57 = vld [vmem:[%s13535_s4 + $0x1d8] sm:$0xff]  }
 0x4af   : > { %9569 = vmatprep.subr.bf16.mxu1 %v10604_v4 }
 0x4b1   : > { %9534 = vmatmul.mubr.bf16.gmra.mrb[24].mxu1 %v12995_v48 }
 0x4b2   : > { %9537 = vmatprep.mubr.bf16.mxu1 %v13000_v8  ;;  %9570 = vmatpush3.bf16.msra.mxu1 %v10604_v4  ;;  %v7305_v4 = vld [vmem:[%s10825_s21 + $0x1b] sm:$0xff] }
 0x4b3   : > { %9571 = vmatprep.subr.bf16.mxu1 %v10605_v19 }
 0x4b6   : > { %9572 = vmatpush3.bf16.msra.mxu1 %v10605_v19  ;;  %v10615_v19 = vld [vmem:[%s13535_s4 + $0x1e8] sm:$0xff]  }
 0x4b7   : > { %9573 = vmatprep.subr.bf16.mxu1 %v10606_v56 }
 0x4b9   : > { %9538 = vmatmul.mubr.bf16.gmra.mrb[28].mxu1 %v13007_v1 }
 0x4ba   : > { %9541 = vmatprep.mubr.bf16.mxu1 %v13012_v61  ;;  %9574 = vmatpush3.bf16.msra.mxu1 %v10606_v56  ;;  %v7309_v56 = vld [vmem:[%s10825_s21 + $0x3b] sm:$0xff] }
 0x4bb   : > { %9575 = vmatprep.subr.bf16.mxu1 %v10607_v40 }
 0x4be   : > { %9576 = vmatpush3.bf16.msra.mxu1 %v10607_v40  ;;  %v10617_v40 = vld [vmem:[%s13535_s4 + $0x1f8] sm:$0xff]  }
 0x4bf   : > { %9577 = vmatprep.subr.bf16.mxu1 %v10608_v10 }
 0x4c1   : > { %9542 = vmatmul.mubr.bf16.gmra.mrb[32].mxu1 %v13022_v16 }
 0x4c2   : > { %9545 = vmatprep.mubr.bf16.mxu1 %v13027_v11  ;;  %9578 = vmatpush3.bf16.msra.mxu1 %v10608_v10  ;;  %v7314_v10 = vld [vmem:[%s10825_s21 + $0x63] sm:$0xff] }
 0x4c3   : > { %9579 = vmatprep.subr.bf16.mxu1 %v10609_v62  ;;  %v7345_v14 = vpack.c.bf16 %v7315_v2, %v7314_v10  ;;  %v6565_v10 = vld [vmem:[#allocation2 + $0x82] sm:$0xff]  ;;  %v6566_v2 = vld [vmem:[#allocation2 + $0x8a] sm:$0xff] }
 0x4c6   : > { %9580 = vmatpush3.bf16.msra.mxu1 %v10609_v62  ;;  %v7317_v62 = vld [vmem:[%s10825_s21 + $0x7b] sm:$0xff] }
 0x4c7   : > { %9617 = vmatprep.subr.bf16.mxu1 %v10610_v54 }
 0x4c9   : > { %9546 = vmatmul.mubr.bf16.gmra.mrb[36].mxu1 %v13037_v3 }
 0x4ca   : > { %9549 = vmatprep.mubr.bf16.mxu1 %v13039_v9 }
 0x4d1   : > { %9550 = vmatmul.mubr.bf16.gmra.mrb[40].mxu1 %v13046_v17 }
 0x4d2   : > { %9553 = vmatprep.mubr.bf16.mxu1 %v13048_v59 }
 0x4d9   : > { %9554 = vmatmul.mubr.bf16.gmra.mrb[44].mxu1 %v13055_v15 }
 0x4da   : > { %9557 = vmatprep.mubr.bf16.mxu1 %v13057_v32 }
 0x4e1   : > { %9558 = vmatmul.mubr.bf16.gmra.mrb[48].mxu1 %v13064_v18 }
 0x4e2   : > { %9561 = vmatprep.mubr.bf16.mxu1 %v13066_v50 }
 0x4e9   : > { %9562 = vmatmul.mubr.bf16.gmra.mrb[52].mxu1 %v13073_v38 }
 0x4ea   : > { %9581 = vmatprep.mubr.bf16.mxu1 %v12983_v39  ;;  %v10612_v39 = vld [vmem:[%s13535_s4 + $0x1d0] sm:$0xff]  }
 0x4f1   : > { %9582 = vmatmul.mubr.bf16.vlgmr.msra.gmra.mrb[20].mxu1 %v12988_v49  ;;  %v7304_v49 = vld [vmem:[%s10825_s21 + $0x13] sm:$0xff] }
 0x4f2   : > { %9585 = vmatprep.mubr.bf16.mxu1 %v12995_v48  ;;  %9618 = vmatpush3.bf16.msra.mxu1 %v10610_v54  ;;  %v7340_v33 = vpack.c.bf16 %v7305_v4, %v7304_v49  ;;  %v7341_v48 = vpack.c.bf16 %v7307_v45, %v7306_v51  ;;  %v7319_v54 = vld [vmem:[%s10825_s21 + $0x8b] sm:$0xff]  ;;  %v7336_v51 = vld [vmem:[%s10825_s21 + $0x113] sm:$0xff] }
 0x4f3   : > { %9619 = vmatprep.subr.bf16.mxu1 %v10611_v23  ;;  %v10620_v49 = vld [vmem:[%s13535_s4 + $0x208] sm:$0xff]   ;;  %v10622_v45 = vld [vmem:[%s13535_s4 + $0x210] sm:$0xff]  }
 0x4f4   : > { %9737 = vmatprep.mubr.bf16.mxu0 %v7340_v33  ;;  %v7338_v33 = vld [vmem:[%s10825_s21 + $0x123] sm:$0xff] }
 0x4f5   : > { %9738 = vmatmul.mubr.bf16.vlgmr.msra.gmra.mrb[36].mxu0 %v7341_v48 }
 0x4f6   : > { %9620 = vmatpush3.bf16.msra.mxu1 %v10611_v23  ;;  %v7355_v23 = vpack.c.bf16 %v7335_v21, %v7334_v44  ;;  %v6589_v21 = vld [vmem:[#allocation2 + $0x142] sm:$0xff] }
 0x4f7   : > { %9621 = vmatprep.subr.bf16.mxu1 %v10612_v39 }
 0x4f9   : > { %9586 = vmatmul.mubr.bf16.gmra.mrb[24].mxu1 %v13000_v8  ;;  %v7308_v8 = vld [vmem:[%s10825_s21 + $0x33] sm:$0xff] }
 0x4fa   : > { %9589 = vmatprep.mubr.bf16.mxu1 %v13007_v1  ;;  %9622 = vmatpush3.bf16.msra.mxu1 %v10612_v39  ;;  %v7342_v35 = vpack.c.bf16 %v7309_v56, %v7308_v8  ;;  %v7343_v1 = vpack.c.bf16 %v7311_v46, %v7310_v12  ;;  %v6560_v8 = vld [vmem:[#allocation2 + $0x5a] sm:$0xff]  ;;  %v6561_v56 = vld [vmem:[#allocation2 + $0x62] sm:$0xff]  ;;  %v6562_v46 = vld [vmem:[#allocation2 + $0x6a] sm:$0xff] }
 0x4fb   : > { %9623 = vmatprep.subr.bf16.mxu1 %v10613_v57 }
 0x4fc   : > { %9741 = vmatprep.mubr.bf16.mxu0 %v7342_v35  ;;  %v6593_v35 = vpack.c.bf16 %v6561_v56, %v6560_v8  ;;  %v6894_v8 = vld [vmem:[#allocation2 + $0x6b] sm:$0xff] }
 0x4fd   : > { %9742 = vmatmul.mubr.bf16.gmra.mrb[40].mxu0 %v7343_v1  ;;  %v10624_v1 = vld [vmem:[%s13535_s4 + $0x218] sm:$0xff]  }
 0x4fe   : > { %9624 = vmatpush3.bf16.msra.mxu1 %v10613_v57  ;;  %v6558_v57 = vld [vmem:[#allocation2 + $0x4a] sm:$0xff] }
 0x4ff   : > { %9625 = vmatprep.subr.bf16.mxu1 %v10614_v7  ;;  %v6592_v4 = vpack.c.bf16 %v6559_v52, %v6558_v57  ;;  %v6889_v57 = vld [vmem:[#allocation2 + $0x43] sm:$0xff] }
 0x501   : > { %9590 = vmatmul.mubr.bf16.gmra.mrb[28].mxu1 %v13012_v61  ;;  %v7312_v61 = vld [vmem:[%s10825_s21 + $0x53] sm:$0xff] }
 0x502   : > { %9593 = vmatprep.mubr.bf16.mxu1 %v13022_v16  ;;  %9626 = vmatpush3.bf16.msra.mxu1 %v10614_v7  ;;  %v7344_v47 = vpack.c.bf16 %v7313_v0, %v7312_v61  ;;  %v7316_v16 = vld [vmem:[%s10825_s21 + $0x73] sm:$0xff]  ;;  %v7337_v7 = vld [vmem:[%s10825_s21 + $0x11b] sm:$0xff]  ;;  %v6564_v0 = vld [vmem:[#allocation2 + $0x7a] sm:$0xff] }
 0x503   : > { %9627 = vmatprep.subr.bf16.mxu1 %v10615_v19  ;;  %v7346_v60 = vpack.c.bf16 %v7317_v62, %v7316_v16  ;;  %v7356_v48 = vpack.c.bf16 %v7337_v7, %v7336_v51  ;;  %v10626_v61 = vld [vmem:[%s13535_s4 + $0x220] sm:$0xff]   ;;  %v10630_v62 = vld [vmem:[%s13535_s4 + $0x230] sm:$0xff]  }
 0x504   : > { %9745 = vmatprep.mubr.bf16.mxu0 %v7344_v47  ;;  %v6595_v47 = vpack.c.bf16 %v6565_v10, %v6564_v0  ;;  %v6890_v51 = vld [vmem:[#allocation2 + $0x4b] sm:$0xff]  ;;  %v6901_v0 = vld [vmem:[#allocation2 + $0xa3] sm:$0xff]  ;;  %v6903_v10 = vld [vmem:[#allocation2 + $0xb3] sm:$0xff] }
 0x505   : > { %9746 = vmatmul.mubr.bf16.gmra.mrb[44].mxu0 %v7345_v14  ;;  %v10628_v14 = vld [vmem:[%s13535_s4 + $0x228] sm:$0xff]  }
 0x506   : > { %9628 = vmatpush3.bf16.msra.mxu1 %v10615_v19  ;;  %9749 = vmatprep.mubr.bf16.mxu0 %v7346_v60  ;;  %v7339_v19 = vld [vmem:[%s10825_s21 + $0x12b] sm:$0xff] }
 0x507   : > { %9629 = vmatprep.subr.bf16.mxu1 %v10616_v36  ;;  %v7357_v12 = vpack.c.bf16 %v7339_v19, %v7338_v33  ;;  %v6569_v60 = vld [vmem:[#allocation2 + $0xa2] sm:$0xff] }
 0x508   : > { %v6892_v33 = vld [vmem:[#allocation2 + $0x5b] sm:$0xff] }
 0x509   : > { %9594 = vmatmul.mubr.bf16.gmra.mrb[32].mxu1 %v13027_v11  ;;  %v7318_v11 = vld [vmem:[%s10825_s21 + $0x83] sm:$0xff] }
 0x50a   : > { %9597 = vmatprep.mubr.bf16.mxu1 %v13037_v3  ;;  %9630 = vmatpush3.bf16.msra.mxu1 %v10616_v36  ;;  %v7347_v13 = vpack.c.bf16 %v7319_v54, %v7318_v11  ;;  %v7348_v3 = vpack.c.bf16 %v7321_v58, %v7320_v43  ;;  %v6563_v36 = vld [vmem:[#allocation2 + $0x72] sm:$0xff]  ;;  %v6568_v11 = vld [vmem:[#allocation2 + $0x9a] sm:$0xff]  ;;  %v6570_v43 = vld [vmem:[#allocation2 + $0xaa] sm:$0xff] }
 0x50b   : > { %9631 = vmatprep.subr.bf16.mxu1 %v10617_v40  ;;  %v6571_v54 = vld [vmem:[#allocation2 + $0xb2] sm:$0xff]  ;;  %v10632_v58 = vld [vmem:[%s13535_s4 + $0x238] sm:$0xff]  }
 0x50d   : > { %9750 = vmatmul.mubr.bf16.gmra.mrb[48].mxu0 %v7347_v13  ;;  %v6597_v13 = vpack.c.bf16 %v6569_v60, %v6568_v11  ;;  %v6906_v60 = vld [vmem:[#allocation2 + $0xcb] sm:$0xff] }
 0x50e   : > { %9632 = vmatpush3.bf16.msra.mxu1 %v10617_v40  ;;  %9753 = vmatprep.mubr.bf16.mxu0 %v7348_v3  ;;  %v6594_v40 = vpack.c.bf16 %v6563_v36, %v6562_v46  ;;  %v6572_v3 = vld [vmem:[#allocation2 + $0xba] sm:$0xff]  ;;  %v6897_v36 = vld [vmem:[#allocation2 + $0x83] sm:$0xff] }
 0x50f   : > { %9669 = vmatprep.subr.bf16.mxu1 %v13126_v53 }
 0x511   : > { %9598 = vmatmul.mubr.bf16.gmra.mrb[36].mxu1 %v13039_v9  ;;  %v7323_v9 = vld [vmem:[%s10825_s21 + $0xab] sm:$0xff] }
 0x512   : > { %9601 = vmatprep.mubr.bf16.mxu1 %v13046_v17  ;;  %v7349_v22 = vpack.c.bf16 %v7323_v9, %v7322_v34  ;;  %v7327_v17 = vld [vmem:[%s10825_s21 + $0xcb] sm:$0xff]  ;;  %v6598_v34 = vpack.c.bf16 %v6571_v54, %v6570_v43  ;;  %v6909_v43 = vld [vmem:[#allocation2 + $0xe3] sm:$0xff] }
 0x513   : > { %v6573_v9 = vld [vmem:[#allocation2 + $0xc2] sm:$0xff] }
 0x514   : > { %v6599_v41 = vpack.c.bf16 %v6573_v9, %v6572_v3  ;;  %v6910_v3 = vld [vmem:[#allocation2 + $0xeb] sm:$0xff] }
 0x515   : > { %9754 = vmatmul.mubr.bf16.gmra.mrb[52].mxu0 %v7349_v22  ;;  %v6575_v22 = vld [vmem:[#allocation2 + $0xd2] sm:$0xff] }
 0x516   : > { %9757 = vmatprep.mubr.bf16.mxu0 %v7350_v63  ;;  %v6576_v63 = vld [vmem:[#allocation2 + $0xda] sm:$0xff] }
 0x519   : > { %9602 = vmatmul.mubr.bf16.gmra.mrb[40].mxu1 %v13048_v59  ;;  %v7351_v59 = vpack.c.bf16 %v7327_v17, %v7326_v31  ;;  %v6600_v31 = vpack.c.bf16 %v6575_v22, %v6574_v42  ;;  %v6577_v17 = vld [vmem:[#allocation2 + $0xe2] sm:$0xff]  ;;  %v6915_v42 = vld [vmem:[#allocation2 + $0x113] sm:$0xff] }
 0x51a   : > { %9605 = vmatprep.mubr.bf16.mxu1 %v13055_v15  ;;  %v7352_v15 = vpack.c.bf16 %v7329_v26, %v7328_v6  ;;  %v6601_v37 = vpack.c.bf16 %v6577_v17, %v6576_v63  ;;  %v6580_v26 = vld [vmem:[#allocation2 + $0xfa] sm:$0xff]  ;;  %v6914_v63 = vld [vmem:[#allocation2 + $0x10b] sm:$0xff] }
 0x51b   : > { %v6912_v22 = vld [vmem:[#allocation2 + $0xfb] sm:$0xff]  ;;  %v6936_v17 = vpack.c.bf16 %v6915_v42, %v6914_v63 }
 0x51d   : > { %9758 = vmatmul.mubr.bf16.gmra.mrb[56].mxu0 %v7351_v59  ;;  %v6579_v59 = vld [vmem:[#allocation2 + $0xf2] sm:$0xff] }
 0x51e   : > { %9761 = vmatprep.mubr.bf16.mxu0 %v7352_v15  ;;  %v6602_v6 = vpack.c.bf16 %v6579_v59, %v6578_v25  ;;  %v6583_v15 = vld [vmem:[#allocation2 + $0x112] sm:$0xff]  ;;  %v6916_v59 = vld [vmem:[#allocation2 + $0x11b] sm:$0xff] }
 0x51f   : > { %v6918_v25 = vld [vmem:[#allocation2 + $0x12b] sm:$0xff] }
 0x521   : > { %9606 = vmatmul.mubr.bf16.gmra.mrb[44].mxu1 %v13057_v32  ;;  %v7331_v32 = vld [vmem:[%s10825_s21 + $0xeb] sm:$0xff] }
 0x522   : > { %9609 = vmatprep.mubr.bf16.mxu1 %v13064_v18  ;;  %v7353_v20 = vpack.c.bf16 %v7331_v32, %v7330_v30  ;;  %v7332_v18 = vld [vmem:[%s10825_s21 + $0xf3] sm:$0xff] }
 0x523   : > { %v6581_v30 = vld [vmem:[#allocation2 + $0x102] sm:$0xff] }
 0x524   : > { %v6603_v32 = vpack.c.bf16 %v6581_v30, %v6580_v26 }
 0x525   : > { %9762 = vmatmul.mubr.bf16.gmra.mrb[60].mxu0 %v7353_v20  ;;  %v6582_v20 = vld [vmem:[#allocation2 + $0x10a] sm:$0xff] }
 0x529   : > { %9610 = vmatmul.mubr.bf16.gmra.mrb[48].mxu1 %v13066_v50  ;;  %v7333_v50 = vld [vmem:[%s10825_s21 + $0xfb] sm:$0xff] }
 0x52a   : > { %9613 = vmatprep.mubr.bf16.mxu1 %v13073_v38  ;;  %v7354_v27 = vpack.c.bf16 %v7333_v50, %v7332_v18  ;;  %v6556_v38 = vld [vmem:[#allocation2 + $0x3a] sm:$0xff]  ;;  %v6587_v18 = vld [vmem:[#allocation2 + $0x132] sm:$0xff]  ;;  %v6605_v50 = vpack.c.bf16 %v6585_v29, %v6584_v24 }
 0x52b   : > { %v6591_v39 = vpack.c.bf16 %v6557_v5, %v6556_v38  ;;  %v6887_v5 = vld [vmem:[#allocation2 + $0x33] sm:$0xff] }
 0x52c   : > { %9765 = vmatprep.mubr.bf16.mxu0 %v7354_v27  ;;  %v6588_v27 = vld [vmem:[#allocation2 + $0x13a] sm:$0xff] }
 0x52d   : > { %9766 = vmatmul.mubr.bf16.gmra.mrb[64].mxu0 %v7355_v23  ;;  %v6607_v38 = vpack.c.bf16 %v6589_v21, %v6588_v27  ;;  %v6886_v23 = vld [vmem:[#allocation2 + $0x2b] sm:$0xff] }
 0x52e   : > { %9769 = vmatprep.mubr.bf16.mxu0 %v7356_v48  ;;  %v6922_v52 = vpack.c.bf16 %v6887_v5, %v6886_v23  ;;  %v6895_v48 = vld [vmem:[#allocation2 + $0x73] sm:$0xff] }
 0x52f   : > { %v6926_v56 = vpack.c.bf16 %v6895_v48, %v6894_v8 }
 0x531   : > { %9614 = vmatmul.mubr.bf16.gmra.mrb[52].mxu1 %v6275_v55  ;;  %v6604_v55 = vpack.c.bf16 %v6583_v15, %v6582_v20  ;;  %v6920_v15 = vld [vmem:[#allocation2 + $0x13b] sm:$0xff] }
 0x532   : > { %9633 = vmatprep.mubr.bf16.mxu1 %v6590_v28  ;;  %v6586_v28 = vld [vmem:[#allocation2 + $0x12a] sm:$0xff] }
 0x533   : > { %v6606_v44 = vpack.c.bf16 %v6587_v18, %v6586_v28 }
 0x535   : > { %9770 = vmatmul.mubr.bf16.gmra.mrb[68].mxu0 %v7357_v12  ;;  %v6896_v12 = vld [vmem:[#allocation2 + $0x7b] sm:$0xff] }
 0x536   : > { %v6927_v46 = vpack.c.bf16 %v6897_v36, %v6896_v12 }
 0x539   : > { %9634 = vmatmul.mubr.bf16.vlgmr.msra.gmra.mrb[20].mxu1 %v6591_v39  ;;  %v6888_v39 = vld [vmem:[#allocation2 + $0x3b] sm:$0xff] }
 0x53a   : > { %9637 = vmatprep.mubr.bf16.mxu1 %v6592_v4  ;;  %9670 = vmatpush3.bf16.msra.mxu1 %v13126_v53  ;;  %v6567_v53 = vld [vmem:[#allocation2 + $0x92] sm:$0xff]  ;;  %v6923_v4 = vpack.c.bf16 %v6889_v57, %v6888_v39 }
 0x53b   : > { %9671 = vmatprep.subr.bf16.mxu1 %v10620_v49  ;;  %v6596_v16 = vpack.c.bf16 %v6567_v53, %v6566_v2 }
 0x53e   : > { %9672 = vmatpush3.bf16.msra.mxu1 %v10620_v49  ;;  %v6891_v49 = vld [vmem:[#allocation2 + $0x53] sm:$0xff] }
 0x53f   : > { %9673 = vmatprep.subr.bf16.mxu1 %v10622_v45  ;;  %v6924_v7 = vpack.c.bf16 %v6891_v49, %v6890_v51 }
 0x541   : > { %9638 = vmatmul.mubr.bf16.gmra.mrb[24].mxu1 %v6593_v35  ;;  %v6899_v35 = vld [vmem:[#allocation2 + $0x93] sm:$0xff] }
 0x542   : > { %9641 = vmatprep.mubr.bf16.mxu1 %v6594_v40  ;;  %9674 = vmatpush3.bf16.msra.mxu1 %v10622_v45  ;;  %v6893_v45 = vld [vmem:[#allocation2 + $0x63] sm:$0xff] }
 0x543   : > { %9675 = vmatprep.subr.bf16.mxu1 %v10624_v1  ;;  %v6925_v19 = vpack.c.bf16 %v6893_v45, %v6892_v33 }
 0x546   : > { %9676 = vmatpush3.bf16.msra.mxu1 %v10624_v1  ;;  %v6898_v1 = vld [vmem:[#allocation2 + $0x8b] sm:$0xff] }
 0x547   : > { %9677 = vmatprep.subr.bf16.mxu1 %v10626_v61  ;;  %v6928_v40 = vpack.c.bf16 %v6899_v35, %v6898_v1 }
 0x549   : > { %9642 = vmatmul.mubr.bf16.gmra.mrb[28].mxu1 %v6595_v47  ;;  %v6902_v47 = vld [vmem:[#allocation2 + $0xab] sm:$0xff] }
 0x54a   : > { %9645 = vmatprep.mubr.bf16.mxu1 %v6596_v16  ;;  %9678 = vmatpush3.bf16.msra.mxu1 %v10626_v61  ;;  %v6900_v61 = vld [vmem:[#allocation2 + $0x9b] sm:$0xff]  ;;  %v6930_v2 = vpack.c.bf16 %v6903_v10, %v6902_v47  ;;  %v6905_v16 = vld [vmem:[#allocation2 + $0xc3] sm:$0xff] }
 0x54b   : > { %9679 = vmatprep.subr.bf16.mxu1 %v10628_v14  ;;  %v6929_v53 = vpack.c.bf16 %v6901_v0, %v6900_v61 }
 0x54e   : > { %9680 = vmatpush3.bf16.msra.mxu1 %v10628_v14  ;;  %v6904_v14 = vld [vmem:[#allocation2 + $0xbb] sm:$0xff] }
 0x54f   : > { %9681 = vmatprep.subr.bf16.mxu1 %v10630_v62  ;;  %v6931_v11 = vpack.c.bf16 %v6905_v16, %v6904_v14  ;;  %v13253_v16 = vld [vmem:[%s13540_s9] ss:$0 sm:$0xff] }
 0x551   : > { %9646 = vmatmul.mubr.bf16.gmra.mrb[32].mxu1 %v6597_v13  ;;  %v6908_v13 = vld [vmem:[#allocation2 + $0xdb] sm:$0xff] }
 0x552   : > { %9649 = vmatprep.mubr.bf16.mxu1 %v6598_v34  ;;  %9682 = vmatpush3.bf16.msra.mxu1 %v10630_v62  ;;  %v6907_v62 = vld [vmem:[#allocation2 + $0xd3] sm:$0xff]  ;;  %v6933_v34 = vpack.c.bf16 %v6909_v43, %v6908_v13 }
 0x553   : > { %9683 = vmatprep.subr.bf16.mxu1 %v10632_v58  ;;  %v6932_v54 = vpack.c.bf16 %v6907_v62, %v6906_v60 }
 0x556   : > { %9684 = vmatpush3.bf16.msra.mxu1 %v10632_v58  ;;  %v6911_v58 = vld [vmem:[#allocation2 + $0xf3] sm:$0xff] }
 0x557   : > { %v6934_v9 = vpack.c.bf16 %v6911_v58, %v6910_v3 }
 0x559   : > { %9650 = vmatmul.mubr.bf16.gmra.mrb[36].mxu1 %v6599_v41  ;;  %v6913_v41 = vld [vmem:[#allocation2 + $0x103] sm:$0xff] }
 0x55a   : > { %9653 = vmatprep.mubr.bf16.mxu1 %v6600_v31  ;;  %v6935_v31 = vpack.c.bf16 %v6913_v41, %v6912_v22 }
 0x561   : > { %9654 = vmatmul.mubr.bf16.gmra.mrb[40].mxu1 %v6601_v37  ;;  %v6917_v37 = vld [vmem:[#allocation2 + $0x123] sm:$0xff] }
 0x562   : > { %9657 = vmatprep.mubr.bf16.mxu1 %v6602_v6  ;;  %v6919_v6 = vld [vmem:[#allocation2 + $0x133] sm:$0xff]  ;;  %v6937_v26 = vpack.c.bf16 %v6917_v37, %v6916_v59 }
 0x563   : > { %v6938_v30 = vpack.c.bf16 %v6919_v6, %v6918_v25 }
 0x569   : > { %9658 = vmatmul.mubr.bf16.gmra.mrb[44].mxu1 %v6603_v32  ;;  %v6921_v32 = vld [vmem:[#allocation2 + $0x143] sm:$0xff] }
 0x56a   : > { %9661 = vmatprep.mubr.bf16.mxu1 %v6604_v55  ;;  %v6939_v20 = vpack.c.bf16 %v6921_v32, %v6920_v15 }
 0x571   : > { %9662 = vmatmul.mubr.bf16.gmra.mrb[48].mxu1 %v6605_v50 }
 0x572   : > { %9665 = vmatprep.mubr.bf16.mxu1 %v6606_v44 }
 0x579   : > { %9666 = vmatmul.mubr.bf16.gmra.mrb[52].mxu1 %v6607_v38 }
 0x57a   : > { %9685 = vmatprep.mubr.bf16.mxu1 %v6922_v52 }
 0x581   : > { %9686 = vmatmul.mubr.bf16.vlgmr.msra.gmra.mrb[20].mxu1 %v6923_v4 }
 0x582   : > { %9689 = vmatprep.mubr.bf16.mxu1 %v6924_v7 }
 0x589   : > { %9690 = vmatmul.mubr.bf16.gmra.mrb[24].mxu1 %v6925_v19 }
 0x58a   : > { %9693 = vmatprep.mubr.bf16.mxu1 %v6926_v56 }
 0x591   : > { %9694 = vmatmul.mubr.bf16.gmra.mrb[28].mxu1 %v6927_v46 }
 0x592   : > { %9697 = vmatprep.mubr.bf16.mxu1 %v6928_v40 }
 0x599   : > { %9698 = vmatmul.mubr.bf16.gmra.mrb[32].mxu1 %v6929_v53 }
 0x59a   : > { %9701 = vmatprep.mubr.bf16.mxu1 %v6930_v2  ;;  %v13247_v2 = vld [vmem:[%s13539_s8] ss:$0 sm:$0xff] }
 0x5a1   : > { %9702 = vmatmul.mubr.bf16.gmra.mrb[36].mxu1 %v6931_v11  ;;  %v13259_v11 = vld [vmem:[%s13536_s5] ss:$0 sm:$0xff] }
 0x5a2   : > { %9705 = vmatprep.mubr.bf16.mxu1 %v6932_v54  ;;  %v13265_v54 = vld [vmem:[%s13537_s6] ss:$0 sm:$0xff] }
 0x5a9   : > { %9706 = vmatmul.mubr.bf16.gmra.mrb[40].mxu1 %v6933_v34 }
 0x5aa   : > { %9709 = vmatprep.mubr.bf16.mxu1 %v6934_v9 }
 0x5b1   : > { %9710 = vmatmul.mubr.bf16.gmra.mrb[44].mxu1 %v6935_v31 }
 0x5b2   : > { %9713 = vmatprep.mubr.bf16.mxu1 %v6936_v17 }
 0x5b9   : > { %9714 = vmatmul.mubr.bf16.gmra.mrb[48].mxu1 %v6937_v26 }
 0x5ba   : > { %9717 = vmatprep.mubr.bf16.mxu1 %v6938_v30 }
 0x5c1   : > { %9718 = vmatmul.mubr.bf16.gmra.mrb[52].mxu1 %v6939_v20 }
 0x5c8   : > { %v9739_v55 = vpop.f32.mrb[36].mxu0 }
 0x5c9   : > { %v7456_v24 = vpop.f32.mrb[37].mxu0  ;;  %v7608_v14 = vmul.f32 %v9739_v55, %v13247_v2 }
 0x5ca   : > { %v9740_v29 = vpop.f32.mrb[38].mxu0  ;;  %v7606_v62 = vmul.f32 %v13247_v2, %v7456_v24 }
 0x5cb   : > { %v7459_v28 = vpop.f32.mrb[39].mxu0  ;;  %v7651_v13 = vadd.f32 %v13253_v16, %v7608_v14  ;;  %v7609_v58 = vmul.f32 %v9740_v29, %v13247_v2 }
 0x5cc   : > { %v7649_v3 = vadd.f32 %v13253_v16, %v7606_v62  ;;  %v7607_v22 = vmul.f32 %v13247_v2, %v7459_v28 }
 0x5cd   : > { %v7652_v25 = vadd.f32 %v13253_v16, %v7609_v58 }
 0x5ce   : > { %v7650_v15 = vadd.f32 %v13253_v16, %v7607_v22 }
 0x5d0   : > { %v9743_v18 = vpop.f32.mrb[40].mxu0 }
 0x5d1   : > { %v7472_v50 = vpop.f32.mrb[41].mxu0  ;;  %v7612_v26 = vmul.f32 %v9743_v18, %v13247_v2 }
 0x5d2   : > { %v13184_v44 = vpop.f32.mrb[42].mxu0  ;;  %v7610_v20 = vmul.f32 %v13247_v2, %v7472_v50 }
 0x5d3   : > { %v13186_v27 = vpop.f32.mrb[43].mxu0  ;;  %v7655_v62 = vadd.f32 %v13253_v16, %v7612_v26  ;;  %v7613_v50 = vmul.f32 %v13184_v44, %v13247_v2 }
 0x5d4   : > { %v7653_v58 = vadd.f32 %v13253_v16, %v7610_v20 }
 0x5d8   : > { %v13188_v21 = vpop.f32.mrb[44].mxu0 }
 0x5d9   : > { %v13190_v38 = vpop.f32.mrb[45].mxu0 }
 0x5da   : > { %v13192_v5 = vpop.f32.mrb[46].mxu0  ;;  %v7614_v26 = vmul.f32 %v13247_v2, %v13190_v38 }
 0x5db   : > { %v13194_v23 = vpop.f32.mrb[47].mxu0 }
 0x5dc   : > { %v7657_v38 = vadd.f32 %v13253_v16, %v7614_v26 }
 0x5e0   : > { %v13196_v52 = vpop.f32.mrb[48].mxu0 }
 0x5e1   : > { %v13198_v39 = vpop.f32.mrb[49].mxu0 }
 0x5e2   : > { %v13200_v57 = vpop.f32.mrb[50].mxu0 }
 0x5e3   : > { %v13202_v49 = vpop.f32.mrb[51].mxu0  ;;  %v7621_v26 = vmul.f32 %v13200_v57, %v13247_v2 }
 0x5e8   : > { %v13204_v4 = vpop.f32.mrb[52].mxu0 }
 0x5e9   : > { %v13206_v51 = vpop.f32.mrb[53].mxu0 }
 0x5ea   : > { %v13208_v7 = vpop.f32.mrb[54].mxu0 }
 0x5eb   : > { %v13210_v33 = vpop.f32.mrb[55].mxu0 }
 0x5f0   : > { %v13212_v45 = vpop.f32.mrb[56].mxu0 }
 0x5f1   : > { %v13214_v48 = vpop.f32.mrb[57].mxu0 }
 0x5f2   : > { %v13216_v19 = vpop.f32.mrb[58].mxu0 }
 0x5f3   : > { %v13218_v8 = vpop.f32.mrb[59].mxu0 }
 0x5f8   : > { %v13220_v56 = vpop.f32.mrb[60].mxu0 }
 0x5f9   : > { %v13222_v12 = vpop.f32.mrb[61].mxu0 }
 0x5fa   : > { %v13224_v36 = vpop.f32.mrb[62].mxu0 }
 0x5fb   : > { %v13226_v35 = vpop.f32.mrb[63].mxu0 }
 0x600   : > { %v13228_v46 = vpop.f32.mrb[64].mxu0 }
 0x601   : > { %v13230_v1 = vpop.f32.mrb[65].mxu0 }
 0x602   : > { %v13232_v40 = vpop.f32.mrb[66].mxu0 }
 0x603   : > { %v13234_v61 = vpop.f32.mrb[67].mxu0 }
 0x608   : > { %v13236_v0 = vpop.f32.mrb[68].mxu0 }
 0x609   : > { %v13238_v10 = vpop.f32.mrb[69].mxu0 }
 0x60a   : > { %v13240_v53 = vpop.f32.mrb[70].mxu0 }
 0x60b   : > { %v13242_v47 = vpop.f32.mrb[71].mxu0 }
 0x654   : > { %v9687_v60 = vpop.f32.mrb[20].mxu1 }
 0x655   : > { %v7227_v43 = vmul.f32 %v9687_v60, %v13259_v11  ;;  %v7039_v34 = vpop.f32.mrb[21].mxu1 }
 0x656   : > { %v7225_v9 = vmul.f32 %v13259_v11, %v7039_v34  ;;  %v9688_v41 = vpop.f32.mrb[22].mxu1 }
 0x657   : > { %v7270_v42 = vadd.f32 %v13265_v54, %v7227_v43  ;;  %v7228_v31 = vmul.f32 %v9688_v41, %v13259_v11  ;;  %v7042_v63 = vpop.f32.mrb[23].mxu1 }
 0x658   : > { %v7268_v17 = vadd.f32 %v13265_v54, %v7225_v9  ;;  %v7226_v59 = vmul.f32 %v13259_v11, %v7042_v63 }
 0x659   : > { %v7687_v37 = vadd.f32 %v7651_v13, %v7270_v42  ;;  %v7271_v6 = vadd.f32 %v13265_v54, %v7228_v31 }
 0x65a   : > { %v7685_v30 = vadd.f32 %v7649_v3, %v7268_v17  ;;  %v7269_v32 = vadd.f32 %v13265_v54, %v7226_v59  ;;  %v7611_v3 = vmul.f32 %v13247_v2, %v13186_v27  ;;  %v7656_v17 = vadd.f32 %v13253_v16, %v7613_v50 }
 0x65b   : > { %v7723_v55 = vmax.f32 %v7687_v37, 0.0  ;;  %v7688_v24 = vadd.f32 %v7652_v25, %v7271_v6  ;;  %v7616_v27 = vmul.f32 %v13188_v21, %v13247_v2 }
 0x65c   : > { %v7721_v29 = vmax.f32 %v7685_v30, 0.0  ;;  %v7686_v28 = vadd.f32 %v7650_v15, %v7269_v32  ;;  %v9691_v14 = vpop.f32.mrb[24].mxu1  ;;  %v7654_v25 = vadd.f32 %v13253_v16, %v7611_v3 }
 0x65d   : > { %7759 = vst [vmem:[%s13285_s29 + $0x10] sm:$0xff] %v7723_v55  ;;  %v7724_v18 = vmax.f32 %v7688_v24, 0.0  ;;  %v7231_v60 = vmul.f32 %v9691_v14, %v13259_v11  ;;  %v7055_v13 = vpop.f32.mrb[25].mxu1  ;;  %v7659_v21 = vadd.f32 %v13253_v16, %v7616_v27 }
 0x65e   : > { %7757 = vst [vmem:[%s13285_s29] sm:$0xff] %v7721_v29  ;;  %v7722_v43 = vmax.f32 %v7686_v28, 0.0  ;;  %v7229_v34 = vmul.f32 %v13259_v11, %v7055_v13  ;;  %v9692_v9 = vpop.f32.mrb[26].mxu1  ;;  %v7617_v28 = vmul.f32 %v13192_v5, %v13247_v2 }
 0x65f   : > { %7760 = vst [vmem:[%s13285_s29 + $0x18] sm:$0xff] %v7724_v18  ;;  %v7274_v22 = vadd.f32 %v13265_v54, %v7231_v60  ;;  %v7232_v41 = vmul.f32 %v9692_v9, %v13259_v11  ;;  %v7058_v42 = vpop.f32.mrb[27].mxu1  ;;  %v7615_v60 = vmul.f32 %v13247_v2, %v13194_v23  ;;  %v7620_v23 = vmul.f32 %v13196_v52, %v13247_v2 }
 0x660   : > { %7758 = vst [vmem:[%s13285_s29 + $0x8] sm:$0xff] %v7722_v43  ;;  %v7272_v44 = vadd.f32 %v13265_v54, %v7229_v34  ;;  %v7230_v31 = vmul.f32 %v13259_v11, %v7058_v42  ;;  %v7660_v9 = vadd.f32 %v13253_v16, %v7617_v28 }
 0x661   : > { %v7691_v63 = vadd.f32 %v7655_v62, %v7274_v22  ;;  %v7275_v59 = vadd.f32 %v13265_v54, %v7232_v41  ;;  %v7658_v42 = vadd.f32 %v13253_v16, %v7615_v60  ;;  %v7663_v52 = vadd.f32 %v13253_v16, %v7620_v23 }
 0x662   : > { %v7689_v37 = vadd.f32 %v7653_v58, %v7272_v44  ;;  %v7273_v6 = vadd.f32 %v13265_v54, %v7230_v31  ;;  %v7618_v31 = vmul.f32 %v13247_v2, %v13198_v39  ;;  %v7625_v23 = vmul.f32 %v13208_v7, %v13247_v2 }
 0x663   : > { %v7727_v30 = vmax.f32 %v7691_v63, 0.0  ;;  %v7692_v15 = vadd.f32 %v7656_v17, %v7275_v59 }
 0x664   : > { %v7725_v32 = vmax.f32 %v7689_v37, 0.0  ;;  %v7690_v20 = vadd.f32 %v7654_v25, %v7273_v6  ;;  %v9695_v55 = vpop.f32.mrb[28].mxu1  ;;  %v7661_v39 = vadd.f32 %v13253_v16, %v7618_v31  ;;  %v7623_v31 = vmul.f32 %v13247_v2, %v13210_v33 }
 0x665   : > { %7763 = vst [vmem:[%s13285_s29 + $0x30] sm:$0xff] %v7727_v30  ;;  %v7728_v24 = vmax.f32 %v7692_v15, 0.0  ;;  %v7235_v29 = vmul.f32 %v9695_v55, %v13259_v11  ;;  %v7071_v14 = vpop.f32.mrb[29].mxu1  ;;  %v7628_v33 = vmul.f32 %v13212_v45, %v13247_v2 }
 0x666   : > { %7761 = vst [vmem:[%s13285_s29 + $0x20] sm:$0xff] %v7725_v32  ;;  %v7726_v18 = vmax.f32 %v7690_v20, 0.0  ;;  %v7233_v62 = vmul.f32 %v13259_v11, %v7071_v14  ;;  %v9696_v50 = vpop.f32.mrb[30].mxu1  ;;  %v7619_v20 = vmul.f32 %v13247_v2, %v13202_v49  ;;  %v7624_v49 = vmul.f32 %v13204_v4, %v13247_v2 }
 0x667   : > { %7764 = vst [vmem:[%s13285_s29 + $0x38] sm:$0xff] %v7728_v24  ;;  %v7278_v13 = vadd.f32 %v13265_v54, %v7235_v29  ;;  %v7236_v43 = vmul.f32 %v9696_v50, %v13259_v11  ;;  %v7074_v58 = vpop.f32.mrb[31].mxu1  ;;  %v7671_v45 = vadd.f32 %v13253_v16, %v7628_v33 }
 0x668   : > { %7762 = vst [vmem:[%s13285_s29 + $0x28] sm:$0xff] %v7726_v18  ;;  %v7276_v5 = vadd.f32 %v13265_v54, %v7233_v62  ;;  %v7234_v34 = vmul.f32 %v13259_v11, %v7074_v58  ;;  %v7664_v18 = vadd.f32 %v13253_v16, %v7621_v26  ;;  %v7662_v60 = vadd.f32 %v13253_v16, %v7619_v20 }
 0x669   : > { %v7695_v3 = vadd.f32 %v7659_v21, %v7278_v13  ;;  %v7279_v22 = vadd.f32 %v13265_v54, %v7236_v43  ;;  %v7622_v13 = vmul.f32 %v13247_v2, %v13206_v51  ;;  %v7667_v4 = vadd.f32 %v13253_v16, %v7624_v49 }
 0x66a   : > { %v7693_v41 = vadd.f32 %v7657_v38, %v7276_v5  ;;  %v7277_v44 = vadd.f32 %v13265_v54, %v7234_v34  ;;  %v7627_v49 = vmul.f32 %v13247_v2, %v13218_v8  ;;  %v7632_v8 = vmul.f32 %v13220_v56, %v13247_v2 }
 0x66b   : > { %v7731_v63 = vmax.f32 %v7695_v3, 0.0  ;;  %v7696_v17 = vadd.f32 %v7660_v9, %v7279_v22  ;;  %v7665_v51 = vadd.f32 %v13253_v16, %v7622_v13 }
 0x66c   : > { %v7729_v59 = vmax.f32 %v7693_v41, 0.0  ;;  %v7694_v27 = vadd.f32 %v7658_v42, %v7277_v44  ;;  %v9699_v37 = vpop.f32.mrb[32].mxu1  ;;  %v7675_v56 = vadd.f32 %v13253_v16, %v7632_v8 }
 0x66d   : > { %7767 = vst [vmem:[%s13285_s29 + $0x50] sm:$0xff] %v7731_v63  ;;  %v7732_v25 = vmax.f32 %v7696_v17, 0.0  ;;  %v7239_v6 = vmul.f32 %v9699_v37, %v13259_v11  ;;  %v7087_v30 = vpop.f32.mrb[33].mxu1 }
 0x66e   : > { %7765 = vst [vmem:[%s13285_s29 + $0x40] sm:$0xff] %v7729_v59  ;;  %v7730_v15 = vmax.f32 %v7694_v27, 0.0  ;;  %v7237_v32 = vmul.f32 %v13259_v11, %v7087_v30  ;;  %v9700_v55 = vpop.f32.mrb[34].mxu1  ;;  %v7666_v30 = vadd.f32 %v13253_v16, %v7623_v31 }
 0x66f   : > { %7768 = vst [vmem:[%s13285_s29 + $0x58] sm:$0xff] %v7732_v25  ;;  %v7282_v24 = vadd.f32 %v13265_v54, %v7239_v6  ;;  %v7240_v21 = vmul.f32 %v9700_v55, %v13259_v11  ;;  %v7090_v29 = vpop.f32.mrb[35].mxu1 }
 0x670   : > { %7766 = vst [vmem:[%s13285_s29 + $0x48] sm:$0xff] %v7730_v15  ;;  %v7280_v57 = vadd.f32 %v13265_v54, %v7237_v32  ;;  %v7238_v28 = vmul.f32 %v13259_v11, %v7090_v29 }
 0x671   : > { %v7699_v14 = vadd.f32 %v7663_v52, %v7282_v24  ;;  %v7283_v38 = vadd.f32 %v13265_v54, %v7240_v21  ;;  %v7668_v52 = vadd.f32 %v13253_v16, %v7625_v23 }
 0x672   : > { %v7697_v62 = vadd.f32 %v7661_v39, %v7280_v57  ;;  %v7281_v50 = vadd.f32 %v13265_v54, %v7238_v28  ;;  %v7626_v39 = vmul.f32 %v13247_v2, %v13214_v48  ;;  %v7629_v28 = vmul.f32 %v13216_v19, %v13247_v2 }
 0x673   : > { %v7735_v43 = vmax.f32 %v7699_v14, 0.0  ;;  %v7700_v58 = vadd.f32 %v7664_v18, %v7283_v38 }
 0x674   : > { %v7733_v5 = vmax.f32 %v7697_v62, 0.0  ;;  %v7698_v34 = vadd.f32 %v7662_v60, %v7281_v50  ;;  %v9703_v3 = vpop.f32.mrb[36].mxu1  ;;  %v7669_v48 = vadd.f32 %v13253_v16, %v7626_v39 }
 0x675   : > { %7771 = vst [vmem:[%s13285_s29 + $0x70] sm:$0xff] %v7735_v43  ;;  %v7736_v9 = vmax.f32 %v7700_v58, 0.0  ;;  %v7243_v22 = vmul.f32 %v9703_v3, %v13259_v11  ;;  %v7103_v41 = vpop.f32.mrb[37].mxu1 }
 0x676   : > { %7769 = vst [vmem:[%s13285_s29 + $0x60] sm:$0xff] %v7733_v5  ;;  %v7734_v42 = vmax.f32 %v7698_v34, 0.0  ;;  %v7241_v44 = vmul.f32 %v13259_v11, %v7103_v41  ;;  %v9704_v63 = vpop.f32.mrb[38].mxu1  ;;  %v7672_v5 = vadd.f32 %v13253_v16, %v7629_v28 }
 0x677   : > { %7772 = vst [vmem:[%s13285_s29 + $0x78] sm:$0xff] %v7736_v9  ;;  %v7286_v17 = vadd.f32 %v13265_v54, %v7243_v22  ;;  %v7244_v59 = vmul.f32 %v9704_v63, %v13259_v11  ;;  %v7106_v27 = vpop.f32.mrb[39].mxu1  ;;  %v7670_v9 = vadd.f32 %v13253_v16, %v7627_v49  ;;  %v7630_v22 = vmul.f32 %v13247_v2, %v13222_v12 }
 0x678   : > { %7770 = vst [vmem:[%s13285_s29 + $0x68] sm:$0xff] %v7734_v42  ;;  %v7284_v7 = vadd.f32 %v13265_v54, %v7241_v44  ;;  %v7242_v37 = vmul.f32 %v13259_v11, %v7106_v27 }
 0x679   : > { %v7703_v25 = vadd.f32 %v7667_v4, %v7286_v17  ;;  %v7287_v6 = vadd.f32 %v13265_v54, %v7244_v59  ;;  %v7633_v17 = vmul.f32 %v13224_v36, %v13247_v2  ;;  %v7673_v12 = vadd.f32 %v13253_v16, %v7630_v22 }
 0x67a   : > { %v7701_v26 = vadd.f32 %v7665_v51, %v7284_v7  ;;  %v7285_v15 = vadd.f32 %v13265_v54, %v7242_v37  ;;  %v7631_v37 = vmul.f32 %v13247_v2, %v13226_v35  ;;  %v7636_v35 = vmul.f32 %v13228_v46, %v13247_v2 }
 0x67b   : > { %v7739_v32 = vmax.f32 %v7703_v25, 0.0  ;;  %v7704_v20 = vadd.f32 %v7668_v52, %v7287_v6  ;;  %v7638_v22 = vmul.f32 %v13247_v2, %v13238_v10 }
 0x67c   : > { %v7737_v55 = vmax.f32 %v7701_v26, 0.0  ;;  %v7702_v24 = vadd.f32 %v7666_v30, %v7285_v15  ;;  %v9707_v21 = vpop.f32.mrb[40].mxu1  ;;  %v7676_v15 = vadd.f32 %v13253_v16, %v7633_v17  ;;  %v7679_v46 = vadd.f32 %v13253_v16, %v7636_v35 }
 0x67d   : > { %7775 = vst [vmem:[%s13285_s29 + $0x90] sm:$0xff] %v7739_v32  ;;  %v7740_v29 = vmax.f32 %v7704_v20, 0.0  ;;  %v7247_v57 = vmul.f32 %v9707_v21, %v13259_v11  ;;  %v7119_v14 = vpop.f32.mrb[41].mxu1  ;;  %v7674_v20 = vadd.f32 %v13253_v16, %v7631_v37 }
 0x67e   : > { %7773 = vst [vmem:[%s13285_s29 + $0x80] sm:$0xff] %v7737_v55  ;;  %v7738_v18 = vmax.f32 %v7702_v24, 0.0  ;;  %v7245_v38 = vmul.f32 %v13259_v11, %v7119_v14  ;;  %v9708_v62 = vpop.f32.mrb[42].mxu1  ;;  %v7634_v24 = vmul.f32 %v13247_v2, %v13230_v1 }
 0x67f   : > { %7776 = vst [vmem:[%s13285_s29 + $0x98] sm:$0xff] %v7740_v29  ;;  %v7290_v60 = vadd.f32 %v13265_v54, %v7247_v57  ;;  %v7248_v50 = vmul.f32 %v9708_v62, %v13259_v11  ;;  %v7122_v13 = vpop.f32.mrb[43].mxu1 }
 0x680   : > { %7774 = vst [vmem:[%s13285_s29 + $0x88] sm:$0xff] %v7738_v18  ;;  %v7288_v19 = vadd.f32 %v13265_v54, %v7245_v38  ;;  %v7246_v43 = vmul.f32 %v13259_v11, %v7122_v13  ;;  %v7677_v1 = vadd.f32 %v13253_v16, %v7634_v24 }
 0x681   : > { %v7707_v58 = vadd.f32 %v7671_v45, %v7290_v60  ;;  %v7291_v34 = vadd.f32 %v13265_v54, %v7248_v50  ;;  %v7635_v60 = vmul.f32 %v13247_v2, %v13234_v61  ;;  %v7640_v61 = vmul.f32 %v13236_v0, %v13247_v2 }
 0x682   : > { %v7705_v3 = vadd.f32 %v7669_v48, %v7288_v19  ;;  %v7289_v4 = vadd.f32 %v13265_v54, %v7246_v43  ;;  %v7637_v48 = vmul.f32 %v13232_v40, %v13247_v2 }
 0x683   : > { %v7743_v23 = vmax.f32 %v7707_v58, 0.0  ;;  %v7708_v41 = vadd.f32 %v7672_v5, %v7291_v34  ;;  %v7683_v0 = vadd.f32 %v13253_v16, %v7640_v61 }
 0x684   : > { %v7741_v42 = vmax.f32 %v7705_v3, 0.0  ;;  %v7706_v51 = vadd.f32 %v7670_v9, %v7289_v4  ;;  %v9711_v44 = vpop.f32.mrb[44].mxu1  ;;  %v7680_v34 = vadd.f32 %v13253_v16, %v7637_v48  ;;  %v7678_v9 = vadd.f32 %v13253_v16, %v7635_v60 }
 0x685   : > { %7779 = vst [vmem:[%s13285_s29 + $0xb0] sm:$0xff] %v7743_v23  ;;  %v7744_v31 = vmax.f32 %v7708_v41, 0.0  ;;  %v7251_v63 = vmul.f32 %v9711_v44, %v13259_v11  ;;  %v7135_v59 = vpop.f32.mrb[45].mxu1 }
 0x686   : > { %7777 = vst [vmem:[%s13285_s29 + $0xa0] sm:$0xff] %v7741_v42  ;;  %v7742_v27 = vmax.f32 %v7706_v51, 0.0  ;;  %v7249_v7 = vmul.f32 %v13259_v11, %v7135_v59  ;;  %v9712_v25 = vpop.f32.mrb[46].mxu1  ;;  %v7681_v59 = vadd.f32 %v13253_v16, %v7638_v22 }
 0x687   : > { %7780 = vst [vmem:[%s13285_s29 + $0xb8] sm:$0xff] %v7744_v31  ;;  %v7294_v52 = vadd.f32 %v13265_v54, %v7251_v63  ;;  %v7252_v6 = vmul.f32 %v9712_v25, %v13259_v11  ;;  %v7138_v33 = vpop.f32.mrb[47].mxu1  ;;  %v7641_v63 = vmul.f32 %v13240_v53, %v13247_v2 }
 0x688   : > { %7778 = vst [vmem:[%s13285_s29 + $0xa8] sm:$0xff] %v7742_v27  ;;  %v7292_v36 = vadd.f32 %v13265_v54, %v7249_v7  ;;  %v7250_v26 = vmul.f32 %v13259_v11, %v7138_v33 }
 0x689   : > { %v7711_v30 = vadd.f32 %v7675_v56, %v7294_v52  ;;  %v7295_v39 = vadd.f32 %v13265_v54, %v7252_v6 }
 0x68a   : > { %v7709_v32 = vadd.f32 %v7673_v12, %v7292_v36  ;;  %v7293_v55 = vadd.f32 %v13265_v54, %v7250_v26  ;;  %v7639_v12 = vmul.f32 %v13247_v2, %v13242_v47  ;;  %v7684_v36 = vadd.f32 %v13253_v16, %v7641_v63 }
 0x68b   : > { %v7747_v21 = vmax.f32 %v7711_v30, 0.0  ;;  %v7712_v29 = vadd.f32 %v7676_v15, %v7295_v39 }
 0x68c   : > { %v7745_v45 = vmax.f32 %v7709_v32, 0.0  ;;  %v7710_v57 = vadd.f32 %v7674_v20, %v7293_v55  ;;  %v9715_v28 = vpop.f32.mrb[48].mxu1  ;;  %v7682_v26 = vadd.f32 %v13253_v16, %v7639_v12 }
 0x68d   : > { %7783 = vst [vmem:[%s13285_s29 + $0xd0] sm:$0xff] %v7747_v21  ;;  %v7748_v14 = vmax.f32 %v7712_v29, 0.0  ;;  %v7255_v18 = vmul.f32 %v9715_v28, %v13259_v11  ;;  %v7151_v38 = vpop.f32.mrb[49].mxu1 }
 0x68e   : > { %7781 = vst [vmem:[%s13285_s29 + $0xc0] sm:$0xff] %v7745_v45  ;;  %v7746_v49 = vmax.f32 %v7710_v57, 0.0  ;;  %v7253_v62 = vmul.f32 %v13259_v11, %v7151_v38  ;;  %v9716_v50 = vpop.f32.mrb[50].mxu1 }
 0x68f   : > { %7784 = vst [vmem:[%s13285_s29 + $0xd8] sm:$0xff] %v7748_v14  ;;  %v7298_v13 = vadd.f32 %v13265_v54, %v7255_v18  ;;  %v7256_v19 = vmul.f32 %v9716_v50, %v13259_v11  ;;  %v7154_v43 = vpop.f32.mrb[51].mxu1 }
 0x690   : > { %7782 = vst [vmem:[%s13285_s29 + $0xc8] sm:$0xff] %v7746_v49  ;;  %v7296_v40 = vadd.f32 %v13265_v54, %v7253_v62  ;;  %v7254_v58 = vmul.f32 %v13259_v11, %v7154_v43 }
 0x691   : > { %v7715_v5 = vadd.f32 %v7679_v46, %v7298_v13  ;;  %v7299_v8 = vadd.f32 %v13265_v54, %v7256_v19 }
 0x692   : > { %v7713_v3 = vadd.f32 %v7677_v1, %v7296_v40  ;;  %v7297_v4 = vadd.f32 %v13265_v54, %v7254_v58 }
 0x693   : > { %v7751_v23 = vmax.f32 %v7715_v5, 0.0  ;;  %v7716_v41 = vadd.f32 %v7680_v34, %v7299_v8 }
 0x694   : > { %v7749_v42 = vmax.f32 %v7713_v3, 0.0  ;;  %v7714_v51 = vadd.f32 %v7678_v9, %v7297_v4  ;;  %v9719_v44 = vpop.f32.mrb[52].mxu1 }
 0x695   : > { %7787 = vst [vmem:[%s13285_s29 + $0xf0] sm:$0xff] %v7751_v23  ;;  %v7752_v31 = vmax.f32 %v7716_v41, 0.0  ;;  %v7259_v56 = vmul.f32 %v9719_v44, %v13259_v11  ;;  %v7167_v17 = vpop.f32.mrb[53].mxu1 }
 0x696   : > { %7785 = vst [vmem:[%s13285_s29 + $0xe0] sm:$0xff] %v7749_v42  ;;  %v7750_v10 = vmax.f32 %v7714_v51, 0.0  ;;  %v7257_v27 = vmul.f32 %v13259_v11, %v7167_v17  ;;  %v9720_v7 = vpop.f32.mrb[54].mxu1 }
 0x697   : > { %7788 = vst [vmem:[%s13285_s29 + $0xf8] sm:$0xff] %v7752_v31  ;;  %v7302_v37 = vadd.f32 %v13265_v54, %v7259_v56  ;;  %v7260_v25 = vmul.f32 %v9720_v7, %v13259_v11  ;;  %v7170_v52 = vpop.f32.mrb[55].mxu1 }
 0x698   : > { %7786 = vst [vmem:[%s13285_s29 + $0xe8] sm:$0xff] %v7750_v10  ;;  %v7300_v53 = vadd.f32 %v13265_v54, %v7257_v27  ;;  %v7258_v6 = vmul.f32 %v13259_v11, %v7170_v52 }
 0x699   : > { %v7719_v33 = vadd.f32 %v7683_v0, %v7302_v37  ;;  %v7303_v47 = vadd.f32 %v13265_v54, %v7260_v25 }
 0x69a   : > { %v7717_v2 = vadd.f32 %v7681_v59, %v7300_v53  ;;  %v7301_v30 = vadd.f32 %v13265_v54, %v7258_v6 }
 0x69b   : > { %v7755_v15 = vmax.f32 %v7719_v33, 0.0  ;;  %v7720_v39 = vadd.f32 %v7684_v36, %v7303_v47 }
 0x69c   : > { %v7753_v11 = vmax.f32 %v7717_v2, 0.0  ;;  %v7718_v35 = vadd.f32 %v7682_v26, %v7301_v30 }
 0x69d   : > { %7791 = vst [vmem:[%s13285_s29 + $0x110] sm:$0xff] %v7755_v15  ;;  %v7756_v32 = vmax.f32 %v7720_v39, 0.0 }
 0x69e   : > { %7789 = vst [vmem:[%s13285_s29 + $0x100] sm:$0xff] %v7753_v11  ;;  %v7754_v20 = vmax.f32 %v7718_v35, 0.0 }
 0x69f   : > { %7792 = vst [vmem:[%s13285_s29 + $0x118] sm:$0xff] %v7756_v32 }
 0x6a0   : > { %7790 = vst [vmem:[%s13285_s29 + $0x108] sm:$0xff] %v7754_v20 }
 0x6a1   : > { %10652 = shalt.err (!%p10649_p3)
}
 0x6a2   : > { %s10653_s25 = scalar_lea.hbm %s13481_s18, 4608  ;;  %s10657_s12 = scalar_lea.hbm %s13541_s10, 9216 }
 0x6a3   : > { %p10654_p4 = scmp.ne.s32.totalorder %s13481_s18, %s10653_s25  ;;  %p10658_p9 = scmp.lt.u32.totalorder %s13481_s18, %s13541_s10 }
 0x6a4   : > { %p10659_p10 = scmp.lt.u32.totalorder %s10657_s12, %s10653_s25  ;;  %p10661_p12 = scmp.lt.u32.totalorder %s10653_s25, %s13481_s18 }
 0x6a5   : > { %p10655_p7 = pnand %p10654_p4, %p10801_p5 }
 0x6a6   : > { %p10660_p11 = por %p10659_p10, %p10658_p9 }
 0x6a7   : > { %p10656_p8 = pneg %p10655_p7 }
 0x6a8   : > { %p10662_p13 = por %p10661_p12, %p10660_p11 }
 0x6aa   : > { %p10663_p0 = pnand %p10662_p13, %p10656_p8 }
 0x6ac   : > { %10666 = shalt.err (!%p10663_p0)
}
 0x6ad   : > { %s10706_s20 = smov 128   ;;  %s10707_s27 = smov 8  }
 0x6ae   : > { %10440 = dma.vmem_to_hbm [thread:$0]  (%p10801_p5), %s13484_s11, 4608, %s13481_s18, %s13490_s17, %s10706_s20, %s10706_s20, %s10707_s27  }
 0x6af PF: > { %p10446_p1 = scmp.ge.s32.totalorder %s10701_s16, 2  ;;  %s7822_s28 = sand.u32 1, %s10689_s13  }
 0x6b0   : > { %s7823_s25 = scalar_lea.sflag [#allocation4], %s7822_s28 }
 0x6b1   : > { %p10443_p2 = pnand %p10446_p1, %p10805_p6 }
 0x6b3   : > { %10684 = dma.done.wait (!%p10443_p2), %s7823_s25, 4608  }
 0x6b4   : > { %10686 = vsyncadd (!%p10443_p2), %s7823_s25, 4294962688  ;;  %p20_p3 = scmp.ge.s32.totalorder %s10788_s19, 4   ;;  %s13727_s13 = smov %s10693_s14 }
 0x6b5   : > { %s13728_s14 = smov %s10697_s15  ;;  %s13729_s15 = smov %s10799_s22 }
 0x6b6   : > { %s13730_s16 = smov %s10788_s19  ;;  %22 = sbr.rel (!%p20_p3) target bundleno = 3 (0x3), region = 111 }
 0x6bd   :  { %7828 = vsyncpa [#allocation4], 1 }
 0x6be   :  { %7830 = vsyncpa [#allocation4 + $0x1], 1 }

</bundles_post_ra>
